<compile_context>
chip_gen: v5e
topology: v5e:2x2
jax: 0.10.0
libtpu: 0.0.40
codegen_flags: <defaults>
</compile_context>

<pallas_src>
import jax
import jax.numpy as jnp
from jax.experimental import pallas as pl
from jax.experimental.pallas import tpu as pltpu

_FOLD = 8  # nodes folded per super-row: 8*16 = 128 input lanes, 8*32 = 256 output lanes


# ----------------------------------------------------------------------------
# forward(): exact PyTorch semantics — pure pass-through of pos_features.
# ----------------------------------------------------------------------------
def node_feature_extractor_forward(pos_features, im_patches=None, splitter=None, n_node=None):
    return pos_features


# ----------------------------------------------------------------------------
# pos_encoder = Linear(pos_feat_dim -> pos_feat_hidden) ; Sigmoid
# ----------------------------------------------------------------------------
def prepare_pos_encoder_params(weight, bias, fold=_FOLD, matmul_dtype=jnp.bfloat16):
    """One-time parameter prep (NOT in the per-call hot path).

    weight: torch layout [d_hid, d_in]; bias: [d_hid].
    Returns a dict with:
      w_t     [d_in, d_hid]           f32          (small-n XLA bypass)
      b       [d_hid]                 f32
      w_bd    [fold*d_in, fold*d_hid] matmul_dtype (block-diagonal, lane-dense)
      b_tiled [1, fold*d_hid]         f32
    """
    w_t = weight.T.astype(jnp.float32)                        # transposed once
    w_bd = jax.scipy.linalg.block_diag(*([w_t] * fold)).astype(matmul_dtype)
    b = bias.astype(jnp.float32)
    b_tiled = jnp.tile(b, fold).reshape(1, -1)
    return dict(w_t=w_t, b=b, w_bd=w_bd, b_tiled=b_tiled, fold=fold)


def _pos_encoder_kernel(x_ref, w_ref, b_ref, o_ref):
    # x: [br, 128] bf16 (8 folded nodes/row), w: [128, 256] block-diag bf16,
    # b: [1, 256] f32.  MXU matmul with f32 accumulation, then VPU bias add and
    # EUP sigmoid in f32; all loads/stores are lane-dense (128/256 lanes).
    y = jnp.dot(x_ref[...], w_ref[...], preferred_element_type=jnp.float32)
    y = y + b_ref[...]
    o_ref[...] = jax.nn.sigmoid(y).astype(o_ref.dtype)


def pos_encoder_forward(pos_features, params, *, block_rows=2048,
                        small_n_threshold=8192, out_dtype=None):
    """Batched Linear+Sigmoid over all nodes (M tiled, 'parallel' grid)."""
    n, d_in = pos_features.shape
    fold = params["fold"]
    w_bd, b_tiled = params["w_bd"], params["b_tiled"]
    d_hid = w_bd.shape[1] // fold
    out_dtype = out_dtype or pos_features.dtype

    # Small-n bypass: at small node counts kernel launch + pipeline priming
    # dominates; XLA's fused matmul+sigmoid wins.
    if n < small_n_threshold:
        y = jax.nn.sigmoid(pos_features.astype(jnp.float32) @ params["w_t"] + params["b"])
        return y.astype(out_dtype)

    # Pad only up to the fold (8 rows), never to a full tile; the ragged last
    # M block is handled by the cdiv grid (rows are independent).
    pad = (-n) % fold
    x = jnp.pad(pos_features, ((0, pad), (0, 0))) if pad else pos_features
    mf = x.shape[0] // fold

    # Free (contiguity-preserving) reshape: 8 consecutive nodes -> 128 lanes.
    # Matmul operands go to bf16 (halved HBM read stream, native MXU dtype);
    # accumulation / bias / sigmoid stay f32 (v5e has no bf16 VPU/EUP).
    x_wide = x.reshape(mf, fold * d_in).astype(w_bd.dtype)

    # Big M tiles for the HBM roofline, but at least 2 grid steps so both v7x
    # TensorCores get work under dimension_semantics=("parallel",).
    br = min(block_rows, pl.cdiv(mf, 2))
    br = max(8, (br // 8) * 8)
    grid = (pl.cdiv(mf, br),)

    out_wide = pl.pallas_call(
        _pos_encoder_kernel,
        out_shape=jax.ShapeDtypeStruct((mf, fold * d_hid), out_dtype),
        grid=grid,
        in_specs=[
            # TODO(synk): add pipeline_mode=pl.Buffered(3) here only if xprof
            # still shows the x DMA exposed after the big-tile change.
            pl.BlockSpec((br, fold * d_in), lambda i: (i, 0)),
            pl.BlockSpec((fold * d_in, fold * d_hid), lambda i: (0, 0)),  # resident
            pl.BlockSpec((1, fold * d_hid), lambda i: (0, 0)),            # resident
        ],
        out_specs=pl.BlockSpec((br, fold * d_hid), lambda i: (i, 0)),
        compiler_params=pltpu.CompilerParams(dimension_semantics=("parallel",)),
    )(x_wide, w_bd, b_tiled)

    # Free reshape back: [mf, fold*d_hid] -> [mf*fold, d_hid]; drop fold padding.
    out = out_wide.reshape(mf * fold, d_hid)
    return out[:n] if pad else out


if __name__ == "__main__":
    key = jax.random.PRNGKey(0)
    k_pos, k_pos2, k_im, k_w, k_b = jax.random.split(key, 5)

    pos_feat_dim = 16
    pos_feat_hidden = 32

    w = jax.random.normal(k_w, (pos_feat_hidden, pos_feat_dim), dtype=jnp.float32) * 0.1
    b = jax.random.normal(k_b, (pos_feat_hidden,), dtype=jnp.float32) * 0.1
    params = prepare_pos_encoder_params(w, b)  # once, outside the per-call path

    # --- forward(): identity pass-through, exact PyTorch semantics. ---
    n_small = 1024
    pos_small = jax.random.normal(k_pos, (n_small, pos_feat_dim), dtype=jnp.float32)
    im_patches = jax.random.normal(k_im, (2, 1, 16, 16), dtype=jnp.float32)
    splitter = jnp.stack(
        [jnp.zeros((n_small,), jnp.int32), jnp.ones((n_small,), jnp.int32)], axis=1)
    out_fwd = jax.block_until_ready(
        node_feature_extractor_forward(pos_small, im_patches, splitter, n_small))
    assert out_fwd.shape == pos_small.shape and out_fwd.dtype == pos_small.dtype
    assert bool(jnp.array_equal(out_fwd, pos_small))

    # --- pos_encoder: small-n bypass (pure XLA path, no kernel launch). ---
    enc_small = jax.block_until_ready(pos_encoder_forward(pos_small, params))
    ref_small = jax.nn.sigmoid(pos_small @ w.T + b)
    assert enc_small.shape == (n_small, pos_feat_hidden)
    assert bool(jnp.allclose(enc_small, ref_small, atol=1e-5, rtol=1e-5))

    # --- pos_encoder: Pallas kernel path (large M; ragged n exercises the
    #     fold padding and the cdiv ragged last block). ---
    n_big = 16391  # not a multiple of 8 nor of the tile size
    pos_big = jax.random.normal(k_pos2, (n_big, pos_feat_dim), dtype=jnp.float32)
    enc_big = jax.block_until_ready(pos_encoder_forward(pos_big, params))
    ref_big = jax.nn.sigmoid(pos_big @ w.T + b)
    assert enc_big.shape == (n_big, pos_feat_hidden)
    # bf16 matmul operands with f32 accumulation -> loosened tolerance vs f32 ref.
    assert bool(jnp.allclose(enc_big, ref_big, atol=2e-2, rtol=2e-2))

    print("KERNEL_OK")
</pallas_src>

<mosaic_0001>
module attributes {stable_mosaic.version = 11 : i64} {
  func.func @_pos_encoder_kernel(%arg0: i32, %arg1: memref<1024x128xbf16, #tpu.memory_space<vmem>>, %arg2: memref<128x256xbf16, #tpu.memory_space<vmem>>, %arg3: memref<1x256xf32, #tpu.memory_space<vmem>>, %arg4: memref<1024x256xf32, #tpu.memory_space<vmem>>) attributes {dimension_semantics = [#tpu.dimension_semantics<parallel>], iteration_bounds = array<i64: 3>, scalar_prefetch = 0 : i64, scratch_operands = 0 : i64, tpu.core_type = #tpu.core_type<tc>, window_params = [{transform_indices = @transform_0, window_bounds = array<i64: 1024, 128>}, {pipeline_mode = #tpu.pipeline_mode<synchronous>, transform_indices = @transform_1, window_bounds = array<i64: 128, 256>}, {pipeline_mode = #tpu.pipeline_mode<synchronous>, transform_indices = @transform_2, window_bounds = array<i64: 1, 256>}, {transform_indices = @transform_3, window_bounds = array<i64: 1024, 256>}]} {
    %c0 = arith.constant 0 : index
    %c0_0 = arith.constant 0 : index
    %0 = vector.load %arg1[%c0, %c0_0] : memref<1024x128xbf16, #tpu.memory_space<vmem>>, vector<1024x128xbf16>
    %c0_1 = arith.constant 0 : index
    %c0_2 = arith.constant 0 : index
    %1 = vector.load %arg2[%c0_1, %c0_2] : memref<128x256xbf16, #tpu.memory_space<vmem>>, vector<128x256xbf16>
    %cst = arith.constant dense<0.000000e+00> : vector<1024x256xf32>
    %2 = tpu.matmul %0, %1, %cst {dimension_numbers = #tpu.dot_dimension_numbers<[1], [0], [0], [1], [0, 0, 1, 1], [], []>} : vector<1024x128xbf16>, vector<128x256xbf16>, vector<1024x256xf32> -> vector<1024x256xf32>
    %c0_3 = arith.constant 0 : index
    %c0_4 = arith.constant 0 : index
    %3 = vector.load %arg3[%c0_3, %c0_4] : memref<1x256xf32, #tpu.memory_space<vmem>>, vector<1x256xf32>
    %4 = vector.broadcast %3 : vector<1x256xf32> to vector<1024x256xf32>
    %5 = arith.addf %2, %4 : vector<1024x256xf32>
    %6 = arith.negf %5 : vector<1024x256xf32>
    %7 = math.exp %6 : vector<1024x256xf32>
    %cst_5 = arith.constant 1.000000e+00 : f32
    %8 = vector.broadcast %cst_5 : f32 to vector<1024x256xf32>
    %9 = arith.addf %8, %7 : vector<1024x256xf32>
    %10 = arith.divf %8, %9 : vector<1024x256xf32>
    %c0_6 = arith.constant 0 : index
    %c0_7 = arith.constant 0 : index
    %11 = vector.load %arg4[%c0_6, %c0_7] : memref<1024x256xf32, #tpu.memory_space<vmem>>, vector<1024x256xf32>
    tpu.vector_store %arg4[%c0_6, %c0_7], %10 {strides = array<i32>} : memref<1024x256xf32, #tpu.memory_space<vmem>>, vector<1024x256xf32>,
    return
  }
  func.func @transform_0(%arg0: i32) -> (i32, i32) {
    %c0_i32 = arith.constant 0 : i32
    %c0_i32_0 = arith.constant 0 : i32
    return %arg0, %c0_i32 : i32, i32
  }
  func.func @transform_1(%arg0: i32) -> (i32, i32) {
    %c0_i32 = arith.constant 0 : i32
    %c0_i32_0 = arith.constant 0 : i32
    %c0_i32_1 = arith.constant 0 : i32
    return %c0_i32, %c0_i32_0 : i32, i32
  }
  func.func @transform_2(%arg0: i32) -> (i32, i32) {
    %c0_i32 = arith.constant 0 : i32
    %c0_i32_0 = arith.constant 0 : i32
    %c0_i32_1 = arith.constant 0 : i32
    return %c0_i32, %c0_i32_0 : i32, i32
  }
  func.func @transform_3(%arg0: i32) -> (i32, i32) {
    %c0_i32 = arith.constant 0 : i32
    %c0_i32_0 = arith.constant 0 : i32
    return %arg0, %c0_i32 : i32, i32
  }
}

</mosaic_0001>

<bundles_post_ra>
// kernel: tpu_custom_call.1
= control target key start
LH: loop header
LB: loop body
LE: loop exit
PB: predicated region body
PF: predicated region fallthrough
CT: control target
= control target key end

     0   :  { %8 = vsyncpa [#allocation3], 0  ;;  %s13537_s0 = inlined_call_operand.hbm [shape: bf16[2049,128], index: 0, kind: input, shape index: {}]   ;;  %s13538_s1 = inlined_call_operand.hbm [shape: bf16[128,256], index: 1, kind: input, shape index: {}]   ;;  %s13539_s2 = inlined_call_operand.hbm [shape: f32[1,256], index: 2, kind: input, shape index: {}]   ;;  %s13540_s3 = inlined_call_operand.hbm [shape: f32[2049,256], index: 3, kind: output, shape index: {}]  }
   0x1   :  { %10 = vsyncpa [#allocation3 + $0x1], 0 }
   0x2   :  { %11 = vsyncpa [#allocation6], 0 }
   0x3   :  { %12 = vsyncpa [#allocation4], 0 }
   0x4   :  { %14 = vsyncpa [#allocation4 + $0x1], 0  ;;  %s8755_s12 = smov 0   ;;  %s8757_s13 = smov 0  }
   0x5   :  { %s8759_s14 = smov 0   ;;  %s8761_s15 = smov 0  }
   0x6 LB: > { %s8776_s16 = sadd.s32 4294967295, %s8723_s15   ;;  %s6749_s17 = sadd.s32 4294967294, %s8723_s15   ;;  %s8723_s15 = sphi %s8761_s15, %s13979_s15   ;;  %s8719_s14 = sphi %s8759_s14, %s13978_s14   ;;  %s8715_s13 = sphi %s8757_s13, %s13977_s13   ;;  %s8711_s12 = sphi %s8755_s12, %s13976_s12  }
   0x7   : > { %s8780_s18 = sadd.s32 1, %s8723_s15   ;;  %s27_s19 = sadd.s32 1, %s8719_s14 }
   0x8   : > { %s24_s20 = ssub.s32 %s8723_s15, %s8780_s18  ;;  %p34_p0 = scmp.ne.s32.totalorder %s8719_s14, %s8715_s13 }
   0x9   : > { %p25_p1 = scmp.eq.s32.totalorder %s24_s20, 0  ;;  %p35_p2 = scmp.eq.s32.totalorder %s8723_s15, 0 }
   0xa   : > { %p40_p3 = scmp.ne.s32.totalorder %s8715_s13, %s8711_s12  ;;  %p13541_p4 = scmp.eq.s32.totalorder %s8776_s16, 0 }
   0xb   : > { %s8792_s21 = scalar_select %p25_p1, %s8719_s14, %s27_s19  }
   0xc   : > { %p8794_p5 = por %p35_p2, %p34_p0  ;;  %p8800_p6 = por %p13541_p4, %p40_p3 }
   0xd   : > { %p106_p7 = scmp.eq.s32.totalorder %s8776_s16, 2  ;;  %p112_p8 = scmp.eq.s32.totalorder %s6749_s17, 2 }
   0xe   : > { %p6750_p9 = scmp.ge.s32.totalorder %s8723_s15, 1  ;;  %p119_p10 = scmp.lt.s32.totalorder %s8723_s15, 4 }
   0xf   : > { %p8807_p11 = por %p106_p7, %p34_p0  ;;  %p8811_p12 = por %p112_p8, %p40_p3 }
  0x10   : > { %p8815_p13 = pnand %p6750_p9, %p119_p10  ;;  %s130_s29 = sshll.u32 %s13538_s1, 4  ;;  %s131_s29 = int_to_ptr.hbm [resolvable:$true] %s130_s29 }
  0x11   : > { %s13545_s25 = scalar_select %p8811_p12, 1, 0 }
  0x12   : > { %p7463_p1 = pneg %p8815_p13  ;;  %s8725_s30 = smov [#allocation5]  }
  0x13   : > { %s132_s4 = sshll.u32 %s8725_s30, 4  ;;  %s145_s7 = sshll.u32 %s13539_s2, 4  ;;  %s133_s4 = int_to_ptr.vmem [resolvable:$true] %s132_s4  ;;  %s146_s7 = int_to_ptr.hbm [resolvable:$true] %s145_s7 }
  0x14   : > { %p7464_p0 = pnand %p7463_p1, %p13541_p4  ;;  %s8726_s8 = smov 128  }
  0x15   : > { %s8727_s9 = smov 8   ;;  %s8728_s10 = smov [#allocation7]  }
  0x16   : > { %7466 = dma.hbm_to_vmem [thread:$0]  (!%p7464_p0), %s131_s29, 2048, %s133_s4, [#allocation6], %s8726_s8, %s8726_s8, %s8727_s9  }
  0x17   : > { %s147_s11 = sshll.u32 %s8728_s10, 4  ;;  %p6753_p2 = scmp.ge.s32.totalorder %s8723_s15, 3  ;;  %s148_s11 = int_to_ptr.vmem [resolvable:$true] %s147_s11 }
  0x18   : > { %7469 = dma.hbm_to_vmem [thread:$0]  (!%p7464_p0), %s146_s7, 32, %s148_s11, [#allocation6]  }
  0x19   : > { %154 = sbr.rel (%p6753_p2) target bundleno = 66 (0x42), region = 24 }
  0x1e   : > { %157 = sbr.rel (!%p8794_p5) target bundleno = 66 (0x42), region = 28  ;;  %s158_s17 = sand.u32 (%p8794_p5), 1, %s8719_s14  }
  0x1f   : > { %s6755_s19 = sshll.u32 (%p8794_p5), %s8723_s15, 7  ;;  %s6754_s20 = sshll.u32 (%p8794_p5), %s158_s17, 9 }
  0x20   : > { %s164_s27 = ssub.s32 (%p8794_p5), 257, %s6755_s19  ;;  %s8837_s4 = scalar_lea.sflag (%p8794_p5), [#allocation3], %s158_s17 }
  0x21   : > { %p165_p3 = scmp.lt.s32.totalorder (%p8794_p5), %s164_s27, 128  ;;  %s162_s5 = scalar_lea.vmem (%p8794_p5), [#allocation2], %s6754_s20 }
  0x23   : > { %s13981_s27 = smov (!%p165_p3, %s164_s27), 128 }
  0x24   : > { %s6756_s28 = sshll.u32 %s13981_s27, 2 }
  0x25   : > { %s168_s29 = ssub.s32 512, %s6756_s28 }
  0x26   : > { %s169_s30 = sshll.u32 %s168_s29, 4 }
  0x27   : > { %170 = vsyncadd %s8837_s4, %s169_s30  ;;  %p8840_p5 = scmp.ne.s32.totalorder %s6756_s28, 0  ;;  %s7353_s6 = sshll.u32 %s8723_s15, 9 }
  0x28   : > { %s173_s9 = scalar_lea.hbm %s13537_s0, %s7353_s6  ;;  %s8848_s10 = sshll.u32 %s162_s5, 4  ;;  %s178_s10 = int_to_ptr.vmem [resolvable:$true] %s8848_s10 }
  0x29   : > { %s175_s11 = sshll.u32 %s173_s9, 4  ;;  %s6760_s17 = sshll.u32 %s13981_s27, 6  ;;  %s8851_s11 = int_to_ptr.hbm [resolvable:$true] %s175_s11 }
  0x2a   : > { %s8603_s19 = sshra.s32 %s8851_s11, 4  ;;  %s8605_s20 = sshrl.u32 %s6760_s17, 4  ;;  %s8604_s19 = int_to_ptr.hbm [resolvable:$true] %s8603_s19 }
  0x2b   : > { %s8610_s28 = scalar_lea.hbm %s8604_s19, %s8605_s20  ;;  %s8614_s5 = scalar_lea.hbm %s13537_s0, 1028 }
  0x2c   : > { %p8611_p7 = scmp.ne.s32.totalorder %s8604_s19, %s8610_s28  ;;  %p8615_p10 = scmp.lt.s32.totalorder %s8604_s19, %s13537_s0 }
  0x2d   : > { %p8616_p1 = scmp.lt.s32.totalorder %s8614_s5, %s8610_s28 }
  0x2e   : > { %p8612_p8 = pnand %p8611_p7, %p8840_p5 }
  0x2f   : > { %p8617_p0 = por %p8616_p1, %p8615_p10 }
  0x30   : > { %p8613_p9 = pneg %p8612_p8 }
  0x32   : > { %p8618_p2 = pnand %p8617_p0, %p8613_p9 }
  0x34   : > { %8621 = shalt.err (!%p8618_p2)
}
  0x35   : > { %s8622_s8 = sshra.s32 %s178_s10, 4  ;;  %s8729_s29 = smov [#allocation2]   ;;  %s8623_s8 = int_to_ptr.vmem [resolvable:$true] %s8622_s8 }
  0x36   : > { %s8629_s9 = scalar_lea.vmem %s8623_s8, %s8605_s20  ;;  %s8633_s30 = scalar_lea.vmem %s8729_s29, 1024 }
  0x37   : > { %p8630_p3 = scmp.ne.s32.totalorder %s8623_s8, %s8629_s9  ;;  %p8635_p4 = scmp.lt.s32.totalorder %s8633_s30, %s8629_s9 }
  0x39   : > { %p8631_p7 = pnand %p8630_p3, %p8840_p5 }
  0x3b   : > { %p8632_p8 = pneg %p8631_p7 }
  0x3d   : > { %p8637_p12 = pnand %p8635_p4, %p8632_p8 }
  0x3f   : > { %8640 = shalt.err (!%p8637_p12)
}
  0x40   : > { %s8730_s19 = smov 64   ;;  %s8731_s28 = smov 4  }
  0x41   : > { %183 = dma.hbm_to_vmem [thread:$0]  (%p8840_p5), %s8851_s11, %s6760_s17, %s178_s10, %s8837_s4, %s8730_s19, %s8730_s19, %s8731_s28  }
  0x42 PF: > { %189 = sbr.rel (%p8815_p13) target bundleno = 1371 (0x55b), region = 32  ;;  %s8880_s20 = sand.u32 (!%p8815_p13), 1, %s8715_s13  }
  0x43   : > { %s6762_s5 = sshll.u32 (!%p8815_p13), %s8880_s20, 9  ;;  %s192_s6 = scalar_lea.sflag (!%p8815_p13), [#allocation3], %s8880_s20 }
  0x44   : > { %s8884_s7 = scalar_lea.vmem (!%p8815_p13), [#allocation2], %s6762_s5 }
  0x47   : > { %8698 = dma.done.wait (%p8800_p6), %s192_s6, 8192  }
  0x48   : > { %8700 = vsyncadd (%p8800_p6), %s192_s6, 4294959104  ;;  %p13548_p4 = scmp.eq.s32.totalorder %s8776_s16, 0 }
  0x4a   : > { %8702 = dma.done.wait (%p13548_p4), [#allocation6], 2080   ;;  %p13549_p12 = pmov %p13548_p4 }
  0x4b   : > { %v7080_v0 = vld [vmem:[#allocation5 + $0x70] sm:$0xf]  ;;  %v7433_v1 = vld [vmem:[#allocation5 + $0x74] sm:$0xf0]  ;;  %v7432_v2 = vld [vmem:[#allocation5 + $0x74] sm:$0xf] }
  0x4c   : > { %8704 = vsyncadd (%p13549_p12), [#allocation6], 4294965216  ;;  %v7081_v3 = vor.u32 %v7433_v1, %v7080_v0  ;;  %v7082_v4 = vld [vmem:[#allocation5 + $0x78] sm:$0xf0]  ;;  %v7072_v5 = vld [vmem:[#allocation5 + $0x60] sm:$0xf] }
  0x4d   : > { %v7431_v6 = vld [vmem:[#allocation5 + $0x64] sm:$0xf0]  ;;  %v7085_v7 = vor.u32 %v7432_v2, %v7082_v4  ;;  %v7430_v8 = vld [vmem:[#allocation5 + $0x64] sm:$0xf]  ;;  %v7074_v9 = vld [vmem:[#allocation5 + $0x68] sm:$0xf0] }
  0x4e   : > { %854 = vmatpush.bf16.msra.mxu0 %v7081_v3  ;;  %7437 = vmatpush.bf16.msra.mxu2 %v7081_v3  ;;  %v7073_v10 = vor.u32 %v7431_v6, %v7072_v5  ;;  %v7077_v11 = vor.u32 %v7430_v8, %v7074_v9  ;;  %v7064_v12 = vld [vmem:[#allocation5 + $0x50] sm:$0xf]  ;;  %v7429_v13 = vld [vmem:[#allocation5 + $0x54] sm:$0xf0]  ;;  %v7428_v14 = vld [vmem:[#allocation5 + $0x54] sm:$0xf] }
  0x4f   : > { %1183 = vmatpush.bf16.msra.mxu1 %v7085_v7  ;;  %7445 = vmatpush.bf16.msra.mxu3 %v7085_v7  ;;  %v7066_v15 = vld [vmem:[#allocation5 + $0x58] sm:$0xf0]  ;;  %v7065_v16 = vor.u32 %v7429_v13, %v7064_v12  ;;  %v7056_v18 = vld [vmem:[#allocation5 + $0x40] sm:$0xf]  ;;  %v7427_v19 = vld [vmem:[#allocation5 + $0x44] sm:$0xf0] }
  0x50   : > { %v7069_v17 = vor.u32 %v7428_v14, %v7066_v15  ;;  %v7426_v20 = vld [vmem:[#allocation5 + $0x44] sm:$0xf]  ;;  %v7058_v21 = vld [vmem:[#allocation5 + $0x48] sm:$0xf0]  ;;  %v7057_v22 = vor.u32 %v7427_v19, %v7056_v18  ;;  %v7048_v24 = vld [vmem:[#allocation5 + $0x30] sm:$0xf] }
  0x51   : > { %v7061_v23 = vor.u32 %v7426_v20, %v7058_v21  ;;  %v7425_v25 = vld [vmem:[#allocation5 + $0x34] sm:$0xf0]  ;;  %v7424_v26 = vld [vmem:[#allocation5 + $0x34] sm:$0xf]  ;;  %v7050_v27 = vld [vmem:[#allocation5 + $0x38] sm:$0xf0] }
  0x52   : > { %855 = vmatpush.bf16.msra.mxu0 %v7073_v10  ;;  %7438 = vmatpush.bf16.msra.mxu2 %v7073_v10  ;;  %v7049_v28 = vor.u32 %v7425_v25, %v7048_v24  ;;  %v7053_v29 = vor.u32 %v7424_v26, %v7050_v27  ;;  %v7040_v30 = vld [vmem:[#allocation5 + $0x20] sm:$0xf]  ;;  %v7423_v31 = vld [vmem:[#allocation5 + $0x24] sm:$0xf0]  ;;  %v7422_v32 = vld [vmem:[#allocation5 + $0x24] sm:$0xf] }
  0x53   : > { %1184 = vmatpush.bf16.msra.mxu1 %v7077_v11  ;;  %7446 = vmatpush.bf16.msra.mxu3 %v7077_v11  ;;  %v7042_v33 = vld [vmem:[#allocation5 + $0x28] sm:$0xf0]  ;;  %v7041_v34 = vor.u32 %v7423_v31, %v7040_v30  ;;  %v7032_v36 = vld [vmem:[#allocation5 + $0x10] sm:$0xf]  ;;  %v7421_v37 = vld [vmem:[#allocation5 + $0x14] sm:$0xf0] }
  0x54   : > { %v7045_v35 = vor.u32 %v7422_v32, %v7042_v33  ;;  %v7420_v38 = vld [vmem:[#allocation5 + $0x14] sm:$0xf]  ;;  %v7034_v39 = vld [vmem:[#allocation5 + $0x18] sm:$0xf0]  ;;  %v7033_v40 = vor.u32 %v7421_v37, %v7032_v36  ;;  %v7024_v42 = vld [vmem:[#allocation5] sm:$0xf] }
  0x55   : > { %v7037_v41 = vor.u32 %v7420_v38, %v7034_v39  ;;  %v7419_v43 = vld [vmem:[#allocation5 + $0x4] sm:$0xf0]  ;;  %v7418_v44 = vld [vmem:[#allocation5 + $0x4] sm:$0xf]  ;;  %v7026_v45 = vld [vmem:[#allocation5 + $0x8] sm:$0xf0] }
  0x56   : > { %856 = vmatpush.bf16.msra.mxu0 %v7065_v16  ;;  %7439 = vmatpush.bf16.msra.mxu2 %v7065_v16  ;;  %v7025_v46 = vor.u32 %v7419_v43, %v7024_v42  ;;  %v7029_v47 = vor.u32 %v7418_v44, %v7026_v45  ;;  %v7354_v48 = vld [vmem:[%s8884_s7] sm:$0xff]  ;;  %v7355_v50 = vld [vmem:[%s8884_s7 + $0x8] sm:$0xff]  ;;  %v7356_v52 = vld [vmem:[%s8884_s7 + $0x10] sm:$0xff]  ;;  %s6765_s23 = sshll.u32 %s8880_s20, 11  ;;  %s6633_s27 = scalar_lea.sflag [#allocation4], %s8880_s20 }
  0x57   : > { %1185 = vmatpush.bf16.msra.mxu1 %v7069_v17  ;;  %7447 = vmatpush.bf16.msra.mxu3 %v7069_v17  ;;  %v7386_v49 = vld [vmem:[%s8884_s7 + $0x100] sm:$0xff]  ;;  %v7387_v51 = vld [vmem:[%s8884_s7 + $0x108] sm:$0xff]  ;;  %v7388_v53 = vld [vmem:[%s8884_s7 + $0x110] sm:$0xff]  ;;  %s8994_s26 = scalar_lea.vmem [#allocation8], %s6765_s23  ;;  %s7343_s4 = sshll.u32 (%p8807_p11), %s8776_s16, 7 }
  0x58   : > { %v7357_v54 = vld [vmem:[%s8884_s7 + $0x18] sm:$0xff]  ;;  %v7358_v56 = vld [vmem:[%s8884_s7 + $0x20] sm:$0xff]  ;;  %v7359_v58 = vld [vmem:[%s8884_s7 + $0x28] sm:$0xff]  ;;  %s6641_s22 = ssub.s32 (%p8807_p11), 257, %s7343_s4 }
  0x59   : > { %v7389_v55 = vld [vmem:[%s8884_s7 + $0x118] sm:$0xff]  ;;  %v7390_v57 = vld [vmem:[%s8884_s7 + $0x120] sm:$0xff]  ;;  %v7391_v59 = vld [vmem:[%s8884_s7 + $0x128] sm:$0xff]  ;;  %p6642_p6 = scmp.lt.s32.totalorder (%p8807_p11), %s6641_s22, 128 }
  0x5a   : > { %857 = vmatpush.bf16.msra.mxu0 %v7057_v22  ;;  %7440 = vmatpush.bf16.msra.mxu2 %v7057_v22  ;;  %v7360_v60 = vld [vmem:[%s8884_s7 + $0x30] sm:$0xff]  ;;  %v7361_v62 = vld [vmem:[%s8884_s7 + $0x38] sm:$0xff]  ;;  %v384_v0 = vld [vmem:[#allocation7] sm:$0x3] }
  0x5b   : > { %1186 = vmatpush.bf16.msra.mxu1 %v7061_v23  ;;  %7448 = vmatpush.bf16.msra.mxu3 %v7061_v23  ;;  %v7392_v61 = vld [vmem:[%s8884_s7 + $0x130] sm:$0xff]  ;;  %v7393_v63 = vld [vmem:[%s8884_s7 + $0x138] sm:$0xff]  ;;  %v8910_v1 = vperm.slane %v384_v0, 0  ;;  %v8912_v2 = vperm.slane %v384_v0, 1  ;;  %v7362_v3 = vld [vmem:[%s8884_s7 + $0x40] sm:$0xff] }
  0x5c   : > { %v7394_v4 = vld [vmem:[%s8884_s7 + $0x140] sm:$0xff]  ;;  %v7395_v30 = vld [vmem:[%s8884_s7 + $0x148] sm:$0xff] }
  0x5e   : > { %858 = vmatpush.bf16.msra.mxu0 %v7049_v28  ;;  %7441 = vmatpush.bf16.msra.mxu2 %v7049_v28 }
  0x5f   : > { %1187 = vmatpush.bf16.msra.mxu1 %v7053_v29  ;;  %7449 = vmatpush.bf16.msra.mxu3 %v7053_v29  ;;  %v7363_v29 = vld [vmem:[%s8884_s7 + $0x48] sm:$0xff] }
  0x62   : > { %859 = vmatpush.bf16.msra.mxu0 %v7041_v34  ;;  %7442 = vmatpush.bf16.msra.mxu2 %v7041_v34 }
  0x63   : > { %1188 = vmatpush.bf16.msra.mxu1 %v7045_v35  ;;  %7450 = vmatpush.bf16.msra.mxu3 %v7045_v35 }
  0x66   : > { %860 = vmatpush.bf16.msra.mxu0 %v7033_v40  ;;  %7443 = vmatpush.bf16.msra.mxu2 %v7033_v40 }
  0x67   : > { %1189 = vmatpush.bf16.msra.mxu1 %v7037_v41  ;;  %7451 = vmatpush.bf16.msra.mxu3 %v7037_v41 }
  0x6a   : > { %861 = vmatpush.bf16.msra.mxu0 %v7025_v46  ;;  %7444 = vmatpush.bf16.msra.mxu2 %v7025_v46 }
  0x6b   : > { %1190 = vmatpush.bf16.msra.mxu1 %v7029_v47  ;;  %7452 = vmatpush.bf16.msra.mxu3 %v7029_v47 }
  0x6d   : > { %862 = vmatmul.bf16.vlgmr.msra.gmra.mxu0 %v7354_v48  ;;  %1022 = vmatmul.bf16.vlgmr.msra.gmra.mxu2 %v7386_v49 }
  0x6e   : > { %1191 = vmatmul.bf16.vlgmr.msra.gmra.mxu1 %v7354_v48  ;;  %1351 = vmatmul.bf16.vlgmr.msra.gmra.mxu3 %v7386_v49  ;;  %v7364_v49 = vld [vmem:[%s8884_s7 + $0x50] sm:$0xff] }
  0x7d   : > { %867 = vmatmul.bf16.gmra.mxu0 %v7355_v50  ;;  %1027 = vmatmul.bf16.gmra.mxu2 %v7387_v51 }
  0x7e   : > { %1196 = vmatmul.bf16.gmra.mxu1 %v7355_v50  ;;  %1356 = vmatmul.bf16.gmra.mxu3 %v7387_v51 }
  0x8d   : > { %872 = vmatmul.bf16.gmra.mxu0 %v7356_v52  ;;  %1032 = vmatmul.bf16.gmra.mxu2 %v7388_v53 }
  0x8e   : > { %1201 = vmatmul.bf16.gmra.mxu1 %v7356_v52  ;;  %1361 = vmatmul.bf16.gmra.mxu3 %v7388_v53 }
  0x9d   : > { %877 = vmatmul.bf16.gmra.mxu0 %v7357_v54  ;;  %1037 = vmatmul.bf16.gmra.mxu2 %v7389_v55 }
  0x9e   : > { %1206 = vmatmul.bf16.gmra.mxu1 %v7357_v54  ;;  %1366 = vmatmul.bf16.gmra.mxu3 %v7389_v55 }
  0xad   : > { %882 = vmatmul.bf16.gmra.mxu0 %v7358_v56  ;;  %1042 = vmatmul.bf16.gmra.mxu2 %v7390_v57 }
  0xae   : > { %1211 = vmatmul.bf16.gmra.mxu1 %v7358_v56  ;;  %1371 = vmatmul.bf16.gmra.mxu3 %v7390_v57 }
  0xbd   : > { %887 = vmatmul.bf16.gmra.mxu0 %v7359_v58  ;;  %1047 = vmatmul.bf16.gmra.mxu2 %v7391_v59 }
  0xbe   : > { %1216 = vmatmul.bf16.gmra.mxu1 %v7359_v58  ;;  %1376 = vmatmul.bf16.gmra.mxu3 %v7391_v59 }
  0xcd   : > { %892 = vmatmul.bf16.gmra.mxu0 %v7360_v60  ;;  %1052 = vmatmul.bf16.gmra.mxu2 %v7392_v61 }
  0xce   : > { %1221 = vmatmul.bf16.gmra.mxu1 %v7360_v60  ;;  %1381 = vmatmul.bf16.gmra.mxu3 %v7392_v61 }
  0xdd   : > { %897 = vmatmul.bf16.gmra.mxu0 %v7361_v62  ;;  %1057 = vmatmul.bf16.gmra.mxu2 %v7393_v63 }
  0xde   : > { %1226 = vmatmul.bf16.gmra.mxu1 %v7361_v62  ;;  %1386 = vmatmul.bf16.gmra.mxu3 %v7393_v63 }
  0xea   : > { %v863_v5 = vpop.f32.mrf.mxu0 }
  0xeb   : > { %v864_v6 = vadd.f32 %v863_v5, %v8910_v1  ;;  %v1192_v7 = vpop.f32.mrf.mxu1 }
  0xec   : > { %v1193_v8 = vadd.f32 %v1192_v7, %v8912_v2 }
  0xed   : > { %v7086_v9 = vmul.f32 -1.442695, %v864_v6  ;;  %902 = vmatmul.bf16.gmra.mxu0 %v7362_v3  ;;  %1062 = vmatmul.bf16.gmra.mxu2 %v7394_v4 }
  0xee   : > { %v7087_v10 = vmul.f32 -1.442695, %v1193_v8  ;;  %1231 = vmatmul.bf16.gmra.mxu1 %v7362_v3  ;;  %1391 = vmatmul.bf16.gmra.mxu3 %v7394_v4 }
  0xef   : > { %7519 = vpow2.f32 %v7086_v9 }
  0xf0   : > { %7521 = vpow2.f32 %v7087_v10  ;;  %v1023_v11 = vpop.f32.mrf.mxu2 }
  0xf1   : > { %v1024_v12 = vadd.f32 %v1023_v11, %v8910_v1  ;;  %v1352_v13 = vpop.f32.mrf.mxu3 }
  0xf2   : > { %v1353_v14 = vadd.f32 %v1352_v13, %v8912_v2  ;;  %v865_v15 = vpop.f32.mrf.mxu0 }
  0xf3   : > { %v7214_v16 = vmul.f32 -1.442695, %v1024_v12  ;;  %v866_v17 = vadd.f32 %v865_v15, %v8910_v1  ;;  %v1194_v18 = vpop.f32.mrf.mxu1 }
  0xf4   : > { %v7215_v19 = vmul.f32 -1.442695, %v1353_v14  ;;  %v1195_v20 = vadd.f32 %v1194_v18, %v8912_v2 }
  0xf5   : > { %v7520_v21 = vpop.eup %7519  ;;  %7523 = vpow2.f32 %v7214_v16  ;;  %v7088_v22 = vmul.f32 -1.442695, %v866_v17 }
  0xf6   : > { %v7522_v23 = vpop.eup %7521  ;;  %v8922_v24 = vadd.f32 1.0, %v7520_v21  ;;  %7525 = vpow2.f32 %v7215_v19  ;;  %v7089_v25 = vmul.f32 -1.442695, %v1195_v20 }
  0xf7   : > { %v8924_v26 = vadd.f32 1.0, %v7522_v23  ;;  %7527 = vpow2.f32 %v7088_v22 }
  0xf8   : > { %7529 = vrcp.f32 %v8922_v24  ;;  %v1025_v27 = vpop.f32.mrf.mxu2  ;;  %v2545_v34 = vand.u32 2147483647, %v8922_v24  ;;  %v2547_v35 = vand.u32 2147483648, %v8922_v24  ;;  %vm2541_vm0 = vweird.f32 %v8922_v24 }
  0xf9   : > { %7531 = vrcp.f32 %v8924_v26  ;;  %v1354_v28 = vpop.f32.mrf.mxu3  ;;  %v1026_v31 = vadd.f32 %v1025_v27, %v8910_v1  ;;  %v2560_v37 = vand.u32 2147483647, %v8924_v26  ;;  %v2562_v38 = vand.u32 2147483648, %v8924_v26 }
  0xfa   : > { %7533 = vpow2.f32 %v7089_v25  ;;  %v868_v32 = vpop.f32.mrf.mxu0  ;;  %v1355_v40 = vadd.f32 %v1354_v28, %v8912_v2  ;;  %vm2556_vm1 = vweird.f32 %v8924_v26  ;;  %vm8945_vm2 = vcmp.eq.f32.partialorder %v2545_v34, 8.507059e+37 }
  0xfb   : > { %v7524_v33 = vpop.eup %7523  ;;  %v869_v43 = vadd.f32 %v868_v32, %v8910_v1  ;;  %v1197_v44 = vpop.f32.mrf.mxu1  ;;  %v7216_v46 = vmul.f32 -1.442695, %v1026_v31  ;;  %v2548_v50 = vor.u32 1.1754944e-38, %v2547_v35  ;;  %vm8951_vm3 = vcmp.eq.f32.partialorder %v2560_v37, 8.507059e+37 }
  0xfc   : > { %v7526_v36 = vpop.eup %7525  ;;  %v8935_v39 = vadd.f32 1.0, %v7524_v33  ;;  %v2563_v54 = vor.u32 1.1754944e-38, %v2562_v38  ;;  %v8955_v55 = vmul.f32 -1.442695, %v1355_v40  ;;  %v1198_v56 = vadd.f32 %v1197_v44, %v8912_v2 }
  0xfd   : > { %v7528_v41 = vpop.eup %7527  ;;  %v8938_v42 = vadd.f32 1.0, %v7526_v36  ;;  %907 = vmatmul.bf16.gmra.mxu0 %v7363_v29  ;;  %1067 = vmatmul.bf16.gmra.mxu2 %v7395_v30  ;;  %v8961_v60 = vmul.f32 -1.442695, %v869_v43 }
  0xfe   : > { %v7530_v45 = vpop.eup %7529  ;;  %7535 = vrcp.f32 %v8935_v39  ;;  %1236 = vmatmul.bf16.gmra.mxu1 %v7363_v29  ;;  %1396 = vmatmul.bf16.gmra.mxu3 %v7395_v30  ;;  %v4465_v58 = vand.u32 2147483647, %v8935_v39  ;;  %v8959_v59 = vadd.f32 1.0, %v7528_v41  ;;  %v4467_v62 = vand.u32 2147483648, %v8935_v39 }
  0xff   : > { %v7532_v47 = vpop.eup %7531  ;;  %v2537_v48 = vmul.f32 %v7530_v45, %v8922_v24  ;;  %7537 = vrcp.f32 %v8938_v42  ;;  %vm2542_vm4 = vweird.f32 %v7530_v45  ;;  %vm4461_vm5 = vweird.f32 %v8935_v39 }
 0x100   : > { %v7534_v51 = vpop.eup %7533  ;;  %v2552_v52 = vmul.f32 %v7532_v47, %v8924_v26  ;;  %7539 = vpow2.f32 %v7216_v46  ;;  %v4480_v3 = vand.u32 2147483647, %v8938_v42  ;;  %vm2557_vm6 = vweird.f32 %v7532_v47  ;;  %vm2543_vm9 = vmor %vm2541_vm0, %vm2542_vm4  ;;  %v1028_v28 = vpop.f32.mrf.mxu2 }
 0x101   : > { %v2538_v57 = vsub.f32 1.0, %v2537_v48  ;;  %v8964_v63 = vadd.f32 1.0, %v7534_v51  ;;  %7541 = vrcp.f32 %v8959_v59  ;;  %vm4476_vm7 = vweird.f32 %v8938_v42  ;;  %vm2558_vm10 = vmor %vm2556_vm1, %vm2557_vm6  ;;  %v1357_v31 = vpop.f32.mrf.mxu3 }
 0x102   : > { %v2553_v61 = vsub.f32 1.0, %v2552_v52  ;;  %v4482_v6 = vand.u32 2147483648, %v8938_v42  ;;  %vm8973_vm8 = vcmp.eq.f32.partialorder %v4465_v58, 8.507059e+37  ;;  %v4468_v12 = vor.u32 1.1754944e-38, %v4467_v62 }
 0x103   : > { %v2539_v0 = vmul.f32 %v7530_v45, %v2538_v57  ;;  %7543 = vrcp.f32 %v8964_v63  ;;  %v7091_v14 = vmul.f32 -1.442695, %v1198_v56  ;;  %vm8983_vm11 = vcmp.eq.f32.partialorder %v4480_v3, 8.507059e+37  ;;  %v1199_v62 = vpop.f32.mrf.mxu1 }
 0x104   : > { %v7536_v4 = vpop.eup %7535  ;;  %v2554_v5 = vmul.f32 %v7532_v47, %v2553_v61  ;;  %v2575_v18 = vand.u32 2147483647, %v8959_v59  ;;  %v4483_v23 = vor.u32 1.1754944e-38, %v4482_v6  ;;  %vm2571_vm14 = vweird.f32 %v8959_v59 }
 0x105   : > { %v7538_v7 = vpop.eup %7537  ;;  %v2540_v8 = vadd.f32 %v7530_v45, %v2539_v0  ;;  %v4457_v9 = vmul.f32 %v7536_v4, %v8935_v39  ;;  %vm4462_vm12 = vweird.f32 %v7536_v4  ;;  %v2577_v35 = vand.u32 2147483648, %v8959_v59 }
 0x106   : > { %v2555_v11 = vadd.f32 %v7532_v47, %v2554_v5  ;;  %v4472_v13 = vmul.f32 %v7538_v7, %v8938_v42  ;;  %v7540_v19 = vpop.eup %7539  ;;  %vm4477_vm13 = vweird.f32 %v7538_v7  ;;  %vm9007_vm15 = vcmp.eq.f32.partialorder %v2575_v18, 8.507059e+37  ;;  %vm4463_vm0 = vmor %vm4461_vm5, %vm4462_vm12 }
 0x107   : > { %v2544_v15 = vsel %vm2543_vm9, %v7530_v45, %v2540_v8  ;;  %v4458_v16 = vsub.f32 1.0, %v4457_v9  ;;  %v8990_v24 = vpop.eup %7541  ;;  %v8999_v27 = vadd.f32 1.0, %v7540_v19  ;;  %v2590_v40 = vand.u32 2147483647, %v8964_v63  ;;  %vm4478_vm1 = vmor %vm4476_vm7, %vm4477_vm13 }
 0x108   : > { %v2549_v20 = vsel %vm8945_vm2, %v2548_v50, %v2544_v15  ;;  %v2559_v21 = vsel %vm2558_vm10, %v7532_v47, %v2555_v11  ;;  %v4473_v22 = vsub.f32 1.0, %v4472_v13  ;;  %v2567_v30 = vmul.f32 %v8990_v24, %v8959_v59  ;;  %v870_v47 = vpop.f32.mrf.mxu0  ;;  %v7396_v50 = vld [vmem:[%s8884_s7 + $0x150] sm:$0xff]  ;;  %v1030_v6 = vpop.f32.mrf.mxu2 }
 0x109   : > { %6376 = vst [vmem:[%s8994_s26] sm:$0xff] %v2549_v20  ;;  %v2564_v25 = vsel %vm8951_vm3, %v2563_v54, %v2559_v21  ;;  %v4459_v26 = vmul.f32 %v7536_v4, %v4458_v16  ;;  %v9005_v32 = vpop.eup %7543  ;;  %7545 = vrcp.f32 %v8999_v27  ;;  %vm2572_vm2 = vweird.f32 %v8990_v24  ;;  %v1359_v11 = vpop.f32.mrf.mxu3 }
 0x10a   : > { %6377 = vst [vmem:[%s8994_s26 + $0x8] sm:$0xff] %v2564_v25  ;;  %v4474_v29 = vmul.f32 %v7538_v7, %v4473_v22  ;;  %v2568_v37 = vsub.f32 1.0, %v2567_v30  ;;  %v2582_v38 = vmul.f32 %v9005_v32, %v8964_v63  ;;  %v2592_v39 = vand.u32 2147483648, %v8964_v63  ;;  %vm2573_vm4 = vmor %vm2571_vm14, %vm2572_vm2 }
 0x10b   : > { %v4460_v33 = vadd.f32 %v7536_v4, %v4459_v26  ;;  %7547 = vpow2.f32 %v8955_v55  ;;  %v2578_v48 = vor.u32 1.1754944e-38, %v2577_v35  ;;  %vm2587_vm3 = vweird.f32 %v9005_v32 }
 0x10c   : > { %v4475_v36 = vadd.f32 %v7538_v7, %v4474_v29  ;;  %v2569_v45 = vmul.f32 %v8990_v24, %v2568_v37  ;;  %v2583_v46 = vsub.f32 1.0, %v2582_v38  ;;  %7549 = vpow2.f32 %v8961_v60 }
 0x10d   : > { %v4464_v41 = vsel %vm4463_vm0, %v7536_v4, %v4460_v33  ;;  %7551 = vpow2.f32 %v7091_v14  ;;  %v1029_v53 = vadd.f32 %v1028_v28, %v8910_v1  ;;  %vm2586_vm5 = vweird.f32 %v8964_v63  ;;  %912 = vmatmul.bf16.gmra.mxu0 %v7364_v49  ;;  %1072 = vmatmul.bf16.gmra.mxu2 %v7396_v50 }
 0x10e   : > { %v4469_v43 = vsel %vm8973_vm8, %v4468_v12, %v4464_v41  ;;  %v4479_v44 = vsel %vm4478_vm1, %v7538_v7, %v4475_v36  ;;  %v2570_v51 = vadd.f32 %v8990_v24, %v2569_v45  ;;  %v2584_v52 = vmul.f32 %v9005_v32, %v2583_v46  ;;  %1241 = vmatmul.bf16.gmra.mxu1 %v7364_v49  ;;  %vm2588_vm7 = vmor %vm2586_vm5, %vm2587_vm3 }
 0x10f   : > { %6504 = vst [vmem:[%s8994_s26 + $0x400] sm:$0xff] %v4469_v43  ;;  %v4484_v42 = vsel %vm8983_vm11, %v4483_v23, %v4479_v44  ;;  %v7546_v54 = vpop.eup %7545  ;;  %vm9043_vm6 = vcmp.eq.f32.partialorder %v2590_v40, 8.507059e+37  ;;  %v1358_v56 = vadd.f32 %v1357_v31, %v8912_v2  ;;  %v871_v57 = vadd.f32 %v870_v47, %v8910_v1  ;;  %1401 = vmatmul.bf16.gmra.mxu3 %v7396_v50 }
 0x110   : > { %6505 = vst [vmem:[%s8994_s26 + $0x408] sm:$0xff] %v4484_v42  ;;  %v2574_v58 = vsel %vm2573_vm4, %v8990_v24, %v2570_v51  ;;  %v2585_v60 = vadd.f32 %v9005_v32, %v2584_v52  ;;  %v2593_v61 = vor.u32 1.1754944e-38, %v2592_v39  ;;  %v4487_v59 = vmul.f32 %v7546_v54, %v8999_v27  ;;  %v873_v42 = vpop.f32.mrf.mxu0 }
 0x111   : > { %v7548_v63 = vpop.eup %7547  ;;  %v2579_v0 = vsel %vm9007_vm15, %v2578_v48, %v2574_v58  ;;  %v4497_v3 = vand.u32 2147483648, %v8999_v27  ;;  %v7218_v4 = vmul.f32 -1.442695, %v1029_v53  ;;  %v7219_v5 = vmul.f32 -1.442695, %v1358_v56 }
 0x112   : > { %6378 = vst [vmem:[%s8994_s26 + $0x10] sm:$0xff] %v2579_v0  ;;  %v2589_v7 = vsel %vm2588_vm7, %v9005_v32, %v2585_v60  ;;  %v4488_v8 = vsub.f32 1.0, %v4487_v59  ;;  %v9059_v9 = vadd.f32 1.0, %v7548_v63  ;;  %v7092_v10 = vmul.f32 -1.442695, %v871_v57  ;;  %v7550_v12 = vpop.eup %7549 }
 0x113   : > { %v2594_v13 = vsel %vm9043_vm6, %v2593_v61, %v2589_v7  ;;  %v4495_v14 = vand.u32 2147483647, %v8999_v27  ;;  %7553 = vpow2.f32 %v7218_v4  ;;  %v1200_v15 = vadd.f32 %v1199_v62, %v8912_v2  ;;  %v7552_v16 = vpop.eup %7551 }
 0x114   : > { %6379 = vst [vmem:[%s8994_s26 + $0x18] sm:$0xff] %v2594_v13  ;;  %v4489_v17 = vmul.f32 %v7546_v54, %v4488_v8  ;;  %vm4492_vm8 = vweird.f32 %v7546_v54  ;;  %7555 = vrcp.f32 %v9059_v9  ;;  %v1031_v18 = vadd.f32 %v1030_v6, %v8910_v1 }
 0x115   : > { %v9068_v19 = vadd.f32 1.0, %v7550_v12  ;;  %v9070_v20 = vadd.f32 1.0, %v7552_v16  ;;  %7557 = vpow2.f32 %v7219_v5  ;;  %v1360_v21 = vadd.f32 %v1359_v11, %v8912_v2 }
 0x116   : > { %v4490_v22 = vadd.f32 %v7546_v54, %v4489_v17  ;;  %vm4491_vm9 = vweird.f32 %v8999_v27  ;;  %v4498_v23 = vor.u32 1.1754944e-38, %v4497_v3  ;;  %7559 = vpow2.f32 %v7092_v10 }
 0x117   : > { %vm4493_vm10 = vmor %vm4491_vm9, %vm4492_vm8  ;;  %v4510_v24 = vand.u32 2147483647, %v9059_v9  ;;  %v4512_v25 = vand.u32 2147483648, %v9059_v9  ;;  %7561 = vrcp.f32 %v9068_v19  ;;  %v7093_v26 = vmul.f32 -1.442695, %v1200_v15 }
 0x118   : > { %v4494_v28 = vsel %vm4493_vm10, %v7546_v54, %v4490_v22  ;;  %vm4496_vm11 = vcmp.eq.f32.partialorder %v4495_v14, 8.507059e+37  ;;  %7563 = vrcp.f32 %v9070_v20  ;;  %v7220_v31 = vmul.f32 -1.442695, %v1031_v18 }
 0x119   : > { %v7554_v29 = vpop.eup %7553  ;;  %v4499_v30 = vsel %vm4496_vm11, %v4498_v23, %v4494_v28  ;;  %v9078_v32 = vmul.f32 -1.442695, %v1360_v21  ;;  %vm4506_vm12 = vweird.f32 %v9059_v9  ;;  %v2605_v33 = vand.u32 2147483647, %v9068_v19 }
 0x11a   : > { %v7556_v27 = vpop.eup %7555  ;;  %6506 = vst [vmem:[%s8994_s26 + $0x410] sm:$0xff] %v4499_v30  ;;  %v2607_v34 = vand.u32 2147483648, %v9068_v19  ;;  %v9084_v35 = vadd.f32 1.0, %v7554_v29  ;;  %vm9087_vm13 = vcmp.eq.f32.partialorder %v4510_v24, 8.507059e+37  ;;  %v4513_v40 = vor.u32 1.1754944e-38, %v4512_v25 }
 0x11b   : > { %v7558_v36 = vpop.eup %7557  ;;  %v4502_v37 = vmul.f32 %v7556_v27, %v9059_v9  ;;  %vm2601_vm14 = vweird.f32 %v9068_v19  ;;  %7565 = vpow2.f32 %v7093_v26  ;;  %vm2616_vm15 = vweird.f32 %v9070_v20 }
 0x11c   : > { %v7560_v41 = vpop.eup %7559  ;;  %v2620_v39 = vand.u32 2147483647, %v9070_v20  ;;  %v2622_v43 = vand.u32 2147483648, %v9070_v20  ;;  %7567 = vrcp.f32 %v9084_v35  ;;  %v9096_v46 = vadd.f32 1.0, %v7558_v36  ;;  %v1033_v36 = vpop.f32.mrf.mxu2 }
 0x11d   : > { %v7562_v44 = vpop.eup %7561  ;;  %v4503_v45 = vsub.f32 1.0, %v4502_v37  ;;  %v9098_v47 = vadd.f32 1.0, %v7560_v41  ;;  %7569 = vpow2.f32 %v7220_v31  ;;  %vm4507_vm0 = vweird.f32 %v7556_v27 }
 0x11e   : > { %v7564_v48 = vpop.eup %7563  ;;  %v2597_v49 = vmul.f32 %v7562_v44, %v9068_v19  ;;  %vm9101_vm1 = vcmp.eq.f32.partialorder %v2605_v33, 8.507059e+37  ;;  %v2608_v51 = vor.u32 1.1754944e-38, %v2607_v34  ;;  %v4525_v54 = vand.u32 2147483647, %v9084_v35  ;;  %vm4508_vm4 = vmor %vm4506_vm12, %vm4507_vm0  ;;  %v1202_v19 = vpop.f32.mrf.mxu1 }
 0x11f   : > { %v4504_v52 = vmul.f32 %v7556_v27, %v4503_v45  ;;  %v2612_v53 = vmul.f32 %v7564_v48, %v9070_v20  ;;  %7571 = vrcp.f32 %v9096_v46  ;;  %vm9108_vm2 = vcmp.eq.f32.partialorder %v2620_v39, 8.507059e+37 }
 0x120   : > { %v2598_v55 = vsub.f32 1.0, %v2597_v49  ;;  %v2623_v57 = vor.u32 1.1754944e-38, %v2622_v43  ;;  %v9113_v58 = vadd.f32 %v873_v42, %v8910_v1  ;;  %vm4521_vm3 = vweird.f32 %v9084_v35 }
 0x121   : > { %v7566_v60 = vpop.eup %7565  ;;  %v4505_v61 = vadd.f32 %v7556_v27, %v4504_v52  ;;  %v2613_v59 = vsub.f32 1.0, %v2612_v53  ;;  %7573 = vrcp.f32 %v9098_v47  ;;  %vm2602_vm5 = vweird.f32 %v7562_v44 }
 0x122   : > { %v7568_v62 = vpop.eup %7567  ;;  %v2599_v63 = vmul.f32 %v7562_v44, %v2598_v55  ;;  %vm2617_vm6 = vweird.f32 %v7564_v48  ;;  %v4527_v0 = vand.u32 2147483648, %v9084_v35  ;;  %vm9122_vm7 = vcmp.eq.f32.partialorder %v4525_v54, 8.507059e+37  ;;  %vm2603_vm8 = vmor %vm2601_vm14, %vm2602_vm5  ;;  %v875_v54 = vpop.f32.mrf.mxu0 }
 0x123   : > { %v7570_v3 = vpop.eup %7569  ;;  %v4509_v4 = vsel %vm4508_vm4, %v7556_v27, %v4505_v61  ;;  %v2614_v5 = vmul.f32 %v7564_v48, %v2613_v59  ;;  %v4517_v6 = vmul.f32 %v7568_v62, %v9084_v35  ;;  %v4540_v8 = vand.u32 2147483647, %v9096_v46  ;;  %vm2618_vm10 = vmor %vm2616_vm15, %vm2617_vm6 }
 0x124   : > { %v4514_v9 = vsel %vm9087_vm13, %v4513_v40, %v4509_v4  ;;  %v2600_v10 = vadd.f32 %v7562_v44, %v2599_v63  ;;  %v4542_v11 = vand.u32 2147483648, %v9096_v46  ;;  %v2635_v12 = vand.u32 2147483647, %v9098_v47 }
 0x125   : > { %v7572_v13 = vpop.eup %7571  ;;  %6507 = vst [vmem:[%s8994_s26 + $0x418] sm:$0xff] %v4514_v9  ;;  %v2615_v14 = vadd.f32 %v7564_v48, %v2614_v5  ;;  %v4518_v15 = vsub.f32 1.0, %v4517_v6  ;;  %vm4522_vm9 = vweird.f32 %v7568_v62  ;;  %v9135_v16 = vadd.f32 1.0, %v7566_v60  ;;  %v7365_v9 = vld [vmem:[%s8884_s7 + $0x58] sm:$0xff] }
 0x126   : > { %v2604_v17 = vsel %vm2603_vm8, %v7562_v44, %v2600_v10  ;;  %v4532_v18 = vmul.f32 %v7572_v13, %v9096_v46  ;;  %v2637_v21 = vand.u32 2147483648, %v9098_v47  ;;  %v9142_v22 = vadd.f32 1.0, %v7570_v3  ;;  %vm4523_vm14 = vmor %vm4521_vm3, %vm4522_vm9  ;;  %v1362_v44 = vpop.f32.mrf.mxu3  ;;  %v1204_v61 = vpop.f32.mrf.mxu1  ;;  %v7397_v10 = vld [vmem:[%s8884_s7 + $0x158] sm:$0xff]  ;;  %917 = vmatmul.bf16.gmra.mxu0 %v7365_v9  ;;  %1246 = vmatmul.bf16.gmra.mxu1 %v7365_v9 }
 0x127   : > { %v7574_v23 = vpop.eup %7573  ;;  %v2609_v24 = vsel %vm9101_vm1, %v2608_v51, %v2604_v17  ;;  %v2619_v25 = vsel %vm2618_vm10, %v7564_v48, %v2615_v14  ;;  %v4519_v26 = vmul.f32 %v7568_v62, %v4518_v15  ;;  %7575 = vrcp.f32 %v9135_v16  ;;  %v1035_v14 = vpop.f32.mrf.mxu2  ;;  %1077 = vmatmul.bf16.gmra.mxu2 %v7397_v10  ;;  %1406 = vmatmul.bf16.gmra.mxu3 %v7397_v10 }
 0x128   : > { %6380 = vst [vmem:[%s8994_s26 + $0x20] sm:$0xff] %v2609_v24  ;;  %v2624_v20 = vsel %vm9108_vm2, %v2623_v57, %v2619_v25  ;;  %v4528_v28 = vor.u32 1.1754944e-38, %v4527_v0  ;;  %v4533_v29 = vsub.f32 1.0, %v4532_v18  ;;  %v2627_v30 = vmul.f32 %v7574_v23, %v9098_v47 }
 0x129   : > { %6381 = vst [vmem:[%s8994_s26 + $0x28] sm:$0xff] %v2624_v20  ;;  %v4520_v31 = vadd.f32 %v7568_v62, %v4519_v26  ;;  %vm4536_vm11 = vweird.f32 %v9096_v46  ;;  %vm9153_vm12 = vcmp.eq.f32.partialorder %v4540_v8, 8.507059e+37  ;;  %vm2631_vm13 = vweird.f32 %v9098_v47 }
 0x12a   : > { %v4534_v33 = vmul.f32 %v7572_v13, %v4533_v29  ;;  %vm4537_vm15 = vweird.f32 %v7572_v13  ;;  %v2628_v34 = vsub.f32 1.0, %v2627_v30  ;;  %7577 = vrcp.f32 %v9142_v22 }
 0x12b   : > { %v4524_v37 = vsel %vm4523_vm14, %v7568_v62, %v4520_v31  ;;  %v4543_v38 = vor.u32 1.1754944e-38, %v4542_v11  ;;  %vm9162_vm0 = vcmp.eq.f32.partialorder %v2635_v12, 8.507059e+37  ;;  %v2638_v41 = vor.u32 1.1754944e-38, %v2637_v21  ;;  %vm4538_vm2 = vmor %vm4536_vm11, %vm4537_vm15 }
 0x12c   : > { %v4529_v39 = vsel %vm9122_vm7, %v4528_v28, %v4524_v37  ;;  %v4535_v43 = vadd.f32 %v7572_v13, %v4534_v33  ;;  %v2629_v35 = vmul.f32 %v7574_v23, %v2628_v34  ;;  %vm2632_vm1 = vweird.f32 %v7574_v23 }
 0x12d   : > { %v9168_v45 = vpop.eup %7575  ;;  %6508 = vst [vmem:[%s8994_s26 + $0x420] sm:$0xff] %v4529_v39  ;;  %vm2646_vm3 = vweird.f32 %v9135_v16  ;;  %7579 = vpow2.f32 %v9078_v32  ;;  %v7094_v42 = vmul.f32 -1.442695, %v9113_v58  ;;  %v1203_v48 = vadd.f32 %v1202_v19, %v8912_v2  ;;  %vm2633_vm4 = vmor %vm2631_vm13, %vm2632_vm1 }
 0x12e   : > { %v4539_v49 = vsel %vm4538_vm2, %v7572_v13, %v4535_v43  ;;  %v2630_v50 = vadd.f32 %v7574_v23, %v2629_v35  ;;  %v2642_v51 = vmul.f32 %v9168_v45, %v9135_v16  ;;  %v2650_v52 = vand.u32 2147483647, %v9135_v16 }
 0x12f   : > { %v4544_v46 = vsel %vm9153_vm12, %v4543_v38, %v4539_v49  ;;  %v2652_v32 = vand.u32 2147483648, %v9135_v16  ;;  %7581 = vpow2.f32 %v7094_v42  ;;  %v7095_v53 = vmul.f32 -1.442695, %v1203_v48  ;;  %v1364_v16 = vpop.f32.mrf.mxu3 }
 0x130   : > { %v7578_v55 = vpop.eup %7577  ;;  %6509 = vst [vmem:[%s8994_s26 + $0x428] sm:$0xff] %v4544_v46  ;;  %v2634_v56 = vsel %vm2633_vm4, %v7574_v23, %v2630_v50  ;;  %v2643_v57 = vsub.f32 1.0, %v2642_v51  ;;  %v1034_v58 = vadd.f32 %v1033_v36, %v8910_v1  ;;  %v1363_v60 = vadd.f32 %v1362_v44, %v8912_v2 }
 0x131   : > { %v2639_v47 = vsel %vm9162_vm0, %v2638_v41, %v2634_v56  ;;  %vm2647_vm5 = vweird.f32 %v9168_v45  ;;  %v4547_v59 = vmul.f32 %v7578_v55, %v9142_v22  ;;  %7583 = vpow2.f32 %v7095_v53 }
 0x132   : > { %6382 = vst [vmem:[%s8994_s26 + $0x30] sm:$0xff] %v2639_v47  ;;  %v2644_v62 = vmul.f32 %v9168_v45, %v2643_v57  ;;  %v7222_v63 = vmul.f32 -1.442695, %v1034_v58  ;;  %v7223_v0 = vmul.f32 -1.442695, %v1363_v60  ;;  %v876_v3 = vadd.f32 %v875_v54, %v8910_v1  ;;  %vm9207_vm6 = vmor %vm2646_vm3, %vm2647_vm5 }
 0x133   : > { %v7580_v4 = vpop.eup %7579  ;;  %v2653_v5 = vor.u32 1.1754944e-38, %v2652_v32  ;;  %v4548_v6 = vsub.f32 1.0, %v4547_v59  ;;  %v4557_v7 = vand.u32 2147483648, %v9142_v22  ;;  %v1205_v8 = vadd.f32 %v1204_v61, %v8912_v2 }
 0x134   : > { %v2645_v11 = vadd.f32 %v9168_v45, %v2644_v62  ;;  %v9201_v12 = vadd.f32 1.0, %v7580_v4  ;;  %7585 = vpow2.f32 %v7222_v63  ;;  %v7096_v13 = vmul.f32 -1.442695, %v876_v3 }
 0x135   : > { %v7582_v15 = vpop.eup %7581  ;;  %v4549_v18 = vmul.f32 %v7578_v55, %v4548_v6  ;;  %vm4552_vm7 = vweird.f32 %v7578_v55  ;;  %v4555_v21 = vand.u32 2147483647, %v9142_v22  ;;  %7587 = vpow2.f32 %v7223_v0 }
 0x136   : > { %v2649_v19 = vsel %vm9207_vm6, %v9168_v45, %v2645_v11  ;;  %vm2651_vm8 = vcmp.eq.f32.partialorder %v2650_v52, 8.507059e+37  ;;  %vm4551_vm9 = vweird.f32 %v9142_v22  ;;  %7589 = vrcp.f32 %v9201_v12 }
 0x137   : > { %v7584_v23 = vpop.eup %7583  ;;  %v2654_v24 = vsel %vm2651_vm8, %v2653_v5, %v2649_v19  ;;  %v4550_v25 = vadd.f32 %v7578_v55, %v4549_v18  ;;  %v9217_v26 = vadd.f32 1.0, %v7582_v15  ;;  %v1036_v20 = vadd.f32 %v1035_v14, %v8910_v1  ;;  %vm4553_vm10 = vmor %vm4551_vm9, %vm4552_vm7  ;;  %v878_v19 = vpop.f32.mrf.mxu0 }
 0x138   : > { %6383 = vst [vmem:[%s8994_s26 + $0x38] sm:$0xff] %v2654_v24  ;;  %v4558_v28 = vor.u32 1.1754944e-38, %v4557_v7  ;;  %v9222_v29 = vadd.f32 1.0, %v7584_v23  ;;  %7591 = vpow2.f32 %v7096_v13  ;;  %v7097_v22 = vmul.f32 -1.442695, %v1205_v8 }
 0x139   : > { %v4554_v30 = vsel %vm4553_vm10, %v7578_v55, %v4550_v25  ;;  %vm4556_vm11 = vcmp.eq.f32.partialorder %v4555_v21, 8.507059e+37  ;;  %7593 = vrcp.f32 %v9217_v26  ;;  %v1365_v31 = vadd.f32 %v1364_v16, %v8912_v2 }
 0x13a   : > { %v7586_v27 = vpop.eup %7585  ;;  %v4559_v33 = vsel %vm4556_vm11, %v4558_v28, %v4554_v30  ;;  %v4570_v34 = vand.u32 2147483647, %v9201_v12  ;;  %v4572_v36 = vand.u32 2147483648, %v9201_v12  ;;  %7595 = vrcp.f32 %v9222_v29  ;;  %v1207_v30 = vpop.f32.mrf.mxu1 }
 0x13b   : > { %v7588_v37 = vpop.eup %7587  ;;  %6510 = vst [vmem:[%s8994_s26 + $0x430] sm:$0xff] %v4559_v33  ;;  %v9230_v38 = vadd.f32 1.0, %v7586_v27  ;;  %v7224_v40 = vmul.f32 -1.442695, %v1036_v20  ;;  %v2665_v39 = vand.u32 2147483647, %v9217_v26  ;;  %7597 = vpow2.f32 %v7097_v22 }
 0x13c   : > { %v7590_v41 = vpop.eup %7589  ;;  %v2667_v43 = vand.u32 2147483648, %v9217_v26  ;;  %v9234_v35 = vadd.f32 1.0, %v7588_v37  ;;  %vm4566_vm12 = vweird.f32 %v9201_v12  ;;  %v2680_v45 = vand.u32 2147483647, %v9222_v29 }
 0x13d   : > { %v4562_v44 = vmul.f32 %v7590_v41, %v9201_v12  ;;  %v2682_v42 = vand.u32 2147483648, %v9222_v29  ;;  %vm9240_vm13 = vcmp.eq.f32.partialorder %v4570_v34, 8.507059e+37  ;;  %v4573_v50 = vor.u32 1.1754944e-38, %v4572_v36 }
 0x13e   : > { %v7592_v48 = vpop.eup %7591  ;;  %7599 = vrcp.f32 %v9230_v38  ;;  %v7225_v51 = vmul.f32 -1.442695, %v1365_v31  ;;  %vm2661_vm14 = vweird.f32 %v9217_v26  ;;  %vm2676_vm15 = vweird.f32 %v9222_v29 }
 0x13f   : > { %v7594_v52 = vpop.eup %7593  ;;  %v4563_v46 = vsub.f32 1.0, %v4562_v44  ;;  %7601 = vrcp.f32 %v9234_v35  ;;  %vm4567_vm0 = vweird.f32 %v7590_v41  ;;  %vm9249_vm1 = vcmp.eq.f32.partialorder %v2665_v39, 8.507059e+37 }
 0x140   : > { %v7596_v32 = vpop.eup %7595  ;;  %v2657_v53 = vmul.f32 %v7594_v52, %v9217_v26  ;;  %v2668_v55 = vor.u32 1.1754944e-38, %v2667_v43  ;;  %vm9254_vm2 = vcmp.eq.f32.partialorder %v2680_v45, 8.507059e+37  ;;  %v2683_v60 = vor.u32 1.1754944e-38, %v2682_v42  ;;  %vm4568_vm4 = vmor %vm4566_vm12, %vm4567_vm0 }
 0x141   : > { %v4564_v56 = vmul.f32 %v7590_v41, %v4563_v46  ;;  %v2672_v57 = vmul.f32 %v7596_v32, %v9222_v29  ;;  %v7598_v61 = vpop.eup %7597  ;;  %v4585_v59 = vand.u32 2147483647, %v9230_v38  ;;  %v9259_v62 = vadd.f32 1.0, %v7592_v48 }
 0x142   : > { %v2658_v47 = vsub.f32 1.0, %v2657_v53  ;;  %7603 = vpow2.f32 %v7224_v40  ;;  %vm4581_vm3 = vweird.f32 %v9230_v38  ;;  %v4587_v3 = vand.u32 2147483648, %v9230_v38 }
 0x143   : > { %v4565_v63 = vadd.f32 %v7590_v41, %v4564_v56  ;;  %v2673_v0 = vsub.f32 1.0, %v2672_v57  ;;  %7605 = vpow2.f32 %v7225_v51  ;;  %vm2662_vm5 = vweird.f32 %v7594_v52 }
 0x144   : > { %v7600_v4 = vpop.eup %7599  ;;  %v2659_v5 = vmul.f32 %v7594_v52, %v2658_v47  ;;  %vm4596_vm6 = vweird.f32 %v9234_v35  ;;  %7607 = vrcp.f32 %v9259_v62  ;;  %v9268_v6 = vadd.f32 1.0, %v7598_v61  ;;  %vm2663_vm8 = vmor %vm2661_vm14, %vm2662_vm5  ;;  %v880_v61 = vpop.f32.mrf.mxu0 }
 0x145   : > { %v7602_v7 = vpop.eup %7601  ;;  %v4569_v8 = vsel %vm4568_vm4, %v7590_v41, %v4565_v63  ;;  %v2674_v9 = vmul.f32 %v7596_v32, %v2673_v0  ;;  %vm2677_vm7 = vweird.f32 %v7596_v32  ;;  %v4577_v10 = vmul.f32 %v7600_v4, %v9230_v38  ;;  %v1038_v38 = vpop.f32.mrf.mxu2 }
 0x146   : > { %v4574_v11 = vsel %vm9240_vm13, %v4573_v50, %v4569_v8  ;;  %v2660_v12 = vadd.f32 %v7594_v52, %v2659_v5  ;;  %v4592_v13 = vmul.f32 %v7602_v7, %v9234_v35  ;;  %v4600_v14 = vand.u32 2147483647, %v9234_v35  ;;  %vm2678_vm10 = vmor %vm2676_vm15, %vm2677_vm7  ;;  %v1209_v5 = vpop.f32.mrf.mxu1  ;;  %v7398_v8 = vld [vmem:[%s8884_s7 + $0x160] sm:$0xff] }
 0x147   : > { %6511 = vst [vmem:[%s8994_s26 + $0x438] sm:$0xff] %v4574_v11  ;;  %v2675_v15 = vadd.f32 %v7596_v32, %v2674_v9  ;;  %v4578_v17 = vsub.f32 1.0, %v4577_v10  ;;  %vm9278_vm9 = vcmp.eq.f32.partialorder %v4585_v59, 8.507059e+37  ;;  %v4602_v21 = vand.u32 2147483648, %v9234_v35  ;;  %1082 = vmatmul.bf16.gmra.mxu2 %v7398_v8  ;;  %1411 = vmatmul.bf16.gmra.mxu3 %v7398_v8 }
 0x148   : > { %v7604_v16 = vpop.eup %7603  ;;  %v2664_v23 = vsel %vm2663_vm8, %v7594_v52, %v2660_v12  ;;  %v4588_v24 = vor.u32 1.1754944e-38, %v4587_v3  ;;  %v4593_v25 = vsub.f32 1.0, %v4592_v13  ;;  %7609 = vrcp.f32 %v9268_v6 }
 0x149   : > { %v7606_v26 = vpop.eup %7605  ;;  %v2669_v20 = vsel %vm9249_vm1, %v2668_v55, %v2664_v23  ;;  %v2679_v28 = vsel %vm2678_vm10, %v7596_v32, %v2675_v15  ;;  %v4579_v22 = vmul.f32 %v7600_v4, %v4578_v17  ;;  %vm4582_vm11 = vweird.f32 %v7600_v4  ;;  %v1367_v55 = vpop.f32.mrf.mxu3 }
 0x14a   : > { %v7608_v31 = vpop.eup %7607  ;;  %6384 = vst [vmem:[%s8994_s26 + $0x40] sm:$0xff] %v2669_v20  ;;  %v2684_v27 = vsel %vm9254_vm2, %v2683_v60, %v2679_v28  ;;  %v4594_v29 = vmul.f32 %v7602_v7, %v4593_v25  ;;  %vm4597_vm12 = vweird.f32 %v7602_v7  ;;  %vm9292_vm13 = vcmp.eq.f32.partialorder %v4600_v14, 8.507059e+37  ;;  %vm4583_vm14 = vmor %vm4581_vm3, %vm4582_vm11 }
 0x14b   : > { %6385 = vst [vmem:[%s8994_s26 + $0x48] sm:$0xff] %v2684_v27  ;;  %v4580_v34 = vadd.f32 %v7600_v4, %v4579_v22  ;;  %v4603_v36 = vor.u32 1.1754944e-38, %v4602_v21  ;;  %v2687_v37 = vmul.f32 %v7608_v31, %v9259_v62  ;;  %v2695_v40 = vand.u32 2147483647, %v9259_v62  ;;  %vm4598_vm15 = vmor %vm4596_vm6, %vm4597_vm12 }
 0x14c   : > { %v4595_v41 = vadd.f32 %v7602_v7, %v4594_v29  ;;  %v2697_v39 = vand.u32 2147483648, %v9259_v62  ;;  %v9302_v43 = vadd.f32 1.0, %v7604_v16  ;;  %v9304_v44 = vadd.f32 1.0, %v7606_v26 }
 0x14d   : > { %v4584_v45 = vsel %vm4583_vm14, %v7600_v4, %v4580_v34  ;;  %v2688_v42 = vsub.f32 1.0, %v2687_v37  ;;  %v2710_v48 = vand.u32 2147483647, %v9268_v6  ;;  %v2712_v49 = vand.u32 2147483648, %v9268_v6  ;;  %v1040_v26 = vpop.f32.mrf.mxu2 }
 0x14e   : > { %v7610_v50 = vpop.eup %7609  ;;  %v4589_v51 = vsel %vm9278_vm9, %v4588_v24, %v4584_v45  ;;  %v4599_v52 = vsel %vm4598_vm15, %v7602_v7, %v4595_v41  ;;  %7611 = vrcp.f32 %v9302_v43  ;;  %v879_v46 = vadd.f32 %v878_v19, %v8910_v1  ;;  %v7366_v7 = vld [vmem:[%s8884_s7 + $0x60] sm:$0xff]  ;;  %v883_v41 = vpop.f32.mrf.mxu0 }
 0x14f   : > { %6512 = vst [vmem:[%s8994_s26 + $0x440] sm:$0xff] %v4589_v51  ;;  %v4604_v35 = vsel %vm9292_vm13, %v4603_v36, %v4599_v52  ;;  %v2689_v32 = vmul.f32 %v7608_v31, %v2688_v42  ;;  %vm2692_vm0 = vweird.f32 %v7608_v31  ;;  %v2702_v53 = vmul.f32 %v7610_v50, %v9268_v6  ;;  %922 = vmatmul.bf16.gmra.mxu0 %v7366_v7 }
 0x150   : > { %6513 = vst [vmem:[%s8994_s26 + $0x448] sm:$0xff] %v4604_v35  ;;  %vm2691_vm1 = vweird.f32 %v9259_v62  ;;  %vm9320_vm2 = vcmp.eq.f32.partialorder %v2695_v40, 8.507059e+37  ;;  %vm2706_vm3 = vweird.f32 %v9268_v6  ;;  %7613 = vrcp.f32 %v9304_v44  ;;  %1251 = vmatmul.bf16.gmra.mxu1 %v7366_v7 }
 0x151   : > { %v2690_v56 = vadd.f32 %v7608_v31, %v2689_v32  ;;  %v2698_v57 = vor.u32 1.1754944e-38, %v2697_v39  ;;  %v2703_v58 = vsub.f32 1.0, %v2702_v53  ;;  %vm9326_vm4 = vcmp.eq.f32.partialorder %v2710_v48, 8.507059e+37  ;;  %vm2693_vm5 = vmor %vm2691_vm1, %vm2692_vm0  ;;  %v1369_v34 = vpop.f32.mrf.mxu3 }
 0x152   : > { %vm2707_vm6 = vweird.f32 %v7610_v50  ;;  %v2713_v47 = vor.u32 1.1754944e-38, %v2712_v49  ;;  %v7098_v59 = vmul.f32 -1.442695, %v879_v46  ;;  %v1208_v62 = vadd.f32 %v1207_v30, %v8912_v2 }
 0x153   : > { %v2694_v63 = vsel %vm2693_vm5, %v7608_v31, %v2690_v56  ;;  %v2704_v0 = vmul.f32 %v7610_v50, %v2703_v58  ;;  %vm4611_vm7 = vweird.f32 %v9302_v43  ;;  %v4615_v3 = vand.u32 2147483647, %v9302_v43  ;;  %vm2708_vm9 = vmor %vm2706_vm3, %vm2707_vm6 }
 0x154   : > { %v4617_v4 = vand.u32 2147483648, %v9302_v43  ;;  %v7612_v9 = vpop.eup %7611  ;;  %v2699_v10 = vsel %vm9320_vm2, %v2698_v57, %v2694_v63  ;;  %7615 = vpow2.f32 %v7098_v59  ;;  %v7099_v11 = vmul.f32 -1.442695, %v1208_v62 }
 0x155   : > { %v1039_v12 = vadd.f32 %v1038_v38, %v8910_v1  ;;  %6386 = vst [vmem:[%s8994_s26 + $0x50] sm:$0xff] %v2699_v10  ;;  %v2705_v13 = vadd.f32 %v7610_v50, %v2704_v0  ;;  %v4607_v14 = vmul.f32 %v7612_v9, %v9302_v43  ;;  %vm4626_vm8 = vweird.f32 %v9304_v44 }
 0x156   : > { %v1368_v15 = vadd.f32 %v1367_v55, %v8912_v2  ;;  %v7614_v17 = vpop.eup %7613  ;;  %7617 = vpow2.f32 %v7099_v11  ;;  %v881_v21 = vadd.f32 %v880_v61, %v8910_v1  ;;  %v1210_v19 = vadd.f32 %v1209_v5, %v8912_v2 }
 0x157   : > { %v7226_v18 = vmul.f32 -1.442695, %v1039_v12  ;;  %v2709_v16 = vsel %vm2708_vm9, %v7610_v50, %v2705_v13  ;;  %v4608_v23 = vsub.f32 1.0, %v4607_v14  ;;  %v4622_v24 = vmul.f32 %v7614_v17, %v9304_v44  ;;  %v1212_v50 = vpop.f32.mrf.mxu1 }
 0x158   : > { %v4632_v25 = vand.u32 2147483648, %v9304_v44  ;;  %v2714_v6 = vsel %vm9326_vm4, %v2713_v47, %v2709_v16  ;;  %v7227_v20 = vmul.f32 -1.442695, %v1368_v15  ;;  %v7100_v28 = vmul.f32 -1.442695, %v881_v21 }
 0x159   : > { %7619 = vpow2.f32 %v7226_v18  ;;  %6387 = vst [vmem:[%s8994_s26 + $0x58] sm:$0xff] %v2714_v6  ;;  %v4609_v22 = vmul.f32 %v7612_v9, %v4608_v23  ;;  %vm4612_vm10 = vweird.f32 %v7612_v9  ;;  %v4623_v30 = vsub.f32 1.0, %v4622_v24 }
 0x15a   : > { %v7101_v31 = vmul.f32 -1.442695, %v1210_v19  ;;  %v7616_v27 = vpop.eup %7615  ;;  %vm4627_vm11 = vweird.f32 %v7614_v17  ;;  %v4630_v29 = vand.u32 2147483647, %v9304_v44  ;;  %7621 = vpow2.f32 %v7227_v20  ;;  %vm4613_vm12 = vmor %vm4611_vm7, %vm4612_vm10 }
 0x15b   : > { %v1041_v33 = vadd.f32 %v1040_v26, %v8910_v1  ;;  %v4610_v36 = vadd.f32 %v7612_v9, %v4609_v22  ;;  %v4624_v37 = vmul.f32 %v7614_v17, %v4623_v30  ;;  %v9355_v40 = vadd.f32 1.0, %v7616_v27  ;;  %vm4628_vm14 = vmor %vm4626_vm8, %vm4627_vm11 }
 0x15c   : > { %7623 = vpow2.f32 %v7100_v28  ;;  %v7618_v39 = vpop.eup %7617  ;;  %vm4616_vm13 = vcmp.eq.f32.partialorder %v4615_v3, 8.507059e+37  ;;  %v4618_v45 = vor.u32 1.1754944e-38, %v4617_v4  ;;  %v4633_v42 = vor.u32 1.1754944e-38, %v4632_v25 }
 0x15d   : > { %7625 = vpow2.f32 %v7101_v31  ;;  %v4614_v48 = vsel %vm4613_vm12, %v7612_v9, %v4610_v36  ;;  %v4625_v49 = vadd.f32 %v7614_v17, %v4624_v37  ;;  %v1370_v38 = vadd.f32 %v1369_v34, %v8912_v2 }
 0x15e   : > { %7627 = vrcp.f32 %v9355_v40  ;;  %v4619_v52 = vsel %vm4616_vm13, %v4618_v45, %v4614_v48  ;;  %v9365_v43 = vadd.f32 1.0, %v7618_v39  ;;  %v7228_v46 = vmul.f32 -1.442695, %v1041_v33 }
 0x15f   : > { %v7620_v51 = vpop.eup %7619  ;;  %v884_v35 = vadd.f32 %v883_v41, %v8910_v1  ;;  %6514 = vst [vmem:[%s8994_s26 + $0x450] sm:$0xff] %v4619_v52  ;;  %v4629_v32 = vsel %vm4628_vm14, %v7614_v17, %v4625_v49  ;;  %vm4631_vm15 = vcmp.eq.f32.partialorder %v4630_v29, 8.507059e+37  ;;  %v2725_v56 = vand.u32 2147483647, %v9355_v40 }
 0x160   : > { %v9369_v53 = vadd.f32 1.0, %v7620_v51  ;;  %v7622_v54 = vpop.eup %7621  ;;  %v4634_v55 = vsel %vm4631_vm15, %v4633_v42, %v4629_v32  ;;  %7629 = vrcp.f32 %v9365_v43  ;;  %v1213_v57 = vadd.f32 %v1212_v50, %v8912_v2 }
 0x161   : > { %6515 = vst [vmem:[%s8994_s26 + $0x458] sm:$0xff] %v4634_v55  ;;  %v2727_v58 = vand.u32 2147483648, %v9355_v40  ;;  %v9377_v61 = vadd.f32 1.0, %v7622_v54  ;;  %v7229_v47 = vmul.f32 -1.442695, %v1370_v38  ;;  %vm2721_vm0 = vweird.f32 %v9355_v40 }
 0x162   : > { %v7624_v44 = vpop.eup %7623  ;;  %7631 = vrcp.f32 %v9369_v53  ;;  %v9379_v59 = vmul.f32 -1.442695, %v884_v35  ;;  %v2740_v63 = vand.u32 2147483647, %v9365_v43  ;;  %v2742_v0 = vand.u32 2147483648, %v9365_v43 }
 0x163   : > { %v7626_v60 = vpop.eup %7625  ;;  %7633 = vpow2.f32 %v7228_v46  ;;  %v9384_v3 = vadd.f32 1.0, %v7624_v44  ;;  %vm9387_vm1 = vcmp.eq.f32.partialorder %v2725_v56, 8.507059e+37  ;;  %v4645_v7 = vand.u32 2147483647, %v9369_v53 }
 0x164   : > { %v7628_v62 = vpop.eup %7627  ;;  %v9392_v8 = vmul.f32 -1.442695, %v1213_v57  ;;  %v2728_v9 = vor.u32 1.1754944e-38, %v2727_v58  ;;  %v4647_v10 = vand.u32 2147483648, %v9369_v53  ;;  %7635 = vrcp.f32 %v9377_v61 }
 0x165   : > { %v2717_v4 = vmul.f32 %v7628_v62, %v9355_v40  ;;  %v9396_v11 = vadd.f32 1.0, %v7626_v60  ;;  %vm2736_vm2 = vweird.f32 %v9365_v43  ;;  %vm4641_vm3 = vweird.f32 %v9369_v53 }
 0x166   : > { %v7630_v12 = vpop.eup %7629  ;;  %7637 = vrcp.f32 %v9384_v3  ;;  %vm2722_vm4 = vweird.f32 %v7628_v62  ;;  %vm9402_vm5 = vcmp.eq.f32.partialorder %v2740_v63, 8.507059e+37  ;;  %v2743_v18 = vor.u32 1.1754944e-38, %v2742_v0 }
 0x167   : > { %v2718_v13 = vsub.f32 1.0, %v2717_v4  ;;  %v2732_v15 = vmul.f32 %v7630_v12, %v9365_v43  ;;  %vm9407_vm6 = vcmp.eq.f32.partialorder %v4645_v7, 8.507059e+37  ;;  %v4660_v24 = vand.u32 2147483647, %v9377_v61  ;;  %vm2723_vm8 = vmor %vm2721_vm0, %vm2722_vm4  ;;  %v1043_v43 = vpop.f32.mrf.mxu2  ;;  %v7367_v7 = vld [vmem:[%s8884_s7 + $0x68] sm:$0xff] }
 0x168   : > { %v7632_v14 = vpop.eup %7631  ;;  %v4648_v26 = vor.u32 1.1754944e-38, %v4647_v10  ;;  %v4662_v6 = vand.u32 2147483648, %v9377_v61  ;;  %7639 = vrcp.f32 %v9396_v11  ;;  %vm4656_vm7 = vweird.f32 %v9377_v61  ;;  %927 = vmatmul.bf16.gmra.mxu0 %v7367_v7  ;;  %1256 = vmatmul.bf16.gmra.mxu1 %v7367_v7 }
 0x169   : > { %v7634_v21 = vpop.eup %7633  ;;  %v2719_v19 = vmul.f32 %v7628_v62, %v2718_v13  ;;  %v4637_v16 = vmul.f32 %v7632_v14, %v9369_v53  ;;  %v2733_v25 = vsub.f32 1.0, %v2732_v15  ;;  %v2755_v22 = vand.u32 2147483647, %v9384_v3  ;;  %v885_v13 = vpop.f32.mrf.mxu0 }
 0x16a   : > { %v7636_v30 = vpop.eup %7635  ;;  %vm2737_vm9 = vweird.f32 %v7630_v12  ;;  %vm2751_vm10 = vweird.f32 %v9384_v3  ;;  %v9420_v27 = vadd.f32 1.0, %v7634_v21  ;;  %7641 = vpow2.f32 %v7229_v47  ;;  %v1214_v21 = vpop.f32.mrf.mxu1 }
 0x16b   : > { %v2720_v20 = vadd.f32 %v7628_v62, %v2719_v19  ;;  %v4638_v28 = vsub.f32 1.0, %v4637_v16  ;;  %v2734_v31 = vmul.f32 %v7630_v12, %v2733_v25  ;;  %vm4642_vm11 = vweird.f32 %v7632_v14  ;;  %vm2738_vm13 = vmor %vm2736_vm2, %vm2737_vm9 }
 0x16c   : > { %v7638_v29 = vpop.eup %7637  ;;  %v4652_v36 = vmul.f32 %v7636_v30, %v9377_v61  ;;  %vm9423_vm12 = vcmp.eq.f32.partialorder %v4660_v24, 8.507059e+37  ;;  %v4663_v39 = vor.u32 1.1754944e-38, %v4662_v6  ;;  %vm9434_vm14 = vcmp.eq.f32.partialorder %v2755_v22, 8.507059e+37  ;;  %vm4643_vm15 = vmor %vm4641_vm3, %vm4642_vm11  ;;  %v7399_v61 = vld [vmem:[%s8884_s7 + $0x168] sm:$0xff] }
 0x16d   : > { %v2724_v33 = vsel %vm2723_vm8, %v7628_v62, %v2720_v20  ;;  %v4639_v34 = vmul.f32 %v7632_v14, %v4638_v28  ;;  %v2735_v41 = vadd.f32 %v7630_v12, %v2734_v31  ;;  %v2747_v45 = vmul.f32 %v7638_v29, %v9384_v3  ;;  %1087 = vmatmul.bf16.gmra.mxu2 %v7399_v61 }
 0x16e   : > { %v2729_v40 = vsel %vm9387_vm1, %v2728_v9, %v2724_v33  ;;  %v4653_v48 = vsub.f32 1.0, %v4652_v36  ;;  %v2757_v38 = vand.u32 2147483648, %v9384_v3  ;;  %v9439_v50 = vpop.eup %7639  ;;  %vm4657_vm0 = vweird.f32 %v7636_v30  ;;  %v1372_v3 = vpop.f32.mrf.mxu3  ;;  %1416 = vmatmul.bf16.gmra.mxu3 %v7399_v61 }
 0x16f   : > { %6388 = vst [vmem:[%s8994_s26 + $0x60] sm:$0xff] %v2729_v40  ;;  %v4640_v42 = vadd.f32 %v7632_v14, %v4639_v34  ;;  %v2739_v51 = vsel %vm2738_vm13, %v7630_v12, %v2735_v41  ;;  %v2748_v52 = vsub.f32 1.0, %v2747_v45  ;;  %7643 = vrcp.f32 %v9420_v27  ;;  %vm4658_vm2 = vmor %vm4656_vm7, %vm4657_vm0  ;;  %v1045_v28 = vpop.f32.mrf.mxu2 }
 0x170   : > { %v2744_v46 = vsel %vm9402_vm5, %v2743_v18, %v2739_v51  ;;  %v4654_v32 = vmul.f32 %v7636_v30, %v4653_v48  ;;  %v2762_v54 = vmul.f32 %v9439_v50, %v9396_v11  ;;  %v7642_v55 = vpop.eup %7641  ;;  %vm2752_vm1 = vweird.f32 %v7638_v29 }
 0x171   : > { %v4644_v35 = vsel %vm4643_vm15, %v7632_v14, %v4640_v42  ;;  %6389 = vst [vmem:[%s8994_s26 + $0x68] sm:$0xff] %v2744_v46  ;;  %v2749_v56 = vmul.f32 %v7638_v29, %v2748_v52  ;;  %v2770_v57 = vand.u32 2147483647, %v9396_v11  ;;  %v2772_v60 = vand.u32 2147483648, %v9396_v11  ;;  %vm2753_vm3 = vmor %vm2751_vm10, %vm2752_vm1 }
 0x172   : > { %v4649_v53 = vsel %vm9407_vm6, %v4648_v26, %v4644_v35  ;;  %v4655_v44 = vadd.f32 %v7636_v30, %v4654_v32  ;;  %v2763_v58 = vsub.f32 1.0, %v2762_v54  ;;  %v9455_v47 = vadd.f32 1.0, %v7642_v55 }
 0x173   : > { %6516 = vst [vmem:[%s8994_s26 + $0x460] sm:$0xff] %v4649_v53  ;;  %v2750_v62 = vadd.f32 %v7638_v29, %v2749_v56  ;;  %v2758_v63 = vor.u32 1.1754944e-38, %v2757_v38  ;;  %7645 = vpow2.f32 %v9379_v59  ;;  %v1044_v0 = vadd.f32 %v1043_v43, %v8910_v1 }
 0x174   : > { %v4659_v4 = vsel %vm4658_vm2, %v7636_v30, %v4655_v44  ;;  %v2764_v5 = vmul.f32 %v9439_v50, %v2763_v58  ;;  %vm2767_vm4 = vweird.f32 %v9439_v50  ;;  %7647 = vrcp.f32 %v9455_v47 }
 0x175   : > { %v7644_v9 = vpop.eup %7643  ;;  %v4664_v59 = vsel %vm9423_vm12, %v4663_v39, %v4659_v4  ;;  %v2754_v10 = vsel %vm2753_vm3, %v7638_v29, %v2750_v62  ;;  %vm2766_vm5 = vweird.f32 %v9396_v11  ;;  %vm9472_vm6 = vcmp.eq.f32.partialorder %v2770_v57, 8.507059e+37 }
 0x176   : > { %6517 = vst [vmem:[%s8994_s26 + $0x468] sm:$0xff] %v4664_v59  ;;  %v2759_v14 = vsel %vm9434_vm14, %v2758_v63, %v2754_v10  ;;  %v2765_v15 = vadd.f32 %v9439_v50, %v2764_v5  ;;  %v2773_v17 = vor.u32 1.1754944e-38, %v2772_v60  ;;  %v4667_v18 = vmul.f32 %v7644_v9, %v9420_v27  ;;  %vm2768_vm7 = vmor %vm2766_vm5, %vm2767_vm4  ;;  %v1374_v55 = vpop.f32.mrf.mxu3  ;;  %v888_v63 = vpop.f32.mrf.mxu0 }
 0x177   : > { %6390 = vst [vmem:[%s8994_s26 + $0x70] sm:$0xff] %v2759_v14  ;;  %v4675_v11 = vand.u32 2147483647, %v9420_v27  ;;  %v4677_v19 = vand.u32 2147483648, %v9420_v27  ;;  %7649 = vpow2.f32 %v9392_v8  ;;  %v7230_v16 = vmul.f32 -1.442695, %v1044_v0 }
 0x178   : > { %v2769_v23 = vsel %vm2768_vm7, %v9439_v50, %v2765_v15  ;;  %v4668_v24 = vsub.f32 1.0, %v4667_v18  ;;  %v1373_v25 = vadd.f32 %v1372_v3, %v8912_v2  ;;  %v886_v26 = vadd.f32 %v885_v13, %v8910_v1  ;;  %v1217_v3 = vpop.f32.mrf.mxu1 }
 0x179   : > { %v7646_v6 = vpop.eup %7645  ;;  %v2774_v20 = vsel %vm9472_vm6, %v2773_v17, %v2769_v23  ;;  %vm4672_vm8 = vweird.f32 %v7644_v9  ;;  %7651 = vpow2.f32 %v7230_v16  ;;  %v1215_v8 = vadd.f32 %v1214_v21, %v8912_v2 }
 0x17a   : > { %v7648_v22 = vpop.eup %7647  ;;  %6391 = vst [vmem:[%s8994_s26 + $0x78] sm:$0xff] %v2774_v20  ;;  %v4669_v30 = vmul.f32 %v7644_v9, %v4668_v24  ;;  %v9494_v31 = vadd.f32 1.0, %v7646_v6  ;;  %v7231_v29 = vmul.f32 -1.442695, %v1373_v25  ;;  %v7104_v33 = vmul.f32 -1.442695, %v886_v26 }
 0x17b   : > { %vm4671_vm9 = vweird.f32 %v9420_v27  ;;  %vm9497_vm10 = vcmp.eq.f32.partialorder %v4675_v11, 8.507059e+37  ;;  %v4682_v36 = vmul.f32 %v7648_v22, %v9455_v47  ;;  %v7105_v37 = vmul.f32 -1.442695, %v1215_v8 }
 0x17c   : > { %v4670_v40 = vadd.f32 %v7644_v9, %v4669_v30  ;;  %v4678_v41 = vor.u32 1.1754944e-38, %v4677_v19  ;;  %7653 = vrcp.f32 %v9494_v31  ;;  %v1046_v39 = vadd.f32 %v1045_v28, %v8910_v1  ;;  %vm4673_vm11 = vmor %vm4671_vm9, %vm4672_vm8 }
 0x17d   : > { %v7650_v45 = vpop.eup %7649  ;;  %v4683_v42 = vsub.f32 1.0, %v4682_v36  ;;  %v4690_v27 = vand.u32 2147483647, %v9455_v47  ;;  %v4692_v48 = vand.u32 2147483648, %v9455_v47  ;;  %7655 = vpow2.f32 %v7231_v29 }
 0x17e   : > { %v4674_v49 = vsel %vm4673_vm11, %v7644_v9, %v4670_v40  ;;  %vm4687_vm12 = vweird.f32 %v7648_v22  ;;  %v9507_v38 = vadd.f32 1.0, %v7650_v45  ;;  %7657 = vpow2.f32 %v7104_v33 }
 0x17f   : > { %v7652_v50 = vpop.eup %7651  ;;  %v4679_v51 = vsel %vm9497_vm10, %v4678_v41, %v4674_v49  ;;  %v4684_v52 = vmul.f32 %v7648_v22, %v4683_v42  ;;  %v2785_v43 = vand.u32 2147483647, %v9494_v31  ;;  %7659 = vpow2.f32 %v7105_v37 }
 0x180   : > { %6518 = vst [vmem:[%s8994_s26 + $0x470] sm:$0xff] %v4679_v51  ;;  %v2787_v46 = vand.u32 2147483648, %v9494_v31  ;;  %7661 = vrcp.f32 %v9507_v38  ;;  %v7232_v35 = vmul.f32 -1.442695, %v1046_v39  ;;  %vm4686_vm13 = vweird.f32 %v9455_v47 }
 0x181   : > { %v4685_v32 = vadd.f32 %v7648_v22, %v4684_v52  ;;  %v9516_v54 = vadd.f32 1.0, %v7652_v50  ;;  %vm4688_vm14 = vmor %vm4686_vm13, %vm4687_vm12  ;;  %vm4691_vm15 = vcmp.eq.f32.partialorder %v4690_v27, 8.507059e+37  ;;  %v4693_v56 = vor.u32 1.1754944e-38, %v4692_v48 }
 0x182   : > { %v7654_v53 = vpop.eup %7653  ;;  %vm2781_vm0 = vweird.f32 %v9494_v31  ;;  %v2802_v57 = vand.u32 2147483648, %v9507_v38  ;;  %vm9522_vm1 = vcmp.eq.f32.partialorder %v2785_v43, 8.507059e+37  ;;  %v2800_v47 = vand.u32 2147483647, %v9507_v38 }
 0x183   : > { %v7656_v44 = vpop.eup %7655  ;;  %v4689_v58 = vsel %vm4688_vm14, %v7648_v22, %v4685_v32  ;;  %v2777_v60 = vmul.f32 %v7654_v53, %v9494_v31  ;;  %7663 = vrcp.f32 %v9516_v54  ;;  %v2788_v5 = vor.u32 1.1754944e-38, %v2787_v46  ;;  %v1048_v46 = vpop.f32.mrf.mxu2 }
 0x184   : > { %v7658_v0 = vpop.eup %7657  ;;  %v4694_v4 = vsel %vm4691_vm15, %v4693_v56, %v4689_v58  ;;  %7665 = vpow2.f32 %v7232_v35  ;;  %v1375_v7 = vadd.f32 %v1374_v55, %v8912_v2  ;;  %v4707_v59 = vand.u32 2147483648, %v9516_v54 }
 0x185   : > { %v7660_v61 = vpop.eup %7659  ;;  %6519 = vst [vmem:[%s8994_s26 + $0x478] sm:$0xff] %v4694_v4  ;;  %v2778_v9 = vsub.f32 1.0, %v2777_v60  ;;  %v9531_v10 = vadd.f32 1.0, %v7656_v44  ;;  %v9533_v12 = vadd.f32 1.0, %v7658_v0  ;;  %vm2796_vm2 = vweird.f32 %v9507_v38 }
 0x186   : > { %v7662_v13 = vpop.eup %7661  ;;  %v2803_v14 = vor.u32 1.1754944e-38, %v2802_v57  ;;  %v4705_v15 = vand.u32 2147483647, %v9516_v54  ;;  %v889_v17 = vadd.f32 %v888_v63, %v8910_v1  ;;  %vm2782_vm3 = vweird.f32 %v7654_v53  ;;  %v890_v63 = vpop.f32.mrf.mxu0 }
 0x187   : > { %v2779_v18 = vmul.f32 %v7654_v53, %v2778_v9  ;;  %v2792_v21 = vmul.f32 %v7662_v13, %v9507_v38  ;;  %vm9539_vm4 = vcmp.eq.f32.partialorder %v2800_v47, 8.507059e+37  ;;  %7667 = vrcp.f32 %v9531_v10  ;;  %vm2783_vm6 = vmor %vm2781_vm0, %vm2782_vm3  ;;  %v1377_v47 = vpop.f32.mrf.mxu3 }
 0x188   : > { %vm4701_vm5 = vweird.f32 %v9516_v54  ;;  %7669 = vrcp.f32 %v9533_v12  ;;  %v9546_v19 = vadd.f32 1.0, %v7660_v61  ;;  %v9549_v16 = vadd.f32 %v1217_v3, %v8912_v2 }
 0x189   : > { %v7664_v23 = vpop.eup %7663  ;;  %v2780_v24 = vadd.f32 %v7654_v53, %v2779_v18  ;;  %v2793_v25 = vsub.f32 1.0, %v2792_v21  ;;  %v4708_v26 = vor.u32 1.1754944e-38, %v4707_v59  ;;  %v7233_v6 = vmul.f32 -1.442695, %v1375_v7  ;;  %v1219_v21 = vpop.f32.mrf.mxu1 }
 0x18a   : > { %v7666_v20 = vpop.eup %7665  ;;  %vm2797_vm7 = vweird.f32 %v7662_v13  ;;  %v4697_v8 = vmul.f32 %v7664_v23, %v9516_v54  ;;  %vm9554_vm8 = vcmp.eq.f32.partialorder %v4705_v15, 8.507059e+37  ;;  %v4720_v22 = vand.u32 2147483647, %v9531_v10 }
 0x18b   : > { %v7106_v30 = vmul.f32 -1.442695, %v889_v17  ;;  %v2784_v29 = vsel %vm2783_vm6, %v7654_v53, %v2780_v24  ;;  %v2794_v33 = vmul.f32 %v7662_v13, %v2793_v25  ;;  %v4722_v34 = vand.u32 2147483648, %v9531_v10  ;;  %vm2798_vm12 = vmor %vm2796_vm2, %vm2797_vm7 }
 0x18c   : > { %v2815_v36 = vand.u32 2147483647, %v9533_v12  ;;  %v2789_v31 = vsel %vm9522_vm1, %v2788_v5, %v2784_v29  ;;  %v4698_v37 = vsub.f32 1.0, %v4697_v8  ;;  %vm4716_vm9 = vweird.f32 %v9531_v10  ;;  %v1050_v8 = vpop.f32.mrf.mxu2 }
 0x18d   : > { %7671 = vrcp.f32 %v9546_v19  ;;  %v7668_v40 = vpop.eup %7667  ;;  %6392 = vst [vmem:[%s8994_s26 + $0x80] sm:$0xff] %v2789_v31  ;;  %v2795_v41 = vadd.f32 %v7662_v13, %v2794_v33  ;;  %vm4702_vm10 = vweird.f32 %v7664_v23  ;;  %vm2811_vm11 = vweird.f32 %v9533_v12  ;;  %v7368_v33 = vld [vmem:[%s8884_s7 + $0x70] sm:$0xff] }
 0x18e   : > { %v2817_v39 = vand.u32 2147483648, %v9533_v12  ;;  %v7670_v45 = vpop.eup %7669  ;;  %v4699_v42 = vmul.f32 %v7664_v23, %v4698_v37  ;;  %v4712_v27 = vmul.f32 %v7668_v40, %v9531_v10  ;;  %vm9572_vm13 = vcmp.eq.f32.partialorder %v4720_v22, 8.507059e+37  ;;  %vm4703_vm15 = vmor %vm4701_vm5, %vm4702_vm10  ;;  %932 = vmatmul.bf16.gmra.mxu0 %v7368_v33  ;;  %1261 = vmatmul.bf16.gmra.mxu1 %v7368_v33 }
 0x18f   : > { %v9576_v49 = vadd.f32 1.0, %v7666_v20  ;;  %v2799_v50 = vsel %vm2798_vm12, %v7662_v13, %v2795_v41  ;;  %v4723_v51 = vor.u32 1.1754944e-38, %v4722_v34  ;;  %v2807_v52 = vmul.f32 %v7670_v45, %v9533_v12  ;;  %v7400_v34 = vld [vmem:[%s8884_s7 + $0x170] sm:$0xff]  ;;  %v1379_v48 = vpop.f32.mrf.mxu3 }
 0x190   : > { %vm9579_vm14 = vcmp.eq.f32.partialorder %v2815_v36, 8.507059e+37  ;;  %v2804_v38 = vsel %vm9539_vm4, %v2803_v14, %v2799_v50  ;;  %v4700_v35 = vadd.f32 %v7664_v23, %v4699_v42  ;;  %v4713_v32 = vsub.f32 1.0, %v4712_v27  ;;  %1092 = vmatmul.bf16.gmra.mxu2 %v7400_v34  ;;  %1421 = vmatmul.bf16.gmra.mxu3 %v7400_v34 }
 0x191   : > { %v2830_v55 = vand.u32 2147483647, %v9546_v19  ;;  %6393 = vst [vmem:[%s8994_s26 + $0x88] sm:$0xff] %v2804_v38  ;;  %v2808_v53 = vsub.f32 1.0, %v2807_v52  ;;  %v2818_v56 = vor.u32 1.1754944e-38, %v2817_v39  ;;  %vm2826_vm0 = vweird.f32 %v9546_v19  ;;  %v893_v38 = vpop.f32.mrf.mxu0 }
 0x192   : > { %7673 = vrcp.f32 %v9576_v49  ;;  %v4704_v44 = vsel %vm4703_vm15, %v7664_v23, %v4700_v35  ;;  %v4714_v58 = vmul.f32 %v7668_v40, %v4713_v32  ;;  %vm4717_vm1 = vweird.f32 %v7668_v40 }
 0x193   : > { %v7672_v57 = vpop.eup %7671  ;;  %7675 = vpow2.f32 %v7233_v6  ;;  %v4709_v60 = vsel %vm9554_vm8, %v4708_v26, %v4704_v44  ;;  %v2809_v62 = vmul.f32 %v7670_v45, %v2808_v53  ;;  %vm2812_vm2 = vweird.f32 %v7670_v45  ;;  %vm4718_vm4 = vmor %vm4716_vm9, %vm4717_vm1 }
 0x194   : > { %v2822_v54 = vmul.f32 %v7672_v57, %v9546_v19  ;;  %6520 = vst [vmem:[%s8994_s26 + $0x480] sm:$0xff] %v4709_v60  ;;  %v4715_v0 = vadd.f32 %v7668_v40, %v4714_v58  ;;  %vm9596_vm3 = vcmp.eq.f32.partialorder %v2830_v55, 8.507059e+37  ;;  %v2832_v5 = vand.u32 2147483648, %v9546_v19  ;;  %vm2813_vm5 = vmor %vm2811_vm11, %vm2812_vm2 }
 0x195   : > { %7677 = vpow2.f32 %v7106_v30  ;;  %v2810_v7 = vadd.f32 %v7670_v45, %v2809_v62  ;;  %v7107_v9 = vmul.f32 -1.442695, %v9549_v16  ;;  %v1049_v59 = vadd.f32 %v1048_v46, %v8910_v1 }
 0x196   : > { %v2823_v61 = vsub.f32 1.0, %v2822_v54  ;;  %v4719_v3 = vsel %vm4718_vm4, %v7668_v40, %v4715_v0  ;;  %vm2827_vm6 = vweird.f32 %v7672_v57  ;;  %v1378_v13 = vadd.f32 %v1377_v47, %v8912_v2 }
 0x197   : > { %v891_v14 = vadd.f32 %v890_v63, %v8910_v1  ;;  %v4724_v15 = vsel %vm9572_vm13, %v4723_v51, %v4719_v3  ;;  %v2814_v17 = vsel %vm2813_vm5, %v7670_v45, %v2810_v7  ;;  %7679 = vpow2.f32 %v7107_v9  ;;  %vm2828_vm7 = vmor %vm2826_vm0, %vm2827_vm6  ;;  %v1382_v3 = vpop.f32.mrf.mxu3 }
 0x198   : > { %v7674_v10 = vpop.eup %7673  ;;  %v2824_v18 = vmul.f32 %v7672_v57, %v2823_v61  ;;  %6521 = vst [vmem:[%s8994_s26 + $0x488] sm:$0xff] %v4724_v15  ;;  %v2819_v12 = vsel %vm9579_vm14, %v2818_v56, %v2814_v17  ;;  %v2833_v16 = vor.u32 1.1754944e-38, %v2832_v5  ;;  %v7234_v24 = vmul.f32 -1.442695, %v1049_v59 }
 0x199   : > { %v7676_v11 = vpop.eup %7675  ;;  %v4727_v23 = vmul.f32 %v7674_v10, %v9576_v49  ;;  %6394 = vst [vmem:[%s8994_s26 + $0x90] sm:$0xff] %v2819_v12  ;;  %v4735_v26 = vand.u32 2147483647, %v9576_v49  ;;  %v7235_v20 = vmul.f32 -1.442695, %v1378_v13  ;;  %v4737_v30 = vand.u32 2147483648, %v9576_v49 }
 0x19a   : > { %v2825_v25 = vadd.f32 %v7672_v57, %v2824_v18  ;;  %v9618_v6 = vadd.f32 1.0, %v7676_v11  ;;  %7681 = vpow2.f32 %v7234_v24  ;;  %v1220_v29 = vadd.f32 %v1219_v21, %v8912_v2 }
 0x19b   : > { %v7678_v28 = vpop.eup %7677  ;;  %v4728_v22 = vsub.f32 1.0, %v4727_v23  ;;  %vm4732_vm8 = vweird.f32 %v7674_v10  ;;  %v7108_v31 = vmul.f32 -1.442695, %v891_v14  ;;  %v1051_v41 = vadd.f32 %v1050_v8, %v8910_v1 }
 0x19c   : > { %v2829_v36 = vsel %vm2828_vm7, %v7672_v57, %v2825_v25  ;;  %7683 = vrcp.f32 %v9618_v6  ;;  %v9630_v19 = vadd.f32 1.0, %v7678_v28  ;;  %vm4731_vm9 = vweird.f32 %v9576_v49 }
 0x19d   : > { %v2834_v37 = vsel %vm9596_vm3, %v2833_v16, %v2829_v36  ;;  %v4729_v40 = vmul.f32 %v7674_v10, %v4728_v22  ;;  %v7680_v39 = vpop.eup %7679  ;;  %7685 = vpow2.f32 %v7235_v20  ;;  %v4750_v42 = vand.u32 2147483647, %v9618_v6  ;;  %vm4733_vm10 = vmor %vm4731_vm9, %vm4732_vm8 }
 0x19e   : > { %6395 = vst [vmem:[%s8994_s26 + $0x98] sm:$0xff] %v2834_v37  ;;  %7687 = vrcp.f32 %v9630_v19  ;;  %v7109_v27 = vmul.f32 -1.442695, %v1220_v29  ;;  %v4738_v50 = vor.u32 1.1754944e-38, %v4737_v30  ;;  %v4752_v51 = vand.u32 2147483648, %v9618_v6 }
 0x19f   : > { %v4730_v45 = vadd.f32 %v7674_v10, %v4729_v40  ;;  %v9639_v52 = vadd.f32 1.0, %v7680_v39  ;;  %vm4736_vm11 = vcmp.eq.f32.partialorder %v4735_v26, 8.507059e+37  ;;  %7689 = vpow2.f32 %v7108_v31 }
 0x1a0   : > { %v7682_v43 = vpop.eup %7681  ;;  %v7236_v46 = vmul.f32 -1.442695, %v1051_v41  ;;  %vm4746_vm12 = vweird.f32 %v9618_v6  ;;  %v1380_v55 = vadd.f32 %v1379_v48, %v8912_v2  ;;  %vm9646_vm13 = vcmp.eq.f32.partialorder %v4750_v42, 8.507059e+37 }
 0x1a1   : > { %v4734_v49 = vsel %vm4733_vm10, %v7674_v10, %v4730_v45  ;;  %7691 = vrcp.f32 %v9639_v52  ;;  %v2845_v57 = vand.u32 2147483647, %v9630_v19  ;;  %v4753_v58 = vor.u32 1.1754944e-38, %v4752_v51 }
 0x1a2   : > { %v7684_v35 = vpop.eup %7683  ;;  %v4739_v32 = vsel %vm4736_vm11, %v4738_v50, %v4734_v49  ;;  %7693 = vpow2.f32 %v7109_v27  ;;  %v2847_v60 = vand.u32 2147483648, %v9630_v19  ;;  %v9652_v62 = vadd.f32 1.0, %v7682_v43 }
 0x1a3   : > { %6522 = vst [vmem:[%s8994_s26 + $0x490] sm:$0xff] %v4739_v32  ;;  %v4742_v53 = vmul.f32 %v7684_v35, %v9618_v6  ;;  %v7686_v44 = vpop.eup %7685  ;;  %v894_v54 = vadd.f32 %v893_v38, %v8910_v1  ;;  %v2860_v0 = vand.u32 2147483647, %v9639_v52  ;;  %7695 = vpow2.f32 %v7236_v46  ;;  %v1222_v46 = vpop.f32.mrf.mxu1 }
 0x1a4   : > { %v7688_v47 = vpop.eup %7687  ;;  %v9656_v4 = vadd.f32 1.0, %v7686_v44  ;;  %v2862_v7 = vand.u32 2147483648, %v9639_v52  ;;  %7697 = vrcp.f32 %v9652_v62  ;;  %v7237_v61 = vmul.f32 -1.442695, %v1380_v55 }
 0x1a5   : > { %v4743_v63 = vsub.f32 1.0, %v4742_v53  ;;  %v2837_v5 = vmul.f32 %v7688_v47, %v9630_v19  ;;  %v7690_v9 = vpop.eup %7689  ;;  %vm4747_vm14 = vweird.f32 %v7684_v35  ;;  %vm2841_vm15 = vweird.f32 %v9630_v19 }
 0x1a6   : > { %vm9662_vm0 = vcmp.eq.f32.partialorder %v2845_v57, 8.507059e+37  ;;  %v2848_v10 = vor.u32 1.1754944e-38, %v2847_v60  ;;  %vm2856_vm1 = vweird.f32 %v9639_v52  ;;  %7699 = vrcp.f32 %v9656_v4  ;;  %vm4748_vm3 = vmor %vm4746_vm12, %vm4747_vm14 }
 0x1a7   : > { %v4744_v59 = vmul.f32 %v7684_v35, %v4743_v63  ;;  %v7692_v13 = vpop.eup %7691  ;;  %v2838_v14 = vsub.f32 1.0, %v2837_v5  ;;  %vm9669_vm2 = vcmp.eq.f32.partialorder %v2860_v0, 8.507059e+37  ;;  %v9673_v11 = vmul.f32 -1.442695, %v894_v54  ;;  %v1053_v63 = vpop.f32.mrf.mxu2 }
 0x1a8   : > { %v7694_v15 = vpop.eup %7693  ;;  %v2852_v18 = vmul.f32 %v7692_v13, %v9639_v52  ;;  %vm2842_vm4 = vweird.f32 %v7688_v47  ;;  %v2863_v16 = vor.u32 1.1754944e-38, %v2862_v7  ;;  %7701 = vpow2.f32 %v7237_v61 }
 0x1a9   : > { %v4745_v17 = vadd.f32 %v7684_v35, %v4744_v59  ;;  %v2839_v12 = vmul.f32 %v7688_v47, %v2838_v14  ;;  %v7696_v23 = vpop.eup %7695  ;;  %vm4761_vm5 = vweird.f32 %v9652_v62  ;;  %v4765_v26 = vand.u32 2147483647, %v9652_v62  ;;  %vm2843_vm6 = vmor %vm2841_vm15, %vm2842_vm4 }
 0x1aa   : > { %v2853_v25 = vsub.f32 1.0, %v2852_v18  ;;  %v9679_v20 = vadd.f32 1.0, %v7690_v9  ;;  %v7698_v8 = vpop.eup %7697  ;;  %v4767_v22 = vand.u32 2147483648, %v9652_v62  ;;  %v9684_v30 = vadd.f32 1.0, %v7694_v15 }
 0x1ab   : > { %v4749_v24 = vsel %vm4748_vm3, %v7684_v35, %v4745_v17  ;;  %v2840_v6 = vadd.f32 %v7688_v47, %v2839_v12  ;;  %vm2857_vm7 = vweird.f32 %v7692_v13  ;;  %v4757_v33 = vmul.f32 %v7698_v8, %v9652_v62 }
 0x1ac   : > { %v4754_v28 = vsel %vm9646_vm13, %v4753_v58, %v4749_v24  ;;  %v2854_v29 = vmul.f32 %v7692_v13, %v2853_v25  ;;  %vm4776_vm8 = vweird.f32 %v9656_v4  ;;  %7703 = vrcp.f32 %v9679_v20  ;;  %v7700_v34 = vpop.eup %7699  ;;  %vm2858_vm9 = vmor %vm2856_vm1, %vm2857_vm7  ;;  %v7401_v24 = vld [vmem:[%s8884_s7 + $0x178] sm:$0xff] }
 0x1ad   : > { %6523 = vst [vmem:[%s8994_s26 + $0x498] sm:$0xff] %v4754_v28  ;;  %v2844_v36 = vsel %vm2843_vm6, %v7688_v47, %v2840_v6  ;;  %v4780_v31 = vand.u32 2147483647, %v9656_v4  ;;  %v4782_v37 = vand.u32 2147483648, %v9656_v4  ;;  %v9695_v40 = vadd.f32 1.0, %v7696_v23  ;;  %v7369_v23 = vld [vmem:[%s8884_s7 + $0x78] sm:$0xff]  ;;  %v895_v28 = vpop.f32.mrf.mxu0  ;;  %v1224_v6 = vpop.f32.mrf.mxu1  ;;  %1097 = vmatmul.bf16.gmra.mxu2 %v7401_v24  ;;  %1426 = vmatmul.bf16.gmra.mxu3 %v7401_v24 }
 0x1ae   : > { %v2849_v19 = vsel %vm9662_vm0, %v2848_v10, %v2844_v36  ;;  %v2855_v41 = vadd.f32 %v7692_v13, %v2854_v29  ;;  %v4758_v39 = vsub.f32 1.0, %v4757_v33  ;;  %v4772_v45 = vmul.f32 %v7700_v34, %v9656_v4  ;;  %v7702_v42 = vpop.eup %7701  ;;  %937 = vmatmul.bf16.gmra.mxu0 %v7369_v23  ;;  %1266 = vmatmul.bf16.gmra.mxu1 %v7369_v23 }
 0x1af   : > { %6396 = vst [vmem:[%s8994_s26 + $0xa0] sm:$0xff] %v2849_v19  ;;  %vm9704_vm10 = vcmp.eq.f32.partialorder %v4765_v26, 8.507059e+37  ;;  %v2875_v48 = vand.u32 2147483647, %v9679_v20  ;;  %v2877_v50 = vand.u32 2147483648, %v9679_v20  ;;  %7705 = vrcp.f32 %v9684_v30 }
 0x1b0   : > { %v2859_v51 = vsel %vm2858_vm9, %v7692_v13, %v2855_v41  ;;  %v4759_v43 = vmul.f32 %v7698_v8, %v4758_v39  ;;  %vm4762_vm11 = vweird.f32 %v7698_v8  ;;  %v4773_v49 = vsub.f32 1.0, %v4772_v45 }
 0x1b1   : > { %v2864_v52 = vsel %vm9669_vm2, %v2863_v16, %v2859_v51  ;;  %v4768_v38 = vor.u32 1.1754944e-38, %v4767_v22  ;;  %vm9713_vm12 = vcmp.eq.f32.partialorder %v4780_v31, 8.507059e+37  ;;  %7707 = vrcp.f32 %v9695_v40  ;;  %vm4763_vm14 = vmor %vm4761_vm5, %vm4762_vm11 }
 0x1b2   : > { %v7704_v32 = vpop.eup %7703  ;;  %6397 = vst [vmem:[%s8994_s26 + $0xa8] sm:$0xff] %v2864_v52  ;;  %v4760_v55 = vadd.f32 %v7698_v8, %v4759_v43  ;;  %v4774_v53 = vmul.f32 %v7700_v34, %v4773_v49  ;;  %vm4777_vm13 = vweird.f32 %v7700_v34  ;;  %v4783_v56 = vor.u32 1.1754944e-38, %v4782_v37 }
 0x1b3   : > { %v2867_v57 = vmul.f32 %v7704_v32, %v9679_v20  ;;  %vm2871_vm15 = vweird.f32 %v9679_v20  ;;  %vm9723_vm0 = vcmp.eq.f32.partialorder %v2875_v48, 8.507059e+37  ;;  %v2878_v58 = vor.u32 1.1754944e-38, %v2877_v50  ;;  %vm4778_vm2 = vmor %vm4776_vm8, %vm4777_vm13  ;;  %v1055_v50 = vpop.f32.mrf.mxu2 }
 0x1b4   : > { %v4764_v60 = vsel %vm4763_vm14, %v7698_v8, %v4760_v55  ;;  %v4775_v54 = vadd.f32 %v7700_v34, %v4774_v53  ;;  %vm2886_vm1 = vweird.f32 %v9684_v30  ;;  %v2890_v47 = vand.u32 2147483647, %v9684_v30 }
 0x1b5   : > { %v7706_v0 = vpop.eup %7705  ;;  %v4769_v62 = vsel %vm9704_vm10, %v4768_v38, %v4764_v60  ;;  %v2868_v5 = vsub.f32 1.0, %v2867_v57  ;;  %v9733_v7 = vadd.f32 1.0, %v7702_v42  ;;  %7709 = vpow2.f32 %v9673_v11  ;;  %v1384_v38 = vpop.f32.mrf.mxu3 }
 0x1b6   : > { %6524 = vst [vmem:[%s8994_s26 + $0x4a0] sm:$0xff] %v4769_v62  ;;  %v4779_v61 = vsel %vm4778_vm2, %v7700_v34, %v4775_v54  ;;  %v2882_v9 = vmul.f32 %v7706_v0, %v9684_v30  ;;  %v2892_v59 = vand.u32 2147483648, %v9684_v30  ;;  %vm4791_vm3 = vweird.f32 %v9695_v40 }
 0x1b7   : > { %v7708_v13 = vpop.eup %7707  ;;  %v4784_v4 = vsel %vm9713_vm12, %v4783_v56, %v4779_v61  ;;  %v2869_v14 = vmul.f32 %v7704_v32, %v2868_v5  ;;  %vm2872_vm4 = vweird.f32 %v7704_v32  ;;  %7711 = vrcp.f32 %v9733_v7 }
 0x1b8   : > { %6525 = vst [vmem:[%s8994_s26 + $0x4a8] sm:$0xff] %v4784_v4  ;;  %v2883_v10 = vsub.f32 1.0, %v2882_v9  ;;  %vm9744_vm5 = vcmp.eq.f32.partialorder %v2890_v47, 8.507059e+37  ;;  %v4787_v17 = vmul.f32 %v7708_v13, %v9695_v40  ;;  %v4795_v18 = vand.u32 2147483647, %v9695_v40  ;;  %vm2873_vm6 = vmor %vm2871_vm15, %vm2872_vm4  ;;  %v898_v47 = vpop.f32.mrf.mxu0 }
 0x1b9   : > { %v2870_v21 = vadd.f32 %v7704_v32, %v2869_v14  ;;  %v4797_v11 = vand.u32 2147483648, %v9695_v40  ;;  %v1223_v12 = vadd.f32 %v1222_v46, %v8912_v2  ;;  %v1054_v16 = vadd.f32 %v1053_v63, %v8910_v1  ;;  %v1227_v63 = vpop.f32.mrf.mxu1 }
 0x1ba   : > { %v2884_v25 = vmul.f32 %v7706_v0, %v2883_v10  ;;  %vm2887_vm7 = vweird.f32 %v7706_v0  ;;  %v4788_v26 = vsub.f32 1.0, %v4787_v17  ;;  %v1383_v8 = vadd.f32 %v1382_v3, %v8912_v2 }
 0x1bb   : > { %v7710_v22 = vpop.eup %7709  ;;  %v2874_v29 = vsel %vm2873_vm6, %v7704_v32, %v2870_v21  ;;  %vm4792_vm8 = vweird.f32 %v7708_v13  ;;  %v7111_v33 = vmul.f32 -1.442695, %v1223_v12  ;;  %v7238_v34 = vmul.f32 -1.442695, %v1054_v16  ;;  %vm2888_vm9 = vmor %vm2886_vm1, %vm2887_vm7  ;;  %v1058_v21 = vpop.f32.mrf.mxu2 }
 0x1bc   : > { %v2879_v36 = vsel %vm9723_vm0, %v2878_v58, %v2874_v29  ;;  %v2885_v20 = vadd.f32 %v7706_v0, %v2884_v25  ;;  %v4789_v31 = vmul.f32 %v7708_v13, %v4788_v26  ;;  %v9760_v37 = vadd.f32 1.0, %v7710_v22  ;;  %vm4793_vm11 = vmor %vm4791_vm3, %vm4792_vm8 }
 0x1bd   : > { %v7712_v19 = vpop.eup %7711  ;;  %6398 = vst [vmem:[%s8994_s26 + $0xb0] sm:$0xff] %v2879_v36  ;;  %v2893_v41 = vor.u32 1.1754944e-38, %v2892_v59  ;;  %7713 = vpow2.f32 %v7111_v33  ;;  %v7239_v39 = vmul.f32 -1.442695, %v1383_v8  ;;  %v896_v45 = vadd.f32 %v895_v28, %v8910_v1 }
 0x1be   : > { %v2889_v42 = vsel %vm2888_vm9, %v7706_v0, %v2885_v20  ;;  %v4790_v27 = vadd.f32 %v7708_v13, %v4789_v31  ;;  %vm4796_vm10 = vcmp.eq.f32.partialorder %v4795_v18, 8.507059e+37  ;;  %v4802_v48 = vmul.f32 %v7712_v19, %v9733_v7 }
 0x1bf   : > { %v2894_v51 = vsel %vm9744_vm5, %v2893_v41, %v2889_v42  ;;  %v4798_v30 = vor.u32 1.1754944e-38, %v4797_v11  ;;  %7715 = vrcp.f32 %v9760_v37  ;;  %v1225_v43 = vadd.f32 %v1224_v6, %v8912_v2 }
 0x1c0   : > { %6399 = vst [vmem:[%s8994_s26 + $0xb8] sm:$0xff] %v2894_v51  ;;  %v4794_v49 = vsel %vm4793_vm11, %v7708_v13, %v4790_v27  ;;  %v4803_v46 = vsub.f32 1.0, %v4802_v48  ;;  %v4810_v52 = vand.u32 2147483647, %v9733_v7  ;;  %7717 = vpow2.f32 %v7238_v34 }
 0x1c1   : > { %v4799_v35 = vsel %vm4796_vm10, %v4798_v30, %v4794_v49  ;;  %v4812_v32 = vand.u32 2147483648, %v9733_v7  ;;  %7719 = vpow2.f32 %v7239_v39  ;;  %v7112_v55 = vmul.f32 -1.442695, %v896_v45 }
 0x1c2   : > { %6526 = vst [vmem:[%s8994_s26 + $0x4b0] sm:$0xff] %v4799_v35  ;;  %v4804_v40 = vmul.f32 %v7712_v19, %v4803_v46  ;;  %vm4807_vm12 = vweird.f32 %v7712_v19  ;;  %v1056_v53 = vadd.f32 %v1055_v50, %v8910_v1  ;;  %v7113_v57 = vmul.f32 -1.442695, %v1225_v43 }
 0x1c3   : > { %v7714_v56 = vpop.eup %7713  ;;  %7721 = vpow2.f32 %v7112_v55  ;;  %v1385_v44 = vadd.f32 %v1384_v38, %v8912_v2  ;;  %vm4806_vm13 = vweird.f32 %v9733_v7  ;;  %vm4811_vm15 = vcmp.eq.f32.partialorder %v4810_v52, 8.507059e+37 }
 0x1c4   : > { %v4805_v58 = vadd.f32 %v7712_v19, %v4804_v40  ;;  %v9782_v60 = vadd.f32 1.0, %v7714_v56  ;;  %v7240_v54 = vmul.f32 -1.442695, %v1056_v53  ;;  %vm4808_vm14 = vmor %vm4806_vm13, %vm4807_vm12  ;;  %v4813_v62 = vor.u32 1.1754944e-38, %v4812_v32 }
 0x1c5   : > { %v7716_v0 = vpop.eup %7715  ;;  %v2905_v5 = vand.u32 2147483647, %v9760_v37  ;;  %v7241_v61 = vmul.f32 -1.442695, %v1385_v44  ;;  %v2907_v13 = vand.u32 2147483648, %v9760_v37  ;;  %v899_v14 = vadd.f32 %v898_v47, %v8910_v1 }
 0x1c6   : > { %v7718_v9 = vpop.eup %7717  ;;  %v4809_v59 = vsel %vm4808_vm14, %v7712_v19, %v4805_v58  ;;  %v2897_v3 = vmul.f32 %v7716_v0, %v9760_v37  ;;  %7723 = vrcp.f32 %v9782_v60  ;;  %v1228_v10 = vadd.f32 %v1227_v63, %v8912_v2 }
 0x1c7   : > { %v7720_v7 = vpop.eup %7719  ;;  %v4814_v4 = vsel %vm4811_vm15, %v4813_v62, %v4809_v59  ;;  %7725 = vpow2.f32 %v7113_v57  ;;  %v9791_v17 = vadd.f32 1.0, %v7718_v9  ;;  %vm2901_vm0 = vweird.f32 %v9760_v37 }
 0x1c8   : > { %6527 = vst [vmem:[%s8994_s26 + $0x4b8] sm:$0xff] %v4814_v4  ;;  %v2898_v15 = vsub.f32 1.0, %v2897_v3  ;;  %v9793_v18 = vadd.f32 1.0, %v7720_v7  ;;  %7727 = vpow2.f32 %v7240_v54  ;;  %vm9796_vm1 = vcmp.eq.f32.partialorder %v2905_v5, 8.507059e+37 }
 0x1c9   : > { %v7722_v11 = vpop.eup %7721  ;;  %v2920_v16 = vand.u32 2147483647, %v9782_v60  ;;  %7729 = vpow2.f32 %v7241_v61  ;;  %vm2902_vm2 = vweird.f32 %v7716_v0  ;;  %v2908_v24 = vor.u32 1.1754944e-38, %v2907_v13 }
 0x1ca   : > { %v2899_v23 = vmul.f32 %v7716_v0, %v2898_v15  ;;  %7731 = vrcp.f32 %v9791_v17  ;;  %v2922_v25 = vand.u32 2147483648, %v9782_v60  ;;  %v7114_v26 = vmul.f32 -1.442695, %v899_v14  ;;  %vm2903_vm4 = vmor %vm2901_vm0, %vm2902_vm2 }
 0x1cb   : > { %7733 = vrcp.f32 %v9793_v18  ;;  %v1059_v8 = vadd.f32 %v1058_v21, %v8910_v1  ;;  %vm2916_vm3 = vweird.f32 %v9782_v60  ;;  %v9806_v22 = vadd.f32 1.0, %v7722_v11 }
 0x1cc   : > { %v7724_v28 = vpop.eup %7723  ;;  %v2900_v6 = vadd.f32 %v7716_v0, %v2899_v23  ;;  %v9808_v29 = vmul.f32 -1.442695, %v1228_v10  ;;  %vm9813_vm5 = vcmp.eq.f32.partialorder %v2920_v16, 8.507059e+37  ;;  %v4825_v20 = vand.u32 2147483647, %v9791_v17 }
 0x1cd   : > { %v7726_v33 = vpop.eup %7725  ;;  %v2912_v34 = vmul.f32 %v7724_v28, %v9782_v60  ;;  %v4827_v31 = vand.u32 2147483648, %v9791_v17  ;;  %v4840_v39 = vand.u32 2147483647, %v9793_v18  ;;  %v4842_v45 = vand.u32 2147483648, %v9793_v18 }
 0x1ce   : > { %v7728_v19 = vpop.eup %7727  ;;  %v2904_v41 = vsel %vm2903_vm4, %v7716_v0, %v2900_v6  ;;  %7735 = vrcp.f32 %v9806_v22  ;;  %v2923_v48 = vor.u32 1.1754944e-38, %v2922_v25  ;;  %v9824_v50 = vmul.f32 -1.442695, %v1059_v8 }
 0x1cf   : > { %v7730_v37 = vpop.eup %7729  ;;  %v2909_v42 = vsel %vm9796_vm1, %v2908_v24, %v2904_v41  ;;  %v2913_v27 = vsub.f32 1.0, %v2912_v34  ;;  %vm4821_vm6 = vweird.f32 %v9791_v17  ;;  %vm4836_vm7 = vweird.f32 %v9793_v18  ;;  %v7402_v34 = vld [vmem:[%s8884_s7 + $0x180] sm:$0xff] }
 0x1d0   : > { %v7732_v51 = vpop.eup %7731  ;;  %6400 = vst [vmem:[%s8994_s26 + $0xc0] sm:$0xff] %v2909_v42  ;;  %v9829_v30 = vadd.f32 1.0, %v7726_v33  ;;  %v9831_v43 = vadd.f32 1.0, %v7728_v19  ;;  %vm2917_vm8 = vweird.f32 %v7724_v28  ;;  %vm9834_vm9 = vcmp.eq.f32.partialorder %v4825_v20, 8.507059e+37  ;;  %v7370_v33 = vld [vmem:[%s8884_s7 + $0x80] sm:$0xff]  ;;  %1102 = vmatmul.bf16.gmra.mxu2 %v7402_v34  ;;  %1431 = vmatmul.bf16.gmra.mxu3 %v7402_v34 }
 0x1d1   : > { %v7734_v49 = vpop.eup %7733  ;;  %v2914_v46 = vmul.f32 %v7724_v28, %v2913_v27  ;;  %v4817_v52 = vmul.f32 %v7732_v51, %v9791_v17  ;;  %v4828_v35 = vor.u32 1.1754944e-38, %v4827_v31  ;;  %vm9839_vm10 = vcmp.eq.f32.partialorder %v4840_v39, 8.507059e+37  ;;  %vm2918_vm11 = vmor %vm2916_vm3, %vm2917_vm8  ;;  %942 = vmatmul.bf16.gmra.mxu0 %v7370_v33  ;;  %1271 = vmatmul.bf16.gmra.mxu1 %v7370_v33 }
 0x1d2   : > { %v4832_v32 = vmul.f32 %v7734_v49, %v9793_v18  ;;  %v4843_v40 = vor.u32 1.1754944e-38, %v4842_v45  ;;  %v2935_v53 = vand.u32 2147483647, %v9806_v22  ;;  %7737 = vrcp.f32 %v9829_v30 }
 0x1d3   : > { %v2915_v56 = vadd.f32 %v7724_v28, %v2914_v46  ;;  %v4818_v57 = vsub.f32 1.0, %v4817_v52  ;;  %v2937_v44 = vand.u32 2147483648, %v9806_v22  ;;  %7739 = vpow2.f32 %v7114_v26  ;;  %v1229_v46 = vpop.f32.mrf.mxu1 }
 0x1d4   : > { %v7736_v58 = vpop.eup %7735  ;;  %v4833_v54 = vsub.f32 1.0, %v4832_v32  ;;  %vm2931_vm12 = vweird.f32 %v9806_v22  ;;  %7741 = vrcp.f32 %v9831_v43  ;;  %v9850_v47 = vadd.f32 1.0, %v7730_v37  ;;  %v900_v37 = vpop.f32.mrf.mxu0 }
 0x1d5   : > { %v2919_v63 = vsel %vm2918_vm11, %v7724_v28, %v2915_v56  ;;  %v4819_v0 = vmul.f32 %v7732_v51, %v4818_v57  ;;  %vm4822_vm13 = vweird.f32 %v7732_v51  ;;  %v2927_v62 = vmul.f32 %v7736_v58, %v9806_v22  ;;  %v1387_v22 = vpop.f32.mrf.mxu3  ;;  %v1060_v32 = vpop.f32.mrf.mxu2 }
 0x1d6   : > { %v2924_v5 = vsel %vm9813_vm5, %v2923_v48, %v2919_v63  ;;  %v4834_v61 = vmul.f32 %v7734_v49, %v4833_v54  ;;  %vm4837_vm14 = vweird.f32 %v7734_v49  ;;  %vm9855_vm15 = vcmp.eq.f32.partialorder %v2935_v53, 8.507059e+37  ;;  %vm4823_vm1 = vmor %vm4821_vm6, %vm4822_vm13 }
 0x1d7   : > { %6401 = vst [vmem:[%s8994_s26 + $0xc8] sm:$0xff] %v2924_v5  ;;  %v4820_v9 = vadd.f32 %v7732_v51, %v4819_v0  ;;  %v2928_v59 = vsub.f32 1.0, %v2927_v62  ;;  %v2938_v3 = vor.u32 1.1754944e-38, %v2937_v44  ;;  %vm2946_vm0 = vweird.f32 %v9829_v30  ;;  %vm4838_vm2 = vmor %vm4836_vm7, %vm4837_vm14 }
 0x1d8   : > { %v9861_v13 = vpop.eup %7737  ;;  %v4835_v7 = vadd.f32 %v7734_v49, %v4834_v61  ;;  %v2950_v4 = vand.u32 2147483647, %v9829_v30  ;;  %v2952_v14 = vand.u32 2147483648, %v9829_v30  ;;  %7743 = vrcp.f32 %v9850_v47 }
 0x1d9   : > { %v7740_v10 = vpop.eup %7739  ;;  %v4824_v15 = vsel %vm4823_vm1, %v7732_v51, %v4820_v9  ;;  %v2929_v21 = vmul.f32 %v7736_v58, %v2928_v59  ;;  %vm2932_vm3 = vweird.f32 %v7736_v58  ;;  %v2942_v17 = vmul.f32 %v9861_v13, %v9829_v30 }
 0x1da   : > { %v9873_v11 = vpop.eup %7741  ;;  %v4829_v12 = vsel %vm9834_vm9, %v4828_v35, %v4824_v15  ;;  %v4839_v16 = vsel %vm4838_vm2, %v7734_v49, %v4835_v7  ;;  %vm4851_vm4 = vweird.f32 %v9831_v43  ;;  %v4855_v23 = vand.u32 2147483647, %v9831_v43  ;;  %vm2933_vm5 = vmor %vm2931_vm12, %vm2932_vm3 }
 0x1db   : > { %6528 = vst [vmem:[%s8994_s26 + $0x4c0] sm:$0xff] %v4829_v12  ;;  %v4844_v18 = vsel %vm9839_vm10, %v4843_v40, %v4839_v16  ;;  %v2930_v24 = vadd.f32 %v7736_v58, %v2929_v21  ;;  %v2943_v25 = vsub.f32 1.0, %v2942_v17  ;;  %v4847_v26 = vmul.f32 %v9873_v11, %v9831_v43 }
 0x1dc   : > { %6529 = vst [vmem:[%s8994_s26 + $0x4c8] sm:$0xff] %v4844_v18  ;;  %vm2947_vm6 = vweird.f32 %v9861_v13  ;;  %vm9888_vm7 = vcmp.eq.f32.partialorder %v2950_v4, 8.507059e+37  ;;  %v4857_v28 = vand.u32 2147483648, %v9831_v43  ;;  %v9893_v6 = vadd.f32 1.0, %v7740_v10  ;;  %v903_v21 = vpop.f32.mrf.mxu0 }
 0x1dd   : > { %v2934_v36 = vsel %vm2933_vm5, %v7736_v58, %v2930_v24  ;;  %v2944_v20 = vmul.f32 %v9861_v13, %v2943_v25  ;;  %v4848_v31 = vsub.f32 1.0, %v4847_v26  ;;  %7745 = vpow2.f32 %v9808_v29  ;;  %vm2948_vm9 = vmor %vm2946_vm0, %vm2947_vm6  ;;  %v1389_v4 = vpop.f32.mrf.mxu3 }
 0x1de   : > { %v7744_v19 = vpop.eup %7743  ;;  %v2939_v41 = vsel %vm9855_vm15, %v2938_v3, %v2934_v36  ;;  %v2953_v39 = vor.u32 1.1754944e-38, %v2952_v14  ;;  %v4870_v45 = vand.u32 2147483647, %v9850_v47  ;;  %7747 = vrcp.f32 %v9893_v6 }
 0x1df   : > { %6402 = vst [vmem:[%s8994_s26 + $0xd0] sm:$0xff] %v2939_v41  ;;  %v2945_v42 = vadd.f32 %v9861_v13, %v2944_v20  ;;  %v4849_v27 = vmul.f32 %v9873_v11, %v4848_v31  ;;  %vm4852_vm8 = vweird.f32 %v9873_v11  ;;  %v4862_v29 = vmul.f32 %v7744_v19, %v9850_v47 }
 0x1e0   : > { %vm9912_vm10 = vcmp.eq.f32.partialorder %v4855_v23, 8.507059e+37  ;;  %v4858_v51 = vor.u32 1.1754944e-38, %v4857_v28  ;;  %7749 = vpow2.f32 %v9824_v50  ;;  %v1388_v49 = vadd.f32 %v1387_v22, %v8912_v2  ;;  %vm4853_vm11 = vmor %vm4851_vm4, %vm4852_vm8 }
 0x1e1   : > { %v2949_v52 = vsel %vm2948_vm9, %v9861_v13, %v2945_v42  ;;  %v4850_v38 = vadd.f32 %v9873_v11, %v4849_v27  ;;  %v4863_v35 = vsub.f32 1.0, %v4862_v29  ;;  %v901_v30 = vadd.f32 %v900_v37, %v8910_v1 }
 0x1e2   : > { %v2954_v55 = vsel %vm9888_vm7, %v2953_v39, %v2949_v52  ;;  %vm4867_vm12 = vweird.f32 %v7744_v19  ;;  %v4872_v50 = vand.u32 2147483648, %v9850_v47  ;;  %v7243_v40 = vmul.f32 -1.442695, %v1388_v49 }
 0x1e3   : > { %v7746_v53 = vpop.eup %7745  ;;  %6403 = vst [vmem:[%s8994_s26 + $0xd8] sm:$0xff] %v2954_v55  ;;  %v4854_v56 = vsel %vm4853_vm11, %v9873_v11, %v4850_v38  ;;  %v4864_v57 = vmul.f32 %v7744_v19, %v4863_v35  ;;  %v7116_v44 = vmul.f32 -1.442695, %v901_v30  ;;  %v1230_v58 = vadd.f32 %v1229_v46, %v8912_v2 }
 0x1e4   : > { %v7748_v54 = vpop.eup %7747  ;;  %v4859_v63 = vsel %vm9912_vm10, %v4858_v51, %v4854_v56  ;;  %v9933_v0 = vadd.f32 1.0, %v7746_v53  ;;  %7751 = vpow2.f32 %v7243_v40  ;;  %v1061_v43 = vadd.f32 %v1060_v32, %v8910_v1  ;;  %v1232_v56 = vpop.f32.mrf.mxu1 }
 0x1e5   : > { %6530 = vst [vmem:[%s8994_s26 + $0x4d0] sm:$0xff] %v4859_v63  ;;  %v4865_v62 = vadd.f32 %v7744_v19, %v4864_v57  ;;  %vm4866_vm13 = vweird.f32 %v9850_v47  ;;  %v2957_v5 = vmul.f32 %v7748_v54, %v9893_v6  ;;  %7753 = vpow2.f32 %v7116_v44 }
 0x1e6   : > { %v7750_v61 = vpop.eup %7749  ;;  %vm4868_vm14 = vmor %vm4866_vm13, %vm4867_vm12  ;;  %vm4871_vm15 = vcmp.eq.f32.partialorder %v4870_v45, 8.507059e+37  ;;  %v4873_v60 = vor.u32 1.1754944e-38, %v4872_v50  ;;  %v2967_v9 = vand.u32 2147483648, %v9893_v6  ;;  %7755 = vrcp.f32 %v9933_v0 }
 0x1e7   : > { %v4869_v59 = vsel %vm4868_vm14, %v7744_v19, %v4865_v62  ;;  %v2958_v3 = vsub.f32 1.0, %v2957_v5  ;;  %v9942_v13 = vadd.f32 1.0, %v7750_v61  ;;  %v7117_v7 = vmul.f32 -1.442695, %v1230_v58 }
 0x1e8   : > { %v4874_v47 = vsel %vm4871_vm15, %v4873_v60, %v4869_v59  ;;  %vm2961_vm0 = vweird.f32 %v9893_v6  ;;  %v7244_v14 = vmul.f32 -1.442695, %v1061_v43  ;;  %vm2962_vm1 = vweird.f32 %v7748_v54 }
 0x1e9   : > { %6531 = vst [vmem:[%s8994_s26 + $0x4d8] sm:$0xff] %v4874_v47  ;;  %v2959_v10 = vmul.f32 %v7748_v54, %v2958_v3  ;;  %v2965_v15 = vand.u32 2147483647, %v9893_v6  ;;  %7757 = vrcp.f32 %v9942_v13  ;;  %v2968_v11 = vor.u32 1.1754944e-38, %v2967_v9  ;;  %vm2963_vm2 = vmor %vm2961_vm0, %vm2962_vm1 }
 0x1ea   : > { %v7752_v17 = vpop.eup %7751  ;;  %v2980_v12 = vand.u32 2147483647, %v9933_v0  ;;  %7759 = vpow2.f32 %v7117_v7  ;;  %v1390_v16 = vadd.f32 %v1389_v4, %v8912_v2  ;;  %v2982_v24 = vand.u32 2147483648, %v9933_v0 }
 0x1eb   : > { %v7754_v23 = vpop.eup %7753  ;;  %v2960_v18 = vadd.f32 %v7748_v54, %v2959_v10  ;;  %v9951_v25 = vadd.f32 1.0, %v7752_v17  ;;  %7761 = vpow2.f32 %v7244_v14  ;;  %v4885_v8 = vand.u32 2147483647, %v9942_v13  ;;  %v1063_v10 = vpop.f32.mrf.mxu2 }
 0x1ec   : > { %v7756_v26 = vpop.eup %7755  ;;  %v4887_v28 = vand.u32 2147483648, %v9942_v13  ;;  %v9958_v33 = vadd.f32 1.0, %v7754_v23  ;;  %v904_v34 = vadd.f32 %v903_v21, %v8910_v1  ;;  %vm2966_vm3 = vcmp.eq.f32.partialorder %v2965_v15, 8.507059e+37  ;;  %v1234_v42 = vpop.f32.mrf.mxu1 }
 0x1ed   : > { %v2964_v36 = vsel %vm2963_vm2, %v7748_v54, %v2960_v18  ;;  %v2972_v20 = vmul.f32 %v7756_v26, %v9933_v0  ;;  %7763 = vrcp.f32 %v9951_v25  ;;  %vm2976_vm4 = vweird.f32 %v9933_v0 }
 0x1ee   : > { %v2969_v31 = vsel %vm2966_vm3, %v2968_v11, %v2964_v36  ;;  %vm9964_vm5 = vcmp.eq.f32.partialorder %v2980_v12, 8.507059e+37  ;;  %v7245_v22 = vmul.f32 -1.442695, %v1390_v16  ;;  %v2983_v39 = vor.u32 1.1754944e-38, %v2982_v24  ;;  %v7371_v36 = vld [vmem:[%s8884_s7 + $0x88] sm:$0xff] }
 0x1ef   : > { %v7758_v19 = vpop.eup %7757  ;;  %6404 = vst [vmem:[%s8994_s26 + $0xe0] sm:$0xff] %v2969_v31  ;;  %v2973_v41 = vsub.f32 1.0, %v2972_v20  ;;  %vm4881_vm6 = vweird.f32 %v9942_v13  ;;  %7765 = vrcp.f32 %v9958_v33  ;;  %vm2977_vm7 = vweird.f32 %v7756_v26  ;;  %v7403_v20 = vld [vmem:[%s8884_s7 + $0x188] sm:$0xff]  ;;  %947 = vmatmul.bf16.gmra.mxu0 %v7371_v36  ;;  %1276 = vmatmul.bf16.gmra.mxu1 %v7371_v36 }
 0x1f0   : > { %v7760_v45 = vpop.eup %7759  ;;  %v4877_v37 = vmul.f32 %v7758_v19, %v9942_v13  ;;  %vm9972_vm8 = vcmp.eq.f32.partialorder %v4885_v8, 8.507059e+37  ;;  %v4888_v27 = vor.u32 1.1754944e-38, %v4887_v28  ;;  %v7118_v29 = vmul.f32 -1.442695, %v904_v34  ;;  %vm2978_vm10 = vmor %vm2976_vm4, %vm2977_vm7  ;;  %1107 = vmatmul.bf16.gmra.mxu2 %v7403_v20  ;;  %1436 = vmatmul.bf16.gmra.mxu3 %v7403_v20 }
 0x1f1   : > { %v7762_v48 = vpop.eup %7761  ;;  %v2974_v51 = vmul.f32 %v7756_v26, %v2973_v41  ;;  %v4900_v49 = vand.u32 2147483647, %v9951_v25  ;;  %v4902_v46 = vand.u32 2147483648, %v9951_v25  ;;  %v9978_v52 = vadd.f32 1.0, %v7760_v45  ;;  %v905_v41 = vpop.f32.mrf.mxu0 }
 0x1f2   : > { %v4878_v38 = vsub.f32 1.0, %v4877_v37  ;;  %vm4896_vm9 = vweird.f32 %v9951_v25  ;;  %v9981_v35 = vadd.f32 1.0, %v7762_v48  ;;  %7767 = vpow2.f32 %v7245_v22 }
 0x1f3   : > { %v7764_v30 = vpop.eup %7763  ;;  %v2975_v32 = vadd.f32 %v7756_v26, %v2974_v51  ;;  %v2995_v55 = vand.u32 2147483647, %v9958_v33  ;;  %v2997_v50 = vand.u32 2147483648, %v9958_v33  ;;  %7769 = vrcp.f32 %v9978_v52 }
 0x1f4   : > { %v4879_v40 = vmul.f32 %v7758_v19, %v4878_v38  ;;  %vm4882_vm11 = vweird.f32 %v7758_v19  ;;  %v4892_v53 = vmul.f32 %v7764_v30, %v9951_v25  ;;  %vm2991_vm12 = vweird.f32 %v9958_v33  ;;  %v1392_v25 = vpop.f32.mrf.mxu3 }
 0x1f5   : > { %v7766_v57 = vpop.eup %7765  ;;  %v2979_v44 = vsel %vm2978_vm10, %v7756_v26, %v2975_v32  ;;  %vm9991_vm13 = vcmp.eq.f32.partialorder %v4900_v49, 8.507059e+37  ;;  %v4903_v54 = vor.u32 1.1754944e-38, %v4902_v46  ;;  %7771 = vrcp.f32 %v9981_v35  ;;  %vm4883_vm14 = vmor %vm4881_vm6, %vm4882_vm11 }
 0x1f6   : > { %v2984_v63 = vsel %vm9964_vm5, %v2983_v39, %v2979_v44  ;;  %v4880_v0 = vadd.f32 %v7758_v19, %v4879_v40  ;;  %v4893_v43 = vsub.f32 1.0, %v4892_v53  ;;  %v2987_v62 = vmul.f32 %v7766_v57, %v9958_v33 }
 0x1f7   : > { %6405 = vst [vmem:[%s8994_s26 + $0xe8] sm:$0xff] %v2984_v63  ;;  %vm10002_vm15 = vcmp.eq.f32.partialorder %v2995_v55, 8.507059e+37  ;;  %v2998_v61 = vor.u32 1.1754944e-38, %v2997_v50  ;;  %v3010_v60 = vand.u32 2147483647, %v9978_v52  ;;  %v1233_v9 = vadd.f32 %v1232_v56, %v8912_v2  ;;  %v1065_v56 = vpop.f32.mrf.mxu2 }
 0x1f8   : > { %v7768_v59 = vpop.eup %7767  ;;  %v4884_v3 = vsel %vm4883_vm14, %v7758_v19, %v4880_v0  ;;  %v4894_v7 = vmul.f32 %v7764_v30, %v4893_v43  ;;  %vm4897_vm0 = vweird.f32 %v7764_v30  ;;  %v2988_v4 = vsub.f32 1.0, %v2987_v62 }
 0x1f9   : > { %v7770_v47 = vpop.eup %7769  ;;  %v4889_v13 = vsel %vm9972_vm8, %v4888_v27, %v4884_v3  ;;  %vm3006_vm1 = vweird.f32 %v9978_v52  ;;  %v10011_v14 = vadd.f32 1.0, %v7768_v59  ;;  %7773 = vpow2.f32 %v7118_v29  ;;  %vm4898_vm3 = vmor %vm4896_vm9, %vm4897_vm0  ;;  %v908_v12 = vpop.f32.mrf.mxu0 }
 0x1fa   : > { %6532 = vst [vmem:[%s8994_s26 + $0x4e0] sm:$0xff] %v4889_v13  ;;  %v4895_v15 = vadd.f32 %v7764_v30, %v4894_v7  ;;  %v2989_v21 = vmul.f32 %v7766_v57, %v2988_v4  ;;  %vm2992_vm2 = vweird.f32 %v7766_v57  ;;  %v3002_v17 = vmul.f32 %v7770_v47, %v9978_v52 }
 0x1fb   : > { %v7772_v11 = vpop.eup %7771  ;;  %vm10017_vm4 = vcmp.eq.f32.partialorder %v3010_v60, 8.507059e+37  ;;  %v3012_v16 = vand.u32 2147483648, %v9978_v52  ;;  %vm4911_vm5 = vweird.f32 %v9981_v35  ;;  %7775 = vrcp.f32 %v10011_v14  ;;  %vm2993_vm6 = vmor %vm2991_vm12, %vm2992_vm2 }
 0x1fc   : > { %v4899_v23 = vsel %vm4898_vm3, %v7764_v30, %v4895_v15  ;;  %v2990_v18 = vadd.f32 %v7766_v57, %v2989_v21  ;;  %v3003_v24 = vsub.f32 1.0, %v3002_v17  ;;  %v4907_v26 = vmul.f32 %v7772_v11, %v9981_v35  ;;  %v1394_v59 = vpop.f32.mrf.mxu3 }
 0x1fd   : > { %v4904_v8 = vsel %vm9991_vm13, %v4903_v54, %v4899_v23  ;;  %vm3007_vm7 = vweird.f32 %v7770_v47  ;;  %v4915_v28 = vand.u32 2147483647, %v9981_v35  ;;  %v4917_v34 = vand.u32 2147483648, %v9981_v35 }
 0x1fe   : > { %6533 = vst [vmem:[%s8994_s26 + $0x4e8] sm:$0xff] %v4904_v8  ;;  %v2994_v31 = vsel %vm2993_vm6, %v7766_v57, %v2990_v18  ;;  %v3004_v6 = vmul.f32 %v7770_v47, %v3003_v24  ;;  %v4908_v22 = vsub.f32 1.0, %v4907_v26  ;;  %v7119_v19 = vmul.f32 -1.442695, %v1233_v9  ;;  %vm3008_vm9 = vmor %vm3006_vm1, %vm3007_vm7  ;;  %v1237_v26 = vpop.f32.mrf.mxu1 }
 0x1ff   : > { %v7774_v39 = vpop.eup %7773  ;;  %v2999_v45 = vsel %vm10002_vm15, %v2998_v61, %v2994_v31  ;;  %vm4912_vm8 = vweird.f32 %v7772_v11  ;;  %v1064_v33 = vadd.f32 %v1063_v10, %v8910_v1  ;;  %v1393_v37 = vadd.f32 %v1392_v25, %v8912_v2  ;;  %v1068_v31 = vpop.f32.mrf.mxu2 }
 0x200   : > { %6406 = vst [vmem:[%s8994_s26 + $0xf0] sm:$0xff] %v2999_v45  ;;  %v3005_v27 = vadd.f32 %v7770_v47, %v3004_v6  ;;  %v4909_v29 = vmul.f32 %v7772_v11, %v4908_v22  ;;  %v10039_v48 = vadd.f32 1.0, %v7774_v39  ;;  %7777 = vpow2.f32 %v7119_v19  ;;  %vm4913_vm10 = vmor %vm4911_vm5, %vm4912_vm8 }
 0x201   : > { %v7776_v51 = vpop.eup %7775  ;;  %v3013_v49 = vor.u32 1.1754944e-38, %v3012_v16  ;;  %v7246_v46 = vmul.f32 -1.442695, %v1064_v33  ;;  %v7247_v38 = vmul.f32 -1.442695, %v1393_v37  ;;  %v906_v30 = vadd.f32 %v905_v41, %v8910_v1 }
 0x202   : > { %v3009_v32 = vsel %vm3008_vm9, %v7770_v47, %v3005_v27  ;;  %v4910_v55 = vadd.f32 %v7772_v11, %v4909_v29  ;;  %v4922_v50 = vmul.f32 %v7776_v51, %v10011_v14  ;;  %v1235_v40 = vadd.f32 %v1234_v42, %v8912_v2 }
 0x203   : > { %v3014_v53 = vsel %vm10017_vm4, %v3013_v49, %v3009_v32  ;;  %vm4916_vm11 = vcmp.eq.f32.partialorder %v4915_v28, 8.507059e+37  ;;  %v4918_v52 = vor.u32 1.1754944e-38, %v4917_v34  ;;  %7779 = vrcp.f32 %v10039_v48 }
 0x204   : > { %6407 = vst [vmem:[%s8994_s26 + $0xf8] sm:$0xff] %v3014_v53  ;;  %v4914_v57 = vsel %vm4913_vm10, %v7772_v11, %v4910_v55  ;;  %v4923_v44 = vsub.f32 1.0, %v4922_v50  ;;  %v4930_v58 = vand.u32 2147483647, %v10011_v14  ;;  %7781 = vpow2.f32 %v7246_v46 }
 0x205   : > { %v4919_v54 = vsel %vm4916_vm11, %v4918_v52, %v4914_v57  ;;  %v4932_v63 = vand.u32 2147483648, %v10011_v14  ;;  %7783 = vpow2.f32 %v7247_v38  ;;  %v7120_v0 = vmul.f32 -1.442695, %v906_v30 }
 0x206   : > { %v7778_v43 = vpop.eup %7777  ;;  %6534 = vst [vmem:[%s8994_s26 + $0x4f0] sm:$0xff] %v4919_v54  ;;  %v4924_v35 = vmul.f32 %v7776_v51, %v4923_v44  ;;  %vm4927_vm12 = vweird.f32 %v7776_v51  ;;  %v7121_v62 = vmul.f32 -1.442695, %v1235_v40  ;;  %v1066_v5 = vadd.f32 %v1065_v56, %v8910_v1 }
 0x207   : > { %v10058_v61 = vadd.f32 1.0, %v7778_v43  ;;  %7785 = vpow2.f32 %v7120_v0  ;;  %vm4926_vm13 = vweird.f32 %v10011_v14  ;;  %v4933_v7 = vor.u32 1.1754944e-38, %v4932_v63 }
 0x208   : > { %v4925_v60 = vadd.f32 %v7776_v51, %v4924_v35  ;;  %7787 = vpow2.f32 %v7121_v62  ;;  %v7248_v9 = vmul.f32 -1.442695, %v1066_v5  ;;  %vm4928_vm14 = vmor %vm4926_vm13, %vm4927_vm12  ;;  %v3025_v4 = vand.u32 2147483647, %v10039_v48 }
 0x209   : > { %v7780_v3 = vpop.eup %7779  ;;  %v3027_v47 = vand.u32 2147483648, %v10039_v48  ;;  %7789 = vrcp.f32 %v10058_v61  ;;  %vm4931_vm15 = vcmp.eq.f32.partialorder %v4930_v58, 8.507059e+37  ;;  %v1395_v11 = vadd.f32 %v1394_v59, %v8912_v2 }
 0x20a   : > { %v7782_v13 = vpop.eup %7781  ;;  %v4929_v10 = vsel %vm4928_vm14, %v7776_v51, %v4925_v60  ;;  %v3017_v15 = vmul.f32 %v7780_v3, %v10039_v48  ;;  %7791 = vpow2.f32 %v7248_v9  ;;  %v3040_v23 = vand.u32 2147483647, %v10058_v61 }
 0x20b   : > { %v7784_v14 = vpop.eup %7783  ;;  %v4934_v21 = vsel %vm4931_vm15, %v4933_v7, %v4929_v10  ;;  %v10065_v17 = vadd.f32 1.0, %v7782_v13  ;;  %v3042_v18 = vand.u32 2147483648, %v10058_v61  ;;  %vm3021_vm0 = vweird.f32 %v10039_v48  ;;  %v1397_v13 = vpop.f32.mrf.mxu3 }
 0x20c   : > { %6535 = vst [vmem:[%s8994_s26 + $0x4f8] sm:$0xff] %v4934_v21  ;;  %v3018_v16 = vsub.f32 1.0, %v3017_v15  ;;  %v10071_v24 = vadd.f32 1.0, %v7784_v14  ;;  %vm10074_vm1 = vcmp.eq.f32.partialorder %v3025_v4, 8.507059e+37  ;;  %v3028_v28 = vor.u32 1.1754944e-38, %v3027_v47 }
 0x20d   : > { %v7786_v25 = vpop.eup %7785  ;;  %7793 = vrcp.f32 %v10065_v17  ;;  %vm3022_vm2 = vweird.f32 %v7780_v3  ;;  %v10081_v20 = vadd.f32 %v908_v12, %v8910_v1  ;;  %vm3036_vm3 = vweird.f32 %v10058_v61 }
 0x20e   : > { %v7788_v34 = vpop.eup %7787  ;;  %v3019_v36 = vmul.f32 %v7780_v3, %v3018_v16  ;;  %7795 = vrcp.f32 %v10071_v24  ;;  %v10084_v22 = vadd.f32 1.0, %v7786_v25  ;;  %v7249_v19 = vmul.f32 -1.442695, %v1395_v11  ;;  %vm3023_vm5 = vmor %vm3021_vm0, %vm3022_vm2 }
 0x20f   : > { %v7790_v6 = vpop.eup %7789  ;;  %v10087_v41 = vadd.f32 %v1237_v26, %v8912_v2  ;;  %vm10090_vm4 = vcmp.eq.f32.partialorder %v3040_v23, 8.507059e+37  ;;  %v3043_v42 = vor.u32 1.1754944e-38, %v3042_v18  ;;  %v4945_v27 = vand.u32 2147483647, %v10065_v17 }
 0x210   : > { %v7792_v39 = vpop.eup %7791  ;;  %v3020_v45 = vadd.f32 %v7780_v3, %v3019_v36  ;;  %v3032_v33 = vmul.f32 %v7790_v6, %v10058_v61  ;;  %v4947_v29 = vand.u32 2147483648, %v10065_v17  ;;  %7797 = vrcp.f32 %v10084_v22 }
 0x211   : > { %v10100_v51 = vadd.f32 %v1068_v31, %v8910_v1  ;;  %vm4941_vm6 = vweird.f32 %v10065_v17  ;;  %v4960_v38 = vand.u32 2147483647, %v10071_v24  ;;  %v10104_v30 = vadd.f32 1.0, %v7788_v34 }
 0x212   : > { %v3024_v49 = vsel %vm3023_vm5, %v7780_v3, %v3020_v45  ;;  %v3033_v46 = vsub.f32 1.0, %v3032_v33  ;;  %vm4956_vm7 = vweird.f32 %v10071_v24  ;;  %v4962_v55 = vand.u32 2147483648, %v10071_v24 }
 0x213   : > { %v7794_v48 = vpop.eup %7793  ;;  %v3029_v32 = vsel %vm10074_vm1, %v3028_v28, %v3024_v49  ;;  %v10110_v50 = vadd.f32 1.0, %v7792_v39  ;;  %7799 = vpow2.f32 %v7249_v19  ;;  %vm3037_vm8 = vweird.f32 %v7790_v6  ;;  %v7372_v49 = vld [vmem:[%s8884_s7 + $0x90] sm:$0xff] }
 0x214   : > { %v7796_v40 = vpop.eup %7795  ;;  %6408 = vst [vmem:[%s8994_s26 + $0x100] sm:$0xff] %v3029_v32  ;;  %v3034_v53 = vmul.f32 %v7790_v6, %v3033_v46  ;;  %v4937_v52 = vmul.f32 %v7794_v48, %v10065_v17  ;;  %v3055_v56 = vand.u32 2147483647, %v10084_v22  ;;  %vm10115_vm9 = vcmp.eq.f32.partialorder %v4945_v27, 8.507059e+37  ;;  %vm3038_vm11 = vmor %vm3036_vm3, %vm3037_vm8  ;;  %v1239_v27 = vpop.f32.mrf.mxu1  ;;  %v7404_v46 = vld [vmem:[%s8884_s7 + $0x190] sm:$0xff]  ;;  %952 = vmatmul.bf16.gmra.mxu0 %v7372_v49  ;;  %1281 = vmatmul.bf16.gmra.mxu1 %v7372_v49 }
 0x215   : > { %v4952_v44 = vmul.f32 %v7796_v40, %v10071_v24  ;;  %v3057_v58 = vand.u32 2147483648, %v10084_v22  ;;  %7801 = vrcp.f32 %v10104_v30  ;;  %v4948_v0 = vor.u32 1.1754944e-38, %v4947_v29  ;;  %1112 = vmatmul.bf16.gmra.mxu2 %v7404_v46  ;;  %1441 = vmatmul.bf16.gmra.mxu3 %v7404_v46 }
 0x216   : > { %v3035_v54 = vadd.f32 %v7790_v6, %v3034_v53  ;;  %v4938_v63 = vsub.f32 1.0, %v4937_v52  ;;  %vm10122_vm10 = vcmp.eq.f32.partialorder %v4960_v38, 8.507059e+37  ;;  %v7798_v35 = vpop.eup %7797  ;;  %v4963_v5 = vor.u32 1.1754944e-38, %v4962_v55 }
 0x217   : > { %v4953_v62 = vsub.f32 1.0, %v4952_v44  ;;  %vm3051_vm12 = vweird.f32 %v10084_v22  ;;  %7803 = vrcp.f32 %v10110_v50  ;;  %vm4942_vm13 = vweird.f32 %v7794_v48  ;;  %v1070_v44 = vpop.f32.mrf.mxu2 }
 0x218   : > { %v3039_v60 = vsel %vm3038_vm11, %v7790_v6, %v3035_v54  ;;  %v4939_v9 = vmul.f32 %v7794_v48, %v4938_v63  ;;  %v3047_v59 = vmul.f32 %v7798_v35, %v10084_v22  ;;  %vm10131_vm14 = vcmp.eq.f32.partialorder %v3055_v56, 8.507059e+37  ;;  %vm4943_vm1 = vmor %vm4941_vm6, %vm4942_vm13 }
 0x219   : > { %v7800_v7 = vpop.eup %7799  ;;  %v3044_v61 = vsel %vm10090_vm4, %v3043_v42, %v3039_v60  ;;  %v4954_v4 = vmul.f32 %v7796_v40, %v4953_v62  ;;  %vm4957_vm15 = vweird.f32 %v7796_v40  ;;  %v3058_v47 = vor.u32 1.1754944e-38, %v3057_v58  ;;  %v1399_v58 = vpop.f32.mrf.mxu3 }
 0x21a   : > { %6409 = vst [vmem:[%s8994_s26 + $0x108] sm:$0xff] %v3044_v61  ;;  %v4940_v10 = vadd.f32 %v7794_v48, %v4939_v9  ;;  %v3048_v15 = vsub.f32 1.0, %v3047_v59  ;;  %vm3066_vm0 = vweird.f32 %v10104_v30  ;;  %v3070_v14 = vand.u32 2147483647, %v10104_v30  ;;  %vm4958_vm3 = vmor %vm4956_vm7, %vm4957_vm15 }
 0x21b   : > { %v3072_v21 = vand.u32 2147483648, %v10104_v30  ;;  %v7802_v11 = vpop.eup %7801  ;;  %v4955_v12 = vadd.f32 %v7796_v40, %v4954_v4  ;;  %vm3052_vm2 = vweird.f32 %v7798_v35  ;;  %v4975_v16 = vand.u32 2147483647, %v10110_v50 }
 0x21c   : > { %v10145_v23 = vadd.f32 1.0, %v7800_v7  ;;  %v4944_v18 = vsel %vm4943_vm1, %v7794_v48, %v4940_v10  ;;  %v3049_v26 = vmul.f32 %v7798_v35, %v3048_v15  ;;  %v3062_v25 = vmul.f32 %v7802_v11, %v10104_v30  ;;  %vm3053_vm5 = vmor %vm3051_vm12, %vm3052_vm2 }
 0x21d   : > { %vm4971_vm4 = vweird.f32 %v10110_v50  ;;  %v7122_v17 = vmul.f32 -1.442695, %v10081_v20  ;;  %v10153_v8 = vpop.eup %7803  ;;  %v4949_v28 = vsel %vm10115_vm9, %v4948_v0, %v4944_v18  ;;  %v4959_v34 = vsel %vm4958_vm3, %v7796_v40, %v4955_v12  ;;  %v910_v20 = vpop.f32.mrf.mxu0 }
 0x21e   : > { %7805 = vrcp.f32 %v10145_v23  ;;  %v7123_v36 = vmul.f32 -1.442695, %v10087_v41  ;;  %6536 = vst [vmem:[%s8994_s26 + $0x500] sm:$0xff] %v4949_v28  ;;  %v4964_v24 = vsel %vm10122_vm10, %v4963_v5, %v4959_v34  ;;  %v3050_v31 = vadd.f32 %v7798_v35, %v3049_v26 }
 0x21f   : > { %v3063_v6 = vsub.f32 1.0, %v3062_v25  ;;  %v4967_v19 = vmul.f32 %v10153_v8, %v10110_v50  ;;  %6537 = vst [vmem:[%s8994_s26 + $0x508] sm:$0xff] %v4964_v24  ;;  %vm3067_vm6 = vweird.f32 %v7802_v11  ;;  %vm10168_vm7 = vcmp.eq.f32.partialorder %v3070_v14, 8.507059e+37 }
 0x220   : > { %v3073_v39 = vor.u32 1.1754944e-38, %v3072_v21  ;;  %v4977_v45 = vand.u32 2147483648, %v10110_v50  ;;  %v3054_v33 = vsel %vm3053_vm5, %v7798_v35, %v3050_v31  ;;  %7807 = vpow2.f32 %v7122_v17  ;;  %vm3068_vm10 = vmor %vm3066_vm0, %vm3067_vm6 }
 0x221   : > { %v3064_v37 = vmul.f32 %v7802_v11, %v3063_v6  ;;  %v4968_v42 = vsub.f32 1.0, %v4967_v19  ;;  %v3059_v29 = vsel %vm10131_vm14, %v3058_v47, %v3054_v33  ;;  %vm4972_vm8 = vweird.f32 %v10153_v8 }
 0x222   : > { %vm10176_vm9 = vcmp.eq.f32.partialorder %v4975_v16, 8.507059e+37  ;;  %7809 = vpow2.f32 %v7123_v36  ;;  %6410 = vst [vmem:[%s8994_s26 + $0x110] sm:$0xff] %v3059_v29  ;;  %v7250_v32 = vmul.f32 -1.442695, %v10100_v51  ;;  %v1398_v55 = vadd.f32 %v1397_v13, %v8912_v2  ;;  %vm4973_vm11 = vmor %vm4971_vm4, %vm4972_vm8 }
 0x223   : > { %v3065_v38 = vadd.f32 %v7802_v11, %v3064_v37  ;;  %v4969_v48 = vmul.f32 %v10153_v8, %v4968_v42  ;;  %v4978_v53 = vor.u32 1.1754944e-38, %v4977_v45  ;;  %v4990_v52 = vand.u32 2147483647, %v10145_v23  ;;  %v1242_v42 = vpop.f32.mrf.mxu1 }
 0x224   : > { %v7806_v40 = vpop.eup %7805  ;;  %v911_v56 = vadd.f32 %v910_v20, %v8910_v1  ;;  %v1240_v57 = vadd.f32 %v1239_v27, %v8912_v2  ;;  %v4992_v0 = vand.u32 2147483648, %v10145_v23  ;;  %7811 = vpow2.f32 %v7250_v32 }
 0x225   : > { %v3069_v54 = vsel %vm3068_vm10, %v7802_v11, %v3065_v38  ;;  %v4970_v51 = vadd.f32 %v10153_v8, %v4969_v48  ;;  %v4982_v63 = vmul.f32 %v7806_v40, %v10145_v23  ;;  %v7251_v43 = vmul.f32 -1.442695, %v1398_v55  ;;  %v913_v13 = vpop.f32.mrf.mxu0 }
 0x226   : > { %v3074_v30 = vsel %vm10168_vm7, %v3073_v39, %v3069_v54  ;;  %v7124_v35 = vmul.f32 -1.442695, %v911_v56  ;;  %v7808_v62 = vpop.eup %7807  ;;  %v1071_v9 = vadd.f32 %v1070_v44, %v8910_v1  ;;  %v1400_v59 = vadd.f32 %v1399_v58, %v8912_v2  ;;  %v7373_v56 = vld [vmem:[%s8884_s7 + $0x98] sm:$0xff] }
 0x227   : > { %6411 = vst [vmem:[%s8994_s26 + $0x118] sm:$0xff] %v3074_v30  ;;  %v4974_v5 = vsel %vm4973_vm11, %v10153_v8, %v4970_v51  ;;  %v4983_v60 = vsub.f32 1.0, %v4982_v63  ;;  %v10207_v50 = vadd.f32 1.0, %v7808_v62  ;;  %7813 = vpow2.f32 %v7251_v43  ;;  %957 = vmatmul.bf16.gmra.mxu0 %v7373_v56  ;;  %1286 = vmatmul.bf16.gmra.mxu1 %v7373_v56 }
 0x228   : > { %v7810_v3 = vpop.eup %7809  ;;  %v4979_v7 = vsel %vm10176_vm9, %v4978_v53, %v4974_v5  ;;  %v7125_v61 = vmul.f32 -1.442695, %v1240_v57  ;;  %vm4987_vm12 = vweird.f32 %v7806_v40  ;;  %7815 = vpow2.f32 %v7124_v35 }
 0x229   : > { %6538 = vst [vmem:[%s8994_s26 + $0x510] sm:$0xff] %v4979_v7  ;;  %v4984_v4 = vmul.f32 %v7806_v40, %v4983_v60  ;;  %v10210_v47 = vadd.f32 1.0, %v7810_v3  ;;  %7817 = vrcp.f32 %v10207_v50  ;;  %vm4986_vm13 = vweird.f32 %v10145_v23 }
 0x22a   : > { %vm4991_vm14 = vcmp.eq.f32.partialorder %v4990_v52, 8.507059e+37  ;;  %v7812_v15 = vpop.eup %7811  ;;  %vm4988_vm15 = vmor %vm4986_vm13, %vm4987_vm12  ;;  %v4993_v14 = vor.u32 1.1754944e-38, %v4992_v0  ;;  %v7252_v21 = vmul.f32 -1.442695, %v1071_v9  ;;  %v914_v11 = vadd.f32 %v913_v13, %v8910_v1 }
 0x22b   : > { %v4985_v10 = vadd.f32 %v7806_v40, %v4984_v4  ;;  %7819 = vrcp.f32 %v10210_v47  ;;  %v3085_v16 = vand.u32 2147483647, %v10207_v50  ;;  %v10217_v18 = vadd.f32 1.0, %v7812_v15 }
 0x22c   : > { %7821 = vpow2.f32 %v7125_v61  ;;  %v7253_v26 = vmul.f32 -1.442695, %v1400_v59  ;;  %vm3081_vm0 = vweird.f32 %v10207_v50  ;;  %v3087_v8 = vand.u32 2147483648, %v10207_v50 }
 0x22d   : > { %v4989_v12 = vsel %vm4988_vm15, %v7806_v40, %v4985_v10  ;;  %v7814_v25 = vpop.eup %7813  ;;  %v3100_v28 = vand.u32 2147483647, %v10210_v47  ;;  %v3102_v34 = vand.u32 2147483648, %v10210_v47  ;;  %7823 = vrcp.f32 %v10217_v18 }
 0x22e   : > { %v4994_v17 = vsel %vm4991_vm14, %v4993_v14, %v4989_v12  ;;  %v7816_v23 = vpop.eup %7815  ;;  %v10225_v24 = vadd.f32 1.0, %v7814_v25  ;;  %7825 = vpow2.f32 %v7252_v21  ;;  %v7126_v6 = vmul.f32 -1.442695, %v914_v11  ;;  %v1073_v25 = vpop.f32.mrf.mxu2 }
 0x22f   : > { %6539 = vst [vmem:[%s8994_s26 + $0x518] sm:$0xff] %v4994_v17  ;;  %v7818_v36 = vpop.eup %7817  ;;  %v10227_v31 = vadd.f32 1.0, %v7816_v23  ;;  %vm10230_vm1 = vcmp.eq.f32.partialorder %v3085_v16, 8.507059e+37  ;;  %vm3096_vm2 = vweird.f32 %v10210_v47  ;;  %7827 = vpow2.f32 %v7253_v26 }
 0x230   : > { %v3077_v20 = vmul.f32 %v7818_v36, %v10207_v50  ;;  %v5005_v33 = vand.u32 2147483647, %v10217_v18  ;;  %v5007_v37 = vand.u32 2147483648, %v10217_v18  ;;  %7829 = vrcp.f32 %v10225_v24 }
 0x231   : > { %v7820_v19 = vpop.eup %7819  ;;  %v3088_v29 = vor.u32 1.1754944e-38, %v3087_v8  ;;  %vm10239_vm3 = vcmp.eq.f32.partialorder %v3100_v28, 8.507059e+37  ;;  %7831 = vrcp.f32 %v10227_v31  ;;  %v3103_v46 = vor.u32 1.1754944e-38, %v3102_v34 }
 0x232   : > { %v7822_v39 = vpop.eup %7821  ;;  %v3092_v45 = vmul.f32 %v7820_v19, %v10210_v47  ;;  %v3078_v27 = vsub.f32 1.0, %v3077_v20  ;;  %vm5001_vm4 = vweird.f32 %v10217_v18  ;;  %7833 = vpow2.f32 %v7126_v6  ;;  %v1402_v6 = vpop.f32.mrf.mxu3 }
 0x233   : > { %v7824_v38 = vpop.eup %7823  ;;  %vm3082_vm5 = vweird.f32 %v7818_v36  ;;  %v10245_v32 = vadd.f32 1.0, %v7822_v39  ;;  %v10248_v55 = vadd.f32 %v1242_v42, %v8912_v2  ;;  %vm3097_vm6 = vweird.f32 %v7820_v19  ;;  %v915_v42 = vpop.f32.mrf.mxu0 }
 0x234   : > { %v3093_v49 = vsub.f32 1.0, %v3092_v45  ;;  %v3079_v48 = vmul.f32 %v7818_v36, %v3078_v27  ;;  %v7826_v40 = vpop.eup %7825  ;;  %v4997_v52 = vmul.f32 %v7824_v38, %v10217_v18  ;;  %vm10251_vm7 = vcmp.eq.f32.partialorder %v5005_v33, 8.507059e+37  ;;  %vm3083_vm9 = vmor %vm3081_vm0, %vm3082_vm5 }
 0x235   : > { %v5008_v57 = vor.u32 1.1754944e-38, %v5007_v37  ;;  %v7828_v44 = vpop.eup %7827  ;;  %vm5016_vm8 = vweird.f32 %v10225_v24  ;;  %v5020_v54 = vand.u32 2147483647, %v10225_v24  ;;  %v5022_v51 = vand.u32 2147483648, %v10225_v24  ;;  %vm3098_vm11 = vmor %vm3096_vm2, %vm3097_vm6 }
 0x236   : > { %v3094_v53 = vmul.f32 %v7820_v19, %v3093_v49  ;;  %v3080_v58 = vadd.f32 %v7818_v36, %v3079_v48  ;;  %7835 = vrcp.f32 %v10245_v32  ;;  %v7830_v63 = vpop.eup %7829  ;;  %v4998_v30 = vsub.f32 1.0, %v4997_v52  ;;  %v1244_v52 = vpop.f32.mrf.mxu1 }
 0x237   : > { %vm3111_vm10 = vweird.f32 %v10227_v31  ;;  %v3115_v43 = vand.u32 2147483647, %v10227_v31  ;;  %v3117_v35 = vand.u32 2147483648, %v10227_v31  ;;  %v7832_v62 = vpop.eup %7831  ;;  %vm5002_vm12 = vweird.f32 %v7824_v38 }
 0x238   : > { %v3095_v0 = vadd.f32 %v7820_v19, %v3094_v53  ;;  %v3084_v5 = vsel %vm3083_vm9, %v7818_v36, %v3080_v58  ;;  %v5012_v60 = vmul.f32 %v7830_v63, %v10225_v24  ;;  %v10269_v9 = vadd.f32 1.0, %v7826_v40  ;;  %v7834_v59 = vpop.eup %7833  ;;  %vm5003_vm15 = vmor %vm5001_vm4, %vm5002_vm12 }
 0x239   : > { %v3089_v3 = vsel %vm10230_vm1, %v3088_v29, %v3084_v5  ;;  %v4999_v50 = vmul.f32 %v7824_v38, %v4998_v30  ;;  %v3107_v61 = vmul.f32 %v7832_v62, %v10227_v31  ;;  %vm10277_vm13 = vcmp.eq.f32.partialorder %v5020_v54, 8.507059e+37 }
 0x23a   : > { %v3099_v7 = vsel %vm3098_vm11, %v7820_v19, %v3095_v0  ;;  %6412 = vst [vmem:[%s8994_s26 + $0x120] sm:$0xff] %v3089_v3  ;;  %v5013_v13 = vsub.f32 1.0, %v5012_v60  ;;  %v5023_v10 = vor.u32 1.1754944e-38, %v5022_v51  ;;  %vm10282_vm14 = vcmp.eq.f32.partialorder %v3115_v43, 8.507059e+37  ;;  %v1075_v0 = vpop.f32.mrf.mxu2 }
 0x23b   : > { %v3104_v4 = vsel %vm10239_vm3, %v3103_v46, %v3099_v7  ;;  %v5000_v15 = vadd.f32 %v7824_v38, %v4999_v50  ;;  %v3108_v14 = vsub.f32 1.0, %v3107_v61  ;;  %7837 = vrcp.f32 %v10269_v9  ;;  %v1404_v7 = vpop.f32.mrf.mxu3  ;;  %v918_v21 = vpop.f32.mrf.mxu0 }
 0x23c   : > { %6413 = vst [vmem:[%s8994_s26 + $0x128] sm:$0xff] %v3104_v4  ;;  %v7836_v11 = vpop.eup %7835  ;;  %v5014_v12 = vmul.f32 %v7830_v63, %v5013_v13  ;;  %vm5017_vm0 = vweird.f32 %v7830_v63  ;;  %v3118_v16 = vor.u32 1.1754944e-38, %v3117_v35  ;;  %v3130_v26 = vand.u32 2147483647, %v10245_v32 }
 0x23d   : > { %v5004_v17 = vsel %vm5003_vm15, %v7824_v38, %v5000_v15  ;;  %v3109_v23 = vmul.f32 %v7832_v62, %v3108_v14  ;;  %vm3112_vm1 = vweird.f32 %v7832_v62  ;;  %v3122_v8 = vmul.f32 %v7836_v11, %v10245_v32  ;;  %vm5018_vm2 = vmor %vm5016_vm8, %vm5017_vm0 }
 0x23e   : > { %v5009_v28 = vsel %vm10251_vm7, %v5008_v57, %v5004_v17  ;;  %v5015_v34 = vadd.f32 %v7830_v63, %v5014_v12  ;;  %v3132_v36 = vand.u32 2147483648, %v10245_v32  ;;  %v5035_v18 = vand.u32 2147483647, %v10269_v9  ;;  %vm3113_vm3 = vmor %vm3111_vm10, %vm3112_vm1  ;;  %v7405_v57 = vld [vmem:[%s8884_s7 + $0x198] sm:$0xff] }
 0x23f   : > { %6540 = vst [vmem:[%s8994_s26 + $0x520] sm:$0xff] %v5009_v28  ;;  %v3110_v19 = vadd.f32 %v7832_v62, %v3109_v23  ;;  %v3123_v20 = vsub.f32 1.0, %v3122_v8  ;;  %v10299_v41 = vadd.f32 1.0, %v7828_v44  ;;  %v10301_v39 = vadd.f32 1.0, %v7834_v59  ;;  %1117 = vmatmul.bf16.gmra.mxu2 %v7405_v57  ;;  %1446 = vmatmul.bf16.gmra.mxu3 %v7405_v57 }
 0x240   : > { %v5019_v45 = vsel %vm5018_vm2, %v7830_v63, %v5015_v34  ;;  %vm3127_vm4 = vweird.f32 %v7836_v11  ;;  %v5037_v33 = vand.u32 2147483648, %v10269_v9  ;;  %v7127_v37 = vmul.f32 -1.442695, %v10248_v55 }
 0x241   : > { %v7838_v24 = vpop.eup %7837  ;;  %v5024_v27 = vsel %vm10277_vm13, %v5023_v10, %v5019_v45  ;;  %v3114_v29 = vsel %vm3113_vm3, %v7832_v62, %v3110_v19  ;;  %v3124_v22 = vmul.f32 %v7836_v11, %v3123_v20  ;;  %7839 = vrcp.f32 %v10299_v41 }
 0x242   : > { %6541 = vst [vmem:[%s8994_s26 + $0x528] sm:$0xff] %v5024_v27  ;;  %v3119_v31 = vsel %vm10282_vm14, %v3118_v16, %v3114_v29  ;;  %vm3126_vm5 = vweird.f32 %v10245_v32  ;;  %vm10314_vm6 = vcmp.eq.f32.partialorder %v3130_v26, 8.507059e+37  ;;  %v5027_v46 = vmul.f32 %v7838_v24, %v10269_v9  ;;  %v1078_v49 = vpop.f32.mrf.mxu2 }
 0x243   : > { %6414 = vst [vmem:[%s8994_s26 + $0x130] sm:$0xff] %v3119_v31  ;;  %v3125_v38 = vadd.f32 %v7836_v11, %v3124_v22  ;;  %7841 = vrcp.f32 %v10301_v39  ;;  %v1074_v48 = vadd.f32 %v1073_v25, %v8910_v1  ;;  %v1403_v55 = vadd.f32 %v1402_v6, %v8912_v2  ;;  %vm3128_vm7 = vmor %vm3126_vm5, %vm3127_vm4 }
 0x244   : > { %v3133_v40 = vor.u32 1.1754944e-38, %v3132_v36  ;;  %v5028_v53 = vsub.f32 1.0, %v5027_v46  ;;  %vm5031_vm8 = vweird.f32 %v10269_v9  ;;  %vm10325_vm9 = vcmp.eq.f32.partialorder %v5035_v18, 8.507059e+37 }
 0x245   : > { %v3129_v44 = vsel %vm3128_vm7, %v7836_v11, %v3125_v38  ;;  %vm5032_vm10 = vweird.f32 %v7838_v24  ;;  %v5038_v58 = vor.u32 1.1754944e-38, %v5037_v33  ;;  %7843 = vpow2.f32 %v7127_v37 }
 0x246   : > { %v3134_v54 = vsel %vm10314_vm6, %v3133_v40, %v3129_v44  ;;  %v5029_v51 = vmul.f32 %v7838_v24, %v5028_v53  ;;  %vm5046_vm11 = vweird.f32 %v10299_v41  ;;  %v5050_v63 = vand.u32 2147483647, %v10299_v41  ;;  %vm5033_vm13 = vmor %vm5031_vm8, %vm5032_vm10 }
 0x247   : > { %v7840_v30 = vpop.eup %7839  ;;  %6415 = vst [vmem:[%s8994_s26 + $0x138] sm:$0xff] %v3134_v54  ;;  %v7254_v43 = vmul.f32 -1.442695, %v1074_v48  ;;  %v7255_v35 = vmul.f32 -1.442695, %v1403_v55  ;;  %v916_v62 = vadd.f32 %v915_v42, %v8910_v1  ;;  %v1245_v5 = vadd.f32 %v1244_v52, %v8912_v2 }
 0x248   : > { %v5030_v60 = vadd.f32 %v7838_v24, %v5029_v51  ;;  %v5042_v59 = vmul.f32 %v7840_v30, %v10299_v41  ;;  %v5052_v3 = vand.u32 2147483648, %v10299_v41  ;;  %vm3141_vm12 = vweird.f32 %v10301_v39  ;;  %v1247_v41 = vpop.f32.mrf.mxu1 }
 0x249   : > { %v7842_v50 = vpop.eup %7841  ;;  %7845 = vpow2.f32 %v7254_v43  ;;  %v7128_v61 = vmul.f32 -1.442695, %v916_v62  ;;  %v7129_v4 = vmul.f32 -1.442695, %v1245_v5  ;;  %v1076_v13 = vadd.f32 %v1075_v0, %v8910_v1  ;;  %v1407_v0 = vpop.f32.mrf.mxu3 }
 0x24a   : > { %v5034_v47 = vsel %vm5033_vm13, %v7838_v24, %v5030_v60  ;;  %v5043_v10 = vsub.f32 1.0, %v5042_v59  ;;  %v3137_v15 = vmul.f32 %v7842_v50, %v10301_v39  ;;  %v3145_v14 = vand.u32 2147483647, %v10301_v39 }
 0x24b   : > { %v7844_v11 = vpop.eup %7843  ;;  %v5039_v12 = vsel %vm10325_vm9, %v5038_v58, %v5034_v47  ;;  %vm5047_vm14 = vweird.f32 %v7840_v30  ;;  %7847 = vpow2.f32 %v7255_v35  ;;  %v1405_v9 = vadd.f32 %v1404_v7, %v8912_v2 }
 0x24c   : > { %6542 = vst [vmem:[%s8994_s26 + $0x530] sm:$0xff] %v5039_v12  ;;  %v5044_v16 = vmul.f32 %v7840_v30, %v5043_v10  ;;  %v3138_v26 = vsub.f32 1.0, %v3137_v15  ;;  %v10351_v25 = vadd.f32 1.0, %v7844_v11  ;;  %7849 = vpow2.f32 %v7128_v61  ;;  %vm5048_vm0 = vmor %vm5046_vm11, %vm5047_vm14 }
 0x24d   : > { %v3147_v17 = vand.u32 2147483648, %v10301_v39  ;;  %7851 = vpow2.f32 %v7129_v4  ;;  %v7256_v23 = vmul.f32 -1.442695, %v1076_v13  ;;  %v919_v8 = vadd.f32 %v918_v21, %v8910_v1 }
 0x24e   : > { %v5045_v28 = vadd.f32 %v7840_v30, %v5044_v16  ;;  %v3139_v34 = vmul.f32 %v7842_v50, %v3138_v26  ;;  %vm3142_vm15 = vweird.f32 %v7842_v50  ;;  %7853 = vrcp.f32 %v10351_v25 }
 0x24f   : > { %v7846_v36 = vpop.eup %7845  ;;  %vm5051_vm1 = vcmp.eq.f32.partialorder %v5050_v63, 8.507059e+37  ;;  %v5053_v18 = vor.u32 1.1754944e-38, %v5052_v3  ;;  %v7257_v6 = vmul.f32 -1.442695, %v1405_v9  ;;  %v7130_v33 = vmul.f32 -1.442695, %v919_v8  ;;  %vm3143_vm2 = vmor %vm3141_vm12, %vm3142_vm15 }
 0x250   : > { %v5049_v19 = vsel %vm5048_vm0, %v7840_v30, %v5045_v28  ;;  %v3140_v20 = vadd.f32 %v7842_v50, %v3139_v34  ;;  %v10359_v45 = vadd.f32 1.0, %v7846_v36  ;;  %vm3146_vm3 = vcmp.eq.f32.partialorder %v3145_v14, 8.507059e+37 }
 0x251   : > { %v7848_v37 = vpop.eup %7847  ;;  %v5054_v42 = vsel %vm5051_vm1, %v5053_v18, %v5049_v19  ;;  %v3148_v24 = vor.u32 1.1754944e-38, %v3147_v17  ;;  %7855 = vpow2.f32 %v7256_v23  ;;  %v3160_v22 = vand.u32 2147483647, %v10351_v25 }
 0x252   : > { %v7850_v27 = vpop.eup %7849  ;;  %6543 = vst [vmem:[%s8994_s26 + $0x538] sm:$0xff] %v5054_v42  ;;  %v3144_v29 = vsel %vm3143_vm2, %v7842_v50, %v3140_v20  ;;  %v3162_v31 = vand.u32 2147483648, %v10351_v25  ;;  %7857 = vrcp.f32 %v10359_v45  ;;  %v10367_v48 = vadd.f32 1.0, %v7848_v37 }
 0x253   : > { %v7852_v46 = vpop.eup %7851  ;;  %v3149_v38 = vsel %vm3146_vm3, %v3148_v24, %v3144_v29  ;;  %v10369_v39 = vadd.f32 1.0, %v7850_v27  ;;  %7859 = vpow2.f32 %v7257_v6  ;;  %v1248_v53 = vadd.f32 %v1247_v41, %v8912_v2 }
 0x254   : > { %v7854_v55 = vpop.eup %7853  ;;  %6416 = vst [vmem:[%s8994_s26 + $0x140] sm:$0xff] %v3149_v38  ;;  %v10372_v40 = vadd.f32 1.0, %v7852_v46  ;;  %7861 = vpow2.f32 %v7130_v33  ;;  %v5065_v52 = vand.u32 2147483647, %v10359_v45  ;;  %v10379_v56 = vadd.f32 %v1078_v49, %v8910_v1 }
 0x255   : > { %v3152_v32 = vmul.f32 %v7854_v55, %v10351_v25  ;;  %7863 = vrcp.f32 %v10367_v48  ;;  %vm3156_vm4 = vweird.f32 %v10351_v25  ;;  %vm10382_vm5 = vcmp.eq.f32.partialorder %v3160_v22, 8.507059e+37  ;;  %v920_v22 = vpop.f32.mrf.mxu0 }
 0x256   : > { %v5067_v44 = vand.u32 2147483648, %v10359_v45  ;;  %7865 = vrcp.f32 %v10369_v39  ;;  %v3163_v51 = vor.u32 1.1754944e-38, %v3162_v31  ;;  %vm5061_vm6 = vweird.f32 %v10359_v45 }
 0x257   : > { %v7856_v58 = vpop.eup %7855  ;;  %v3153_v54 = vsub.f32 1.0, %v3152_v32  ;;  %v5082_v63 = vand.u32 2147483648, %v10367_v48  ;;  %v5080_v43 = vand.u32 2147483647, %v10367_v48  ;;  %v3177_v35 = vand.u32 2147483648, %v10369_v39 }
 0x258   : > { %v7858_v30 = vpop.eup %7857  ;;  %7867 = vrcp.f32 %v10372_v40  ;;  %v10393_v62 = vmul.f32 -1.442695, %v1248_v53  ;;  %vm3157_vm7 = vweird.f32 %v7854_v55  ;;  %vm10396_vm8 = vcmp.eq.f32.partialorder %v5065_v52, 8.507059e+37 }
 0x259   : > { %v7860_v5 = vpop.eup %7859  ;;  %v3154_v60 = vmul.f32 %v7854_v55, %v3153_v54  ;;  %v5057_v59 = vmul.f32 %v7858_v30, %v10359_v45  ;;  %v3175_v7 = vand.u32 2147483647, %v10369_v39  ;;  %v5068_v61 = vor.u32 1.1754944e-38, %v5067_v44  ;;  %vm3158_vm12 = vmor %vm3156_vm4, %vm3157_vm7 }
 0x25a   : > { %v7862_v50 = vpop.eup %7861  ;;  %vm5076_vm9 = vweird.f32 %v10367_v48  ;;  %v10402_v4 = vadd.f32 1.0, %v7856_v58  ;;  %v10405_v13 = vadd.f32 %v1407_v0, %v8912_v2  ;;  %vm5062_vm10 = vweird.f32 %v7858_v30 }
 0x25b   : > { %v7864_v47 = vpop.eup %7863  ;;  %v3155_v10 = vadd.f32 %v7854_v55, %v3154_v60  ;;  %v5058_v15 = vsub.f32 1.0, %v5057_v59  ;;  %v5083_v14 = vor.u32 1.1754944e-38, %v5082_v63  ;;  %vm3171_vm11 = vweird.f32 %v10369_v39  ;;  %vm5063_vm1 = vmor %vm5061_vm6, %vm5062_vm10  ;;  %v7406_v63 = vld [vmem:[%s8884_s7 + $0x1a0] sm:$0xff] }
 0x25c   : > { %v7866_v21 = vpop.eup %7865  ;;  %v5072_v11 = vmul.f32 %v7864_v47, %v10367_v48  ;;  %vm10412_vm13 = vcmp.eq.f32.partialorder %v5080_v43, 8.507059e+37  ;;  %v3178_v9 = vor.u32 1.1754944e-38, %v3177_v35  ;;  %v3190_v16 = vand.u32 2147483647, %v10372_v40  ;;  %1122 = vmatmul.bf16.gmra.mxu2 %v7406_v63  ;;  %1451 = vmatmul.bf16.gmra.mxu3 %v7406_v63 }
 0x25d   : > { %v10417_v26 = vadd.f32 1.0, %v7860_v5  ;;  %v3159_v17 = vsel %vm3158_vm12, %v7854_v55, %v3155_v10  ;;  %v5059_v23 = vmul.f32 %v7858_v30, %v5058_v15  ;;  %v3167_v8 = vmul.f32 %v7866_v21, %v10369_v39  ;;  %v7374_v39 = vld [vmem:[%s8884_s7 + $0xa0] sm:$0xff]  ;;  %v923_v28 = vpop.f32.mrf.mxu0 }
 0x25e   : > { %vm10420_vm14 = vcmp.eq.f32.partialorder %v3175_v7, 8.507059e+37  ;;  %vm3186_vm15 = vweird.f32 %v10372_v40  ;;  %v3192_v25 = vand.u32 2147483648, %v10372_v40  ;;  %v10426_v34 = vpop.eup %7867  ;;  %v3164_v36 = vsel %vm10382_vm5, %v3163_v51, %v3159_v17  ;;  %v1080_v7 = vpop.f32.mrf.mxu2  ;;  %962 = vmatmul.bf16.gmra.mxu0 %v7374_v39  ;;  %1291 = vmatmul.bf16.gmra.mxu1 %v7374_v39 }
 0x25f   : > { %v5073_v18 = vsub.f32 1.0, %v5072_v11  ;;  %7869 = vrcp.f32 %v10402_v4  ;;  %v10431_v6 = vadd.f32 1.0, %v7862_v50  ;;  %6417 = vst [vmem:[%s8994_s26 + $0x148] sm:$0xff] %v3164_v36  ;;  %v5060_v19 = vadd.f32 %v7858_v30, %v5059_v23 }
 0x260   : > { %vm5077_vm0 = vweird.f32 %v7864_v47  ;;  %v3168_v20 = vsub.f32 1.0, %v3167_v8  ;;  %v3182_v33 = vmul.f32 %v10426_v34, %v10372_v40  ;;  %vm3172_vm2 = vweird.f32 %v7866_v21  ;;  %v1249_v40 = vpop.f32.mrf.mxu1  ;;  %v1409_v8 = vpop.f32.mrf.mxu3 }
 0x261   : > { %v5074_v37 = vmul.f32 %v7864_v47, %v5073_v18  ;;  %vm10439_vm3 = vcmp.eq.f32.partialorder %v3190_v16, 8.507059e+37  ;;  %7871 = vrcp.f32 %v10417_v26  ;;  %v5064_v24 = vsel %vm5063_vm1, %v7858_v30, %v5060_v19  ;;  %vm5078_vm4 = vmor %vm5076_vm9, %vm5077_vm0 }
 0x262   : > { %v3169_v41 = vmul.f32 %v7866_v21, %v3168_v20  ;;  %v3183_v27 = vsub.f32 1.0, %v3182_v33  ;;  %v5095_v29 = vand.u32 2147483647, %v10402_v4  ;;  %v5069_v31 = vsel %vm10396_vm8, %v5068_v61, %v5064_v24  ;;  %vm3173_vm6 = vmor %vm3171_vm11, %vm3172_vm2 }
 0x263   : > { %v5075_v49 = vadd.f32 %v7864_v47, %v5074_v37  ;;  %v3193_v45 = vor.u32 1.1754944e-38, %v3192_v25  ;;  %v5097_v46 = vand.u32 2147483648, %v10402_v4  ;;  %6544 = vst [vmem:[%s8994_s26 + $0x540] sm:$0xff] %v5069_v31  ;;  %vm3187_vm5 = vweird.f32 %v10426_v34 }
 0x264   : > { %v3170_v38 = vadd.f32 %v7866_v21, %v3169_v41  ;;  %v3184_v55 = vmul.f32 %v10426_v34, %v3183_v27  ;;  %v5110_v53 = vand.u32 2147483647, %v10417_v26  ;;  %vm5091_vm7 = vweird.f32 %v10402_v4  ;;  %vm3188_vm10 = vmor %vm3186_vm15, %vm3187_vm5 }
 0x265   : > { %v10455_v32 = vpop.eup %7869  ;;  %v5079_v52 = vsel %vm5078_vm4, %v7864_v47, %v5075_v49  ;;  %v5112_v48 = vand.u32 2147483648, %v10417_v26  ;;  %7873 = vrcp.f32 %v10431_v6  ;;  %vm10468_vm8 = vcmp.eq.f32.partialorder %v5095_v29, 8.507059e+37 }
 0x266   : > { %v5084_v57 = vsel %vm10412_vm13, %v5083_v14, %v5079_v52  ;;  %v3174_v44 = vsel %vm3173_vm6, %v7866_v21, %v3170_v38  ;;  %v3185_v58 = vadd.f32 %v10426_v34, %v3184_v55  ;;  %v5087_v54 = vmul.f32 %v10455_v32, %v10402_v4 }
 0x267   : > { %vm5106_vm9 = vweird.f32 %v10417_v26  ;;  %v7872_v0 = vpop.eup %7871  ;;  %6545 = vst [vmem:[%s8994_s26 + $0x548] sm:$0xff] %v5084_v57  ;;  %v3179_v30 = vsel %vm10420_vm14, %v3178_v9, %v3174_v44  ;;  %vm5092_vm11 = vweird.f32 %v10455_v32  ;;  %v5098_v43 = vor.u32 1.1754944e-38, %v5097_v46 }
 0x268   : > { %v3205_v35 = vand.u32 2147483647, %v10431_v6  ;;  %6418 = vst [vmem:[%s8994_s26 + $0x150] sm:$0xff] %v3179_v30  ;;  %v3189_v5 = vsel %vm3188_vm10, %v10426_v34, %v3185_v58  ;;  %v5088_v60 = vsub.f32 1.0, %v5087_v54  ;;  %v5102_v59 = vmul.f32 %v7872_v0, %v10417_v26  ;;  %vm5093_vm0 = vmor %vm5091_vm7, %vm5092_vm11  ;;  %v1252_v31 = vpop.f32.mrf.mxu1 }
 0x269   : > { %vm10487_vm12 = vcmp.eq.f32.partialorder %v5110_v53, 8.507059e+37  ;;  %vm3201_vm13 = vweird.f32 %v10431_v6  ;;  %v3194_v50 = vsel %vm10439_vm3, %v3193_v45, %v3189_v5  ;;  %vm5107_vm14 = vweird.f32 %v7872_v0 }
 0x26a   : > { %v5113_v61 = vor.u32 1.1754944e-38, %v5112_v48  ;;  %7875 = vpow2.f32 %v10393_v62  ;;  %6419 = vst [vmem:[%s8994_s26 + $0x158] sm:$0xff] %v3194_v50  ;;  %v5089_v47 = vmul.f32 %v10455_v32, %v5088_v60  ;;  %v5103_v10 = vsub.f32 1.0, %v5102_v59  ;;  %vm5108_vm1 = vmor %vm5106_vm9, %vm5107_vm14  ;;  %v1083_v48 = vpop.f32.mrf.mxu2 }
 0x26b   : > { %v7258_v15 = vmul.f32 -1.442695, %v10379_v56  ;;  %v7259_v14 = vmul.f32 -1.442695, %v10405_v13  ;;  %v7874_v21 = vpop.eup %7873  ;;  %v3207_v11 = vand.u32 2147483648, %v10431_v6  ;;  %v921_v12 = vadd.f32 %v920_v22, %v8910_v1 }
 0x26c   : > { %v1250_v9 = vadd.f32 %v1249_v40, %v8912_v2  ;;  %v1081_v16 = vadd.f32 %v1080_v7, %v8910_v1  ;;  %v5090_v62 = vadd.f32 %v10455_v32, %v5089_v47  ;;  %v5104_v17 = vmul.f32 %v7872_v0, %v5103_v10 }
 0x26d   : > { %v3197_v23 = vmul.f32 %v7874_v21, %v10431_v6  ;;  %vm3202_vm15 = vweird.f32 %v7874_v21  ;;  %7877 = vpow2.f32 %v7258_v15  ;;  %v7132_v56 = vmul.f32 -1.442695, %v921_v12 }
 0x26e   : > { %v7133_v13 = vmul.f32 -1.442695, %v1250_v9  ;;  %v7260_v25 = vmul.f32 -1.442695, %v1081_v16  ;;  %v5094_v34 = vsel %vm5093_vm0, %v10455_v32, %v5090_v62  ;;  %v5105_v36 = vadd.f32 %v7872_v0, %v5104_v17  ;;  %vm3203_vm2 = vmor %vm3201_vm13, %vm3202_vm15 }
 0x26f   : > { %v3198_v18 = vsub.f32 1.0, %v3197_v23  ;;  %7879 = vpow2.f32 %v7259_v14  ;;  %v5099_v20 = vsel %vm10468_vm8, %v5098_v43, %v5094_v34  ;;  %v1410_v4 = vadd.f32 %v1409_v8, %v8912_v2 }
 0x270   : > { %v7876_v19 = vpop.eup %7875  ;;  %7881 = vpow2.f32 %v7132_v56  ;;  %v924_v33 = vadd.f32 %v923_v28, %v8910_v1  ;;  %6546 = vst [vmem:[%s8994_s26 + $0x550] sm:$0xff] %v5099_v20  ;;  %v5109_v37 = vsel %vm5108_vm1, %v7872_v0, %v5105_v36  ;;  %v3208_v22 = vor.u32 1.1754944e-38, %v3207_v11 }
 0x271   : > { %v3199_v42 = vmul.f32 %v7874_v21, %v3198_v18  ;;  %v10518_v24 = vadd.f32 1.0, %v7876_v19  ;;  %7883 = vpow2.f32 %v7133_v13  ;;  %v5114_v41 = vsel %vm10487_vm12, %v5113_v61, %v5109_v37 }
 0x272   : > { %v7261_v27 = vmul.f32 -1.442695, %v1410_v4  ;;  %6547 = vst [vmem:[%s8994_s26 + $0x558] sm:$0xff] %v5114_v41  ;;  %vm3206_vm3 = vcmp.eq.f32.partialorder %v3205_v35, 8.507059e+37  ;;  %v7134_v38 = vmul.f32 -1.442695, %v924_v33  ;;  %v1253_v6 = vadd.f32 %v1252_v31, %v8912_v2 }
 0x273   : > { %v3200_v29 = vadd.f32 %v7874_v21, %v3199_v42  ;;  %7885 = vrcp.f32 %v10518_v24  ;;  %v7878_v26 = vpop.eup %7877  ;;  %v3220_v32 = vand.u32 2147483647, %v10518_v24  ;;  %v3222_v44 = vand.u32 2147483648, %v10518_v24 }
 0x274   : > { %7887 = vpow2.f32 %v7260_v25  ;;  %v10529_v46 = vadd.f32 1.0, %v7878_v26  ;;  %vm3216_vm4 = vweird.f32 %v10518_v24  ;;  %v10546_v63 = vadd.f32 %v1083_v48, %v8910_v1 }
 0x275   : > { %v7880_v49 = vpop.eup %7879  ;;  %v3204_v45 = vsel %vm3203_vm2, %v7874_v21, %v3200_v29  ;;  %7889 = vpow2.f32 %v7261_v27  ;;  %vm10549_vm5 = vcmp.eq.f32.partialorder %v3220_v32, 8.507059e+37  ;;  %v3223_v5 = vor.u32 1.1754944e-38, %v3222_v44 }
 0x276   : > { %v7882_v55 = vpop.eup %7881  ;;  %v3209_v53 = vsel %vm3206_vm3, %v3208_v22, %v3204_v45  ;;  %v10532_v52 = vadd.f32 1.0, %v7880_v49  ;;  %7891 = vrcp.f32 %v10529_v46  ;;  %v5127_v54 = vand.u32 2147483648, %v10529_v46  ;;  %v1412_v49 = vpop.f32.mrf.mxu3 }
 0x277   : > { %v7884_v57 = vpop.eup %7883  ;;  %6420 = vst [vmem:[%s8994_s26 + $0x160] sm:$0xff] %v3209_v53  ;;  %v10541_v51 = vadd.f32 1.0, %v7882_v55  ;;  %v5125_v35 = vand.u32 2147483647, %v10529_v46  ;;  %v10556_v59 = vmul.f32 -1.442695, %v1253_v6  ;;  %vm5121_vm6 = vweird.f32 %v10529_v46 }
 0x278   : > { %7893 = vrcp.f32 %v10532_v52  ;;  %v10543_v39 = vadd.f32 1.0, %v7884_v57  ;;  %v5140_v60 = vand.u32 2147483647, %v10532_v52  ;;  %v5142_v7 = vand.u32 2147483648, %v10532_v52  ;;  %v925_v57 = vpop.f32.mrf.mxu0 }
 0x279   : > { %v7886_v58 = vpop.eup %7885  ;;  %7895 = vpow2.f32 %v7134_v38  ;;  %v5128_v61 = vor.u32 1.1754944e-38, %v5127_v54  ;;  %vm5136_vm7 = vweird.f32 %v10532_v52  ;;  %v3237_v47 = vand.u32 2147483648, %v10541_v51 }
 0x27a   : > { %v7888_v0 = vpop.eup %7887  ;;  %v3212_v30 = vmul.f32 %v7886_v58, %v10518_v24  ;;  %7897 = vrcp.f32 %v10541_v51  ;;  %vm3217_vm8 = vweird.f32 %v7886_v58  ;;  %vm10566_vm9 = vcmp.eq.f32.partialorder %v5125_v35, 8.507059e+37 }
 0x27b   : > { %v7890_v3 = vpop.eup %7889  ;;  %7899 = vrcp.f32 %v10543_v39  ;;  %v10563_v10 = vadd.f32 1.0, %v7888_v0  ;;  %v3235_v12 = vand.u32 2147483647, %v10541_v51  ;;  %vm10572_vm10 = vcmp.eq.f32.partialorder %v5140_v60, 8.507059e+37  ;;  %vm3218_vm12 = vmor %vm3216_vm4, %vm3217_vm8 }
 0x27c   : > { %v3213_v40 = vsub.f32 1.0, %v3212_v30  ;;  %v7892_v50 = vpop.eup %7891  ;;  %v3250_v62 = vand.u32 2147483647, %v10543_v39  ;;  %v3252_v17 = vand.u32 2147483648, %v10543_v39  ;;  %v5143_v56 = vor.u32 1.1754944e-38, %v5142_v7  ;;  %v7375_v7 = vld [vmem:[%s8884_s7 + $0xa8] sm:$0xff] }
 0x27d   : > { %v5117_v21 = vmul.f32 %v7892_v50, %v10529_v46  ;;  %7901 = vrcp.f32 %v10563_v10  ;;  %vm3231_vm11 = vweird.f32 %v10541_v51  ;;  %vm5122_vm13 = vweird.f32 %v7892_v50  ;;  %967 = vmatmul.bf16.gmra.mxu0 %v7375_v7  ;;  %1296 = vmatmul.bf16.gmra.mxu1 %v7375_v7 }
 0x27e   : > { %v7894_v15 = vpop.eup %7893  ;;  %v3214_v14 = vmul.f32 %v7886_v58, %v3213_v40  ;;  %v3238_v34 = vor.u32 1.1754944e-38, %v3237_v47  ;;  %vm3246_vm14 = vweird.f32 %v10543_v39  ;;  %v10586_v36 = vadd.f32 1.0, %v7890_v3  ;;  %vm5123_vm3 = vmor %vm5121_vm6, %vm5122_vm13  ;;  %v1254_v40 = vpop.f32.mrf.mxu1 }
 0x27f   : > { %v5132_v9 = vmul.f32 %v7894_v15, %v10532_v52  ;;  %v7896_v23 = vpop.eup %7895  ;;  %v5118_v28 = vsub.f32 1.0, %v5117_v21  ;;  %vm5137_vm15 = vweird.f32 %v7894_v15  ;;  %vm10590_vm0 = vcmp.eq.f32.partialorder %v3235_v12, 8.507059e+37  ;;  %v1085_v12 = vpop.f32.mrf.mxu2 }
 0x280   : > { %v3215_v8 = vadd.f32 %v7886_v58, %v3214_v14  ;;  %v10580_v13 = vpop.eup %7897  ;;  %vm10597_vm1 = vcmp.eq.f32.partialorder %v3250_v62, 8.507059e+37  ;;  %v3253_v27 = vor.u32 1.1754944e-38, %v3252_v17  ;;  %vm5151_vm2 = vweird.f32 %v10563_v10  ;;  %vm5138_vm4 = vmor %vm5136_vm7, %vm5137_vm15 }
 0x281   : > { %v5133_v25 = vsub.f32 1.0, %v5132_v9  ;;  %v7900_v18 = vpop.eup %7899  ;;  %v5119_v20 = vmul.f32 %v7892_v50, %v5118_v28  ;;  %v3227_v4 = vmul.f32 %v10580_v13, %v10541_v51  ;;  %v5155_v22 = vand.u32 2147483647, %v10563_v10  ;;  %v1414_v28 = vpop.f32.mrf.mxu3 }
 0x282   : > { %v3219_v19 = vsel %vm3218_vm12, %v7886_v58, %v3215_v8  ;;  %v3242_v24 = vmul.f32 %v7900_v18, %v10543_v39  ;;  %v5157_v31 = vand.u32 2147483648, %v10563_v10  ;;  %7903 = vrcp.f32 %v10586_v36 }
 0x283   : > { %v3224_v37 = vsel %vm10549_vm5, %v3223_v5, %v3219_v19  ;;  %v5134_v42 = vmul.f32 %v7894_v15, %v5133_v25  ;;  %v5120_v29 = vadd.f32 %v7892_v50, %v5119_v20  ;;  %v3228_v26 = vsub.f32 1.0, %v3227_v4  ;;  %v10605_v45 = vpop.eup %7901  ;;  %v928_v19 = vpop.f32.mrf.mxu0 }
 0x284   : > { %6421 = vst [vmem:[%s8994_s26 + $0x168] sm:$0xff] %v3224_v37  ;;  %v3243_v55 = vsub.f32 1.0, %v3242_v24  ;;  %v10611_v53 = vadd.f32 1.0, %v7896_v23  ;;  %vm3232_vm5 = vweird.f32 %v10580_v13  ;;  %v5147_v46 = vmul.f32 %v10605_v45, %v10563_v10 }
 0x285   : > { %v5135_v38 = vadd.f32 %v7894_v15, %v5134_v42  ;;  %v5124_v32 = vsel %vm5123_vm3, %v7892_v50, %v5120_v29  ;;  %v3229_v48 = vmul.f32 %v10580_v13, %v3228_v26  ;;  %vm3247_vm6 = vweird.f32 %v7900_v18  ;;  %vm3233_vm7 = vmor %vm3231_vm11, %vm3232_vm5  ;;  %v7407_v50 = vld [vmem:[%s8884_s7 + $0x1a8] sm:$0xff] }
 0x286   : > { %v5129_v44 = vsel %vm10566_vm9, %v5128_v61, %v5124_v32  ;;  %v3244_v58 = vmul.f32 %v7900_v18, %v3243_v55  ;;  %v5148_v0 = vsub.f32 1.0, %v5147_v46  ;;  %v5170_v30 = vand.u32 2147483647, %v10586_v36  ;;  %vm3248_vm9 = vmor %vm3246_vm14, %vm3247_vm6  ;;  %1127 = vmatmul.bf16.gmra.mxu2 %v7407_v50  ;;  %1456 = vmatmul.bf16.gmra.mxu3 %v7407_v50 }
 0x287   : > { %v5139_v6 = vsel %vm5138_vm4, %v7894_v15, %v5135_v38  ;;  %6548 = vst [vmem:[%s8994_s26 + $0x560] sm:$0xff] %v5129_v44  ;;  %v3230_v52 = vadd.f32 %v10580_v13, %v3229_v48  ;;  %vm10630_vm8 = vcmp.eq.f32.partialorder %v5155_v22, 8.507059e+37  ;;  %v5172_v5 = vand.u32 2147483648, %v10586_v36  ;;  %v1088_v35 = vpop.f32.mrf.mxu2 }
 0x288   : > { %v5144_v54 = vsel %vm10572_vm10, %v5143_v56, %v5139_v6  ;;  %v3245_v43 = vadd.f32 %v7900_v18, %v3244_v58  ;;  %7905 = vrcp.f32 %v10611_v53  ;;  %v5149_v3 = vmul.f32 %v10605_v45, %v5148_v0  ;;  %v7904_v61 = vpop.eup %7903 }
 0x289   : > { %6549 = vst [vmem:[%s8994_s26 + $0x568] sm:$0xff] %v5144_v54  ;;  %v3234_v60 = vsel %vm3233_vm7, %v10580_v13, %v3230_v52  ;;  %vm5152_vm10 = vweird.f32 %v10605_v45  ;;  %v5158_v51 = vor.u32 1.1754944e-38, %v5157_v31  ;;  %vm5166_vm11 = vweird.f32 %v10586_v36 }
 0x28a   : > { %v3239_v47 = vsel %vm10590_vm0, %v3238_v34, %v3234_v60  ;;  %v3249_v15 = vsel %vm3248_vm9, %v7900_v18, %v3245_v43  ;;  %7907 = vpow2.f32 %v10556_v59  ;;  %v5150_v14 = vadd.f32 %v10605_v45, %v5149_v3  ;;  %vm5153_vm13 = vmor %vm5151_vm2, %vm5152_vm10 }
 0x28b   : > { %6422 = vst [vmem:[%s8994_s26 + $0x170] sm:$0xff] %v3239_v47  ;;  %v3254_v39 = vsel %vm10597_vm1, %v3253_v27, %v3249_v15  ;;  %v5162_v21 = vmul.f32 %v7904_v61, %v10586_v36  ;;  %vm10652_vm12 = vcmp.eq.f32.partialorder %v5170_v30, 8.507059e+37  ;;  %v5173_v59 = vor.u32 1.1754944e-38, %v5172_v5 }
 0x28c   : > { %6423 = vst [vmem:[%s8994_s26 + $0x178] sm:$0xff] %v3254_v39  ;;  %vm3261_vm14 = vweird.f32 %v10611_v53  ;;  %v7262_v9 = vmul.f32 -1.442695, %v10546_v63  ;;  %v1413_v16 = vadd.f32 %v1412_v49, %v8912_v2  ;;  %v5154_v62 = vsel %vm5153_vm13, %v10605_v45, %v5150_v14  ;;  %v1257_v49 = vpop.f32.mrf.mxu1 }
 0x28d   : > { %v5163_v17 = vsub.f32 1.0, %v5162_v21  ;;  %v926_v23 = vadd.f32 %v925_v57, %v8910_v1  ;;  %v1255_v8 = vadd.f32 %v1254_v40, %v8912_v2  ;;  %v5159_v56 = vsel %vm10630_vm8, %v5158_v51, %v5154_v62 }
 0x28e   : > { %v7906_v10 = vpop.eup %7905  ;;  %7909 = vpow2.f32 %v7262_v9  ;;  %v7263_v13 = vmul.f32 -1.442695, %v1413_v16  ;;  %v1086_v63 = vadd.f32 %v1085_v12, %v8910_v1  ;;  %6550 = vst [vmem:[%s8994_s26 + $0x570] sm:$0xff] %v5159_v56  ;;  %vm5167_vm15 = vweird.f32 %v7904_v61 }
 0x28f   : > { %v5164_v25 = vmul.f32 %v7904_v61, %v5163_v17  ;;  %v3257_v34 = vmul.f32 %v7906_v10, %v10611_v53  ;;  %v7136_v18 = vmul.f32 -1.442695, %v926_v23  ;;  %v3265_v4 = vand.u32 2147483647, %v10611_v53  ;;  %vm5168_vm0 = vmor %vm5166_vm11, %vm5167_vm15 }
 0x290   : > { %v7908_v20 = vpop.eup %7907  ;;  %7911 = vpow2.f32 %v7263_v13  ;;  %v7137_v33 = vmul.f32 -1.442695, %v1255_v8  ;;  %v1415_v37 = vadd.f32 %v1414_v28, %v8912_v2  ;;  %v3267_v27 = vand.u32 2147483648, %v10611_v53 }
 0x291   : > { %v5165_v42 = vadd.f32 %v7904_v61, %v5164_v25  ;;  %v3258_v24 = vsub.f32 1.0, %v3257_v34  ;;  %v10674_v41 = vadd.f32 1.0, %v7908_v20  ;;  %7913 = vpow2.f32 %v7136_v18 }
 0x292   : > { %7915 = vpow2.f32 %v7137_v33  ;;  %v7264_v29 = vmul.f32 -1.442695, %v1086_v63  ;;  %v929_v26 = vadd.f32 %v928_v19, %v8910_v1  ;;  %vm3262_vm1 = vweird.f32 %v7906_v10 }
 0x293   : > { %v5169_v22 = vsel %vm5168_vm0, %v7904_v61, %v5165_v42  ;;  %v3259_v31 = vmul.f32 %v7906_v10, %v3258_v24  ;;  %7917 = vrcp.f32 %v10674_v41  ;;  %v7265_v55 = vmul.f32 -1.442695, %v1415_v37  ;;  %vm3263_vm2 = vmor %vm3261_vm14, %vm3262_vm1 }
 0x294   : > { %v7910_v45 = vpop.eup %7909  ;;  %v5174_v38 = vsel %vm10652_vm12, %v5173_v59, %v5169_v22  ;;  %v7138_v48 = vmul.f32 -1.442695, %v929_v26  ;;  %vm3266_vm3 = vcmp.eq.f32.partialorder %v3265_v4, 8.507059e+37  ;;  %v3268_v57 = vor.u32 1.1754944e-38, %v3267_v27  ;;  %v1259_v62 = vpop.f32.mrf.mxu1 }
 0x295   : > { %6551 = vst [vmem:[%s8994_s26 + $0x578] sm:$0xff] %v5174_v38  ;;  %v3260_v36 = vadd.f32 %v7906_v10, %v3259_v31  ;;  %v10684_v32 = vadd.f32 1.0, %v7910_v45  ;;  %7919 = vpow2.f32 %v7264_v29  ;;  %v1258_v44 = vadd.f32 %v1257_v49, %v8912_v2 }
 0x296   : > { %v7912_v46 = vpop.eup %7911  ;;  %v3280_v54 = vand.u32 2147483647, %v10674_v41  ;;  %v3282_v52 = vand.u32 2147483648, %v10674_v41  ;;  %vm3276_vm4 = vweird.f32 %v10674_v41  ;;  %v1089_v50 = vadd.f32 %v1088_v35, %v8910_v1 }
 0x297   : > { %v7914_v6 = vpop.eup %7913  ;;  %v3264_v58 = vsel %vm3263_vm2, %v7906_v10, %v3260_v36  ;;  %7921 = vrcp.f32 %v10684_v32  ;;  %v10692_v43 = vadd.f32 1.0, %v7912_v46  ;;  %v5185_v51 = vand.u32 2147483647, %v10684_v32 }
 0x298   : > { %v7916_v0 = vpop.eup %7915  ;;  %v3269_v30 = vsel %vm3266_vm3, %v3268_v57, %v3264_v58  ;;  %v10694_v53 = vadd.f32 1.0, %v7914_v6  ;;  %7923 = vpow2.f32 %v7265_v55  ;;  %vm10703_vm5 = vcmp.eq.f32.partialorder %v3280_v54, 8.507059e+37 }
 0x299   : > { %v7918_v5 = vpop.eup %7917  ;;  %6424 = vst [vmem:[%s8994_s26 + $0x180] sm:$0xff] %v3269_v30  ;;  %v10697_v60 = vadd.f32 1.0, %v7916_v0  ;;  %7925 = vpow2.f32 %v7138_v48  ;;  %v5187_v7 = vand.u32 2147483648, %v10684_v32  ;;  %v3283_v15 = vor.u32 1.1754944e-38, %v3282_v52  ;;  %v1417_v48 = vpop.f32.mrf.mxu3 }
 0x29a   : > { %v3272_v3 = vmul.f32 %v7918_v5, %v10674_v41  ;;  %7927 = vrcp.f32 %v10692_v43  ;;  %v5202_v39 = vand.u32 2147483648, %v10692_v43  ;;  %v10711_v14 = vmul.f32 -1.442695, %v1258_v44 }
 0x29b   : > { %7929 = vrcp.f32 %v10694_v53  ;;  %v7920_v61 = vpop.eup %7919  ;;  %vm5181_vm6 = vweird.f32 %v10684_v32  ;;  %v5200_v11 = vand.u32 2147483647, %v10692_v43  ;;  %v3297_v12 = vand.u32 2147483648, %v10694_v53 }
 0x29c   : > { %v3273_v47 = vsub.f32 1.0, %v3272_v3  ;;  %7931 = vrcp.f32 %v10697_v60  ;;  %vm3277_vm7 = vweird.f32 %v7918_v5  ;;  %vm10718_vm8 = vcmp.eq.f32.partialorder %v5185_v51, 8.507059e+37 }
 0x29d   : > { %v7922_v21 = vpop.eup %7921  ;;  %v3295_v17 = vand.u32 2147483647, %v10694_v53  ;;  %v5188_v8 = vor.u32 1.1754944e-38, %v5187_v7  ;;  %vm5196_vm9 = vweird.f32 %v10692_v43  ;;  %v10724_v28 = vadd.f32 1.0, %v7920_v61  ;;  %vm3278_vm12 = vmor %vm3276_vm4, %vm3277_vm7 }
 0x29e   : > { %v7924_v59 = vpop.eup %7923  ;;  %v3274_v9 = vmul.f32 %v7918_v5, %v3273_v47  ;;  %v5177_v16 = vmul.f32 %v7922_v21, %v10684_v32  ;;  %v10726_v10 = vmul.f32 -1.442695, %v1089_v50  ;;  %vm5182_vm10 = vweird.f32 %v7922_v21 }
 0x29f   : > { %v7926_v23 = vpop.eup %7925  ;;  %v5203_v25 = vor.u32 1.1754944e-38, %v5202_v39  ;;  %vm3291_vm11 = vweird.f32 %v10694_v53  ;;  %vm10733_vm13 = vcmp.eq.f32.partialorder %v5200_v11, 8.507059e+37  ;;  %v3298_v20 = vor.u32 1.1754944e-38, %v3297_v12  ;;  %vm5183_vm1 = vmor %vm5181_vm6, %vm5182_vm10  ;;  %v7376_v11 = vld [vmem:[%s8884_s7 + $0xb0] sm:$0xff] }
 0x2a0   : > { %v7928_v56 = vpop.eup %7927  ;;  %v3275_v13 = vadd.f32 %v7918_v5, %v3274_v9  ;;  %v5178_v63 = vsub.f32 1.0, %v5177_v16  ;;  %v3310_v4 = vand.u32 2147483647, %v10697_v60  ;;  %v10738_v33 = vadd.f32 1.0, %v7924_v59  ;;  %v7408_v12 = vld [vmem:[%s8884_s7 + $0x1b0] sm:$0xff]  ;;  %972 = vmatmul.bf16.gmra.mxu0 %v7376_v11  ;;  %1301 = vmatmul.bf16.gmra.mxu1 %v7376_v11 }
 0x2a1   : > { %v7930_v34 = vpop.eup %7929  ;;  %v5192_v18 = vmul.f32 %v7928_v56, %v10692_v43  ;;  %vm10741_vm14 = vcmp.eq.f32.partialorder %v3295_v17, 8.507059e+37  ;;  %vm3306_vm15 = vweird.f32 %v10697_v60  ;;  %v3312_v41 = vand.u32 2147483648, %v10697_v60  ;;  %v930_v43 = vpop.f32.mrf.mxu0  ;;  %1132 = vmatmul.bf16.gmra.mxu2 %v7408_v12  ;;  %1461 = vmatmul.bf16.gmra.mxu3 %v7408_v12 }
 0x2a2   : > { %v3279_v37 = vsel %vm3278_vm12, %v7918_v5, %v3275_v13  ;;  %v5179_v42 = vmul.f32 %v7922_v21, %v5178_v63  ;;  %v3287_v24 = vmul.f32 %v7930_v34, %v10694_v53  ;;  %v7932_v29 = vpop.eup %7931  ;;  %7933 = vrcp.f32 %v10724_v28  ;;  %v1090_v17 = vpop.f32.mrf.mxu2 }
 0x2a3   : > { %v3284_v26 = vsel %vm10703_vm5, %v3283_v15, %v3279_v37  ;;  %v5193_v22 = vsub.f32 1.0, %v5192_v18  ;;  %v10750_v31 = vadd.f32 1.0, %v7926_v23  ;;  %vm5197_vm0 = vweird.f32 %v7928_v56  ;;  %v1419_v19 = vpop.f32.mrf.mxu3 }
 0x2a4   : > { %6425 = vst [vmem:[%s8994_s26 + $0x188] sm:$0xff] %v3284_v26  ;;  %v5180_v49 = vadd.f32 %v7922_v21, %v5179_v42  ;;  %v3288_v45 = vsub.f32 1.0, %v3287_v24  ;;  %v3302_v38 = vmul.f32 %v7932_v29, %v10697_v60  ;;  %vm3292_vm2 = vweird.f32 %v7930_v34  ;;  %vm5198_vm4 = vmor %vm5196_vm9, %vm5197_vm0 }
 0x2a5   : > { %v5194_v55 = vmul.f32 %v7928_v56, %v5193_v22  ;;  %vm10757_vm3 = vcmp.eq.f32.partialorder %v3310_v4, 8.507059e+37  ;;  %7935 = vrcp.f32 %v10738_v33  ;;  %v5215_v6 = vand.u32 2147483647, %v10724_v28  ;;  %vm3293_vm7 = vmor %vm3291_vm11, %vm3292_vm2 }
 0x2a6   : > { %v5184_v46 = vsel %vm5183_vm1, %v7922_v21, %v5180_v49  ;;  %v3289_v57 = vmul.f32 %v7930_v34, %v3288_v45  ;;  %v3303_v44 = vsub.f32 1.0, %v3302_v38  ;;  %v3313_v32 = vor.u32 1.1754944e-38, %v3312_v41 }
 0x2a7   : > { %v5189_v58 = vsel %vm10718_vm8, %v5188_v8, %v5184_v46  ;;  %v5195_v54 = vadd.f32 %v7928_v56, %v5194_v55  ;;  %v5217_v52 = vand.u32 2147483648, %v10724_v28  ;;  %vm3307_vm5 = vweird.f32 %v7932_v29 }
 0x2a8   : > { %6552 = vst [vmem:[%s8994_s26 + $0x580] sm:$0xff] %v5189_v58  ;;  %v3290_v0 = vadd.f32 %v7930_v34, %v3289_v57  ;;  %v3304_v30 = vmul.f32 %v7932_v29, %v3303_v44  ;;  %vm5211_vm6 = vweird.f32 %v10724_v28  ;;  %v10771_v35 = vpop.eup %7933  ;;  %v5230_v3 = vand.u32 2147483647, %v10738_v33  ;;  %vm3308_vm9 = vmor %vm3306_vm15, %vm3307_vm5 }
 0x2a9   : > { %v5199_v5 = vsel %vm5198_vm4, %v7928_v56, %v5195_v54  ;;  %v5232_v51 = vand.u32 2147483648, %v10738_v33  ;;  %7937 = vrcp.f32 %v10750_v31  ;;  %v5207_v61 = vmul.f32 %v10771_v35, %v10724_v28  ;;  %v933_v38 = vpop.f32.mrf.mxu0 }
 0x2aa   : > { %v5204_v40 = vsel %vm10733_vm13, %v5203_v25, %v5199_v5  ;;  %v3294_v7 = vsel %vm3293_vm7, %v7930_v34, %v3290_v0  ;;  %v3305_v50 = vadd.f32 %v7932_v29, %v3304_v30  ;;  %vm10783_vm8 = vcmp.eq.f32.partialorder %v5215_v6, 8.507059e+37  ;;  %v1093_v53 = vpop.f32.mrf.mxu2 }
 0x2ab   : > { %v10787_v47 = vpop.eup %7935  ;;  %6553 = vst [vmem:[%s8994_s26 + $0x588] sm:$0xff] %v5204_v40  ;;  %v3299_v15 = vsel %vm10741_vm14, %v3298_v20, %v3294_v7  ;;  %v5218_v39 = vor.u32 1.1754944e-38, %v5217_v52  ;;  %vm5226_vm10 = vweird.f32 %v10738_v33  ;;  %v3325_v21 = vand.u32 2147483647, %v10750_v31  ;;  %v1422_v12 = vpop.f32.mrf.mxu3 }
 0x2ac   : > { %6426 = vst [vmem:[%s8994_s26 + $0x190] sm:$0xff] %v3299_v15  ;;  %v3309_v59 = vsel %vm3308_vm9, %v7932_v29, %v3305_v50  ;;  %v5208_v9 = vsub.f32 1.0, %v5207_v61  ;;  %vm5212_vm11 = vweird.f32 %v10771_v35  ;;  %v5222_v16 = vmul.f32 %v10787_v47, %v10738_v33  ;;  %v1262_v50 = vpop.f32.mrf.mxu1 }
 0x2ad   : > { %v3314_v60 = vsel %vm10757_vm3, %v3313_v32, %v3309_v59  ;;  %vm10805_vm12 = vcmp.eq.f32.partialorder %v5230_v3, 8.507059e+37  ;;  %v5233_v8 = vor.u32 1.1754944e-38, %v5232_v51  ;;  %7939 = vpow2.f32 %v10711_v14  ;;  %vm5213_vm14 = vmor %vm5211_vm6, %vm5212_vm11 }
 0x2ae   : > { %6427 = vst [vmem:[%s8994_s26 + $0x198] sm:$0xff] %v3314_v60  ;;  %v5209_v56 = vmul.f32 %v10771_v35, %v5208_v9  ;;  %v5223_v13 = vsub.f32 1.0, %v5222_v16  ;;  %7941 = vpow2.f32 %v10726_v10  ;;  %v1418_v63 = vadd.f32 %v1417_v48, %v8912_v2 }
 0x2af   : > { %v7938_v25 = vpop.eup %7937  ;;  %vm5227_vm13 = vweird.f32 %v10787_v47  ;;  %v931_v34 = vadd.f32 %v930_v43, %v8910_v1  ;;  %v1260_v18 = vadd.f32 %v1259_v62, %v8912_v2  ;;  %v1091_v14 = vadd.f32 %v1090_v17, %v8910_v1 }
 0x2b0   : > { %v5210_v20 = vadd.f32 %v10771_v35, %v5209_v56  ;;  %v5224_v4 = vmul.f32 %v10787_v47, %v5223_v13  ;;  %v3317_v10 = vmul.f32 %v7938_v25, %v10750_v31  ;;  %v3327_v37 = vand.u32 2147483648, %v10750_v31  ;;  %vm5228_vm0 = vmor %vm5226_vm10, %vm5227_vm13 }
 0x2b1   : > { %vm3321_vm15 = vweird.f32 %v10750_v31  ;;  %v7267_v42 = vmul.f32 -1.442695, %v1418_v63  ;;  %v7140_v24 = vmul.f32 -1.442695, %v931_v34  ;;  %v7141_v27 = vmul.f32 -1.442695, %v1260_v18  ;;  %v935_v59 = vpop.f32.mrf.mxu0 }
 0x2b2   : > { %v5214_v41 = vsel %vm5213_vm14, %v10771_v35, %v5210_v20  ;;  %v5225_v29 = vadd.f32 %v10787_v47, %v5224_v4  ;;  %v3318_v26 = vsub.f32 1.0, %v3317_v10  ;;  %v1420_v22 = vadd.f32 %v1419_v19, %v8912_v2 }
 0x2b3   : > { %v7940_v49 = vpop.eup %7939  ;;  %v5219_v45 = vsel %vm10783_vm8, %v5218_v39, %v5214_v41  ;;  %vm3322_vm1 = vweird.f32 %v7938_v25  ;;  %7943 = vpow2.f32 %v7267_v42  ;;  %v7268_v28 = vmul.f32 -1.442695, %v1091_v14 }
 0x2b4   : > { %v7942_v55 = vpop.eup %7941  ;;  %6554 = vst [vmem:[%s8994_s26 + $0x590] sm:$0xff] %v5219_v45  ;;  %v5229_v36 = vsel %vm5228_vm0, %v10787_v47, %v5225_v29  ;;  %v3319_v48 = vmul.f32 %v7938_v25, %v3318_v26  ;;  %v10838_v46 = vadd.f32 1.0, %v7940_v49  ;;  %7945 = vpow2.f32 %v7140_v24  ;;  %vm3323_vm2 = vmor %vm3321_vm15, %vm3322_vm1 }
 0x2b5   : > { %v5234_v57 = vsel %vm10805_vm12, %v5233_v8, %v5229_v36  ;;  %v10842_v44 = vadd.f32 1.0, %v7942_v55  ;;  %7947 = vpow2.f32 %v7141_v27  ;;  %v7269_v6 = vmul.f32 -1.442695, %v1420_v22 }
 0x2b6   : > { %6555 = vst [vmem:[%s8994_s26 + $0x598] sm:$0xff] %v5234_v57  ;;  %v3320_v33 = vadd.f32 %v7938_v25, %v3319_v48  ;;  %7949 = vrcp.f32 %v10838_v46  ;;  %v934_v58 = vadd.f32 %v933_v38, %v8910_v1  ;;  %v3328_v54 = vor.u32 1.1754944e-38, %v3327_v37  ;;  %v7409_v57 = vld [vmem:[%s8884_s7 + $0x1b8] sm:$0xff] }
 0x2b7   : > { %7951 = vrcp.f32 %v10842_v44  ;;  %vm3326_vm3 = vcmp.eq.f32.partialorder %v3325_v21, 8.507059e+37  ;;  %v3340_v30 = vand.u32 2147483647, %v10838_v46  ;;  %v3342_v35 = vand.u32 2147483648, %v10838_v46  ;;  %1137 = vmatmul.bf16.gmra.mxu2 %v7409_v57  ;;  %1466 = vmatmul.bf16.gmra.mxu3 %v7409_v57 }
 0x2b8   : > { %v3324_v32 = vsel %vm3323_vm2, %v7938_v25, %v3320_v33  ;;  %7953 = vpow2.f32 %v7268_v28  ;;  %v5247_v5 = vand.u32 2147483648, %v10842_v44  ;;  %v5245_v51 = vand.u32 2147483647, %v10842_v44 }
 0x2b9   : > { %v7944_v52 = vpop.eup %7943  ;;  %v3329_v0 = vsel %vm3326_vm3, %v3328_v54, %v3324_v32  ;;  %7955 = vpow2.f32 %v7269_v6  ;;  %v7142_v40 = vmul.f32 -1.442695, %v934_v58  ;;  %vm3336_vm4 = vweird.f32 %v10838_v46 }
 0x2ba   : > { %v7946_v3 = vpop.eup %7945  ;;  %6428 = vst [vmem:[%s8994_s26 + $0x1a0] sm:$0xff] %v3329_v0  ;;  %v10858_v43 = vadd.f32 1.0, %v7944_v52  ;;  %vm5241_vm5 = vweird.f32 %v10842_v44  ;;  %vm10866_vm6 = vcmp.eq.f32.partialorder %v3340_v30, 8.507059e+37  ;;  %v3343_v21 = vor.u32 1.1754944e-38, %v3342_v35 }
 0x2bb   : > { %v7948_v7 = vpop.eup %7947  ;;  %v10860_v31 = vadd.f32 1.0, %v7946_v3  ;;  %v5248_v11 = vor.u32 1.1754944e-38, %v5247_v5  ;;  %vm10872_vm7 = vcmp.eq.f32.partialorder %v5245_v51, 8.507059e+37  ;;  %v1263_v60 = vadd.f32 %v1262_v50, %v8912_v2 }
 0x2bc   : > { %v7950_v61 = vpop.eup %7949  ;;  %7957 = vrcp.f32 %v10858_v43  ;;  %v5262_v17 = vand.u32 2147483648, %v10858_v43  ;;  %v5260_v8 = vand.u32 2147483647, %v10858_v43  ;;  %v10879_v56 = vadd.f32 1.0, %v7948_v7 }
 0x2bd   : > { %v7952_v47 = vpop.eup %7951  ;;  %v3332_v15 = vmul.f32 %v7950_v61, %v10838_v46  ;;  %7959 = vrcp.f32 %v10860_v31  ;;  %v10882_v13 = vadd.f32 %v1093_v53, %v8910_v1  ;;  %v10887_v18 = vadd.f32 %v1422_v12, %v8912_v2  ;;  %v7377_v46 = vld [vmem:[%s8884_s7 + $0xb8] sm:$0xff] }
 0x2be   : > { %v7954_v9 = vpop.eup %7953  ;;  %v5237_v16 = vmul.f32 %v7952_v47, %v10842_v44  ;;  %7961 = vpow2.f32 %v7142_v40  ;;  %v10890_v14 = vadd.f32 %v935_v59, %v8910_v1  ;;  %vm3337_vm8 = vweird.f32 %v7950_v61  ;;  %977 = vmatmul.bf16.gmra.mxu0 %v7377_v46  ;;  %1306 = vmatmul.bf16.gmra.mxu1 %v7377_v46 }
 0x2bf   : > { %v3333_v23 = vsub.f32 1.0, %v3332_v15  ;;  %v7956_v63 = vpop.eup %7955  ;;  %v10884_v34 = vadd.f32 1.0, %v7954_v9  ;;  %vm5256_vm9 = vweird.f32 %v10858_v43  ;;  %v3355_v20 = vand.u32 2147483647, %v10860_v31  ;;  %vm3338_vm13 = vmor %vm3336_vm4, %vm3337_vm8 }
 0x2c0   : > { %v5238_v25 = vsub.f32 1.0, %v5237_v16  ;;  %7963 = vrcp.f32 %v10879_v56  ;;  %vm5242_vm10 = vweird.f32 %v7952_v47  ;;  %v5263_v37 = vor.u32 1.1754944e-38, %v5262_v17 }
 0x2c1   : > { %v3334_v19 = vmul.f32 %v7950_v61, %v3333_v23  ;;  %vm3351_vm11 = vweird.f32 %v10860_v31  ;;  %vm10897_vm12 = vcmp.eq.f32.partialorder %v5260_v8, 8.507059e+37  ;;  %7965 = vrcp.f32 %v10884_v34  ;;  %vm5243_vm14 = vmor %vm5241_vm5, %vm5242_vm10 }
 0x2c2   : > { %v7958_v4 = vpop.eup %7957  ;;  %v5239_v10 = vmul.f32 %v7952_v47, %v5238_v25  ;;  %v10902_v29 = vadd.f32 1.0, %v7956_v63  ;;  %v3357_v45 = vand.u32 2147483648, %v10860_v31  ;;  %v7143_v28 = vmul.f32 -1.442695, %v1263_v60  ;;  %v1264_v60 = vpop.f32.mrf.mxu1 }
 0x2c3   : > { %v7960_v42 = vpop.eup %7959  ;;  %v3335_v24 = vadd.f32 %v7950_v61, %v3334_v19  ;;  %v5252_v27 = vmul.f32 %v7958_v4, %v10858_v43  ;;  %vm10912_vm15 = vcmp.eq.f32.partialorder %v3355_v20, 8.507059e+37  ;;  %v3370_v48 = vand.u32 2147483647, %v10879_v56 }
 0x2c4   : > { %v7962_v26 = vpop.eup %7961  ;;  %v5240_v22 = vadd.f32 %v7952_v47, %v5239_v10  ;;  %v3347_v49 = vmul.f32 %v7960_v42, %v10860_v31  ;;  %v3372_v54 = vand.u32 2147483648, %v10879_v56  ;;  %vm5257_vm0 = vweird.f32 %v7958_v4  ;;  %v1095_v10 = vpop.f32.mrf.mxu2 }
 0x2c5   : > { %v3339_v38 = vsel %vm3338_vm13, %v7950_v61, %v3335_v24  ;;  %v5253_v55 = vsub.f32 1.0, %v5252_v27  ;;  %7967 = vrcp.f32 %v10902_v29  ;;  %vm3352_vm1 = vweird.f32 %v7960_v42  ;;  %vm5258_vm4 = vmor %vm5256_vm9, %vm5257_vm0  ;;  %v1424_v27 = vpop.f32.mrf.mxu3 }
 0x2c6   : > { %v3344_v33 = vsel %vm10866_vm6, %v3343_v21, %v3339_v38  ;;  %v5244_v6 = vsel %vm5243_vm14, %v7952_v47, %v5240_v22  ;;  %v3348_v58 = vsub.f32 1.0, %v3347_v49  ;;  %v7964_v32 = vpop.eup %7963  ;;  %v3358_v30 = vor.u32 1.1754944e-38, %v3357_v45  ;;  %vm3353_vm5 = vmor %vm3351_vm11, %vm3352_vm1 }
 0x2c7   : > { %6429 = vst [vmem:[%s8994_s26 + $0x1a8] sm:$0xff] %v3344_v33  ;;  %v5249_v44 = vsel %vm10872_vm7, %v5248_v11, %v5244_v6  ;;  %v5254_v52 = vmul.f32 %v7958_v4, %v5253_v55  ;;  %v3362_v35 = vmul.f32 %v7964_v32, %v10879_v56  ;;  %v7966_v5 = vpop.eup %7965  ;;  %vm3366_vm2 = vweird.f32 %v10879_v56 }
 0x2c8   : > { %6556 = vst [vmem:[%s8994_s26 + $0x5a0] sm:$0xff] %v5249_v44  ;;  %v3349_v0 = vmul.f32 %v7960_v42, %v3348_v58  ;;  %vm10929_vm3 = vcmp.eq.f32.partialorder %v3370_v48, 8.507059e+37  ;;  %v5275_v40 = vand.u32 2147483647, %v10884_v34  ;;  %v3373_v61 = vor.u32 1.1754944e-38, %v3372_v54 }
 0x2c9   : > { %v5255_v3 = vadd.f32 %v7958_v4, %v5254_v52  ;;  %v3363_v50 = vsub.f32 1.0, %v3362_v35  ;;  %v5267_v53 = vmul.f32 %v7966_v5, %v10884_v34  ;;  %vm3367_vm6 = vweird.f32 %v7964_v32 }
 0x2ca   : > { %v3350_v7 = vadd.f32 %v7960_v42, %v3349_v0  ;;  %vm5271_vm7 = vweird.f32 %v10884_v34  ;;  %v10942_v15 = vadd.f32 1.0, %v7962_v26  ;;  %vm10949_vm8 = vcmp.eq.f32.partialorder %v5275_v40, 8.507059e+37  ;;  %vm3368_vm10 = vmor %vm3366_vm2, %vm3367_vm6  ;;  %v1267_v52 = vpop.f32.mrf.mxu1 }
 0x2cb   : > { %v5259_v47 = vsel %vm5258_vm4, %v7958_v4, %v5255_v3  ;;  %v3364_v21 = vmul.f32 %v7964_v32, %v3363_v50  ;;  %v5268_v11 = vsub.f32 1.0, %v5267_v53  ;;  %v7968_v12 = vpop.eup %7967  ;;  %v5277_v31 = vand.u32 2147483648, %v10884_v34 }
 0x2cc   : > { %v5264_v43 = vsel %vm10897_vm12, %v5263_v37, %v5259_v47  ;;  %v3354_v39 = vsel %vm3353_vm5, %v7960_v42, %v3350_v7  ;;  %7969 = vrcp.f32 %v10942_v15  ;;  %vm5272_vm9 = vweird.f32 %v7966_v5  ;;  %v1098_v51 = vpop.f32.mrf.mxu2 }
 0x2cd   : > { %6557 = vst [vmem:[%s8994_s26 + $0x5a8] sm:$0xff] %v5264_v43  ;;  %v3359_v59 = vsel %vm10912_vm15, %v3358_v30, %v3354_v39  ;;  %v3365_v16 = vadd.f32 %v7964_v32, %v3364_v21  ;;  %v5269_v62 = vmul.f32 %v7966_v5, %v5268_v11  ;;  %v5282_v17 = vmul.f32 %v7968_v12, %v10902_v29  ;;  %vm5273_vm11 = vmor %vm5271_vm7, %vm5272_vm9 }
 0x2ce   : > { %6430 = vst [vmem:[%s8994_s26 + $0x1b0] sm:$0xff] %v3359_v59  ;;  %v5290_v23 = vand.u32 2147483647, %v10902_v29  ;;  %v5292_v8 = vand.u32 2147483648, %v10902_v29  ;;  %7971 = vpow2.f32 %v7143_v28  ;;  %v7270_v63 = vmul.f32 -1.442695, %v10882_v13  ;;  %v938_v28 = vpop.f32.mrf.mxu0 }
 0x2cf   : > { %v3369_v25 = vsel %vm3368_vm10, %v7964_v32, %v3365_v16  ;;  %v5270_v19 = vadd.f32 %v7966_v5, %v5269_v62  ;;  %v5283_v20 = vsub.f32 1.0, %v5282_v17  ;;  %v7271_v4 = vmul.f32 -1.442695, %v10887_v18 }
 0x2d0   : > { %v3374_v37 = vsel %vm10929_vm3, %v3373_v61, %v3369_v25  ;;  %v5278_v56 = vor.u32 1.1754944e-38, %v5277_v31  ;;  %vm5287_vm12 = vweird.f32 %v7968_v12  ;;  %7973 = vpow2.f32 %v7270_v63 }
 0x2d1   : > { %6431 = vst [vmem:[%s8994_s26 + $0x1b8] sm:$0xff] %v3374_v37  ;;  %v5274_v42 = vsel %vm5273_vm11, %v7966_v5, %v5270_v19  ;;  %v5284_v24 = vmul.f32 %v7968_v12, %v5283_v20  ;;  %7975 = vpow2.f32 %v7271_v4  ;;  %v7144_v13 = vmul.f32 -1.442695, %v10890_v14 }
 0x2d2   : > { %v7970_v41 = vpop.eup %7969  ;;  %v5279_v18 = vsel %vm10949_vm8, %v5278_v56, %v5274_v42  ;;  %vm5286_vm13 = vweird.f32 %v10902_v29  ;;  %v1265_v34 = vadd.f32 %v1264_v60, %v8912_v2  ;;  %v1096_v26 = vadd.f32 %v1095_v10, %v8910_v1 }
 0x2d3   : > { %6558 = vst [vmem:[%s8994_s26 + $0x5b0] sm:$0xff] %v5279_v18  ;;  %v5285_v22 = vadd.f32 %v7968_v12, %v5284_v24  ;;  %vm5291_vm14 = vcmp.eq.f32.partialorder %v5290_v23, 8.507059e+37  ;;  %v5293_v49 = vor.u32 1.1754944e-38, %v5292_v8  ;;  %v3377_v45 = vmul.f32 %v7970_v41, %v10942_v15  ;;  %vm5288_vm15 = vmor %vm5286_vm13, %vm5287_vm12 }
 0x2d4   : > { %v7972_v38 = vpop.eup %7971  ;;  %v3387_v14 = vand.u32 2147483648, %v10942_v15  ;;  %7977 = vpow2.f32 %v7144_v13  ;;  %v7145_v55 = vmul.f32 -1.442695, %v1265_v34  ;;  %v1425_v29 = vadd.f32 %v1424_v27, %v8912_v2  ;;  %v1100_v13 = vpop.f32.mrf.mxu2 }
 0x2d5   : > { %v5289_v36 = vsel %vm5288_vm15, %v7968_v12, %v5285_v22  ;;  %v3378_v48 = vsub.f32 1.0, %v3377_v45  ;;  %v10980_v46 = vadd.f32 1.0, %v7972_v38  ;;  %v7272_v57 = vmul.f32 -1.442695, %v1096_v26 }
 0x2d6   : > { %v7974_v33 = vpop.eup %7973  ;;  %v5294_v6 = vsel %vm5291_vm14, %v5293_v49, %v5289_v36  ;;  %vm3381_vm0 = vweird.f32 %v10942_v15  ;;  %7979 = vpow2.f32 %v7145_v55  ;;  %v939_v58 = vadd.f32 %v938_v28, %v8910_v1 }
 0x2d7   : > { %v7976_v54 = vpop.eup %7975  ;;  %6559 = vst [vmem:[%s8994_s26 + $0x5b8] sm:$0xff] %v5294_v6  ;;  %v3379_v32 = vmul.f32 %v7970_v41, %v3378_v48  ;;  %vm3382_vm1 = vweird.f32 %v7970_v41  ;;  %v3385_v44 = vand.u32 2147483647, %v10942_v15  ;;  %7981 = vrcp.f32 %v10980_v46 }
 0x2d8   : > { %v10987_v0 = vadd.f32 1.0, %v7974_v33  ;;  %v10989_v30 = vadd.f32 1.0, %v7976_v54  ;;  %v7273_v35 = vmul.f32 -1.442695, %v1425_v29  ;;  %v3388_v3 = vor.u32 1.1754944e-38, %v3387_v14  ;;  %vm3383_vm2 = vmor %vm3381_vm0, %vm3382_vm1 }
 0x2d9   : > { %v3380_v5 = vadd.f32 %v7970_v41, %v3379_v32  ;;  %7983 = vpow2.f32 %v7272_v57  ;;  %v3400_v7 = vand.u32 2147483647, %v10980_v46  ;;  %v7146_v50 = vmul.f32 -1.442695, %v939_v58  ;;  %v7378_v32 = vld [vmem:[%s8884_s7 + $0xc0] sm:$0xff] }
 0x2da   : > { %v7978_v40 = vpop.eup %7977  ;;  %7985 = vrcp.f32 %v10987_v0  ;;  %v1268_v61 = vadd.f32 %v1267_v52, %v8912_v2  ;;  %vm3386_vm3 = vcmp.eq.f32.partialorder %v3385_v44, 8.507059e+37  ;;  %v3402_v47 = vand.u32 2147483648, %v10980_v46  ;;  %v7410_v44 = vld [vmem:[%s8884_s7 + $0x1c0] sm:$0xff]  ;;  %982 = vmatmul.bf16.gmra.mxu0 %v7378_v32  ;;  %1311 = vmatmul.bf16.gmra.mxu1 %v7378_v32 }
 0x2db   : > { %v3384_v53 = vsel %vm3383_vm2, %v7970_v41, %v3380_v5  ;;  %7987 = vrcp.f32 %v10989_v30  ;;  %vm3396_vm4 = vweird.f32 %v10980_v46  ;;  %v11000_v15 = vadd.f32 %v1098_v51, %v8910_v1  ;;  %1142 = vmatmul.bf16.gmra.mxu2 %v7410_v44  ;;  %1471 = vmatmul.bf16.gmra.mxu3 %v7410_v44 }
 0x2dc   : > { %v7980_v43 = vpop.eup %7979  ;;  %v3389_v39 = vsel %vm3386_vm3, %v3388_v3, %v3384_v53  ;;  %7989 = vpow2.f32 %v7273_v35  ;;  %v5305_v11 = vand.u32 2147483647, %v10987_v0  ;;  %v5307_v12 = vand.u32 2147483648, %v10987_v0 }
 0x2dd   : > { %v7982_v21 = vpop.eup %7981  ;;  %6432 = vst [vmem:[%s8994_s26 + $0x1c0] sm:$0xff] %v3389_v39  ;;  %v11005_v59 = vadd.f32 1.0, %v7978_v40  ;;  %v11007_v9 = vadd.f32 1.0, %v7980_v43  ;;  %vm11010_vm5 = vcmp.eq.f32.partialorder %v3400_v7, 8.507059e+37  ;;  %v5320_v62 = vand.u32 2147483647, %v10989_v30  ;;  %v1427_v7 = vpop.f32.mrf.mxu3 }
 0x2de   : > { %v3392_v31 = vmul.f32 %v7982_v21, %v10980_v46  ;;  %7991 = vpow2.f32 %v7146_v50  ;;  %v7147_v17 = vmul.f32 -1.442695, %v1268_v61  ;;  %v3403_v23 = vor.u32 1.1754944e-38, %v3402_v47 }
 0x2df   : > { %v7984_v60 = vpop.eup %7983  ;;  %vm5301_vm6 = vweird.f32 %v10987_v0  ;;  %v5322_v8 = vand.u32 2147483648, %v10989_v30  ;;  %7993 = vrcp.f32 %v11005_v59  ;;  %vm5316_vm7 = vweird.f32 %v10989_v30 }
 0x2e0   : > { %v7986_v63 = vpop.eup %7985  ;;  %v3393_v25 = vsub.f32 1.0, %v3392_v31  ;;  %v3417_v19 = vand.u32 2147483648, %v11005_v59  ;;  %7995 = vrcp.f32 %v11007_v9  ;;  %vm3397_vm8 = vweird.f32 %v7982_v21 }
 0x2e1   : > { %v11021_v20 = vpop.eup %7987  ;;  %v5297_v4 = vmul.f32 %v7986_v63, %v10987_v0  ;;  %vm11024_vm9 = vcmp.eq.f32.partialorder %v5305_v11, 8.507059e+37  ;;  %v5308_v37 = vor.u32 1.1754944e-38, %v5307_v12  ;;  %vm11030_vm10 = vcmp.eq.f32.partialorder %v5320_v62, 8.507059e+37  ;;  %vm3398_vm13 = vmor %vm3396_vm4, %vm3397_vm8  ;;  %v940_v62 = vpop.f32.mrf.mxu0 }
 0x2e2   : > { %v7990_v56 = vpop.eup %7989  ;;  %v3394_v42 = vmul.f32 %v7982_v21, %v3393_v25  ;;  %v5312_v24 = vmul.f32 %v11021_v20, %v10989_v30  ;;  %v3415_v27 = vand.u32 2147483647, %v11005_v59  ;;  %v5323_v18 = vor.u32 1.1754944e-38, %v5322_v8 }
 0x2e3   : > { %v5298_v41 = vsub.f32 1.0, %v5297_v4  ;;  %v3430_v34 = vand.u32 2147483647, %v11007_v9  ;;  %v11036_v26 = vadd.f32 1.0, %v7984_v60  ;;  %vm5302_vm11 = vweird.f32 %v7986_v63 }
 0x2e4   : > { %v7992_v22 = vpop.eup %7991  ;;  %v3395_v49 = vadd.f32 %v7982_v21, %v3394_v42  ;;  %v5313_v45 = vsub.f32 1.0, %v5312_v24  ;;  %vm3411_vm12 = vweird.f32 %v11005_v59  ;;  %v11039_v28 = vor.u32 1.1754944e-38, %v3417_v19  ;;  %vm5303_vm1 = vmor %vm5301_vm6, %vm5302_vm11  ;;  %v1269_v19 = vpop.f32.mrf.mxu1 }
 0x2e5   : > { %v11041_v38 = vpop.eup %7993  ;;  %v5299_v14 = vmul.f32 %v7986_v63, %v5298_v41  ;;  %vm5317_vm14 = vweird.f32 %v11021_v20  ;;  %vm3426_vm15 = vweird.f32 %v11007_v9  ;;  %7997 = vrcp.f32 %v11036_v26 }
 0x2e6   : > { %v11049_v55 = vadd.f32 1.0, %v7990_v56  ;;  %v11051_v29 = vpop.eup %7995  ;;  %v3399_v36 = vsel %vm3398_vm13, %v7982_v21, %v3395_v49  ;;  %v5314_v48 = vmul.f32 %v11021_v20, %v5313_v45  ;;  %v3407_v46 = vmul.f32 %v11041_v38, %v11005_v59  ;;  %vm11079_vm3 = vmor %vm5316_vm7, %vm5317_vm14 }
 0x2e7   : > { %vm11056_vm0 = vcmp.eq.f32.partialorder %v3415_v27, 8.507059e+37  ;;  %7999 = vpow2.f32 %v7147_v17  ;;  %v3404_v33 = vsel %vm11010_vm5, %v3403_v23, %v3399_v36  ;;  %v5300_v6 = vadd.f32 %v7986_v63, %v5299_v14 }
 0x2e8   : > { %v3422_v58 = vmul.f32 %v11051_v29, %v11007_v9  ;;  %v3432_v54 = vand.u32 2147483648, %v11007_v9  ;;  %6433 = vst [vmem:[%s8994_s26 + $0x1c8] sm:$0xff] %v3404_v33  ;;  %v5315_v52 = vadd.f32 %v11021_v20, %v5314_v48  ;;  %v3408_v35 = vsub.f32 1.0, %v3407_v46 }
 0x2e9   : > { %vm3412_vm2 = vweird.f32 %v11041_v38  ;;  %v11073_v5 = vadd.f32 1.0, %v7992_v22  ;;  %v5304_v3 = vsel %vm5303_vm1, %v7986_v63, %v5300_v6  ;;  %v5335_v0 = vand.u32 2147483647, %v11036_v26  ;;  %v943_v32 = vpop.f32.mrf.mxu0 }
 0x2ea   : > { %v3423_v40 = vsub.f32 1.0, %v3422_v58  ;;  %8001 = vrcp.f32 %v11049_v55  ;;  %v5309_v50 = vsel %vm11024_vm9, %v5308_v37, %v5304_v3  ;;  %v5319_v30 = vsel %vm11079_vm3, %v11021_v20, %v5315_v52  ;;  %vm3413_vm7 = vmor %vm3411_vm12, %vm3412_vm2 }
 0x2eb   : > { %v3409_v61 = vmul.f32 %v11041_v38, %v3408_v35  ;;  %v5337_v53 = vand.u32 2147483648, %v11036_v26  ;;  %v7998_v47 = vpop.eup %7997  ;;  %6560 = vst [vmem:[%s8994_s26 + $0x5c0] sm:$0xff] %v5309_v50  ;;  %v5324_v43 = vsel %vm11030_vm10, %v5323_v18, %v5319_v30  ;;  %vm3427_vm4 = vweird.f32 %v11051_v29 }
 0x2ec   : > { %v3424_v39 = vmul.f32 %v11051_v29, %v3423_v40  ;;  %vm11097_vm5 = vcmp.eq.f32.partialorder %v3430_v34, 8.507059e+37  ;;  %6561 = vst [vmem:[%s8994_s26 + $0x5c8] sm:$0xff] %v5324_v43  ;;  %v3433_v31 = vor.u32 1.1754944e-38, %v3432_v54  ;;  %v5327_v16 = vmul.f32 %v7998_v47, %v11036_v26  ;;  %vm3428_vm9 = vmor %vm3426_vm15, %vm3427_vm4  ;;  %v1272_v50 = vpop.f32.mrf.mxu1 }
 0x2ed   : > { %v8000_v11 = vpop.eup %7999  ;;  %v3410_v12 = vadd.f32 %v11041_v38, %v3409_v61  ;;  %vm5331_vm6 = vweird.f32 %v11036_v26  ;;  %vm11110_vm8 = vcmp.eq.f32.partialorder %v5335_v0, 8.507059e+37  ;;  %v5350_v23 = vand.u32 2147483647, %v11049_v55 }
 0x2ee   : > { %v3425_v17 = vadd.f32 %v11051_v29, %v3424_v39  ;;  %8003 = vrcp.f32 %v11073_v5  ;;  %v5328_v59 = vsub.f32 1.0, %v5327_v16  ;;  %v5338_v63 = vor.u32 1.1754944e-38, %v5337_v53  ;;  %v1103_v39 = vpop.f32.mrf.mxu2 }
 0x2ef   : > { %v3414_v8 = vsel %vm3413_vm7, %v11041_v38, %v3410_v12  ;;  %vm5346_vm10 = vweird.f32 %v11049_v55  ;;  %v5352_v25 = vand.u32 2147483648, %v11049_v55  ;;  %vm5332_vm11 = vweird.f32 %v7998_v47 }
 0x2f0   : > { %v8002_v20 = vpop.eup %8001  ;;  %v3419_v4 = vsel %vm11056_vm0, %v11039_v28, %v3414_v8  ;;  %v3429_v10 = vsel %vm3428_vm9, %v11051_v29, %v3425_v17  ;;  %v11127_v37 = vadd.f32 1.0, %v8000_v11  ;;  %v5329_v56 = vmul.f32 %v7998_v47, %v5328_v59  ;;  %vm5333_vm15 = vmor %vm5331_vm6, %vm5332_vm11  ;;  %v1429_v29 = vpop.f32.mrf.mxu3 }
 0x2f1   : > { %6434 = vst [vmem:[%s8994_s26 + $0x1d0] sm:$0xff] %v3419_v4  ;;  %v3434_v9 = vsel %vm11097_vm5, %v3433_v31, %v3429_v10  ;;  %v5342_v42 = vmul.f32 %v8002_v20, %v11049_v55  ;;  %v3445_v24 = vand.u32 2147483647, %v11073_v5  ;;  %vm11135_vm12 = vcmp.eq.f32.partialorder %v5350_v23, 8.507059e+37 }
 0x2f2   : > { %6435 = vst [vmem:[%s8994_s26 + $0x1d8] sm:$0xff] %v3434_v9  ;;  %vm3441_vm13 = vweird.f32 %v11073_v5  ;;  %v3447_v41 = vand.u32 2147483648, %v11073_v5  ;;  %8005 = vrcp.f32 %v11127_v37  ;;  %v5330_v18 = vadd.f32 %v7998_v47, %v5329_v56 }
 0x2f3   : > { %v5343_v34 = vsub.f32 1.0, %v5342_v42  ;;  %vm5347_vm14 = vweird.f32 %v8002_v20  ;;  %v5353_v22 = vor.u32 1.1754944e-38, %v5352_v25  ;;  %v7274_v45 = vmul.f32 -1.442695, %v11000_v15 }
 0x2f4   : > { %v8004_v49 = vpop.eup %8003  ;;  %v1428_v28 = vadd.f32 %v1427_v7, %v8912_v2  ;;  %v941_v38 = vadd.f32 %v940_v62, %v8910_v1  ;;  %v1270_v14 = vadd.f32 %v1269_v19, %v8912_v2  ;;  %v5334_v36 = vsel %vm5333_vm15, %v7998_v47, %v5330_v18  ;;  %vm5348_vm2 = vmor %vm5346_vm10, %vm5347_vm14 }
 0x2f5   : > { %v5344_v48 = vmul.f32 %v8002_v20, %v5343_v34  ;;  %v3437_v46 = vmul.f32 %v8004_v49, %v11073_v5  ;;  %vm11150_vm0 = vcmp.eq.f32.partialorder %v3445_v24, 8.507059e+37  ;;  %v5339_v26 = vsel %vm11110_vm8, %v5338_v63, %v5334_v36 }
 0x2f6   : > { %v3448_v33 = vor.u32 1.1754944e-38, %v3447_v41  ;;  %vm3456_vm1 = vweird.f32 %v11127_v37  ;;  %8007 = vpow2.f32 %v7274_v45  ;;  %6562 = vst [vmem:[%s8994_s26 + $0x5d0] sm:$0xff] %v5339_v26  ;;  %v7275_v58 = vmul.f32 -1.442695, %v1428_v28  ;;  %v945_v41 = vpop.f32.mrf.mxu0 }
 0x2f7   : > { %v5345_v15 = vadd.f32 %v8002_v20, %v5344_v48  ;;  %v3438_v6 = vsub.f32 1.0, %v3437_v46  ;;  %v7148_v54 = vmul.f32 -1.442695, %v941_v38  ;;  %v3460_v52 = vand.u32 2147483647, %v11127_v37 }
 0x2f8   : > { %v8006_v44 = vpop.eup %8005  ;;  %v7149_v35 = vmul.f32 -1.442695, %v1270_v14  ;;  %v1101_v3 = vadd.f32 %v1100_v13, %v8910_v1  ;;  %v1430_v51 = vadd.f32 %v1429_v29, %v8912_v2  ;;  %vm3442_vm3 = vweird.f32 %v8004_v49  ;;  %v1432_v8 = vpop.f32.mrf.mxu3 }
 0x2f9   : > { %v5349_v40 = vsel %vm5348_vm2, %v8002_v20, %v5345_v15  ;;  %v3439_v0 = vmul.f32 %v8004_v49, %v3438_v6  ;;  %v3452_v7 = vmul.f32 %v8006_v44, %v11127_v37  ;;  %8009 = vpow2.f32 %v7275_v58  ;;  %vm3443_vm4 = vmor %vm3441_vm13, %vm3442_vm3 }
 0x2fa   : > { %v5354_v30 = vsel %vm11135_vm12, %v5353_v22, %v5349_v40  ;;  %v7276_v61 = vmul.f32 -1.442695, %v1101_v3  ;;  %v944_v55 = vadd.f32 %v943_v32, %v8910_v1  ;;  %v3462_v43 = vand.u32 2147483648, %v11127_v37 }
 0x2fb   : > { %6563 = vst [vmem:[%s8994_s26 + $0x5d8] sm:$0xff] %v5354_v30  ;;  %v3440_v53 = vadd.f32 %v8004_v49, %v3439_v0  ;;  %v3453_v47 = vsub.f32 1.0, %v3452_v7  ;;  %8011 = vpow2.f32 %v7148_v54  ;;  %vm3457_vm5 = vweird.f32 %v8006_v44 }
 0x2fc   : > { %v8008_v21 = vpop.eup %8007  ;;  %8013 = vpow2.f32 %v7149_v35  ;;  %v7277_v11 = vmul.f32 -1.442695, %v1430_v51  ;;  %v1273_v12 = vadd.f32 %v1272_v50, %v8912_v2  ;;  %v7150_v60 = vmul.f32 -1.442695, %v944_v55  ;;  %vm3458_vm6 = vmor %vm3456_vm1, %vm3457_vm5 }
 0x2fd   : > { %v3444_v31 = vsel %vm3443_vm4, %v8004_v49, %v3440_v53  ;;  %v3454_v16 = vmul.f32 %v8006_v44, %v3453_v47  ;;  %v11173_v62 = vadd.f32 1.0, %v8008_v21  ;;  %8015 = vpow2.f32 %v7276_v61  ;;  %v7411_v21 = vld [vmem:[%s8884_s7 + $0x1c8] sm:$0xff] }
 0x2fe   : > { %v3449_v17 = vsel %vm11150_vm0, %v3448_v33, %v3444_v31  ;;  %v1104_v23 = vadd.f32 %v1103_v39, %v8910_v1  ;;  %vm3461_vm7 = vcmp.eq.f32.partialorder %v3460_v52, 8.507059e+37  ;;  %v3463_v63 = vor.u32 1.1754944e-38, %v3462_v43  ;;  %v7379_v39 = vld [vmem:[%s8884_s7 + $0xc8] sm:$0xff]  ;;  %1147 = vmatmul.bf16.gmra.mxu2 %v7411_v21  ;;  %1476 = vmatmul.bf16.gmra.mxu3 %v7411_v21 }
 0x2ff   : > { %6436 = vst [vmem:[%s8994_s26 + $0x1e0] sm:$0xff] %v3449_v17  ;;  %v3455_v5 = vadd.f32 %v8006_v44, %v3454_v16  ;;  %8017 = vrcp.f32 %v11173_v62  ;;  %v8010_v59 = vpop.eup %8009  ;;  %v7151_v4 = vmul.f32 -1.442695, %v1273_v12  ;;  %v1433_v10 = vadd.f32 %v1432_v8, %v8912_v2  ;;  %987 = vmatmul.bf16.gmra.mxu0 %v7379_v39  ;;  %1316 = vmatmul.bf16.gmra.mxu1 %v7379_v39 }
 0x300   : > { %8019 = vpow2.f32 %v7277_v11  ;;  %v11183_v20 = vadd.f32 1.0, %v8010_v59  ;;  %v7278_v24 = vmul.f32 -1.442695, %v1104_v23  ;;  %vm5361_vm8 = vweird.f32 %v11173_v62 }
 0x301   : > { %v8012_v25 = vpop.eup %8011  ;;  %v3459_v19 = vsel %vm3458_vm6, %v8006_v44, %v3455_v5  ;;  %8021 = vpow2.f32 %v7150_v60  ;;  %v5365_v37 = vand.u32 2147483647, %v11173_v62  ;;  %v5367_v27 = vand.u32 2147483648, %v11173_v62 }
 0x302   : > { %v8014_v9 = vpop.eup %8013  ;;  %v3464_v56 = vsel %vm3461_vm7, %v3463_v63, %v3459_v19  ;;  %v11186_v42 = vadd.f32 1.0, %v8012_v25  ;;  %8023 = vrcp.f32 %v11183_v20  ;;  %v5382_v34 = vand.u32 2147483648, %v11183_v20 }
 0x303   : > { %v8016_v13 = vpop.eup %8015  ;;  %6437 = vst [vmem:[%s8994_s26 + $0x1e8] sm:$0xff] %v3464_v56  ;;  %v11195_v22 = vadd.f32 1.0, %v8014_v9  ;;  %v5380_v38 = vand.u32 2147483647, %v11183_v20  ;;  %v11201_v14 = vmul.f32 -1.442695, %v1433_v10  ;;  %v11207_v48 = vadd.f32 %v945_v41, %v8910_v1 }
 0x304   : > { %8025 = vrcp.f32 %v11186_v42  ;;  %v11197_v49 = vadd.f32 1.0, %v8016_v13  ;;  %v3475_v29 = vand.u32 2147483647, %v11186_v42  ;;  %v3477_v36 = vand.u32 2147483648, %v11186_v42 }
 0x305   : > { %v8018_v18 = vpop.eup %8017  ;;  %8027 = vpow2.f32 %v7151_v4  ;;  %vm11209_vm9 = vcmp.eq.f32.partialorder %v5365_v37, 8.507059e+37  ;;  %v5368_v33 = vor.u32 1.1754944e-38, %v5367_v27  ;;  %vm5376_vm10 = vweird.f32 %v11183_v20 }
 0x306   : > { %v8020_v45 = vpop.eup %8019  ;;  %v5357_v28 = vmul.f32 %v8018_v18, %v11173_v62  ;;  %8029 = vpow2.f32 %v7278_v24  ;;  %v5383_v6 = vor.u32 1.1754944e-38, %v5382_v34  ;;  %vm3471_vm11 = vweird.f32 %v11186_v42 }
 0x307   : > { %8031 = vrcp.f32 %v11195_v22  ;;  %v8022_v46 = vpop.eup %8021  ;;  %v11216_v58 = vadd.f32 1.0, %v8020_v45  ;;  %vm5362_vm12 = vweird.f32 %v8018_v18  ;;  %vm11219_vm13 = vcmp.eq.f32.partialorder %v5380_v38, 8.507059e+37 }
 0x308   : > { %v5358_v57 = vsub.f32 1.0, %v5357_v28  ;;  %8033 = vrcp.f32 %v11197_v49  ;;  %v8024_v15 = vpop.eup %8023  ;;  %v3490_v35 = vand.u32 2147483647, %v11195_v22  ;;  %vm11225_vm14 = vcmp.eq.f32.partialorder %v3475_v29, 8.507059e+37  ;;  %vm5363_vm0 = vmor %vm5361_vm8, %vm5362_vm12 }
 0x309   : > { %v5372_v44 = vmul.f32 %v8024_v15, %v11183_v20  ;;  %v3478_v0 = vor.u32 1.1754944e-38, %v3477_v36  ;;  %8035 = vrcp.f32 %v11216_v58  ;;  %vm3486_vm15 = vweird.f32 %v11195_v22 }
 0x30a   : > { %v8026_v54 = vpop.eup %8025  ;;  %v5359_v32 = vmul.f32 %v8018_v18, %v5358_v57  ;;  %v3492_v61 = vand.u32 2147483648, %v11195_v22  ;;  %vm5391_vm1 = vweird.f32 %v11197_v49  ;;  %v5395_v47 = vand.u32 2147483647, %v11197_v49 }
 0x30b   : > { %v8028_v3 = vpop.eup %8027  ;;  %v3467_v51 = vmul.f32 %v8026_v54, %v11186_v42  ;;  %v5373_v30 = vsub.f32 1.0, %v5372_v44  ;;  %v11239_v43 = vadd.f32 1.0, %v8022_v46  ;;  %vm5377_vm2 = vweird.f32 %v8024_v15 }
 0x30c   : > { %v11230_v7 = vpop.eup %8029  ;;  %v5360_v50 = vadd.f32 %v8018_v18, %v5359_v32  ;;  %vm11244_vm3 = vcmp.eq.f32.partialorder %v3490_v35, 8.507059e+37  ;;  %vm3472_vm4 = vweird.f32 %v8026_v54  ;;  %v3493_v59 = vor.u32 1.1754944e-38, %v3492_v61  ;;  %vm5378_vm5 = vmor %vm5376_vm10, %vm5377_vm2 }
 0x30d   : > { %v8032_v55 = vpop.eup %8031  ;;  %v3468_v53 = vsub.f32 1.0, %v3467_v51  ;;  %v5374_v31 = vmul.f32 %v8024_v15, %v5373_v30  ;;  %v5397_v63 = vand.u32 2147483648, %v11197_v49  ;;  %8037 = vrcp.f32 %v11239_v43  ;;  %vm3473_vm6 = vmor %vm3471_vm11, %vm3472_vm4 }
 0x30e   : > { %v8034_v11 = vpop.eup %8033  ;;  %v5364_v12 = vsel %vm5363_vm0, %v8018_v18, %v5360_v50  ;;  %v3482_v16 = vmul.f32 %v8032_v55, %v11195_v22  ;;  %v11257_v10 = vadd.f32 1.0, %v8028_v3  ;;  %vm3487_vm7 = vweird.f32 %v8032_v55  ;;  %v1434_v3 = vpop.f32.mrf.mxu3 }
 0x30f   : > { %v5369_v62 = vsel %vm11209_vm9, %v5368_v33, %v5364_v12  ;;  %v3469_v60 = vmul.f32 %v8026_v54, %v3468_v53  ;;  %v5387_v23 = vmul.f32 %v8034_v11, %v11197_v49  ;;  %v5375_v8 = vadd.f32 %v8024_v15, %v5374_v31  ;;  %v8036_v25 = vpop.eup %8035  ;;  %vm3488_vm9 = vmor %vm3486_vm15, %vm3487_vm7  ;;  %v948_v50 = vpop.f32.mrf.mxu0 }
 0x310   : > { %6564 = vst [vmem:[%s8994_s26 + $0x5e0] sm:$0xff] %v5369_v62  ;;  %v3483_v5 = vsub.f32 1.0, %v3482_v16  ;;  %v5402_v24 = vmul.f32 %v8036_v25, %v11216_v58  ;;  %vm5392_vm8 = vweird.f32 %v8034_v11  ;;  %v5398_v18 = vor.u32 1.1754944e-38, %v5397_v63 }
 0x311   : > { %v3470_v19 = vadd.f32 %v8026_v54, %v3469_v60  ;;  %v5388_v4 = vsub.f32 1.0, %v5387_v23  ;;  %v5379_v9 = vsel %vm5378_vm5, %v8024_v15, %v5375_v8  ;;  %v5410_v45 = vand.u32 2147483647, %v11216_v58  ;;  %vm5393_vm10 = vmor %vm5391_vm1, %vm5392_vm8 }
 0x312   : > { %v3484_v56 = vmul.f32 %v8032_v55, %v3483_v5  ;;  %v5384_v20 = vsel %vm11219_vm13, %v5383_v6, %v5379_v9  ;;  %v5403_v34 = vsub.f32 1.0, %v5402_v24  ;;  %v5412_v28 = vand.u32 2147483648, %v11216_v58  ;;  %v1274_v6 = vpop.f32.mrf.mxu1 }
 0x313   : > { %v3474_v13 = vsel %vm3473_vm6, %v8026_v54, %v3470_v19  ;;  %v5389_v37 = vmul.f32 %v8034_v11, %v5388_v4  ;;  %6565 = vst [vmem:[%s8994_s26 + $0x5e8] sm:$0xff] %v5384_v20  ;;  %8039 = vrcp.f32 %v11257_v10  ;;  %vm5407_vm11 = vweird.f32 %v8036_v25  ;;  %v8038_v46 = vpop.eup %8037  ;;  %v1105_v54 = vpop.f32.mrf.mxu2 }
 0x314   : > { %v3479_v27 = vsel %vm11225_vm14, %v3478_v0, %v3474_v13  ;;  %v3485_v41 = vadd.f32 %v8032_v55, %v3484_v56  ;;  %v5404_v29 = vmul.f32 %v8036_v25, %v5403_v34  ;;  %v3505_v36 = vand.u32 2147483647, %v11239_v43 }
 0x315   : > { %6438 = vst [vmem:[%s8994_s26 + $0x1f0] sm:$0xff] %v3479_v27  ;;  %v5390_v42 = vadd.f32 %v8034_v11, %v5389_v37  ;;  %vm5396_vm12 = vcmp.eq.f32.partialorder %v5395_v47, 8.507059e+37  ;;  %v11280_v26 = vadd.f32 1.0, %v11230_v7  ;;  %vm5406_vm13 = vweird.f32 %v11216_v58 }
 0x316   : > { %v3489_v38 = vsel %vm3488_vm9, %v8032_v55, %v3485_v41  ;;  %v5405_v15 = vadd.f32 %v8036_v25, %v5404_v29  ;;  %v3497_v49 = vmul.f32 %v8038_v46, %v11239_v43  ;;  %vm5408_vm14 = vmor %vm5406_vm13, %vm5407_vm11  ;;  %vm5411_vm15 = vcmp.eq.f32.partialorder %v5410_v45, 8.507059e+37  ;;  %v1437_v41 = vpop.f32.mrf.mxu3 }
 0x317   : > { %v3494_v22 = vsel %vm11244_vm3, %v3493_v59, %v3489_v38  ;;  %v5394_v57 = vsel %vm5393_vm10, %v8034_v11, %v5390_v42  ;;  %v5413_v32 = vor.u32 1.1754944e-38, %v5412_v28  ;;  %vm3501_vm0 = vweird.f32 %v11239_v43 }
 0x318   : > { %6439 = vst [vmem:[%s8994_s26 + $0x1f8] sm:$0xff] %v3494_v22  ;;  %v5399_v33 = vsel %vm5396_vm12, %v5398_v18, %v5394_v57  ;;  %8041 = vrcp.f32 %v11280_v26  ;;  %v5409_v44 = vsel %vm5408_vm14, %v8036_v25, %v5405_v15  ;;  %v3498_v52 = vsub.f32 1.0, %v3497_v49  ;;  %v950_v22 = vpop.f32.mrf.mxu0 }
 0x319   : > { %6566 = vst [vmem:[%s8994_s26 + $0x5f0] sm:$0xff] %v5399_v33  ;;  %vm11289_vm1 = vcmp.eq.f32.partialorder %v3505_v36, 8.507059e+37  ;;  %v3507_v58 = vand.u32 2147483648, %v11239_v43  ;;  %v8040_v51 = vpop.eup %8039  ;;  %v5414_v40 = vsel %vm5411_vm15, %v5413_v32, %v5409_v44  ;;  %8043 = vpow2.f32 %v11201_v14 }
 0x31a   : > { %v7152_v0 = vmul.f32 -1.442695, %v11207_v48  ;;  %v1275_v7 = vadd.f32 %v1274_v6, %v8912_v2  ;;  %6567 = vst [vmem:[%s8994_s26 + $0x5f8] sm:$0xff] %v5414_v40  ;;  %v3499_v30 = vmul.f32 %v8038_v46, %v3498_v52  ;;  %vm3502_vm2 = vweird.f32 %v8038_v46  ;;  %v1277_v4 = vpop.f32.mrf.mxu1 }
 0x31b   : > { %v3512_v61 = vmul.f32 %v8040_v51, %v11257_v10  ;;  %vm3516_vm3 = vweird.f32 %v11257_v10  ;;  %v3520_v55 = vand.u32 2147483647, %v11257_v10  ;;  %v1106_v47 = vadd.f32 %v1105_v54, %v8910_v1  ;;  %vm3503_vm4 = vmor %vm3501_vm0, %vm3502_vm2  ;;  %v1108_v9 = vpop.f32.mrf.mxu2 }
 0x31c   : > { %8045 = vpow2.f32 %v7152_v0  ;;  %v7153_v53 = vmul.f32 -1.442695, %v1275_v7  ;;  %v3500_v39 = vadd.f32 %v8038_v46, %v3499_v30  ;;  %v1435_v48 = vadd.f32 %v1434_v3, %v8912_v2 }
 0x31d   : > { %v3513_v14 = vsub.f32 1.0, %v3512_v61  ;;  %v949_v21 = vadd.f32 %v948_v50, %v8910_v1  ;;  %v3508_v12 = vor.u32 1.1754944e-38, %v3507_v58  ;;  %v3522_v31 = vand.u32 2147483648, %v11257_v10  ;;  %v7412_v50 = vld [vmem:[%s8884_s7 + $0x1d0] sm:$0xff] }
 0x31e   : > { %v8042_v11 = vpop.eup %8041  ;;  %8047 = vpow2.f32 %v7153_v53  ;;  %v7280_v16 = vmul.f32 -1.442695, %v1106_v47  ;;  %v3504_v17 = vsel %vm3503_vm4, %v8038_v46, %v3500_v39  ;;  %vm3517_vm5 = vweird.f32 %v8040_v51  ;;  %1152 = vmatmul.bf16.gmra.mxu2 %v7412_v50  ;;  %1481 = vmatmul.bf16.gmra.mxu3 %v7412_v50 }
 0x31f   : > { %v3514_v62 = vmul.f32 %v8040_v51, %v3513_v14  ;;  %v5417_v60 = vmul.f32 %v8042_v11, %v11280_v26  ;;  %v8044_v23 = vpop.eup %8043  ;;  %v3509_v8 = vsel %vm11289_vm1, %v3508_v12, %v3504_v17  ;;  %vm11310_vm6 = vcmp.eq.f32.partialorder %v3520_v55, 8.507059e+37  ;;  %vm3518_vm7 = vmor %vm3516_vm3, %vm3517_vm5 }
 0x320   : > { %8049 = vpow2.f32 %v7280_v16  ;;  %v7281_v43 = vmul.f32 -1.442695, %v1435_v48  ;;  %6440 = vst [vmem:[%s8994_s26 + $0x200] sm:$0xff] %v3509_v8  ;;  %v11315_v25 = vadd.f32 1.0, %v8044_v23  ;;  %v7154_v19 = vmul.f32 -1.442695, %v949_v21 }
 0x321   : > { %v3515_v59 = vadd.f32 %v8040_v51, %v3514_v62  ;;  %v5418_v63 = vsub.f32 1.0, %v5417_v60  ;;  %v3523_v24 = vor.u32 1.1754944e-38, %v3522_v31  ;;  %v5425_v20 = vand.u32 2147483647, %v11280_v26 }
 0x322   : > { %v8046_v56 = vpop.eup %8045  ;;  %v5427_v13 = vand.u32 2147483648, %v11280_v26  ;;  %8051 = vpow2.f32 %v7281_v43  ;;  %vm5422_vm8 = vweird.f32 %v8042_v11  ;;  %v1278_v10 = vadd.f32 %v1277_v4, %v8912_v2 }
 0x323   : > { %v3519_v37 = vsel %vm3518_vm7, %v8040_v51, %v3515_v59  ;;  %v5419_v27 = vmul.f32 %v8042_v11, %v5418_v63  ;;  %8053 = vrcp.f32 %v11315_v25  ;;  %v11325_v42 = vadd.f32 1.0, %v8046_v56  ;;  %v7380_v51 = vld [vmem:[%s8884_s7 + $0xd0] sm:$0xff] }
 0x324   : > { %v8048_v18 = vpop.eup %8047  ;;  %v3524_v34 = vsel %vm11310_vm6, %v3523_v24, %v3519_v37  ;;  %v1109_v45 = vadd.f32 %v1108_v9, %v8910_v1  ;;  %vm5421_vm9 = vweird.f32 %v11280_v26  ;;  %8055 = vpow2.f32 %v7154_v19  ;;  %992 = vmatmul.bf16.gmra.mxu0 %v7380_v51  ;;  %1321 = vmatmul.bf16.gmra.mxu1 %v7380_v51 }
 0x325   : > { %6441 = vst [vmem:[%s8994_s26 + $0x208] sm:$0xff] %v3524_v34  ;;  %v5420_v28 = vadd.f32 %v8042_v11, %v5419_v27  ;;  %v11331_v38 = vadd.f32 1.0, %v8048_v18  ;;  %vm5423_vm10 = vmor %vm5421_vm9, %vm5422_vm8  ;;  %vm5426_vm11 = vcmp.eq.f32.partialorder %v5425_v20, 8.507059e+37  ;;  %v5428_v36 = vor.u32 1.1754944e-38, %v5427_v13 }
 0x326   : > { %v8050_v29 = vpop.eup %8049  ;;  %8057 = vrcp.f32 %v11325_v42  ;;  %v1438_v46 = vadd.f32 %v1437_v41, %v8912_v2  ;;  %v5440_v33 = vand.u32 2147483647, %v11315_v25  ;;  %v5442_v15 = vand.u32 2147483648, %v11315_v25 }
 0x327   : > { %v5424_v57 = vsel %vm5423_vm10, %v8042_v11, %v5420_v28  ;;  %8059 = vrcp.f32 %v11331_v38  ;;  %v3535_v6 = vand.u32 2147483647, %v11325_v42  ;;  %v7155_v54 = vmul.f32 -1.442695, %v1278_v10 }
 0x328   : > { %v8052_v26 = vpop.eup %8051  ;;  %v5429_v49 = vsel %vm5426_vm11, %v5428_v36, %v5424_v57  ;;  %v7282_v32 = vmul.f32 -1.442695, %v1109_v45  ;;  %v3537_v52 = vand.u32 2147483648, %v11325_v42  ;;  %v11341_v35 = vadd.f32 1.0, %v8050_v29  ;;  %v1279_v57 = vpop.f32.mrf.mxu1 }
 0x329   : > { %v8054_v44 = vpop.eup %8053  ;;  %6568 = vst [vmem:[%s8994_s26 + $0x600] sm:$0xff] %v5429_v49  ;;  %v11343_v58 = vadd.f32 1.0, %v8052_v26  ;;  %v11346_v3 = vadd.f32 %v950_v22, %v8910_v1  ;;  %vm5436_vm12 = vweird.f32 %v11315_v25  ;;  %v3550_v0 = vand.u32 2147483647, %v11331_v38 }
 0x32a   : > { %v5432_v40 = vmul.f32 %v8054_v44, %v11315_v25  ;;  %v3552_v7 = vand.u32 2147483648, %v11331_v38  ;;  %v8056_v30 = vpop.eup %8055  ;;  %vm11354_vm13 = vcmp.eq.f32.partialorder %v5440_v33, 8.507059e+37  ;;  %v5443_v55 = vor.u32 1.1754944e-38, %v5442_v15 }
 0x32b   : > { %8061 = vrcp.f32 %v11341_v35  ;;  %v7283_v53 = vmul.f32 -1.442695, %v1438_v46  ;;  %vm3531_vm14 = vweird.f32 %v11325_v42  ;;  %vm3546_vm15 = vweird.f32 %v11331_v38 }
 0x32c   : > { %v8058_v47 = vpop.eup %8057  ;;  %v5433_v39 = vsub.f32 1.0, %v5432_v40  ;;  %8063 = vrcp.f32 %v11343_v58  ;;  %vm5437_vm0 = vweird.f32 %v8054_v44  ;;  %vm11363_vm1 = vcmp.eq.f32.partialorder %v3535_v6, 8.507059e+37 }
 0x32d   : > { %v8060_v14 = vpop.eup %8059  ;;  %v3527_v48 = vmul.f32 %v8058_v47, %v11325_v42  ;;  %v3538_v11 = vor.u32 1.1754944e-38, %v3537_v52  ;;  %vm11368_vm2 = vcmp.eq.f32.partialorder %v3550_v0, 8.507059e+37  ;;  %v3553_v17 = vor.u32 1.1754944e-38, %v3552_v7  ;;  %vm5438_vm4 = vmor %vm5436_vm12, %vm5437_vm0  ;;  %v1110_v52 = vpop.f32.mrf.mxu2 }
 0x32e   : > { %v5434_v12 = vmul.f32 %v8054_v44, %v5433_v39  ;;  %v3542_v31 = vmul.f32 %v8060_v14, %v11331_v38  ;;  %v5455_v62 = vand.u32 2147483647, %v11341_v35  ;;  %v5457_v23 = vand.u32 2147483648, %v11341_v35  ;;  %v1439_v39 = vpop.f32.mrf.mxu3 }
 0x32f   : > { %v3528_v60 = vsub.f32 1.0, %v3527_v48  ;;  %v11374_v8 = vadd.f32 1.0, %v8056_v30  ;;  %8065 = vpow2.f32 %v7155_v54  ;;  %vm5451_vm3 = vweird.f32 %v11341_v35 }
 0x330   : > { %v5435_v5 = vadd.f32 %v8054_v44, %v5434_v12  ;;  %v3543_v43 = vsub.f32 1.0, %v3542_v31  ;;  %v5470_v59 = vand.u32 2147483647, %v11343_v58  ;;  %8067 = vpow2.f32 %v7282_v32 }
 0x331   : > { %v8062_v63 = vpop.eup %8061  ;;  %v3529_v19 = vmul.f32 %v8058_v47, %v3528_v60  ;;  %vm3532_vm5 = vweird.f32 %v8058_v47  ;;  %vm5466_vm6 = vweird.f32 %v11343_v58  ;;  %8069 = vrcp.f32 %v11374_v8 }
 0x332   : > { %v8064_v4 = vpop.eup %8063  ;;  %v5439_v9 = vsel %vm5438_vm4, %v8054_v44, %v5435_v5  ;;  %v3544_v56 = vmul.f32 %v8060_v14, %v3543_v43  ;;  %vm3547_vm7 = vweird.f32 %v8060_v14  ;;  %v5447_v24 = vmul.f32 %v8062_v63, %v11341_v35  ;;  %vm3533_vm9 = vmor %vm3531_vm14, %vm3532_vm5 }
 0x333   : > { %vm11384_vm8 = vcmp.eq.f32.partialorder %v5455_v62, 8.507059e+37  ;;  %v5444_v25 = vsel %vm11354_vm13, %v5443_v55, %v5439_v9  ;;  %v3530_v13 = vadd.f32 %v8058_v47, %v3529_v19  ;;  %v5458_v37 = vor.u32 1.1754944e-38, %v5457_v23  ;;  %vm3548_vm11 = vmor %vm3546_vm15, %vm3547_vm7 }
 0x334   : > { %v5462_v27 = vmul.f32 %v8064_v4, %v11343_v58  ;;  %6569 = vst [vmem:[%s8994_s26 + $0x608] sm:$0xff] %v5444_v25  ;;  %v3545_v41 = vadd.f32 %v8060_v14, %v3544_v56  ;;  %v5448_v18 = vsub.f32 1.0, %v5447_v24  ;;  %vm11394_vm10 = vcmp.eq.f32.partialorder %v5470_v59, 8.507059e+37 }
 0x335   : > { %v5472_v10 = vand.u32 2147483648, %v11343_v58  ;;  %v8066_v45 = vpop.eup %8065  ;;  %v3534_v28 = vsel %vm3533_vm9, %v8058_v47, %v3530_v13  ;;  %vm5452_vm12 = vweird.f32 %v8062_v63  ;;  %8071 = vpow2.f32 %v7283_v53  ;;  %v1113_v13 = vpop.f32.mrf.mxu2 }
 0x336   : > { %v5463_v29 = vsub.f32 1.0, %v5462_v27  ;;  %v8068_v42 = vpop.eup %8067  ;;  %v3539_v36 = vsel %vm11363_vm1, %v3538_v11, %v3534_v28  ;;  %v3549_v46 = vsel %vm3548_vm11, %v8060_v14, %v3545_v41  ;;  %v5449_v22 = vmul.f32 %v8062_v63, %v5448_v18  ;;  %vm5453_vm14 = vmor %vm5451_vm3, %vm5452_vm12 }
 0x337   : > { %vm5467_vm13 = vweird.f32 %v8064_v4  ;;  %v8070_v33 = vpop.eup %8069  ;;  %6442 = vst [vmem:[%s8994_s26 + $0x210] sm:$0xff] %v3539_v36  ;;  %v3554_v15 = vsel %vm11368_vm2, %v3553_v17, %v3549_v46  ;;  %v3565_v38 = vand.u32 2147483647, %v11374_v8  ;;  %v11408_v49 = vadd.f32 1.0, %v8066_v45 }
 0x338   : > { %v5464_v26 = vmul.f32 %v8064_v4, %v5463_v29  ;;  %6443 = vst [vmem:[%s8994_s26 + $0x218] sm:$0xff] %v3554_v15  ;;  %v5450_v6 = vadd.f32 %v8062_v63, %v5449_v22  ;;  %v3557_v54 = vmul.f32 %v8070_v33, %v11374_v8  ;;  %v11412_v32 = vadd.f32 1.0, %v8068_v42  ;;  %vm5468_vm0 = vmor %vm5466_vm6, %vm5467_vm13 }
 0x339   : > { %v7156_v44 = vmul.f32 -1.442695, %v11346_v3  ;;  %v5473_v40 = vor.u32 1.1754944e-38, %v5472_v10  ;;  %vm3561_vm15 = vweird.f32 %v11374_v8  ;;  %8073 = vrcp.f32 %v11408_v49 }
 0x33a   : > { %v5465_v51 = vadd.f32 %v8064_v4, %v5464_v26  ;;  %v5454_v0 = vsel %vm5453_vm14, %v8062_v63, %v5450_v6  ;;  %v3558_v7 = vsub.f32 1.0, %v3557_v54  ;;  %8075 = vrcp.f32 %v11412_v32  ;;  %v1282_v63 = vpop.f32.mrf.mxu1 }
 0x33b   : > { %v1280_v3 = vadd.f32 %v1279_v57, %v8912_v2  ;;  %v8072_v35 = vpop.eup %8071  ;;  %v5459_v50 = vsel %vm11384_vm8, %v5458_v37, %v5454_v0  ;;  %vm11427_vm1 = vcmp.eq.f32.partialorder %v3565_v38, 8.507059e+37  ;;  %v3567_v55 = vand.u32 2147483648, %v11374_v8  ;;  %v953_v8 = vpop.f32.mrf.mxu0 }
 0x33c   : > { %v5469_v30 = vsel %vm5468_vm0, %v8064_v4, %v5465_v51  ;;  %6570 = vst [vmem:[%s8994_s26 + $0x610] sm:$0xff] %v5459_v50  ;;  %v3559_v53 = vmul.f32 %v8070_v33, %v3558_v7  ;;  %vm3562_vm2 = vweird.f32 %v8070_v33  ;;  %v3580_v47 = vand.u32 2147483647, %v11408_v49 }
 0x33d   : > { %v5474_v58 = vsel %vm11394_vm10, %v5473_v40, %v5469_v30  ;;  %v3582_v14 = vand.u32 2147483648, %v11408_v49  ;;  %v5485_v48 = vand.u32 2147483647, %v11412_v32  ;;  %v11439_v21 = vadd.f32 1.0, %v8072_v35  ;;  %vm3563_vm3 = vmor %vm3561_vm15, %vm3562_vm2  ;;  %v1442_v35 = vpop.f32.mrf.mxu3 }
 0x33e   : > { %6571 = vst [vmem:[%s8994_s26 + $0x618] sm:$0xff] %v5474_v58  ;;  %8077 = vpow2.f32 %v7156_v44  ;;  %v3560_v11 = vadd.f32 %v8070_v33, %v3559_v53  ;;  %v5487_v12 = vand.u32 2147483648, %v11412_v32  ;;  %v7157_v31 = vmul.f32 -1.442695, %v1280_v3  ;;  %v7381_v58 = vld [vmem:[%s8884_s7 + $0xd8] sm:$0xff] }
 0x33f   : > { %v1111_v16 = vadd.f32 %v1110_v52, %v8910_v1  ;;  %v8074_v17 = vpop.eup %8073  ;;  %v3568_v62 = vor.u32 1.1754944e-38, %v3567_v55  ;;  %vm3576_vm4 = vweird.f32 %v11408_v49  ;;  %8079 = vrcp.f32 %v11439_v21  ;;  %v7413_v53 = vld [vmem:[%s8884_s7 + $0x1d8] sm:$0xff]  ;;  %997 = vmatmul.bf16.gmra.mxu0 %v7381_v58  ;;  %1326 = vmatmul.bf16.gmra.mxu1 %v7381_v58 }
 0x340   : > { %v1440_v60 = vadd.f32 %v1439_v39, %v8912_v2  ;;  %v8076_v23 = vpop.eup %8075  ;;  %v3564_v5 = vsel %vm3563_vm3, %v8070_v33, %v3560_v11  ;;  %v3572_v43 = vmul.f32 %v8074_v17, %v11408_v49  ;;  %vm11449_vm5 = vcmp.eq.f32.partialorder %v3580_v47, 8.507059e+37  ;;  %1157 = vmatmul.bf16.gmra.mxu2 %v7413_v53  ;;  %1486 = vmatmul.bf16.gmra.mxu3 %v7413_v53  ;;  %v1115_v11 = vpop.f32.mrf.mxu2 }
 0x341   : > { %vm5481_vm6 = vweird.f32 %v11412_v32  ;;  %v3569_v19 = vsel %vm11427_vm1, %v3568_v62, %v3564_v5  ;;  %v3583_v4 = vor.u32 1.1754944e-38, %v3582_v14  ;;  %v5477_v9 = vmul.f32 %v8076_v23, %v11412_v32 }
 0x342   : > { %vm11457_vm7 = vcmp.eq.f32.partialorder %v5485_v48, 8.507059e+37  ;;  %6444 = vst [vmem:[%s8994_s26 + $0x220] sm:$0xff] %v3569_v19  ;;  %v3573_v24 = vsub.f32 1.0, %v3572_v43  ;;  %v5488_v20 = vor.u32 1.1754944e-38, %v5487_v12  ;;  %8081 = vpow2.f32 %v7157_v31 }
 0x343   : > { %v7284_v25 = vmul.f32 -1.442695, %v1111_v16  ;;  %v5478_v27 = vsub.f32 1.0, %v5477_v9  ;;  %v7285_v41 = vmul.f32 -1.442695, %v1440_v60  ;;  %v954_v18 = vadd.f32 %v953_v8, %v8910_v1  ;;  %v955_v31 = vpop.f32.mrf.mxu0 }
 0x344   : > { %v8078_v37 = vpop.eup %8077  ;;  %v1283_v34 = vadd.f32 %v1282_v63, %v8912_v2  ;;  %v3574_v10 = vmul.f32 %v8074_v17, %v3573_v24  ;;  %vm3577_vm8 = vweird.f32 %v8074_v17  ;;  %vm5482_vm9 = vweird.f32 %v8076_v23 }
 0x345   : > { %v11464_v45 = vadd.f32 1.0, %v8078_v37  ;;  %8083 = vpow2.f32 %v7284_v25  ;;  %v8080_v28 = vpop.eup %8079  ;;  %v5479_v29 = vmul.f32 %v8076_v23, %v5478_v27  ;;  %v7158_v42 = vmul.f32 -1.442695, %v954_v18  ;;  %vm3578_vm10 = vmor %vm3576_vm4, %vm3577_vm8 }
 0x346   : > { %v1114_v36 = vadd.f32 %v1113_v13, %v8910_v1  ;;  %v3575_v46 = vadd.f32 %v8074_v17, %v3574_v10  ;;  %v5492_v22 = vmul.f32 %v8080_v28, %v11439_v21  ;;  %v7159_v57 = vmul.f32 -1.442695, %v1283_v34  ;;  %vm5483_vm11 = vmor %vm5481_vm6, %vm5482_vm9 }
 0x347   : > { %8085 = vrcp.f32 %v11464_v45  ;;  %v5480_v33 = vadd.f32 %v8076_v23, %v5479_v29  ;;  %v5500_v15 = vand.u32 2147483647, %v11439_v21  ;;  %v5502_v26 = vand.u32 2147483648, %v11439_v21 }
 0x348   : > { %8087 = vpow2.f32 %v7285_v41  ;;  %v8082_v38 = vpop.eup %8081  ;;  %v3579_v6 = vsel %vm3578_vm10, %v8074_v17, %v3575_v46  ;;  %v5493_v54 = vsub.f32 1.0, %v5492_v22  ;;  %vm5497_vm12 = vweird.f32 %v8080_v28 }
 0x349   : > { %8089 = vpow2.f32 %v7158_v42  ;;  %v3584_v49 = vsel %vm11449_vm5, %v3583_v4, %v3579_v6  ;;  %v5484_v44 = vsel %vm5483_vm11, %v8076_v23, %v5480_v33  ;;  %v3595_v52 = vand.u32 2147483647, %v11464_v45 }
 0x34a   : > { %v7286_v51 = vmul.f32 -1.442695, %v1114_v36  ;;  %6445 = vst [vmem:[%s8994_s26 + $0x228] sm:$0xff] %v3584_v49  ;;  %v5489_v0 = vsel %vm11457_vm7, %v5488_v20, %v5484_v44  ;;  %v5494_v7 = vmul.f32 %v8080_v28, %v5493_v54  ;;  %v11481_v32 = vadd.f32 1.0, %v8082_v38  ;;  %v1284_v49 = vpop.f32.mrf.mxu1 }
 0x34b   : > { %v8084_v40 = vpop.eup %8083  ;;  %8091 = vpow2.f32 %v7159_v57  ;;  %6572 = vst [vmem:[%s8994_s26 + $0x620] sm:$0xff] %v5489_v0  ;;  %vm5496_vm13 = vweird.f32 %v11439_v21  ;;  %vm11487_vm14 = vcmp.eq.f32.partialorder %v5500_v15, 8.507059e+37  ;;  %v5503_v55 = vor.u32 1.1754944e-38, %v5502_v26 }
 0x34c   : > { %v11485_v3 = vadd.f32 1.0, %v8084_v40  ;;  %v5495_v30 = vadd.f32 %v8080_v28, %v5494_v7  ;;  %8093 = vrcp.f32 %v11481_v32  ;;  %vm5498_vm15 = vmor %vm5496_vm13, %vm5497_vm12  ;;  %vm3591_vm0 = vweird.f32 %v11464_v45 }
 0x34d   : > { %v8086_v50 = vpop.eup %8085  ;;  %v3597_v14 = vand.u32 2147483648, %v11464_v45  ;;  %vm11499_vm1 = vcmp.eq.f32.partialorder %v3595_v52, 8.507059e+37  ;;  %v1443_v12 = vadd.f32 %v1442_v35, %v8912_v2  ;;  %v3610_v62 = vand.u32 2147483647, %v11481_v32 }
 0x34e   : > { %v8088_v47 = vpop.eup %8087  ;;  %v3587_v39 = vmul.f32 %v8086_v50, %v11464_v45  ;;  %8095 = vrcp.f32 %v11485_v3  ;;  %v5499_v21 = vsel %vm5498_vm15, %v8080_v28, %v5495_v30  ;;  %v3612_v60 = vand.u32 2147483648, %v11481_v32 }
 0x34f   : > { %v8090_v48 = vpop.eup %8089  ;;  %8097 = vpow2.f32 %v7286_v51  ;;  %v5504_v16 = vsel %vm11487_vm14, %v5503_v55, %v5499_v21  ;;  %v5515_v5 = vand.u32 2147483647, %v11485_v3  ;;  %v5517_v43 = vand.u32 2147483648, %v11485_v3 }
 0x350   : > { %v3588_v17 = vsub.f32 1.0, %v3587_v39  ;;  %6573 = vst [vmem:[%s8994_s26 + $0x628] sm:$0xff] %v5504_v16  ;;  %v11511_v59 = vadd.f32 1.0, %v8088_v47  ;;  %v11513_v8 = vadd.f32 1.0, %v8090_v48  ;;  %vm3592_vm2 = vweird.f32 %v8086_v50 }
 0x351   : > { %v8092_v23 = vpop.eup %8091  ;;  %v3598_v19 = vor.u32 1.1754944e-38, %v3597_v14  ;;  %v956_v4 = vadd.f32 %v955_v31, %v8910_v1  ;;  %vm3606_vm3 = vweird.f32 %v11481_v32  ;;  %vm5511_vm4 = vweird.f32 %v11485_v3  ;;  %vm3593_vm6 = vmor %vm3591_vm0, %vm3592_vm2 }
 0x352   : > { %v3589_v63 = vmul.f32 %v8086_v50, %v3588_v17  ;;  %v8094_v9 = vpop.eup %8093  ;;  %8099 = vrcp.f32 %v11511_v59  ;;  %v11519_v56 = vadd.f32 1.0, %v8092_v23  ;;  %vm11522_vm5 = vcmp.eq.f32.partialorder %v3610_v62, 8.507059e+37  ;;  %v958_v62 = vpop.f32.mrf.mxu0 }
 0x353   : > { %v3602_v25 = vmul.f32 %v8094_v9, %v11481_v32  ;;  %v3613_v37 = vor.u32 1.1754944e-38, %v3612_v60  ;;  %8101 = vrcp.f32 %v11513_v8  ;;  %vm11531_vm7 = vcmp.eq.f32.partialorder %v5515_v5, 8.507059e+37 }
 0x354   : > { %v8096_v24 = vpop.eup %8095  ;;  %v3590_v20 = vadd.f32 %v8086_v50, %v3589_v63  ;;  %v5518_v34 = vor.u32 1.1754944e-38, %v5517_v43  ;;  %v5532_v10 = vand.u32 2147483648, %v11511_v59  ;;  %v7287_v28 = vmul.f32 -1.442695, %v1443_v12  ;;  %v1444_v12 = vpop.f32.mrf.mxu3 }
 0x355   : > { %v8098_v27 = vpop.eup %8097  ;;  %v5507_v41 = vmul.f32 %v8096_v24, %v11485_v3  ;;  %v3603_v42 = vsub.f32 1.0, %v3602_v25  ;;  %v5530_v36 = vand.u32 2147483647, %v11511_v59  ;;  %v7160_v46 = vmul.f32 -1.442695, %v956_v4 }
 0x356   : > { %v3594_v29 = vsel %vm3593_vm6, %v8086_v50, %v3590_v20  ;;  %v3625_v57 = vand.u32 2147483647, %v11513_v8  ;;  %8103 = vrcp.f32 %v11519_v56  ;;  %vm3607_vm8 = vweird.f32 %v8094_v9 }
 0x357   : > { %v3599_v22 = vsel %vm11499_vm1, %v3598_v19, %v3594_v29  ;;  %v5508_v45 = vsub.f32 1.0, %v5507_v41  ;;  %v3604_v33 = vmul.f32 %v8094_v9, %v3603_v42  ;;  %vm5526_vm9 = vweird.f32 %v11511_v59  ;;  %vm3608_vm13 = vmor %vm3606_vm3, %vm3607_vm8  ;;  %v1287_v41 = vpop.f32.mrf.mxu1 }
 0x358   : > { %6446 = vst [vmem:[%s8994_s26 + $0x230] sm:$0xff] %v3599_v22  ;;  %v3627_v15 = vand.u32 2147483648, %v11513_v8  ;;  %v8100_v26 = vpop.eup %8099  ;;  %vm5512_vm10 = vweird.f32 %v8096_v24  ;;  %v5533_v6 = vor.u32 1.1754944e-38, %v5532_v10  ;;  %v11544_v54 = vadd.f32 1.0, %v8098_v27 }
 0x359   : > { %v5509_v38 = vmul.f32 %v8096_v24, %v5508_v45  ;;  %v8102_v44 = vpop.eup %8101  ;;  %v3605_v52 = vadd.f32 %v8094_v9, %v3604_v33  ;;  %v5522_v51 = vmul.f32 %v8100_v26, %v11511_v59  ;;  %vm11547_vm11 = vcmp.eq.f32.partialorder %v5530_v36, 8.507059e+37  ;;  %vm5513_vm0 = vmor %vm5511_vm4, %vm5512_vm10 }
 0x35a   : > { %vm3621_vm12 = vweird.f32 %v11513_v8  ;;  %v3640_v0 = vand.u32 2147483647, %v11519_v56  ;;  %v3617_v35 = vmul.f32 %v8102_v44, %v11513_v8  ;;  %vm11557_vm14 = vcmp.eq.f32.partialorder %v3625_v57, 8.507059e+37 }
 0x35b   : > { %v5510_v7 = vadd.f32 %v8096_v24, %v5509_v38  ;;  %vm3636_vm15 = vweird.f32 %v11519_v56  ;;  %v3642_v30 = vand.u32 2147483648, %v11519_v56  ;;  %v3609_v61 = vsel %vm3608_vm13, %v8094_v9, %v3605_v52 }
 0x35c   : > { %v5523_v55 = vsub.f32 1.0, %v5522_v51  ;;  %v3628_v32 = vor.u32 1.1754944e-38, %v3627_v15  ;;  %8105 = vrcp.f32 %v11544_v54  ;;  %v8104_v58 = vpop.eup %8103  ;;  %v3614_v53 = vsel %vm11522_vm5, %v3613_v37, %v3609_v61 }
 0x35d   : > { %v5514_v47 = vsel %vm5513_vm0, %v8096_v24, %v5510_v7  ;;  %vm5527_vm1 = vweird.f32 %v8100_v26  ;;  %v3618_v39 = vsub.f32 1.0, %v3617_v35  ;;  %6447 = vst [vmem:[%s8994_s26 + $0x238] sm:$0xff] %v3614_v53  ;;  %vm3622_vm2 = vweird.f32 %v8102_v44 }
 0x35e   : > { %v5519_v14 = vsel %vm11531_vm7, %v5518_v34, %v5514_v47  ;;  %v5524_v48 = vmul.f32 %v8100_v26, %v5523_v55  ;;  %v3632_v3 = vmul.f32 %v8104_v58, %v11519_v56  ;;  %vm11573_vm3 = vcmp.eq.f32.partialorder %v3640_v0, 8.507059e+37  ;;  %vm5528_vm4 = vmor %vm5526_vm9, %vm5527_vm1  ;;  %v1447_v0 = vpop.f32.mrf.mxu3 }
 0x35f   : > { %6574 = vst [vmem:[%s8994_s26 + $0x630] sm:$0xff] %v5519_v14  ;;  %v3619_v31 = vmul.f32 %v8102_v44, %v3618_v39  ;;  %v3643_v16 = vor.u32 1.1754944e-38, %v3642_v30  ;;  %v5545_v17 = vand.u32 2147483647, %v11544_v54  ;;  %8107 = vpow2.f32 %v7287_v28  ;;  %vm3623_vm6 = vmor %vm3621_vm12, %vm3622_vm2 }
 0x360   : > { %v5525_v60 = vadd.f32 %v8100_v26, %v5524_v48  ;;  %v3633_v23 = vsub.f32 1.0, %v3632_v3  ;;  %8109 = vpow2.f32 %v7160_v46  ;;  %v1285_v5 = vadd.f32 %v1284_v49, %v8912_v2  ;;  %v1118_v49 = vpop.f32.mrf.mxu2 }
 0x361   : > { %v3620_v43 = vadd.f32 %v8102_v44, %v3619_v31  ;;  %vm3637_vm5 = vweird.f32 %v8104_v58  ;;  %v1116_v63 = vadd.f32 %v1115_v11, %v8910_v1  ;;  %v1445_v19 = vadd.f32 %v1444_v12, %v8912_v2 }
 0x362   : > { %v8106_v4 = vpop.eup %8105  ;;  %v5529_v9 = vsel %vm5528_vm4, %v8100_v26, %v5525_v60  ;;  %v3634_v24 = vmul.f32 %v8104_v58, %v3633_v23  ;;  %v7161_v20 = vmul.f32 -1.442695, %v1285_v5  ;;  %v959_v25 = vadd.f32 %v958_v62, %v8910_v1  ;;  %vm3638_vm7 = vmor %vm3636_vm15, %vm3637_vm5 }
 0x363   : > { %v5534_v59 = vsel %vm11547_vm11, %v5533_v6, %v5529_v9  ;;  %v3624_v13 = vsel %vm3623_vm6, %v8102_v44, %v3620_v43  ;;  %v5537_v37 = vmul.f32 %v8106_v4, %v11544_v54  ;;  %v5547_v27 = vand.u32 2147483648, %v11544_v54 }
 0x364   : > { %6575 = vst [vmem:[%s8994_s26 + $0x638] sm:$0xff] %v5534_v59  ;;  %v3629_v18 = vsel %vm11557_vm14, %v3628_v32, %v3624_v13  ;;  %v3635_v8 = vadd.f32 %v8104_v58, %v3634_v24  ;;  %8111 = vpow2.f32 %v7161_v20  ;;  %v7288_v34 = vmul.f32 -1.442695, %v1116_v63 }
 0x365   : > { %v8108_v10 = vpop.eup %8107  ;;  %6448 = vst [vmem:[%s8994_s26 + $0x240] sm:$0xff] %v3629_v18  ;;  %v5538_v28 = vsub.f32 1.0, %v5537_v37  ;;  %vm5542_vm8 = vweird.f32 %v8106_v4  ;;  %v7289_v29 = vmul.f32 -1.442695, %v1445_v19  ;;  %v7162_v42 = vmul.f32 -1.442695, %v959_v25 }
 0x366   : > { %v8110_v36 = vpop.eup %8109  ;;  %v3639_v46 = vsel %vm3638_vm7, %v8104_v58, %v3635_v8  ;;  %v11600_v22 = vadd.f32 1.0, %v8108_v10  ;;  %8113 = vpow2.f32 %v7288_v34  ;;  %v1288_v45 = vadd.f32 %v1287_v41, %v8912_v2  ;;  %v7382_v41 = vld [vmem:[%s8884_s7 + $0xe0] sm:$0xff] }
 0x367   : > { %v3644_v57 = vsel %vm11573_vm3, %v3643_v16, %v3639_v46  ;;  %v5539_v33 = vmul.f32 %v8106_v4, %v5538_v28  ;;  %v11605_v15 = vadd.f32 1.0, %v8110_v36  ;;  %8115 = vpow2.f32 %v7289_v29  ;;  %v7414_v18 = vld [vmem:[%s8884_s7 + $0x1e0] sm:$0xff]  ;;  %1002 = vmatmul.bf16.gmra.mxu0 %v7382_v41  ;;  %1331 = vmatmul.bf16.gmra.mxu1 %v7382_v41 }
 0x368   : > { %6449 = vst [vmem:[%s8994_s26 + $0x248] sm:$0xff] %v3644_v57  ;;  %8117 = vrcp.f32 %v11600_v22  ;;  %vm5541_vm9 = vweird.f32 %v11544_v54  ;;  %vm5546_vm11 = vcmp.eq.f32.partialorder %v5545_v17, 8.507059e+37  ;;  %v5548_v38 = vor.u32 1.1754944e-38, %v5547_v27  ;;  %1162 = vmatmul.bf16.gmra.mxu2 %v7414_v18  ;;  %1491 = vmatmul.bf16.gmra.mxu3 %v7414_v18 }
 0x369   : > { %v5540_v56 = vadd.f32 %v8106_v4, %v5539_v33  ;;  %8119 = vrcp.f32 %v11605_v15  ;;  %vm5543_vm10 = vmor %vm5541_vm9, %vm5542_vm8  ;;  %v5560_v6 = vand.u32 2147483647, %v11600_v22  ;;  %v5562_v52 = vand.u32 2147483648, %v11600_v22 }
 0x36a   : > { %v8112_v26 = vpop.eup %8111  ;;  %8121 = vpow2.f32 %v7162_v42  ;;  %v7163_v40 = vmul.f32 -1.442695, %v1288_v45  ;;  %v3655_v35 = vand.u32 2147483647, %v11605_v15  ;;  %vm5556_vm12 = vweird.f32 %v11600_v22 }
 0x36b   : > { %v5544_v44 = vsel %vm5543_vm10, %v8106_v4, %v5540_v56  ;;  %v11614_v51 = vadd.f32 1.0, %v8112_v26  ;;  %v3657_v30 = vand.u32 2147483648, %v11605_v15  ;;  %v1119_v61 = vadd.f32 %v1118_v49, %v8910_v1 }
 0x36c   : > { %v8114_v54 = vpop.eup %8113  ;;  %v5549_v7 = vsel %vm5546_vm11, %v5548_v38, %v5544_v44  ;;  %v1448_v53 = vadd.f32 %v1447_v0, %v8912_v2  ;;  %vm11628_vm13 = vcmp.eq.f32.partialorder %v5560_v6, 8.507059e+37  ;;  %v5563_v48 = vor.u32 1.1754944e-38, %v5562_v52  ;;  %v960_v38 = vpop.f32.mrf.mxu0 }
 0x36d   : > { %v8116_v50 = vpop.eup %8115  ;;  %6576 = vst [vmem:[%s8994_s26 + $0x640] sm:$0xff] %v5549_v7  ;;  %8123 = vrcp.f32 %v11614_v51  ;;  %v11622_v32 = vadd.f32 1.0, %v8114_v54  ;;  %vm3651_vm14 = vweird.f32 %v11605_v15  ;;  %vm11634_vm15 = vcmp.eq.f32.partialorder %v3655_v35, 8.507059e+37  ;;  %v1289_v7 = vpop.f32.mrf.mxu1 }
 0x36e   : > { %v8118_v55 = vpop.eup %8117  ;;  %v11624_v58 = vadd.f32 1.0, %v8116_v50  ;;  %8125 = vpow2.f32 %v7163_v40  ;;  %v3670_v12 = vand.u32 2147483647, %v11614_v51  ;;  %v3672_v31 = vand.u32 2147483648, %v11614_v51 }
 0x36f   : > { %v8120_v47 = vpop.eup %8119  ;;  %v5552_v39 = vmul.f32 %v8118_v55, %v11600_v22  ;;  %8127 = vrcp.f32 %v11622_v32  ;;  %v3658_v17 = vor.u32 1.1754944e-38, %v3657_v30  ;;  %v11642_v62 = vmul.f32 -1.442695, %v1119_v61  ;;  %v1120_v30 = vpop.f32.mrf.mxu2 }
 0x370   : > { %v8122_v3 = vpop.eup %8121  ;;  %v3647_v21 = vmul.f32 %v8120_v47, %v11605_v15  ;;  %8129 = vrcp.f32 %v11624_v58  ;;  %vm3666_vm0 = vweird.f32 %v11614_v51  ;;  %v5577_v23 = vand.u32 2147483648, %v11622_v32 }
 0x371   : > { %v5553_v16 = vsub.f32 1.0, %v5552_v39  ;;  %v11646_v5 = vmul.f32 -1.442695, %v1448_v53  ;;  %vm5557_vm1 = vweird.f32 %v8118_v55  ;;  %v5575_v19 = vand.u32 2147483647, %v11622_v32 }
 0x372   : > { %v3648_v60 = vsub.f32 1.0, %v3647_v21  ;;  %v11651_v4 = vadd.f32 1.0, %v8122_v3  ;;  %vm3652_vm2 = vweird.f32 %v8120_v47  ;;  %vm11655_vm3 = vcmp.eq.f32.partialorder %v3670_v12, 8.507059e+37  ;;  %vm11670_vm5 = vmor %vm5556_vm12, %vm5557_vm1 }
 0x373   : > { %v11648_v43 = vpop.eup %8123  ;;  %v5554_v63 = vmul.f32 %v8118_v55, %v5553_v16  ;;  %v3673_v59 = vor.u32 1.1754944e-38, %v3672_v31  ;;  %vm5571_vm4 = vweird.f32 %v11622_v32  ;;  %v5590_v37 = vand.u32 2147483647, %v11624_v58  ;;  %vm3653_vm8 = vmor %vm3651_vm14, %vm3652_vm2  ;;  %v1449_v31 = vpop.f32.mrf.mxu3 }
 0x374   : > { %v8126_v9 = vpop.eup %8125  ;;  %v3649_v24 = vmul.f32 %v8120_v47, %v3648_v60  ;;  %v3662_v20 = vmul.f32 %v11648_v43, %v11614_v51  ;;  %v5592_v27 = vand.u32 2147483648, %v11624_v58  ;;  %8131 = vrcp.f32 %v11651_v4 }
 0x375   : > { %v5555_v13 = vadd.f32 %v8118_v55, %v5554_v63  ;;  %v11665_v8 = vpop.eup %8127  ;;  %vm3667_vm6 = vweird.f32 %v11648_v43  ;;  %v5578_v29 = vor.u32 1.1754944e-38, %v5577_v23  ;;  %vm5586_vm7 = vweird.f32 %v11624_v58  ;;  %v1292_v41 = vpop.f32.mrf.mxu1 }
 0x376   : > { %v3650_v10 = vadd.f32 %v8120_v47, %v3649_v24  ;;  %v3663_v28 = vsub.f32 1.0, %v3662_v20  ;;  %v8130_v42 = vpop.eup %8129  ;;  %v5567_v46 = vmul.f32 %v11665_v8, %v11622_v32  ;;  %vm11683_vm9 = vcmp.eq.f32.partialorder %v5575_v19, 8.507059e+37  ;;  %vm3668_vm11 = vmor %vm3666_vm0, %vm3667_vm6  ;;  %v963_v24 = vpop.f32.mrf.mxu0 }
 0x377   : > { %v5559_v36 = vsel %vm11670_vm5, %v8118_v55, %v5555_v13  ;;  %v3685_v45 = vand.u32 2147483647, %v11651_v4  ;;  %v11688_v57 = vadd.f32 1.0, %v8126_v9  ;;  %v5582_v26 = vmul.f32 %v8130_v42, %v11624_v58 }
 0x378   : > { %v5564_v33 = vsel %vm11628_vm13, %v5563_v48, %v5559_v36  ;;  %v3654_v56 = vsel %vm3653_vm8, %v8120_v47, %v3650_v10  ;;  %v3664_v15 = vmul.f32 %v11648_v43, %v3663_v28  ;;  %v5568_v49 = vsub.f32 1.0, %v5567_v46  ;;  %v1123_v28 = vpop.f32.mrf.mxu2 }
 0x379   : > { %6577 = vst [vmem:[%s8994_s26 + $0x648] sm:$0xff] %v5564_v33  ;;  %v3659_v6 = vsel %vm11634_vm15, %v3658_v17, %v3654_v56  ;;  %vm11697_vm10 = vcmp.eq.f32.partialorder %v5590_v37, 8.507059e+37  ;;  %v3687_v52 = vand.u32 2147483648, %v11651_v4  ;;  %v5583_v0 = vsub.f32 1.0, %v5582_v26 }
 0x37a   : > { %6450 = vst [vmem:[%s8994_s26 + $0x250] sm:$0xff] %v3659_v6  ;;  %v3665_v40 = vadd.f32 %v11648_v43, %v3664_v15  ;;  %v5593_v54 = vor.u32 1.1754944e-38, %v5592_v27  ;;  %8133 = vrcp.f32 %v11688_v57  ;;  %v8132_v35 = vpop.eup %8131  ;;  %v5569_v50 = vmul.f32 %v11665_v8, %v5568_v49 }
 0x37b   : > { %vm5572_vm12 = vweird.f32 %v11665_v8  ;;  %vm5587_vm13 = vweird.f32 %v8130_v42  ;;  %vm3681_vm14 = vweird.f32 %v11651_v4  ;;  %v5584_v55 = vmul.f32 %v8130_v42, %v5583_v0 }
 0x37c   : > { %v3669_v61 = vsel %vm3668_vm11, %v11648_v43, %v3665_v40  ;;  %v3677_v53 = vmul.f32 %v8132_v35, %v11651_v4  ;;  %vm11714_vm15 = vcmp.eq.f32.partialorder %v3685_v45, 8.507059e+37  ;;  %v5570_v39 = vadd.f32 %v11665_v8, %v5569_v50  ;;  %vm5573_vm1 = vmor %vm5571_vm4, %vm5572_vm12 }
 0x37d   : > { %v3674_v51 = vsel %vm11655_vm3, %v3673_v59, %v3669_v61  ;;  %vm3682_vm0 = vweird.f32 %v8132_v35  ;;  %v3688_v14 = vor.u32 1.1754944e-38, %v3687_v52  ;;  %v5585_v48 = vadd.f32 %v8130_v42, %v5584_v55  ;;  %vm5588_vm2 = vmor %vm5586_vm7, %vm5587_vm13 }
 0x37e   : > { %6451 = vst [vmem:[%s8994_s26 + $0x258] sm:$0xff] %v3674_v51  ;;  %v3678_v3 = vsub.f32 1.0, %v3677_v53  ;;  %8135 = vpow2.f32 %v11642_v62  ;;  %v961_v21 = vadd.f32 %v960_v38, %v8910_v1  ;;  %v5574_v11 = vsel %vm5573_vm1, %v11665_v8, %v5570_v39  ;;  %vm3683_vm4 = vmor %vm3681_vm14, %vm3682_vm0 }
 0x37f   : > { %8137 = vpow2.f32 %v11646_v5  ;;  %v1290_v12 = vadd.f32 %v1289_v7, %v8912_v2  ;;  %v1121_v32 = vadd.f32 %v1120_v30, %v8910_v1  ;;  %v5579_v17 = vsel %vm11683_vm9, %v5578_v29, %v5574_v11 }
 0x380   : > { %v8134_v16 = vpop.eup %8133  ;;  %v5589_v62 = vsel %vm5588_vm2, %v8130_v42, %v5585_v48  ;;  %v3679_v60 = vmul.f32 %v8132_v35, %v3678_v3  ;;  %v7164_v23 = vmul.f32 -1.442695, %v961_v21  ;;  %6578 = vst [vmem:[%s8994_s26 + $0x650] sm:$0xff] %v5579_v17  ;;  %vm3696_vm3 = vweird.f32 %v11688_v57 }
 0x381   : > { %v5594_v58 = vsel %vm11697_vm10, %v5593_v54, %v5589_v62  ;;  %v3692_v43 = vmul.f32 %v8134_v16, %v11688_v57  ;;  %v7165_v5 = vmul.f32 -1.442695, %v1290_v12  ;;  %v7292_v19 = vmul.f32 -1.442695, %v1121_v32 }
 0x382   : > { %6579 = vst [vmem:[%s8994_s26 + $0x658] sm:$0xff] %v5594_v58  ;;  %v3680_v63 = vadd.f32 %v8132_v35, %v3679_v60  ;;  %8139 = vpow2.f32 %v7164_v23  ;;  %v1450_v9 = vadd.f32 %v1449_v31, %v8912_v2  ;;  %v3700_v25 = vand.u32 2147483647, %v11688_v57 }
 0x383   : > { %v3693_v20 = vsub.f32 1.0, %v3692_v43  ;;  %v3702_v59 = vand.u32 2147483648, %v11688_v57  ;;  %8141 = vpow2.f32 %v7165_v5  ;;  %vm3697_vm5 = vweird.f32 %v8134_v16  ;;  %v1452_v5 = vpop.f32.mrf.mxu3 }
 0x384   : > { %v8136_v13 = vpop.eup %8135  ;;  %v3684_v37 = vsel %vm3683_vm4, %v8132_v35, %v3680_v63  ;;  %8143 = vpow2.f32 %v7292_v19  ;;  %v7293_v27 = vmul.f32 -1.442695, %v1450_v9  ;;  %v964_v10 = vadd.f32 %v963_v24, %v8910_v1  ;;  %vm3698_vm6 = vmor %vm3696_vm3, %vm3697_vm5 }
 0x385   : > { %v8138_v18 = vpop.eup %8137  ;;  %v3689_v8 = vsel %vm11714_vm15, %v3688_v14, %v3684_v37  ;;  %v3694_v34 = vmul.f32 %v8134_v16, %v3693_v20  ;;  %v11749_v4 = vadd.f32 1.0, %v8136_v13  ;;  %v1293_v36 = vadd.f32 %v1292_v41, %v8912_v2 }
 0x386   : > { %6452 = vst [vmem:[%s8994_s26 + $0x260] sm:$0xff] %v3689_v8  ;;  %v11753_v29 = vadd.f32 1.0, %v8138_v18  ;;  %8145 = vpow2.f32 %v7293_v27  ;;  %v3703_v22 = vor.u32 1.1754944e-38, %v3702_v59  ;;  %v1124_v45 = vadd.f32 %v1123_v28, %v8910_v1  ;;  %v7415_v28 = vld [vmem:[%s8884_s7 + $0x1e8] sm:$0xff] }
 0x387   : > { %v3695_v42 = vadd.f32 %v8134_v16, %v3694_v34  ;;  %8147 = vrcp.f32 %v11749_v4  ;;  %vm3701_vm7 = vcmp.eq.f32.partialorder %v3700_v25, 8.507059e+37  ;;  %v7166_v26 = vmul.f32 -1.442695, %v964_v10  ;;  %v7383_v10 = vld [vmem:[%s8884_s7 + $0xe8] sm:$0xff]  ;;  %1167 = vmatmul.bf16.gmra.mxu2 %v7415_v28  ;;  %1496 = vmatmul.bf16.gmra.mxu3 %v7415_v28 }
 0x388   : > { %v8140_v46 = vpop.eup %8139  ;;  %8149 = vrcp.f32 %v11753_v29  ;;  %v5605_v49 = vand.u32 2147483647, %v11749_v4  ;;  %v5607_v44 = vand.u32 2147483648, %v11749_v4  ;;  %v5620_v57 = vand.u32 2147483647, %v11753_v29  ;;  %1007 = vmatmul.bf16.gmra.mxu0 %v7383_v10  ;;  %1336 = vmatmul.bf16.gmra.mxu1 %v7383_v10 }
 0x389   : > { %v8142_v33 = vpop.eup %8141  ;;  %v3699_v56 = vsel %vm3698_vm6, %v8134_v16, %v3695_v42  ;;  %v11762_v15 = vadd.f32 1.0, %v8140_v46  ;;  %v11771_v40 = vmul.f32 -1.442695, %v1293_v36  ;;  %vm5601_vm8 = vweird.f32 %v11749_v4 }
 0x38a   : > { %v8144_v38 = vpop.eup %8143  ;;  %v3704_v6 = vsel %vm3701_vm7, %v3703_v22, %v3699_v56  ;;  %v11766_v52 = vadd.f32 1.0, %v8142_v33  ;;  %v5622_v54 = vand.u32 2147483648, %v11753_v29  ;;  %v11776_v7 = vmul.f32 -1.442695, %v1124_v45 }
 0x38b   : > { %6453 = vst [vmem:[%s8994_s26 + $0x268] sm:$0xff] %v3704_v6  ;;  %8151 = vrcp.f32 %v11762_v15  ;;  %vm5616_vm9 = vweird.f32 %v11753_v29  ;;  %v3717_v50 = vand.u32 2147483648, %v11762_v15  ;;  %v11780_v30 = vadd.f32 1.0, %v8144_v38 }
 0x38c   : > { %v8146_v0 = vpop.eup %8145  ;;  %8153 = vrcp.f32 %v11766_v52  ;;  %vm11785_vm10 = vcmp.eq.f32.partialorder %v5605_v49, 8.507059e+37  ;;  %v5608_v51 = vor.u32 1.1754944e-38, %v5607_v44  ;;  %v3715_v39 = vand.u32 2147483647, %v11762_v15 }
 0x38d   : > { %v8148_v35 = vpop.eup %8147  ;;  %v11782_v61 = vadd.f32 1.0, %v8146_v0  ;;  %v3732_v14 = vand.u32 2147483648, %v11766_v52  ;;  %vm11792_vm11 = vcmp.eq.f32.partialorder %v5620_v57, 8.507059e+37  ;;  %v3730_v21 = vand.u32 2147483647, %v11766_v52 }
 0x38e   : > { %v8150_v55 = vpop.eup %8149  ;;  %v5597_v53 = vmul.f32 %v8148_v35, %v11749_v4  ;;  %8155 = vrcp.f32 %v11780_v30  ;;  %vm5602_vm12 = vweird.f32 %v8148_v35  ;;  %v5623_v12 = vor.u32 1.1754944e-38, %v5622_v54 }
 0x38f   : > { %v5612_v48 = vmul.f32 %v8150_v55, %v11753_v29  ;;  %vm3711_vm13 = vweird.f32 %v11762_v15  ;;  %vm5617_vm14 = vweird.f32 %v8150_v55  ;;  %v3718_v16 = vor.u32 1.1754944e-38, %v3717_v50  ;;  %vm5603_vm5 = vmor %vm5601_vm8, %vm5602_vm12 }
 0x390   : > { %v5598_v11 = vsub.f32 1.0, %v5597_v53  ;;  %vm3726_vm15 = vweird.f32 %v11766_v52  ;;  %8157 = vrcp.f32 %v11782_v61  ;;  %vm11807_vm0 = vcmp.eq.f32.partialorder %v3715_v39, 8.507059e+37  ;;  %vm5618_vm6 = vmor %vm5616_vm9, %vm5617_vm14 }
 0x391   : > { %v11799_v32 = vpop.eup %8151  ;;  %v5613_v31 = vsub.f32 1.0, %v5612_v48  ;;  %v3733_v58 = vor.u32 1.1754944e-38, %v3732_v14  ;;  %v5635_v43 = vand.u32 2147483647, %v11780_v30  ;;  %vm11814_vm1 = vcmp.eq.f32.partialorder %v3730_v21, 8.507059e+37  ;;  %v1125_v14 = vpop.f32.mrf.mxu2 }
 0x392   : > { %v11803_v17 = vpop.eup %8153  ;;  %v5599_v62 = vmul.f32 %v8148_v35, %v5598_v11  ;;  %v3707_v60 = vmul.f32 %v11799_v32, %v11762_v15  ;;  %v5637_v24 = vand.u32 2147483648, %v11780_v30  ;;  %v5650_v20 = vand.u32 2147483647, %v11782_v61 }
 0x393   : > { %v5614_v63 = vmul.f32 %v8150_v55, %v5613_v31  ;;  %v3722_v19 = vmul.f32 %v11803_v17, %v11766_v52  ;;  %vm3712_vm2 = vweird.f32 %v11799_v32  ;;  %vm3727_vm3 = vweird.f32 %v11803_v17 }
 0x394   : > { %v5600_v25 = vadd.f32 %v8148_v35, %v5599_v62  ;;  %v3708_v59 = vsub.f32 1.0, %v3707_v60  ;;  %vm5631_vm4 = vweird.f32 %v11780_v30  ;;  %v11823_v13 = vpop.eup %8155  ;;  %8159 = vpow2.f32 %v7166_v26  ;;  %v965_v26 = vpop.f32.mrf.mxu0  ;;  %vm11855_vm8 = vmor %vm3711_vm13, %vm3712_vm2 }
 0x395   : > { %v5615_v37 = vadd.f32 %v8150_v55, %v5614_v63  ;;  %v3723_v27 = vsub.f32 1.0, %v3722_v19  ;;  %v1453_v41 = vadd.f32 %v1452_v5, %v8912_v2  ;;  %v5627_v34 = vmul.f32 %v11823_v13, %v11780_v30 }
 0x396   : > { %v5604_v18 = vsel %vm5603_vm5, %v8148_v35, %v5600_v25  ;;  %v3709_v8 = vmul.f32 %v11799_v32, %v3708_v59  ;;  %v5652_v4 = vand.u32 2147483648, %v11782_v61  ;;  %v11838_v42 = vpop.eup %8157  ;;  %vm5632_vm7 = vweird.f32 %v11823_v13 }
 0x397   : > { %v5609_v36 = vsel %vm11785_vm10, %v5608_v51, %v5604_v18  ;;  %v5619_v46 = vsel %vm5618_vm6, %v8150_v55, %v5615_v37  ;;  %v3724_v22 = vmul.f32 %v11803_v17, %v3723_v27  ;;  %v5628_v33 = vsub.f32 1.0, %v5627_v34  ;;  %vm3728_vm10 = vmor %vm3726_vm15, %vm3727_vm3 }
 0x398   : > { %6580 = vst [vmem:[%s8994_s26 + $0x660] sm:$0xff] %v5609_v36  ;;  %v5624_v29 = vsel %vm11792_vm11, %v5623_v12, %v5619_v46  ;;  %v3710_v45 = vadd.f32 %v11799_v32, %v3709_v8  ;;  %v5642_v56 = vmul.f32 %v11838_v42, %v11782_v61  ;;  %vm5647_vm9 = vweird.f32 %v11838_v42  ;;  %vm5633_vm11 = vmor %vm5631_vm4, %vm5632_vm7 }
 0x399   : > { %6581 = vst [vmem:[%s8994_s26 + $0x668] sm:$0xff] %v5624_v29  ;;  %v3725_v6 = vadd.f32 %v11803_v17, %v3724_v22  ;;  %8161 = vpow2.f32 %v11771_v40  ;;  %v7295_v49 = vmul.f32 -1.442695, %v1453_v41  ;;  %v5629_v15 = vmul.f32 %v11823_v13, %v5628_v33  ;;  %v1294_v40 = vpop.f32.mrf.mxu1 }
 0x39a   : > { %v3714_v44 = vsel %vm11855_vm8, %v11799_v32, %v3710_v45  ;;  %v5643_v57 = vsub.f32 1.0, %v5642_v56  ;;  %8163 = vpow2.f32 %v11776_v7  ;;  %v8160_v0 = vpop.eup %8159  ;;  %v966_v50 = vadd.f32 %v965_v26, %v8910_v1 }
 0x39b   : > { %v3719_v54 = vsel %vm11807_vm0, %v3718_v16, %v3714_v44  ;;  %v3729_v35 = vsel %vm3728_vm10, %v11803_v17, %v3725_v6  ;;  %8165 = vpow2.f32 %v7295_v49  ;;  %v5630_v55 = vadd.f32 %v11823_v13, %v5629_v15 }
 0x39c   : > { %6454 = vst [vmem:[%s8994_s26 + $0x270] sm:$0xff] %v3719_v54  ;;  %v3734_v52 = vsel %vm11814_vm1, %v3733_v58, %v3729_v35  ;;  %v5644_v53 = vmul.f32 %v11838_v42, %v5643_v57  ;;  %v11880_v7 = vadd.f32 1.0, %v8160_v0  ;;  %v5638_v47 = vor.u32 1.1754944e-38, %v5637_v24  ;;  %v968_v22 = vpop.f32.mrf.mxu0 }
 0x39d   : > { %6455 = vst [vmem:[%s8994_s26 + $0x278] sm:$0xff] %v3734_v52  ;;  %vm5646_vm12 = vweird.f32 %v11782_v61  ;;  %v7168_v51 = vmul.f32 -1.442695, %v966_v50  ;;  %v1295_v39 = vadd.f32 %v1294_v40, %v8912_v2  ;;  %v5634_v48 = vsel %vm5633_vm11, %v11823_v13, %v5630_v55 }
 0x39e   : > { %vm5636_vm13 = vcmp.eq.f32.partialorder %v5635_v43, 8.507059e+37  ;;  %v5645_v3 = vadd.f32 %v11838_v42, %v5644_v53  ;;  %8167 = vrcp.f32 %v11880_v7  ;;  %vm5648_vm14 = vmor %vm5646_vm12, %vm5647_vm9  ;;  %vm5651_vm15 = vcmp.eq.f32.partialorder %v5650_v20, 8.507059e+37  ;;  %v1454_v43 = vpop.f32.mrf.mxu3 }
 0x39f   : > { %v8162_v21 = vpop.eup %8161  ;;  %v5639_v11 = vsel %vm5636_vm13, %v5638_v47, %v5634_v48  ;;  %v5653_v12 = vor.u32 1.1754944e-38, %v5652_v4  ;;  %8169 = vpow2.f32 %v7168_v51  ;;  %v7169_v16 = vmul.f32 -1.442695, %v1295_v39 }
 0x3a0   : > { %v8164_v32 = vpop.eup %8163  ;;  %6582 = vst [vmem:[%s8994_s26 + $0x670] sm:$0xff] %v5639_v11  ;;  %v5649_v30 = vsel %vm5648_vm14, %v11838_v42, %v5645_v3  ;;  %v11900_v31 = vadd.f32 1.0, %v8162_v21  ;;  %v1126_v17 = vadd.f32 %v1125_v14, %v8910_v1  ;;  %v3745_v23 = vand.u32 2147483647, %v11880_v7 }
 0x3a1   : > { %v8166_v62 = vpop.eup %8165  ;;  %v5654_v60 = vsel %vm5651_vm15, %v5653_v12, %v5649_v30  ;;  %v11904_v58 = vadd.f32 1.0, %v8164_v32  ;;  %v3747_v61 = vand.u32 2147483648, %v11880_v7  ;;  %v1455_v9 = vadd.f32 %v1454_v43, %v8912_v2  ;;  %v1297_v0 = vpop.f32.mrf.mxu1 }
 0x3a2   : > { %6583 = vst [vmem:[%s8994_s26 + $0x678] sm:$0xff] %v5654_v60  ;;  %8171 = vrcp.f32 %v11900_v31  ;;  %v11910_v63 = vadd.f32 1.0, %v8166_v62  ;;  %v7296_v19 = vmul.f32 -1.442695, %v1126_v17  ;;  %vm3741_vm0 = vweird.f32 %v11880_v7  ;;  %v1128_v43 = vpop.f32.mrf.mxu2 }
 0x3a3   : > { %8173 = vrcp.f32 %v11904_v58  ;;  %vm11915_vm1 = vcmp.eq.f32.partialorder %v3745_v23, 8.507059e+37  ;;  %v3760_v59 = vand.u32 2147483647, %v11900_v31  ;;  %v3762_v13 = vand.u32 2147483648, %v11900_v31 }
 0x3a4   : > { %v8168_v5 = vpop.eup %8167  ;;  %8175 = vpow2.f32 %v7169_v16  ;;  %v5665_v37 = vand.u32 2147483647, %v11904_v58  ;;  %v5667_v27 = vand.u32 2147483648, %v11904_v58  ;;  %v3748_v18 = vor.u32 1.1754944e-38, %v3747_v61 }
 0x3a5   : > { %v8170_v24 = vpop.eup %8169  ;;  %v3737_v20 = vmul.f32 %v8168_v5, %v11880_v7  ;;  %8177 = vrcp.f32 %v11910_v63  ;;  %vm3756_vm2 = vweird.f32 %v11900_v31  ;;  %vm3742_vm3 = vweird.f32 %v8168_v5 }
 0x3a6   : > { %v11925_v8 = vadd.f32 1.0, %v8170_v24  ;;  %vm5661_vm4 = vweird.f32 %v11904_v58  ;;  %8179 = vpow2.f32 %v7296_v19  ;;  %v7297_v4 = vmul.f32 -1.442695, %v1455_v9  ;;  %vm3743_vm7 = vmor %vm3741_vm0, %vm3742_vm3 }
 0x3a7   : > { %v3738_v41 = vsub.f32 1.0, %v3737_v20  ;;  %vm11929_vm5 = vcmp.eq.f32.partialorder %v3760_v59, 8.507059e+37  ;;  %v5680_v46 = vand.u32 2147483647, %v11910_v63  ;;  %v3763_v45 = vor.u32 1.1754944e-38, %v3762_v13  ;;  %v1457_v20 = vpop.f32.mrf.mxu3 }
 0x3a8   : > { %v8172_v34 = vpop.eup %8171  ;;  %8181 = vrcp.f32 %v11925_v8  ;;  %vm11936_vm6 = vcmp.eq.f32.partialorder %v5665_v37, 8.507059e+37  ;;  %v5668_v26 = vor.u32 1.1754944e-38, %v5667_v27  ;;  %v5682_v49 = vand.u32 2147483648, %v11910_v63 }
 0x3a9   : > { %v8174_v10 = vpop.eup %8173  ;;  %v3739_v28 = vmul.f32 %v8168_v5, %v3738_v41  ;;  %v3752_v42 = vmul.f32 %v8172_v34, %v11900_v31  ;;  %vm5676_vm8 = vweird.f32 %v11910_v63  ;;  %8183 = vpow2.f32 %v7297_v4 }
 0x3aa   : > { %v8176_v29 = vpop.eup %8175  ;;  %v5657_v33 = vmul.f32 %v8174_v10, %v11904_v58  ;;  %v969_v40 = vadd.f32 %v968_v22, %v8910_v1  ;;  %vm3757_vm9 = vweird.f32 %v8172_v34  ;;  %vm11949_vm10 = vcmp.eq.f32.partialorder %v5680_v46, 8.507059e+37 }
 0x3ab   : > { %v3740_v38 = vadd.f32 %v8168_v5, %v3739_v28  ;;  %v3753_v6 = vsub.f32 1.0, %v3752_v42  ;;  %v11941_v44 = vadd.f32 1.0, %v8176_v29  ;;  %v8178_v15 = vpop.eup %8177  ;;  %vm5662_vm11 = vweird.f32 %v8174_v10  ;;  %vm3758_vm12 = vmor %vm3756_vm2, %vm3757_vm9  ;;  %v970_v42 = vpop.f32.mrf.mxu0 }
 0x3ac   : > { %v5658_v57 = vsub.f32 1.0, %v5657_v33  ;;  %v5672_v50 = vmul.f32 %v8178_v15, %v11910_v63  ;;  %v8180_v55 = vpop.eup %8179  ;;  %v5683_v14 = vor.u32 1.1754944e-38, %v5682_v49  ;;  %v1298_v48 = vadd.f32 %v1297_v0, %v8912_v2  ;;  %vm5663_vm13 = vmor %vm5661_vm4, %vm5662_vm11 }
 0x3ad   : > { %v3744_v54 = vsel %vm3743_vm7, %v8168_v5, %v3740_v38  ;;  %v3754_v35 = vmul.f32 %v8172_v34, %v3753_v6  ;;  %8185 = vrcp.f32 %v11941_v44  ;;  %v3775_v11 = vand.u32 2147483647, %v11925_v8  ;;  %v7416_v38 = vld [vmem:[%s8884_s7 + $0x1f0] sm:$0xff] }
 0x3ae   : > { %v3749_v53 = vsel %vm11915_vm1, %v3748_v18, %v3744_v54  ;;  %v5659_v7 = vmul.f32 %v8174_v10, %v5658_v57  ;;  %v8182_v47 = vpop.eup %8181  ;;  %v5673_v39 = vsub.f32 1.0, %v5672_v50  ;;  %v7170_v12 = vmul.f32 -1.442695, %v969_v40  ;;  %1172 = vmatmul.bf16.gmra.mxu2 %v7416_v38  ;;  %1501 = vmatmul.bf16.gmra.mxu3 %v7416_v38 }
 0x3af   : > { %6456 = vst [vmem:[%s8994_s26 + $0x280] sm:$0xff] %v3749_v53  ;;  %v3755_v51 = vadd.f32 %v8172_v34, %v3754_v35  ;;  %v3767_v21 = vmul.f32 %v8182_v47, %v11925_v8  ;;  %vm5677_vm14 = vweird.f32 %v8178_v15  ;;  %v11964_v16 = vadd.f32 1.0, %v8180_v55  ;;  %v8184_v17 = vpop.eup %8183  ;;  %v1130_v55 = vpop.f32.mrf.mxu2 }
 0x3b0   : > { %v5660_v3 = vadd.f32 %v8174_v10, %v5659_v7  ;;  %v5674_v30 = vmul.f32 %v8178_v15, %v5673_v39  ;;  %v3777_v23 = vand.u32 2147483648, %v11925_v8  ;;  %v3790_v5 = vand.u32 2147483647, %v11941_v44  ;;  %vm5678_vm15 = vmor %vm5676_vm8, %vm5677_vm14 }
 0x3b1   : > { %v3759_v32 = vsel %vm3758_vm12, %v8172_v34, %v3755_v51  ;;  %v3768_v60 = vsub.f32 1.0, %v3767_v21  ;;  %8187 = vrcp.f32 %v11964_v16  ;;  %vm3771_vm0 = vweird.f32 %v11925_v8 }
 0x3b2   : > { %v3764_v31 = vsel %vm11929_vm5, %v3763_v45, %v3759_v32  ;;  %v5664_v62 = vsel %vm5663_vm13, %v8174_v10, %v5660_v3  ;;  %v5675_v58 = vadd.f32 %v8178_v15, %v5674_v30  ;;  %vm3772_vm1 = vweird.f32 %v8182_v47  ;;  %v1299_v45 = vpop.f32.mrf.mxu1 }
 0x3b3   : > { %6457 = vst [vmem:[%s8994_s26 + $0x288] sm:$0xff] %v3764_v31  ;;  %v5669_v61 = vsel %vm11936_vm6, %v5668_v26, %v5664_v62  ;;  %v8186_v19 = vpop.eup %8185  ;;  %v3769_v9 = vmul.f32 %v8182_v47, %v3768_v60  ;;  %v11979_v24 = vadd.f32 1.0, %v8184_v17  ;;  %vm11981_vm2 = vcmp.eq.f32.partialorder %v3775_v11, 8.507059e+37  ;;  %vm3773_vm3 = vmor %vm3771_vm0, %vm3772_vm1  ;;  %v7384_v26 = vld [vmem:[%s8884_s7 + $0xf0] sm:$0xff] }
 0x3b4   : > { %6584 = vst [vmem:[%s8994_s26 + $0x680] sm:$0xff] %v5669_v61  ;;  %v5679_v25 = vsel %vm5678_vm15, %v8178_v15, %v5675_v58  ;;  %v3782_v13 = vmul.f32 %v8186_v19, %v11941_v44  ;;  %8189 = vpow2.f32 %v7170_v12  ;;  %v3778_v27 = vor.u32 1.1754944e-38, %v3777_v23  ;;  %1012 = vmatmul.bf16.gmra.mxu0 %v7384_v26  ;;  %1341 = vmatmul.bf16.gmra.mxu1 %v7384_v26 }
 0x3b5   : > { %v5684_v37 = vsel %vm11949_vm10, %v5683_v14, %v5679_v25  ;;  %v3770_v63 = vadd.f32 %v8182_v47, %v3769_v9  ;;  %v3792_v41 = vand.u32 2147483648, %v11941_v44  ;;  %vm3786_vm4 = vweird.f32 %v11941_v44 }
 0x3b6   : > { %6585 = vst [vmem:[%s8994_s26 + $0x688] sm:$0xff] %v5684_v37  ;;  %v3783_v18 = vsub.f32 1.0, %v3782_v13  ;;  %vm11991_vm5 = vcmp.eq.f32.partialorder %v3790_v5, 8.507059e+37  ;;  %8191 = vrcp.f32 %v11979_v24  ;;  %v5695_v4 = vand.u32 2147483647, %v11964_v16 }
 0x3b7   : > { %v3774_v34 = vsel %vm3773_vm3, %v8182_v47, %v3770_v63  ;;  %v7171_v10 = vmul.f32 -1.442695, %v1298_v48  ;;  %v1129_v28 = vadd.f32 %v1128_v43, %v8910_v1  ;;  %v8188_v36 = vpop.eup %8187  ;;  %vm3787_vm6 = vweird.f32 %v8186_v19  ;;  %v1459_v48 = vpop.f32.mrf.mxu3 }
 0x3b8   : > { %v3779_v46 = vsel %vm11981_vm2, %v3778_v27, %v3774_v34  ;;  %v3784_v22 = vmul.f32 %v8186_v19, %v3783_v18  ;;  %v1458_v29 = vadd.f32 %v1457_v20, %v8912_v2  ;;  %v3793_v33 = vor.u32 1.1754944e-38, %v3792_v41  ;;  %vm12011_vm8 = vmor %vm3786_vm4, %vm3787_vm6 }
 0x3b9   : > { %6458 = vst [vmem:[%s8994_s26 + $0x290] sm:$0xff] %v3779_v46  ;;  %v5687_v56 = vmul.f32 %v8188_v36, %v11964_v16  ;;  %vm5691_vm7 = vweird.f32 %v11964_v16  ;;  %8193 = vpow2.f32 %v7171_v10  ;;  %v5697_v15 = vand.u32 2147483648, %v11964_v16 }
 0x3ba   : > { %v8190_v6 = vpop.eup %8189  ;;  %v3785_v49 = vadd.f32 %v8186_v19, %v3784_v22  ;;  %v7298_v57 = vmul.f32 -1.442695, %v1129_v28  ;;  %v971_v40 = vadd.f32 %v970_v42, %v8910_v1  ;;  %v7299_v50 = vmul.f32 -1.442695, %v1458_v29  ;;  %v1302_v18 = vpop.f32.mrf.mxu1 }
 0x3bb   : > { %v5688_v54 = vsub.f32 1.0, %v5687_v56  ;;  %v12015_v35 = vadd.f32 1.0, %v8190_v6  ;;  %v1300_v52 = vadd.f32 %v1299_v45, %v8912_v2  ;;  %vm12020_vm9 = vcmp.eq.f32.partialorder %v5695_v4, 8.507059e+37 }
 0x3bc   : > { %v8192_v53 = vpop.eup %8191  ;;  %v3789_v7 = vsel %vm12011_vm8, %v8186_v19, %v3785_v49  ;;  %8195 = vpow2.f32 %v7298_v57  ;;  %v7172_v47 = vmul.f32 -1.442695, %v971_v40  ;;  %vm5692_vm10 = vweird.f32 %v8188_v36 }
 0x3bd   : > { %v3794_v51 = vsel %vm11991_vm5, %v3793_v33, %v3789_v7  ;;  %v5689_v39 = vmul.f32 %v8188_v36, %v5688_v54  ;;  %v5702_v14 = vmul.f32 %v8192_v53, %v11979_v24  ;;  %v5698_v3 = vor.u32 1.1754944e-38, %v5697_v15  ;;  %vm5693_vm11 = vmor %vm5691_vm7, %vm5692_vm10 }
 0x3be   : > { %6459 = vst [vmem:[%s8994_s26 + $0x298] sm:$0xff] %v3794_v51  ;;  %v5710_v21 = vand.u32 2147483647, %v11979_v24  ;;  %8197 = vrcp.f32 %v12015_v35  ;;  %v1131_v11 = vadd.f32 %v1130_v55, %v8910_v1  ;;  %v7173_v17 = vmul.f32 -1.442695, %v1300_v52 }
 0x3bf   : > { %v8194_v12 = vpop.eup %8193  ;;  %v5690_v32 = vadd.f32 %v8188_v36, %v5689_v39  ;;  %v5703_v30 = vsub.f32 1.0, %v5702_v14  ;;  %8199 = vpow2.f32 %v7299_v50  ;;  %v5712_v31 = vand.u32 2147483648, %v11979_v24 }
 0x3c0   : > { %v12034_v62 = vadd.f32 1.0, %v8194_v12  ;;  %8201 = vpow2.f32 %v7172_v47  ;;  %v1460_v60 = vadd.f32 %v1459_v48, %v8912_v2  ;;  %vm5707_vm12 = vweird.f32 %v8192_v53 }
 0x3c1   : > { %v5694_v23 = vsel %vm5693_vm11, %v8188_v36, %v5690_v32  ;;  %v5704_v43 = vmul.f32 %v8192_v53, %v5703_v30  ;;  %8203 = vpow2.f32 %v7173_v17  ;;  %v3805_v5 = vand.u32 2147483647, %v12015_v35 }
 0x3c2   : > { %v8196_v61 = vpop.eup %8195  ;;  %v5699_v58 = vsel %vm12020_vm9, %v5698_v3, %v5694_v23  ;;  %8205 = vrcp.f32 %v12034_v62  ;;  %vm5706_vm13 = vweird.f32 %v11979_v24  ;;  %v7300_v9 = vmul.f32 -1.442695, %v1131_v11  ;;  %v973_v24 = vpop.f32.mrf.mxu0 }
 0x3c3   : > { %6586 = vst [vmem:[%s8994_s26 + $0x690] sm:$0xff] %v5699_v58  ;;  %v5705_v16 = vadd.f32 %v8192_v53, %v5704_v43  ;;  %v12043_v19 = vadd.f32 1.0, %v8196_v61  ;;  %vm5708_vm14 = vmor %vm5706_vm13, %vm5707_vm12  ;;  %vm5711_vm15 = vcmp.eq.f32.partialorder %v5710_v21, 8.507059e+37  ;;  %v5713_v25 = vor.u32 1.1754944e-38, %v5712_v31 }
 0x3c4   : > { %v8198_v20 = vpop.eup %8197  ;;  %vm3801_vm0 = vweird.f32 %v12015_v35  ;;  %v3807_v59 = vand.u32 2147483648, %v12015_v35  ;;  %v3820_v27 = vand.u32 2147483647, %v12034_v62  ;;  %v7301_v41 = vmul.f32 -1.442695, %v1460_v60 }
 0x3c5   : > { %v8200_v13 = vpop.eup %8199  ;;  %v5709_v37 = vsel %vm5708_vm14, %v8192_v53, %v5705_v16  ;;  %v3797_v63 = vmul.f32 %v8198_v20, %v12015_v35  ;;  %vm12049_vm1 = vcmp.eq.f32.partialorder %v3805_v5, 8.507059e+37  ;;  %v3822_v10 = vand.u32 2147483648, %v12034_v62 }
 0x3c6   : > { %v8202_v8 = vpop.eup %8201  ;;  %v5714_v34 = vsel %vm5711_vm15, %v5713_v25, %v5709_v37  ;;  %8207 = vrcp.f32 %v12043_v19  ;;  %v12056_v36 = vadd.f32 1.0, %v8200_v13  ;;  %v3808_v29 = vor.u32 1.1754944e-38, %v3807_v59 }
 0x3c7   : > { %v8204_v28 = vpop.eup %8203  ;;  %6587 = vst [vmem:[%s8994_s26 + $0x698] sm:$0xff] %v5714_v34  ;;  %v3798_v42 = vsub.f32 1.0, %v3797_v63  ;;  %v12058_v46 = vadd.f32 1.0, %v8202_v8  ;;  %8209 = vpow2.f32 %v7300_v9  ;;  %vm3816_vm2 = vweird.f32 %v12034_v62  ;;  %v1133_v63 = vpop.f32.mrf.mxu2 }
 0x3c8   : > { %v8206_v22 = vpop.eup %8205  ;;  %v974_v45 = vadd.f32 %v973_v24, %v8910_v1  ;;  %v12063_v33 = vadd.f32 %v1302_v18, %v8912_v2  ;;  %vm3802_vm3 = vweird.f32 %v8198_v20  ;;  %vm12066_vm4 = vcmp.eq.f32.partialorder %v3820_v27, 8.507059e+37  ;;  %v12122_v27 = vpop.f32.mrf.mxu3 }
 0x3c9   : > { %v3799_v56 = vmul.f32 %v8198_v20, %v3798_v42  ;;  %v3812_v26 = vmul.f32 %v8206_v22, %v12034_v62  ;;  %8211 = vpow2.f32 %v7301_v41  ;;  %v3823_v6 = vor.u32 1.1754944e-38, %v3822_v10  ;;  %vm3803_vm5 = vmor %vm3801_vm0, %vm3802_vm3 }
 0x3ca   : > { %v5725_v49 = vand.u32 2147483647, %v12043_v19  ;;  %8213 = vrcp.f32 %v12056_v36  ;;  %v12072_v15 = vadd.f32 1.0, %v8204_v28  ;;  %v5727_v0 = vand.u32 2147483648, %v12043_v19 }
 0x3cb   : > { %v3800_v57 = vadd.f32 %v8198_v20, %v3799_v56  ;;  %v3813_v40 = vsub.f32 1.0, %v3812_v26  ;;  %8215 = vrcp.f32 %v12058_v46  ;;  %vm3817_vm6 = vweird.f32 %v8206_v22  ;;  %v975_v26 = vpop.f32.mrf.mxu0 }
 0x3cc   : > { %v8208_v54 = vpop.eup %8207  ;;  %vm5721_vm7 = vweird.f32 %v12043_v19  ;;  %v5742_v50 = vand.u32 2147483648, %v12056_v36  ;;  %v7174_v52 = vmul.f32 -1.442695, %v974_v45  ;;  %v5740_v47 = vand.u32 2147483647, %v12056_v36  ;;  %vm3818_vm10 = vmor %vm3816_vm2, %vm3817_vm6 }
 0x3cd   : > { %v8210_v55 = vpop.eup %8209  ;;  %v3804_v53 = vsel %vm3803_vm5, %v8198_v20, %v3800_v57  ;;  %v3814_v7 = vmul.f32 %v8206_v22, %v3813_v40  ;;  %v5717_v44 = vmul.f32 %v8208_v54, %v12043_v19  ;;  %vm12084_vm8 = vcmp.eq.f32.partialorder %v5725_v49, 8.507059e+37  ;;  %v7385_v40 = vld [vmem:[%s8884_s7 + $0xf8] sm:$0xff] }
 0x3ce   : > { %v3809_v51 = vsel %vm12049_vm1, %v3808_v29, %v3804_v53  ;;  %v3835_v39 = vand.u32 2147483647, %v12058_v46  ;;  %8217 = vrcp.f32 %v12072_v15  ;;  %v5728_v21 = vor.u32 1.1754944e-38, %v5727_v0  ;;  %v7417_v0 = vld [vmem:[%s8884_s7 + $0x1f8] sm:$0xff]  ;;  %1017 = vmatmul.bf16.gmra.mxu0 %v7385_v40  ;;  %1346 = vmatmul.bf16.gmra.mxu1 %v7385_v40 }
 0x3cf   : > { %v8212_v14 = vpop.eup %8211  ;;  %6460 = vst [vmem:[%s8994_s26 + $0x2a0] sm:$0xff] %v3809_v51  ;;  %v3815_v48 = vadd.f32 %v8206_v22, %v3814_v7  ;;  %v5718_v3 = vsub.f32 1.0, %v5717_v44  ;;  %vm5736_vm9 = vweird.f32 %v12056_v36  ;;  %v5743_v12 = vor.u32 1.1754944e-38, %v5742_v50  ;;  %1177 = vmatmul.bf16.gmra.mxu2 %v7417_v0  ;;  %1506 = vmatmul.bf16.gmra.mxu3 %v7417_v0 }
 0x3d0   : > { %v8214_v11 = vpop.eup %8213  ;;  %vm3831_vm11 = vweird.f32 %v12058_v46  ;;  %v3837_v32 = vand.u32 2147483648, %v12058_v46  ;;  %v12097_v30 = vadd.f32 1.0, %v8210_v55  ;;  %8219 = vpow2.f32 %v7174_v52 }
 0x3d1   : > { %v8216_v17 = vpop.eup %8215  ;;  %v3819_v31 = vsel %vm3818_vm10, %v8206_v22, %v3815_v48  ;;  %v5719_v60 = vmul.f32 %v8208_v54, %v5718_v3  ;;  %vm5722_vm12 = vweird.f32 %v8208_v54  ;;  %v5732_v23 = vmul.f32 %v8214_v11, %v12056_v36 }
 0x3d2   : > { %vm12100_vm13 = vcmp.eq.f32.partialorder %v5740_v47, 8.507059e+37  ;;  %v3824_v62 = vsel %vm12066_vm4, %v3823_v6, %v3819_v31  ;;  %v3827_v61 = vmul.f32 %v8216_v17, %v12058_v46  ;;  %vm12107_vm14 = vcmp.eq.f32.partialorder %v3835_v39, 8.507059e+37  ;;  %vm5723_vm15 = vmor %vm5721_vm7, %vm5722_vm12 }
 0x3d3   : > { %v3850_v5 = vand.u32 2147483647, %v12072_v15  ;;  %v3852_v16 = vand.u32 2147483648, %v12072_v15  ;;  %6461 = vst [vmem:[%s8994_s26 + $0x2a8] sm:$0xff] %v3824_v62  ;;  %v5720_v9 = vadd.f32 %v8208_v54, %v5719_v60  ;;  %v5733_v20 = vsub.f32 1.0, %v5732_v23 }
 0x3d4   : > { %8221 = vrcp.f32 %v12097_v30  ;;  %v12115_v25 = vadd.f32 1.0, %v8212_v14  ;;  %v12117_v59 = vpop.eup %8217  ;;  %vm5737_vm0 = vweird.f32 %v8214_v11  ;;  %v3828_v13 = vsub.f32 1.0, %v3827_v61 }
 0x3d5   : > { %v3838_v37 = vor.u32 1.1754944e-38, %v3837_v32  ;;  %vm3846_vm1 = vweird.f32 %v12072_v15  ;;  %v5724_v41 = vsel %vm5723_vm15, %v8208_v54, %v5720_v9  ;;  %v5734_v24 = vmul.f32 %v8214_v11, %v5733_v20  ;;  %vm5738_vm4 = vmor %vm5736_vm9, %vm5737_vm0 }
 0x3d6   : > { %vm3832_vm2 = vweird.f32 %v8216_v17  ;;  %v3842_v18 = vmul.f32 %v12117_v59, %v12072_v15  ;;  %v8220_v8 = vpop.eup %8219  ;;  %v5729_v19 = vsel %vm12084_vm8, %v5728_v21, %v5724_v41  ;;  %v3829_v34 = vmul.f32 %v8216_v17, %v3828_v13  ;;  %v1304_v15 = vpop.f32.mrf.mxu1 }
 0x3d7   : > { %vm12128_vm3 = vcmp.eq.f32.partialorder %v3850_v5, 8.507059e+37  ;;  %v3853_v10 = vor.u32 1.1754944e-38, %v3852_v16  ;;  %6588 = vst [vmem:[%s8994_s26 + $0x6a0] sm:$0xff] %v5729_v19  ;;  %v5735_v28 = vadd.f32 %v8214_v11, %v5734_v24  ;;  %v5755_v22 = vand.u32 2147483647, %v12097_v30  ;;  %vm3833_vm6 = vmor %vm3831_vm11, %vm3832_vm2  ;;  %v1135_v21 = vpop.f32.mrf.mxu2  ;;  %v978_v13 = vpop.f32.mrf.mxu0 }
 0x3d8   : > { %v3843_v42 = vsub.f32 1.0, %v3842_v18  ;;  %8223 = vrcp.f32 %v12115_v25  ;;  %v3830_v29 = vadd.f32 %v8216_v17, %v3829_v34  ;;  %vm3847_vm5 = vweird.f32 %v12117_v59 }
 0x3d9   : > { %v5757_v45 = vand.u32 2147483648, %v12097_v30  ;;  %v12140_v56 = vadd.f32 1.0, %v8220_v8  ;;  %v5739_v6 = vsel %vm5738_vm4, %v8214_v11, %v5735_v28  ;;  %v7175_v36 = vmul.f32 -1.442695, %v12063_v33  ;;  %vm3848_vm8 = vmor %vm3846_vm1, %vm3847_vm5  ;;  %v1464_v11 = vpop.f32.mrf.mxu3 }
 0x3da   : > { %v8222_v38 = vpop.eup %8221  ;;  %v3844_v49 = vmul.f32 %v12117_v59, %v3843_v42  ;;  %v1134_v57 = vadd.f32 %v1133_v63, %v8910_v1  ;;  %v5744_v54 = vsel %vm12100_vm13, %v5743_v12, %v5739_v6  ;;  %v3834_v50 = vsel %vm3833_vm6, %v8216_v17, %v3830_v29 }
 0x3db   : > { %v5747_v52 = vmul.f32 %v8222_v38, %v12097_v30  ;;  %vm5751_vm7 = vweird.f32 %v12097_v30  ;;  %6589 = vst [vmem:[%s8994_s26 + $0x6a8] sm:$0xff] %v5744_v54  ;;  %v3839_v46 = vsel %vm12107_vm14, %v3838_v37, %v3834_v50  ;;  %v5770_v33 = vand.u32 2147483647, %v12115_v25 }
 0x3dc   : > { %v3845_v55 = vadd.f32 %v12117_v59, %v3844_v49  ;;  %v5772_v53 = vand.u32 2147483648, %v12115_v25  ;;  %6462 = vst [vmem:[%s8994_s26 + $0x2b0] sm:$0xff] %v3839_v46  ;;  %vm12165_vm9 = vcmp.eq.f32.partialorder %v5755_v22, 8.507059e+37  ;;  %v5758_v47 = vor.u32 1.1754944e-38, %v5757_v45 }
 0x3dd   : > { %v5748_v7 = vsub.f32 1.0, %v5747_v52  ;;  %8225 = vrcp.f32 %v12140_v56  ;;  %vm5766_vm10 = vweird.f32 %v12115_v25  ;;  %v7302_v39 = vmul.f32 -1.442695, %v1134_v57 }
 0x3de   : > { %v8224_v51 = vpop.eup %8223  ;;  %v3849_v35 = vsel %vm3848_vm8, %v12117_v59, %v3845_v55  ;;  %8227 = vpow2.f32 %v7175_v36  ;;  %vm5752_vm11 = vweird.f32 %v8222_v38  ;;  %vm12176_vm12 = vcmp.eq.f32.partialorder %v5770_v33, 8.507059e+37 }
 0x3df   : > { %v3854_v14 = vsel %vm12128_vm3, %v3853_v10, %v3849_v35  ;;  %v5749_v48 = vmul.f32 %v8222_v38, %v5748_v7  ;;  %v5762_v3 = vmul.f32 %v8224_v51, %v12115_v25  ;;  %v5773_v32 = vor.u32 1.1754944e-38, %v5772_v53  ;;  %vm5753_vm13 = vmor %vm5751_vm7, %vm5752_vm11  ;;  %v1307_v25 = vpop.f32.mrf.mxu1  ;;  %v1138_v0 = vpop.f32.mrf.mxu2 }
 0x3e0   : > { %6463 = vst [vmem:[%s8994_s26 + $0x2b8] sm:$0xff] %v3854_v14  ;;  %8229 = vpow2.f32 %v7302_v39  ;;  %v1463_v17 = vadd.f32 %v12122_v27, %v8912_v2  ;;  %v976_v23 = vadd.f32 %v975_v26, %v8910_v1  ;;  %v1305_v43 = vadd.f32 %v1304_v15, %v8912_v2 }
 0x3e1   : > { %v5750_v31 = vadd.f32 %v8222_v38, %v5749_v48  ;;  %v5763_v60 = vsub.f32 1.0, %v5762_v3  ;;  %vm5767_vm14 = vweird.f32 %v8224_v51  ;;  %v1136_v61 = vadd.f32 %v1135_v21, %v8910_v1 }
 0x3e2   : > { %v7303_v62 = vmul.f32 -1.442695, %v1463_v17  ;;  %v1465_v58 = vadd.f32 %v1464_v11, %v8912_v2  ;;  %v7176_v20 = vmul.f32 -1.442695, %v976_v23  ;;  %v7177_v59 = vmul.f32 -1.442695, %v1305_v43  ;;  %vm5768_vm0 = vmor %vm5766_vm10, %vm5767_vm14 }
 0x3e3   : > { %v8226_v5 = vpop.eup %8225  ;;  %v5754_v16 = vsel %vm5753_vm13, %v8222_v38, %v5750_v31  ;;  %v5764_v9 = vmul.f32 %v8224_v51, %v5763_v60  ;;  %vm3861_vm15 = vweird.f32 %v12140_v56  ;;  %v7304_v24 = vmul.f32 -1.442695, %v1136_v61 }
 0x3e4   : > { %v8228_v37 = vpop.eup %8227  ;;  %v5759_v63 = vsel %vm12165_vm9, %v5758_v47, %v5754_v16  ;;  %v3857_v30 = vmul.f32 %v8226_v5, %v12140_v56  ;;  %8231 = vpow2.f32 %v7303_v62  ;;  %v3865_v19 = vand.u32 2147483647, %v12140_v56 }
 0x3e5   : > { %6590 = vst [vmem:[%s8994_s26 + $0x6b0] sm:$0xff] %v5759_v63  ;;  %v5765_v27 = vadd.f32 %v8224_v51, %v5764_v9  ;;  %v12193_v41 = vadd.f32 1.0, %v8228_v37  ;;  %8233 = vpow2.f32 %v7176_v20  ;;  %v979_v34 = vadd.f32 %v978_v13, %v8910_v1 }
 0x3e6   : > { %v8230_v18 = vpop.eup %8229  ;;  %v3858_v8 = vsub.f32 1.0, %v3857_v30  ;;  %8235 = vpow2.f32 %v7177_v59  ;;  %v3867_v10 = vand.u32 2147483648, %v12140_v56  ;;  %v7305_v28 = vmul.f32 -1.442695, %v1465_v58 }
 0x3e7   : > { %v5769_v4 = vsel %vm5768_vm0, %v8224_v51, %v5765_v27  ;;  %8237 = vrcp.f32 %v12193_v41  ;;  %vm3862_vm1 = vweird.f32 %v8226_v5  ;;  %v12204_v29 = vadd.f32 1.0, %v8230_v18 }
 0x3e8   : > { %v5774_v42 = vsel %vm12176_vm12, %v5773_v32, %v5769_v4  ;;  %v3859_v22 = vmul.f32 %v8226_v5, %v3858_v8  ;;  %8239 = vpow2.f32 %v7304_v24  ;;  %v3880_v38 = vand.u32 2147483647, %v12193_v41  ;;  %vm3863_vm2 = vmor %vm3861_vm15, %vm3862_vm1 }
 0x3e9   : > { %6591 = vst [vmem:[%s8994_s26 + $0x6b8] sm:$0xff] %v5774_v42  ;;  %8241 = vrcp.f32 %v12204_v29  ;;  %v7178_v6 = vmul.f32 -1.442695, %v979_v34  ;;  %v3868_v36 = vor.u32 1.1754944e-38, %v3867_v10  ;;  %v3882_v57 = vand.u32 2147483648, %v12193_v41 }
 0x3ea   : > { %v8232_v45 = vpop.eup %8231  ;;  %v3860_v26 = vadd.f32 %v8226_v5, %v3859_v22  ;;  %8243 = vpow2.f32 %v7305_v28  ;;  %vm3866_vm3 = vcmp.eq.f32.partialorder %v3865_v19, 8.507059e+37  ;;  %v1308_v46 = vadd.f32 %v1307_v25, %v8912_v2 }
 0x3eb   : > { %v8234_v49 = vpop.eup %8233  ;;  %v12212_v40 = vadd.f32 1.0, %v8232_v45  ;;  %vm3876_vm4 = vweird.f32 %v12193_v41  ;;  %v5785_v56 = vand.u32 2147483647, %v12204_v29  ;;  %vm12222_vm5 = vcmp.eq.f32.partialorder %v3880_v38, 8.507059e+37 }
 0x3ec   : > { %v8236_v54 = vpop.eup %8235  ;;  %v3864_v50 = vsel %vm3863_vm2, %v8226_v5, %v3860_v26  ;;  %v12214_v52 = vadd.f32 1.0, %v8234_v49  ;;  %v12227_v44 = vadd.f32 %v1138_v0, %v8910_v1  ;;  %v3883_v51 = vor.u32 1.1754944e-38, %v3882_v57  ;;  %v1467_v0 = vpop.f32.mrf.mxu3 }
 0x3ed   : > { %v8238_v55 = vpop.eup %8237  ;;  %v3869_v33 = vsel %vm3866_vm3, %v3868_v36, %v3864_v50  ;;  %8245 = vrcp.f32 %v12212_v40  ;;  %vm5781_vm6 = vweird.f32 %v12204_v29  ;;  %v5787_v35 = vand.u32 2147483648, %v12204_v29 }
 0x3ee   : > { %6464 = vst [vmem:[%s8994_s26 + $0x2c0] sm:$0xff] %v3869_v33  ;;  %v3872_v53 = vmul.f32 %v8238_v55, %v12193_v41  ;;  %8247 = vpow2.f32 %v7178_v6  ;;  %v8240_v47 = vpop.eup %8239  ;;  %v5800_v14 = vand.u32 2147483647, %v12212_v40  ;;  %v12233_v48 = vadd.f32 1.0, %v8236_v54 }
 0x3ef   : > { %8249 = vrcp.f32 %v12214_v52  ;;  %v8242_v39 = vpop.eup %8241  ;;  %v12235_v3 = vmul.f32 -1.442695, %v1308_v46  ;;  %vm3877_vm7 = vweird.f32 %v8238_v55  ;;  %vm12238_vm8 = vcmp.eq.f32.partialorder %v5785_v56, 8.507059e+37 }
 0x3f0   : > { %v3873_v15 = vsub.f32 1.0, %v3872_v53  ;;  %v8244_v21 = vpop.eup %8243  ;;  %v5777_v11 = vmul.f32 %v8242_v39, %v12204_v29  ;;  %v5802_v32 = vand.u32 2147483648, %v12212_v40  ;;  %v3895_v31 = vand.u32 2147483647, %v12214_v52  ;;  %vm3878_vm12 = vmor %vm3876_vm4, %vm3877_vm7 }
 0x3f1   : > { %v3897_v60 = vand.u32 2147483648, %v12214_v52  ;;  %8251 = vrcp.f32 %v12233_v48  ;;  %v5788_v62 = vor.u32 1.1754944e-38, %v5787_v35  ;;  %vm5796_vm9 = vweird.f32 %v12212_v40 }
 0x3f2   : > { %v3874_v17 = vmul.f32 %v8238_v55, %v3873_v15  ;;  %v5778_v43 = vsub.f32 1.0, %v5777_v11  ;;  %v12247_v61 = vadd.f32 1.0, %v8240_v47  ;;  %vm12250_vm10 = vcmp.eq.f32.partialorder %v5800_v14, 8.507059e+37 }
 0x3f3   : > { %v8246_v23 = vpop.eup %8245  ;;  %vm3891_vm11 = vweird.f32 %v12214_v52  ;;  %v12255_v20 = vadd.f32 1.0, %v8244_v21  ;;  %vm5782_vm13 = vweird.f32 %v8242_v39  ;;  %v5803_v37 = vor.u32 1.1754944e-38, %v5802_v32  ;;  %v1309_v32 = vpop.f32.mrf.mxu1 }
 0x3f4   : > { %v8248_v58 = vpop.eup %8247  ;;  %v3875_v5 = vadd.f32 %v8238_v55, %v3874_v17  ;;  %v5792_v16 = vmul.f32 %v8246_v23, %v12212_v40  ;;  %v5779_v13 = vmul.f32 %v8242_v39, %v5778_v43  ;;  %8253 = vrcp.f32 %v12247_v61  ;;  %vm5783_vm15 = vmor %vm5781_vm6, %vm5782_vm13 }
 0x3f5   : > { %v8250_v59 = vpop.eup %8249  ;;  %vm12262_vm14 = vcmp.eq.f32.partialorder %v3895_v31, 8.507059e+37  ;;  %v3898_v18 = vor.u32 1.1754944e-38, %v3897_v60  ;;  %v3910_v19 = vand.u32 2147483647, %v12233_v48  ;;  %v3912_v34 = vand.u32 2147483648, %v12233_v48 }
 0x3f6   : > { %v3879_v63 = vsel %vm3878_vm12, %v8238_v55, %v3875_v5  ;;  %v5793_v30 = vsub.f32 1.0, %v5792_v16  ;;  %v3887_v27 = vmul.f32 %v8250_v59, %v12214_v52  ;;  %v5780_v41 = vadd.f32 %v8242_v39, %v5779_v13  ;;  %v980_v55 = vpop.f32.mrf.mxu0 }
 0x3f7   : > { %v3884_v8 = vsel %vm12222_vm5, %v3883_v51, %v3879_v63  ;;  %v8252_v4 = vpop.eup %8251  ;;  %vm5797_vm0 = vweird.f32 %v8246_v23  ;;  %8255 = vrcp.f32 %v12255_v20  ;;  %vm3906_vm1 = vweird.f32 %v12233_v48  ;;  %v1469_v63 = vpop.f32.mrf.mxu3 }
 0x3f8   : > { %6465 = vst [vmem:[%s8994_s26 + $0x2c8] sm:$0xff] %v3884_v8  ;;  %v5794_v10 = vmul.f32 %v8246_v23, %v5793_v30  ;;  %v3888_v28 = vsub.f32 1.0, %v3887_v27  ;;  %v5784_v42 = vsel %vm5783_vm15, %v8242_v39, %v5780_v41  ;;  %v3902_v22 = vmul.f32 %v8252_v4, %v12233_v48  ;;  %vm5798_vm3 = vmor %vm5796_vm9, %vm5797_vm0 }
 0x3f9   : > { %v5815_v25 = vand.u32 2147483647, %v12247_v61  ;;  %v5789_v45 = vsel %vm12238_vm8, %v5788_v62, %v5784_v42  ;;  %vm3892_vm2 = vweird.f32 %v8250_v59  ;;  %vm12282_vm4 = vcmp.eq.f32.partialorder %v3910_v19, 8.507059e+37 }
 0x3fa   : > { %v5795_v26 = vadd.f32 %v8246_v23, %v5794_v10  ;;  %v3889_v38 = vmul.f32 %v8250_v59, %v3888_v28  ;;  %v8254_v29 = vpop.eup %8253  ;;  %6592 = vst [vmem:[%s8994_s26 + $0x6c0] sm:$0xff] %v5789_v45  ;;  %v3903_v6 = vsub.f32 1.0, %v3902_v22  ;;  %v3913_v36 = vor.u32 1.1754944e-38, %v3912_v34  ;;  %vm3893_vm6 = vmor %vm3891_vm11, %vm3892_vm2 }
 0x3fb   : > { %v5817_v57 = vand.u32 2147483648, %v12247_v61  ;;  %v5807_v46 = vmul.f32 %v8254_v29, %v12247_v61  ;;  %vm5811_vm5 = vweird.f32 %v12247_v61  ;;  %vm3907_vm7 = vweird.f32 %v8252_v4 }
 0x3fc   : > { %v5799_v54 = vsel %vm5798_vm3, %v8246_v23, %v5795_v26  ;;  %v3890_v50 = vadd.f32 %v8250_v59, %v3889_v38  ;;  %v3904_v33 = vmul.f32 %v8252_v4, %v3903_v6  ;;  %vm12294_vm8 = vcmp.eq.f32.partialorder %v5815_v25, 8.507059e+37  ;;  %vm3908_vm9 = vmor %vm3906_vm1, %vm3907_vm7 }
 0x3fd   : > { %v5804_v40 = vsel %vm12250_vm10, %v5803_v37, %v5799_v54  ;;  %v8256_v53 = vpop.eup %8255  ;;  %v5808_v47 = vsub.f32 1.0, %v5807_v46  ;;  %v12299_v51 = vadd.f32 1.0, %v8248_v58  ;;  %8257 = vpow2.f32 %v12235_v3 }
 0x3fe   : > { %6593 = vst [vmem:[%s8994_s26 + $0x6c8] sm:$0xff] %v5804_v40  ;;  %v3894_v7 = vsel %vm3893_vm6, %v8250_v59, %v3890_v50  ;;  %v3905_v39 = vadd.f32 %v8252_v4, %v3904_v33  ;;  %v5818_v52 = vor.u32 1.1754944e-38, %v5817_v57  ;;  %v5822_v15 = vmul.f32 %v8256_v53, %v12255_v20  ;;  %v983_v8 = vpop.f32.mrf.mxu0 }
 0x3ff   : > { %v3899_v35 = vsel %vm12262_vm14, %v3898_v18, %v3894_v7  ;;  %v5809_v14 = vmul.f32 %v8254_v29, %v5808_v47  ;;  %vm5812_vm10 = vweird.f32 %v8254_v29  ;;  %v5830_v21 = vand.u32 2147483647, %v12255_v20 }
 0x400   : > { %6466 = vst [vmem:[%s8994_s26 + $0x2d0] sm:$0xff] %v3899_v35  ;;  %8259 = vrcp.f32 %v12299_v51  ;;  %v3909_v11 = vsel %vm3908_vm9, %v8252_v4, %v3905_v39  ;;  %v5823_v3 = vsub.f32 1.0, %v5822_v15  ;;  %vm5826_vm11 = vweird.f32 %v12255_v20  ;;  %vm5813_vm12 = vmor %vm5811_vm5, %vm5812_vm10 }
 0x401   : > { %v7306_v12 = vmul.f32 -1.442695, %v12227_v44  ;;  %v3914_v17 = vsel %vm12282_vm4, %v3913_v36, %v3909_v11  ;;  %v5810_v31 = vadd.f32 %v8254_v29, %v5809_v14  ;;  %v5832_v48 = vand.u32 2147483648, %v12255_v20  ;;  %v1140_v44 = vpop.f32.mrf.mxu2 }
 0x402   : > { %v1468_v60 = vadd.f32 %v1467_v0, %v8912_v2  ;;  %6467 = vst [vmem:[%s8994_s26 + $0x2d8] sm:$0xff] %v3914_v17  ;;  %v5824_v23 = vmul.f32 %v8256_v53, %v5823_v3  ;;  %vm5827_vm13 = vweird.f32 %v8256_v53  ;;  %v981_v43 = vadd.f32 %v980_v55, %v8910_v1 }
 0x403   : > { %8261 = vpow2.f32 %v7306_v12  ;;  %v8258_v62 = vpop.eup %8257  ;;  %v5814_v58 = vsel %vm5813_vm12, %v8254_v29, %v5810_v31  ;;  %vm12320_vm14 = vcmp.eq.f32.partialorder %v5830_v21, 8.507059e+37  ;;  %v1310_v9 = vadd.f32 %v1309_v32, %v8912_v2  ;;  %vm5828_vm15 = vmor %vm5826_vm11, %vm5827_vm13  ;;  %v1312_v29 = vpop.f32.mrf.mxu1 }
 0x404   : > { %v7307_v16 = vmul.f32 -1.442695, %v1468_v60  ;;  %v5819_v61 = vsel %vm12294_vm8, %v5818_v52, %v5814_v58  ;;  %v5825_v59 = vadd.f32 %v8256_v53, %v5824_v23  ;;  %v12327_v13 = vadd.f32 1.0, %v8258_v62 }
 0x405   : > { %v7180_v37 = vmul.f32 -1.442695, %v981_v43  ;;  %6594 = vst [vmem:[%s8994_s26 + $0x6d0] sm:$0xff] %v5819_v61  ;;  %v5833_v27 = vor.u32 1.1754944e-38, %v5832_v48  ;;  %v7181_v24 = vmul.f32 -1.442695, %v1310_v9  ;;  %v1141_v18 = vadd.f32 %v1140_v44, %v8910_v1 }
 0x406   : > { %v8260_v30 = vpop.eup %8259  ;;  %8263 = vpow2.f32 %v7307_v16  ;;  %v5829_v41 = vsel %vm5828_vm15, %v8256_v53, %v5825_v59  ;;  %v3925_v34 = vand.u32 2147483647, %v12299_v51  ;;  %v3927_v10 = vand.u32 2147483648, %v12299_v51 }
 0x407   : > { %v3917_v19 = vmul.f32 %v8260_v30, %v12299_v51  ;;  %8265 = vrcp.f32 %v12327_v13  ;;  %v5834_v4 = vsel %vm12320_vm14, %v5833_v27, %v5829_v41  ;;  %v1470_v20 = vadd.f32 %v1469_v63, %v8912_v2 }
 0x408   : > { %6595 = vst [vmem:[%s8994_s26 + $0x6d8] sm:$0xff] %v5834_v4  ;;  %8267 = vpow2.f32 %v7180_v37  ;;  %v984_v22 = vadd.f32 %v983_v8, %v8910_v1  ;;  %v7308_v45 = vmul.f32 -1.442695, %v1141_v18  ;;  %vm3921_vm0 = vweird.f32 %v12299_v51 }
 0x409   : > { %v8262_v28 = vpop.eup %8261  ;;  %v3918_v42 = vsub.f32 1.0, %v3917_v19  ;;  %8269 = vpow2.f32 %v7181_v24  ;;  %vm3922_vm1 = vweird.f32 %v8260_v30  ;;  %vm12346_vm2 = vcmp.eq.f32.partialorder %v3925_v34, 8.507059e+37  ;;  %v1143_v32 = vpop.f32.mrf.mxu2 }
 0x40a   : > { %v12343_v25 = vadd.f32 1.0, %v8262_v28  ;;  %v3928_v49 = vor.u32 1.1754944e-38, %v3927_v10  ;;  %vm3936_vm3 = vweird.f32 %v12327_v13  ;;  %v7309_v36 = vmul.f32 -1.442695, %v1470_v20  ;;  %vm3923_vm4 = vmor %vm3921_vm0, %vm3922_vm1 }
 0x40b   : > { %v3919_v26 = vmul.f32 %v8260_v30, %v3918_v42  ;;  %v3940_v54 = vand.u32 2147483647, %v12327_v13  ;;  %v7182_v46 = vmul.f32 -1.442695, %v984_v22  ;;  %v3942_v40 = vand.u32 2147483648, %v12327_v13 }
 0x40c   : > { %v8264_v6 = vpop.eup %8263  ;;  %8271 = vrcp.f32 %v12343_v25  ;;  %v1313_v33 = vadd.f32 %v1312_v29, %v8912_v2  ;;  %v5845_v7 = vand.u32 2147483647, %v12343_v25  ;;  %v5847_v47 = vand.u32 2147483648, %v12343_v25 }
 0x40d   : > { %v8266_v57 = vpop.eup %8265  ;;  %v3920_v0 = vadd.f32 %v8260_v30, %v3919_v26  ;;  %v12353_v50 = vadd.f32 1.0, %v8264_v6  ;;  %8273 = vpow2.f32 %v7308_v45  ;;  %vm12366_vm6 = vcmp.eq.f32.partialorder %v3940_v54, 8.507059e+37 }
 0x40e   : > { %v3932_v55 = vmul.f32 %v8266_v57, %v12327_v13  ;;  %v8268_v56 = vpop.eup %8267  ;;  %vm3937_vm5 = vweird.f32 %v8266_v57  ;;  %v3943_v17 = vor.u32 1.1754944e-38, %v3942_v40  ;;  %vm5841_vm7 = vweird.f32 %v12343_v25 }
 0x40f   : > { %v3924_v53 = vsel %vm3923_vm4, %v8260_v30, %v3920_v0  ;;  %8275 = vrcp.f32 %v12353_v50  ;;  %v8270_v51 = vpop.eup %8269  ;;  %v12363_v52 = vadd.f32 1.0, %v8268_v56  ;;  %v5860_v3 = vand.u32 2147483647, %v12353_v50  ;;  %vm3938_vm9 = vmor %vm3936_vm3, %vm3937_vm5 }
 0x410   : > { %v3929_v35 = vsel %vm12346_vm2, %v3928_v49, %v3924_v53  ;;  %v3933_v39 = vsub.f32 1.0, %v3932_v55  ;;  %8277 = vpow2.f32 %v7309_v36  ;;  %v12370_v14 = vadd.f32 1.0, %v8270_v51  ;;  %v985_v51 = vpop.f32.mrf.mxu0 }
 0x411   : > { %6468 = vst [vmem:[%s8994_s26 + $0x2e0] sm:$0xff] %v3929_v35  ;;  %8279 = vpow2.f32 %v7182_v46  ;;  %v5862_v12 = vand.u32 2147483648, %v12353_v50  ;;  %v7183_v48 = vmul.f32 -1.442695, %v1313_v33  ;;  %vm12377_vm8 = vcmp.eq.f32.partialorder %v5845_v7, 8.507059e+37  ;;  %v1472_v46 = vpop.f32.mrf.mxu3 }
 0x412   : > { %v8272_v21 = vpop.eup %8271  ;;  %v3934_v11 = vmul.f32 %v8266_v57, %v3933_v39  ;;  %8281 = vrcp.f32 %v12363_v52  ;;  %v5848_v44 = vor.u32 1.1754944e-38, %v5847_v47  ;;  %vm5856_vm10 = vweird.f32 %v12353_v50 }
 0x413   : > { %v5837_v31 = vmul.f32 %v8272_v21, %v12343_v25  ;;  %v8274_v60 = vpop.eup %8273  ;;  %8283 = vrcp.f32 %v12370_v14  ;;  %v3955_v5 = vand.u32 2147483647, %v12363_v52  ;;  %v12388_v16 = vadd.f32 %v1143_v32, %v8910_v1 }
 0x414   : > { %v3935_v23 = vadd.f32 %v8266_v57, %v3934_v11  ;;  %vm5842_vm11 = vweird.f32 %v8272_v21  ;;  %vm12391_vm12 = vcmp.eq.f32.partialorder %v5860_v3, 8.507059e+37  ;;  %v5863_v13 = vor.u32 1.1754944e-38, %v5862_v12 }
 0x415   : > { %v8276_v62 = vpop.eup %8275  ;;  %v5838_v58 = vsub.f32 1.0, %v5837_v31  ;;  %v3957_v24 = vand.u32 2147483648, %v12363_v52  ;;  %v12398_v18 = vadd.f32 1.0, %v8274_v60  ;;  %vm3951_vm13 = vweird.f32 %v12363_v52  ;;  %vm5843_vm0 = vmor %vm5841_vm7, %vm5842_vm11 }
 0x416   : > { %v8278_v9 = vpop.eup %8277  ;;  %v3939_v61 = vsel %vm3938_vm9, %v8266_v57, %v3935_v23  ;;  %v5852_v59 = vmul.f32 %v8276_v62, %v12353_v50  ;;  %v3970_v19 = vand.u32 2147483647, %v12370_v14  ;;  %8285 = vpow2.f32 %v7183_v48  ;;  %v1314_v48 = vpop.f32.mrf.mxu1 }
 0x417   : > { %v8280_v63 = vpop.eup %8279  ;;  %v3944_v30 = vsel %vm12366_vm6, %v3943_v17, %v3939_v61  ;;  %v5839_v27 = vmul.f32 %v8272_v21, %v5838_v58  ;;  %vm12404_vm14 = vcmp.eq.f32.partialorder %v3955_v5, 8.507059e+37  ;;  %vm3966_vm15 = vweird.f32 %v12370_v14 }
 0x418   : > { %v8282_v8 = vpop.eup %8281  ;;  %6469 = vst [vmem:[%s8994_s26 + $0x2e8] sm:$0xff] %v3944_v30  ;;  %v5853_v41 = vsub.f32 1.0, %v5852_v59  ;;  %8287 = vrcp.f32 %v12398_v18  ;;  %v12410_v20 = vadd.f32 1.0, %v8278_v9  ;;  %vm5857_vm1 = vweird.f32 %v8276_v62  ;;  %v1145_v30 = vpop.f32.mrf.mxu2 }
 0x419   : > { %v5840_v34 = vadd.f32 %v8272_v21, %v5839_v27  ;;  %v3947_v4 = vmul.f32 %v8282_v8, %v12363_v52  ;;  %v8284_v28 = vpop.eup %8283  ;;  %v3972_v22 = vand.u32 2147483648, %v12370_v14  ;;  %v12416_v45 = vadd.f32 1.0, %v8280_v63  ;;  %vm5858_vm2 = vmor %vm5856_vm10, %vm5857_vm1 }
 0x41a   : > { %v5854_v42 = vmul.f32 %v8276_v62, %v5853_v41  ;;  %v3958_v29 = vor.u32 1.1754944e-38, %v3957_v24  ;;  %v3962_v6 = vmul.f32 %v8284_v28, %v12370_v14  ;;  %v5875_v57 = vand.u32 2147483647, %v12398_v18  ;;  %v1474_v41 = vpop.f32.mrf.mxu3 }
 0x41b   : > { %v5844_v26 = vsel %vm5843_vm0, %v8272_v21, %v5840_v34  ;;  %v3948_v38 = vsub.f32 1.0, %v3947_v4  ;;  %v5877_v25 = vand.u32 2147483648, %v12398_v18  ;;  %vm3952_vm3 = vweird.f32 %v8282_v8 }
 0x41c   : > { %v5849_v49 = vsel %vm12377_vm8, %v5848_v44, %v5844_v26  ;;  %v5855_v36 = vadd.f32 %v8276_v62, %v5854_v42  ;;  %v3963_v54 = vsub.f32 1.0, %v3962_v6  ;;  %8289 = vrcp.f32 %v12410_v20  ;;  %v8286_v55 = vpop.eup %8285  ;;  %vm3953_vm6 = vmor %vm3951_vm13, %vm3952_vm3  ;;  %v988_v42 = vpop.f32.mrf.mxu0 }
 0x41d   : > { %6596 = vst [vmem:[%s8994_s26 + $0x6e0] sm:$0xff] %v5849_v49  ;;  %v3949_v0 = vmul.f32 %v8282_v8, %v3948_v38  ;;  %vm12427_vm4 = vcmp.eq.f32.partialorder %v3970_v19, 8.507059e+37  ;;  %v3973_v56 = vor.u32 1.1754944e-38, %v3972_v22  ;;  %8291 = vrcp.f32 %v12416_v45 }
 0x41e   : > { %v5859_v40 = vsel %vm5858_vm2, %v8276_v62, %v5855_v36  ;;  %v8288_v53 = vpop.eup %8287  ;;  %v3964_v47 = vmul.f32 %v8284_v28, %v3963_v54  ;;  %vm3967_vm5 = vweird.f32 %v8284_v28  ;;  %vm5871_vm7 = vweird.f32 %v12398_v18 }
 0x41f   : > { %v5864_v50 = vsel %vm12391_vm12, %v5863_v13, %v5859_v40  ;;  %v3950_v7 = vadd.f32 %v8282_v8, %v3949_v0  ;;  %v5867_v35 = vmul.f32 %v8288_v53, %v12398_v18  ;;  %vm12440_vm8 = vcmp.eq.f32.partialorder %v5875_v57, 8.507059e+37  ;;  %vm3968_vm9 = vmor %vm3966_vm15, %vm3967_vm5 }
 0x420   : > { %6597 = vst [vmem:[%s8994_s26 + $0x6e8] sm:$0xff] %v5864_v50  ;;  %v5878_v15 = vor.u32 1.1754944e-38, %v5877_v25  ;;  %v3965_v11 = vadd.f32 %v8284_v28, %v3964_v47  ;;  %v5890_v3 = vand.u32 2147483647, %v12410_v20  ;;  %v5892_v12 = vand.u32 2147483648, %v12410_v20  ;;  %v1148_v39 = vpop.f32.mrf.mxu2 }
 0x421   : > { %v3954_v21 = vsel %vm3953_vm6, %v8282_v8, %v3950_v7  ;;  %v5868_v32 = vsub.f32 1.0, %v5867_v35  ;;  %vm5886_vm10 = vweird.f32 %v12410_v20  ;;  %v3985_v17 = vand.u32 2147483647, %v12416_v45 }
 0x422   : > { %v3959_v52 = vsel %vm12404_vm14, %v3958_v29, %v3954_v21  ;;  %v12452_v31 = vadd.f32 1.0, %v8286_v55  ;;  %v8290_v60 = vpop.eup %8289  ;;  %v3969_v23 = vsel %vm3968_vm9, %v8284_v28, %v3965_v11  ;;  %vm3981_vm11 = vweird.f32 %v12416_v45 }
 0x423   : > { %6470 = vst [vmem:[%s8994_s26 + $0x2f0] sm:$0xff] %v3959_v52  ;;  %v7310_v43 = vmul.f32 -1.442695, %v12388_v16  ;;  %v1473_v44 = vadd.f32 %v1472_v46, %v8912_v2  ;;  %v8292_v14 = vpop.eup %8291  ;;  %v3974_v62 = vsel %vm12427_vm4, %v3973_v56, %v3969_v23  ;;  %v5869_v58 = vmul.f32 %v8288_v53, %v5868_v32  ;;  %v1317_v46 = vpop.f32.mrf.mxu1 }
 0x424   : > { %vm5872_vm12 = vweird.f32 %v8288_v53  ;;  %v5882_v5 = vmul.f32 %v8290_v60, %v12410_v20  ;;  %6471 = vst [vmem:[%s8994_s26 + $0x2f8] sm:$0xff] %v3974_v62  ;;  %vm12462_vm13 = vcmp.eq.f32.partialorder %v5890_v3, 8.507059e+37  ;;  %v5893_v61 = vor.u32 1.1754944e-38, %v5892_v12 }
 0x425   : > { %v3977_v59 = vmul.f32 %v8292_v14, %v12416_v45  ;;  %8293 = vrcp.f32 %v12452_v31  ;;  %v5870_v16 = vadd.f32 %v8288_v53, %v5869_v58  ;;  %vm12468_vm14 = vcmp.eq.f32.partialorder %v3985_v17, 8.507059e+37  ;;  %vm5873_vm15 = vmor %vm5871_vm7, %vm5872_vm12 }
 0x426   : > { %v5883_v37 = vsub.f32 1.0, %v5882_v5  ;;  %v3987_v63 = vand.u32 2147483648, %v12416_v45  ;;  %8295 = vpow2.f32 %v7310_v43  ;;  %v7311_v24 = vmul.f32 -1.442695, %v1473_v44 }
 0x427   : > { %v3978_v27 = vsub.f32 1.0, %v3977_v59  ;;  %v986_v8 = vadd.f32 %v985_v51, %v8910_v1  ;;  %v5874_v19 = vsel %vm5873_vm15, %v8288_v53, %v5870_v16  ;;  %vm5887_vm0 = vweird.f32 %v8290_v60 }
 0x428   : > { %v5884_v34 = vmul.f32 %v8290_v60, %v5883_v37  ;;  %vm3982_vm1 = vweird.f32 %v8292_v14  ;;  %v5879_v4 = vsel %vm12440_vm8, %v5878_v15, %v5874_v19  ;;  %8297 = vpow2.f32 %v7311_v24  ;;  %vm5888_vm2 = vmor %vm5886_vm10, %vm5887_vm0  ;;  %v1150_v13 = vpop.f32.mrf.mxu2 }
 0x429   : > { %v3979_v10 = vmul.f32 %v8292_v14, %v3978_v27  ;;  %v7184_v28 = vmul.f32 -1.442695, %v986_v8  ;;  %6598 = vst [vmem:[%s8994_s26 + $0x6f0] sm:$0xff] %v5879_v4  ;;  %v1315_v22 = vadd.f32 %v1314_v48, %v8912_v2  ;;  %v1146_v26 = vadd.f32 %v1145_v30, %v8910_v1  ;;  %vm3983_vm3 = vmor %vm3981_vm11, %vm3982_vm1 }
 0x42a   : > { %v5885_v18 = vadd.f32 %v8290_v60, %v5884_v34  ;;  %v1475_v38 = vadd.f32 %v1474_v41, %v8912_v2  ;;  %v3988_v49 = vor.u32 1.1754944e-38, %v3987_v63  ;;  %v4000_v36 = vand.u32 2147483647, %v12452_v31 }
 0x42b   : > { %v8294_v29 = vpop.eup %8293  ;;  %v3980_v6 = vadd.f32 %v8292_v14, %v3979_v10  ;;  %8299 = vpow2.f32 %v7184_v28  ;;  %v7185_v0 = vmul.f32 -1.442695, %v1315_v22  ;;  %v989_v54 = vadd.f32 %v988_v42, %v8910_v1 }
 0x42c   : > { %v5889_v57 = vsel %vm5888_vm2, %v8290_v60, %v5885_v18  ;;  %v3992_v25 = vmul.f32 %v8294_v29, %v12452_v31  ;;  %v8296_v20 = vpop.eup %8295  ;;  %v7312_v33 = vmul.f32 -1.442695, %v1146_v26  ;;  %v7313_v56 = vmul.f32 -1.442695, %v1475_v38 }
 0x42d   : > { %v5894_v55 = vsel %vm12462_vm13, %v5893_v61, %v5889_v57  ;;  %v3984_v40 = vsel %vm3983_vm3, %v8292_v14, %v3980_v6  ;;  %v12495_v50 = vadd.f32 1.0, %v8296_v20  ;;  %8301 = vpow2.f32 %v7185_v0 }
 0x42e   : > { %6599 = vst [vmem:[%s8994_s26 + $0x6f8] sm:$0xff] %v5894_v55  ;;  %v3989_v53 = vsel %vm12468_vm14, %v3988_v49, %v3984_v40  ;;  %v3993_v45 = vsub.f32 1.0, %v3992_v25  ;;  %v8298_v7 = vpop.eup %8297  ;;  %v4002_v47 = vand.u32 2147483648, %v12452_v31  ;;  %8303 = vpow2.f32 %v7312_v33  ;;  %v12546_v25 = vpop.f32.mrf.mxu3 }
 0x42f   : > { %6472 = vst [vmem:[%s8994_s26 + $0x300] sm:$0xff] %v3989_v53  ;;  %v1318_v51 = vadd.f32 %v1317_v46, %v8912_v2  ;;  %vm3996_vm4 = vweird.f32 %v12452_v31  ;;  %vm3997_vm5 = vweird.f32 %v8294_v29  ;;  %8305 = vrcp.f32 %v12495_v50 }
 0x430   : > { %v3994_v35 = vmul.f32 %v8294_v29, %v3993_v45  ;;  %v12502_v21 = vadd.f32 1.0, %v8298_v7  ;;  %v7186_v11 = vmul.f32 -1.442695, %v989_v54  ;;  %vm4001_vm6 = vcmp.eq.f32.partialorder %v4000_v36, 8.507059e+37  ;;  %vm3998_vm7 = vmor %vm3996_vm4, %vm3997_vm5 }
 0x431   : > { %v8300_v15 = vpop.eup %8299  ;;  %8307 = vpow2.f32 %v7313_v56  ;;  %v4003_v52 = vor.u32 1.1754944e-38, %v4002_v47  ;;  %v7187_v32 = vmul.f32 -1.442695, %v1318_v51  ;;  %v1149_v17 = vadd.f32 %v1148_v39, %v8910_v1 }
 0x432   : > { %v3995_v3 = vadd.f32 %v8294_v29, %v3994_v35  ;;  %v12504_v12 = vadd.f32 1.0, %v8300_v15  ;;  %8309 = vrcp.f32 %v12502_v21  ;;  %v5905_v60 = vand.u32 2147483647, %v12495_v50 }
 0x433   : > { %v8302_v31 = vpop.eup %8301  ;;  %v5907_v23 = vand.u32 2147483648, %v12495_v50  ;;  %vm5901_vm8 = vweird.f32 %v12495_v50  ;;  %v5920_v62 = vand.u32 2147483647, %v12502_v21  ;;  %v5922_v58 = vand.u32 2147483648, %v12502_v21 }
 0x434   : > { %v3999_v48 = vsel %vm3998_vm7, %v8294_v29, %v3995_v3  ;;  %8311 = vrcp.f32 %v12504_v12  ;;  %v8304_v43 = vpop.eup %8303  ;;  %v12515_v5 = vadd.f32 1.0, %v8302_v31  ;;  %v4015_v59 = vand.u32 2147483647, %v12504_v12  ;;  %v990_v3 = vpop.f32.mrf.mxu0 }
 0x435   : > { %v4004_v44 = vsel %vm4001_vm6, %v4003_v52, %v3999_v48  ;;  %8313 = vpow2.f32 %v7186_v11  ;;  %v8306_v14 = vpop.eup %8305  ;;  %v12517_v9 = vadd.f32 1.0, %v8304_v43  ;;  %v7314_v16 = vmul.f32 -1.442695, %v1149_v17 }
 0x436   : > { %6473 = vst [vmem:[%s8994_s26 + $0x308] sm:$0xff] %v4004_v44  ;;  %v5897_v61 = vmul.f32 %v8306_v14, %v12495_v50  ;;  %8315 = vpow2.f32 %v7187_v32  ;;  %vm12521_vm9 = vcmp.eq.f32.partialorder %v5905_v60, 8.507059e+37  ;;  %v5908_v63 = vor.u32 1.1754944e-38, %v5907_v23  ;;  %v1319_v23 = vpop.f32.mrf.mxu1 }
 0x437   : > { %v8308_v37 = vpop.eup %8307  ;;  %v4017_v30 = vand.u32 2147483648, %v12504_v12  ;;  %8317 = vrcp.f32 %v12515_v5  ;;  %vm5916_vm10 = vweird.f32 %v12502_v21  ;;  %vm4011_vm11 = vweird.f32 %v12504_v12 }
 0x438   : > { %v8310_v27 = vpop.eup %8309  ;;  %v5898_v24 = vsub.f32 1.0, %v5897_v61  ;;  %8319 = vrcp.f32 %v12517_v9  ;;  %vm5902_vm12 = vweird.f32 %v8306_v14  ;;  %vm12531_vm13 = vcmp.eq.f32.partialorder %v5920_v62, 8.507059e+37 }
 0x439   : > { %v5912_v41 = vmul.f32 %v8310_v27, %v12502_v21  ;;  %v5923_v34 = vor.u32 1.1754944e-38, %v5922_v58  ;;  %vm12536_vm14 = vcmp.eq.f32.partialorder %v4015_v59, 8.507059e+37  ;;  %v4030_v18 = vand.u32 2147483647, %v12515_v5  ;;  %vm5903_vm1 = vmor %vm5901_vm8, %vm5902_vm12 }
 0x43a   : > { %v8312_v8 = vpop.eup %8311  ;;  %v5899_v10 = vmul.f32 %v8306_v14, %v5898_v24  ;;  %v4018_v26 = vor.u32 1.1754944e-38, %v4017_v30  ;;  %v4032_v38 = vand.u32 2147483648, %v12515_v5  ;;  %v12542_v29 = vadd.f32 1.0, %v8308_v37 }
 0x43b   : > { %v8314_v4 = vpop.eup %8313  ;;  %v4007_v28 = vmul.f32 %v8312_v8, %v12504_v12  ;;  %v5913_v22 = vsub.f32 1.0, %v5912_v41  ;;  %vm5917_vm15 = vweird.f32 %v8310_v27  ;;  %vm4026_vm0 = vweird.f32 %v12515_v5 }
 0x43c   : > { %v8316_v6 = vpop.eup %8315  ;;  %v5900_v49 = vadd.f32 %v8306_v14, %v5899_v10  ;;  %v5935_v57 = vand.u32 2147483647, %v12517_v9  ;;  %vm4012_vm2 = vweird.f32 %v8312_v8  ;;  %vm5931_vm3 = vweird.f32 %v12517_v9  ;;  %vm5918_vm5 = vmor %vm5916_vm10, %vm5917_vm15 }
 0x43d   : > { %v4008_v36 = vsub.f32 1.0, %v4007_v28  ;;  %v8318_v0 = vpop.eup %8317  ;;  %v5914_v54 = vmul.f32 %v8310_v27, %v5913_v22  ;;  %8321 = vrcp.f32 %v12542_v29  ;;  %v12553_v46 = vadd.f32 1.0, %v8314_v4  ;;  %vm4013_vm7 = vmor %vm4011_vm11, %vm4012_vm2 }
 0x43e   : > { %v8320_v20 = vpop.eup %8319  ;;  %v5904_v55 = vsel %vm5903_vm1, %v8306_v14, %v5900_v49  ;;  %v4022_v33 = vmul.f32 %v8318_v0, %v12515_v5  ;;  %vm12556_vm4 = vcmp.eq.f32.partialorder %v4030_v18, 8.507059e+37  ;;  %8323 = vpow2.f32 %v7314_v16 }
 0x43f   : > { %v4009_v40 = vmul.f32 %v8312_v8, %v4008_v36  ;;  %v5909_v53 = vsel %vm12521_vm9, %v5908_v63, %v5904_v55  ;;  %v5915_v45 = vadd.f32 %v8310_v27, %v5914_v54  ;;  %v4033_v50 = vor.u32 1.1754944e-38, %v4032_v38  ;;  %v1479_v63 = vpop.f32.mrf.mxu3 }
 0x440   : > { %v5927_v7 = vmul.f32 %v8320_v20, %v12517_v9  ;;  %6600 = vst [vmem:[%s8994_s26 + $0x700] sm:$0xff] %v5909_v53  ;;  %v4023_v51 = vsub.f32 1.0, %v4022_v33  ;;  %vm12567_vm6 = vcmp.eq.f32.partialorder %v5935_v57, 8.507059e+37  ;;  %v5937_v39 = vand.u32 2147483648, %v12517_v9  ;;  %v993_v57 = vpop.f32.mrf.mxu0  ;;  %v1322_v33 = vpop.f32.mrf.mxu1 }
 0x441   : > { %v4010_v47 = vadd.f32 %v8312_v8, %v4009_v40  ;;  %v5919_v15 = vsel %vm5918_vm5, %v8310_v27, %v5915_v45  ;;  %8325 = vrcp.f32 %v12553_v46  ;;  %v12576_v21 = vadd.f32 1.0, %v8316_v6 }
 0x442   : > { %v5928_v11 = vsub.f32 1.0, %v5927_v7  ;;  %v5924_v52 = vsel %vm12531_vm13, %v5923_v34, %v5919_v15  ;;  %v4024_v17 = vmul.f32 %v8318_v0, %v4023_v51  ;;  %vm4027_vm8 = vweird.f32 %v8318_v0 }
 0x443   : > { %v4014_v32 = vsel %vm4013_vm7, %v8312_v8, %v4010_v47  ;;  %v8322_v31 = vpop.eup %8321  ;;  %6601 = vst [vmem:[%s8994_s26 + $0x708] sm:$0xff] %v5924_v52  ;;  %vm5932_vm9 = vweird.f32 %v8320_v20  ;;  %v5950_v60 = vand.u32 2147483647, %v12542_v29  ;;  %v5938_v14 = vor.u32 1.1754944e-38, %v5937_v39  ;;  %vm4028_vm11 = vmor %vm4026_vm0, %vm4027_vm8 }
 0x444   : > { %v4019_v48 = vsel %vm12536_vm14, %v4018_v26, %v4014_v32  ;;  %v5929_v12 = vmul.f32 %v8320_v20, %v5928_v11  ;;  %v8324_v43 = vpop.eup %8323  ;;  %v4025_v44 = vadd.f32 %v8318_v0, %v4024_v17  ;;  %v5942_v62 = vmul.f32 %v8322_v31, %v12542_v29  ;;  %vm5933_vm12 = vmor %vm5931_vm3, %vm5932_vm9 }
 0x445   : > { %6474 = vst [vmem:[%s8994_s26 + $0x310] sm:$0xff] %v4019_v48  ;;  %vm5946_vm10 = vweird.f32 %v12542_v29  ;;  %v5952_v61 = vand.u32 2147483648, %v12542_v29  ;;  %v4045_v59 = vand.u32 2147483647, %v12553_v46  ;;  %8327 = vrcp.f32 %v12576_v21 }
 0x446   : > { %v5930_v58 = vadd.f32 %v8320_v20, %v5929_v12  ;;  %v4029_v16 = vsel %vm4028_vm11, %v8318_v0, %v4025_v44  ;;  %v5943_v37 = vsub.f32 1.0, %v5942_v62  ;;  %vm4041_vm13 = vweird.f32 %v12553_v46 }
 0x447   : > { %v4047_v5 = vand.u32 2147483648, %v12553_v46  ;;  %v8326_v30 = vpop.eup %8325  ;;  %v4034_v27 = vsel %vm12556_vm4, %v4033_v50, %v4029_v16  ;;  %vm12599_vm14 = vcmp.eq.f32.partialorder %v5950_v60, 8.507059e+37  ;;  %v12603_v41 = vadd.f32 1.0, %v8324_v43  ;;  %v1482_v52 = vpop.f32.mrf.mxu3 }
 0x448   : > { %v5934_v24 = vsel %vm5933_vm12, %v8320_v20, %v5930_v58  ;;  %6475 = vst [vmem:[%s8994_s26 + $0x318] sm:$0xff] %v4034_v27  ;;  %v5944_v19 = vmul.f32 %v8322_v31, %v5943_v37  ;;  %vm5947_vm15 = vweird.f32 %v8322_v31  ;;  %v4037_v34 = vmul.f32 %v8326_v30, %v12553_v46  ;;  %v995_v16 = vpop.f32.mrf.mxu0  ;;  %v1324_v27 = vpop.f32.mrf.mxu1 }
 0x449   : > { %v5939_v9 = vsel %vm12567_vm6, %v5938_v14, %v5934_v24  ;;  %v5953_v4 = vor.u32 1.1754944e-38, %v5952_v61  ;;  %vm12610_vm0 = vcmp.eq.f32.partialorder %v4045_v59, 8.507059e+37  ;;  %v4060_v28 = vand.u32 2147483647, %v12576_v21  ;;  %vm5948_vm2 = vmor %vm5946_vm10, %vm5947_vm15 }
 0x44a   : > { %6602 = vst [vmem:[%s8994_s26 + $0x710] sm:$0xff] %v5939_v9  ;;  %8329 = vrcp.f32 %v12603_v41  ;;  %v5945_v42 = vadd.f32 %v8322_v31, %v5944_v19  ;;  %v4038_v18 = vsub.f32 1.0, %v4037_v34  ;;  %v4048_v22 = vor.u32 1.1754944e-38, %v4047_v5 }
 0x44b   : > { %vm4056_vm1 = vweird.f32 %v12576_v21  ;;  %v8328_v26 = vpop.eup %8327  ;;  %v1478_v38 = vadd.f32 %v12546_v25, %v8912_v2  ;;  %v991_v6 = vadd.f32 %v990_v3, %v8910_v1  ;;  %v1320_v49 = vadd.f32 %v1319_v23, %v8912_v2  ;;  %v1153_v3 = vpop.f32.mrf.mxu2 }
 0x44c   : > { %v1151_v36 = vadd.f32 %v1150_v13, %v8910_v1  ;;  %v5949_v0 = vsel %vm5948_vm2, %v8322_v31, %v5945_v42  ;;  %v4039_v54 = vmul.f32 %v8326_v30, %v4038_v18  ;;  %vm4042_vm3 = vweird.f32 %v8326_v30 }
 0x44d   : > { %v4052_v20 = vmul.f32 %v8328_v26, %v12576_v21  ;;  %v5954_v29 = vsel %vm12599_vm14, %v5953_v4, %v5949_v0  ;;  %vm12627_vm4 = vcmp.eq.f32.partialorder %v4060_v28, 8.507059e+37  ;;  %v4062_v25 = vand.u32 2147483648, %v12576_v21  ;;  %vm4043_vm5 = vmor %vm4041_vm13, %vm4042_vm3 }
 0x44e   : > { %v7315_v40 = vmul.f32 -1.442695, %v1478_v38  ;;  %6603 = vst [vmem:[%s8994_s26 + $0x718] sm:$0xff] %v5954_v29  ;;  %v4040_v56 = vadd.f32 %v8326_v30, %v4039_v54  ;;  %v7188_v45 = vmul.f32 -1.442695, %v991_v6  ;;  %v1480_v51 = vadd.f32 %v1479_v63, %v8912_v2 }
 0x44f   : > { %v4053_v53 = vsub.f32 1.0, %v4052_v20  ;;  %v7189_v50 = vmul.f32 -1.442695, %v1320_v49  ;;  %v7316_v47 = vmul.f32 -1.442695, %v1151_v36  ;;  %v994_v35 = vadd.f32 %v993_v57, %v8910_v1 }
 0x450   : > { %v8330_v7 = vpop.eup %8329  ;;  %8331 = vpow2.f32 %v7315_v40  ;;  %v4044_v39 = vsel %vm4043_vm5, %v8326_v30, %v4040_v56  ;;  %vm4057_vm6 = vweird.f32 %v8328_v26  ;;  %v4063_v17 = vor.u32 1.1754944e-38, %v4062_v25 }
 0x451   : > { %v4054_v15 = vmul.f32 %v8328_v26, %v4053_v53  ;;  %v5957_v11 = vmul.f32 %v8330_v7, %v12603_v41  ;;  %v4049_v32 = vsel %vm12610_vm0, %v4048_v22, %v4044_v39  ;;  %8333 = vpow2.f32 %v7188_v45  ;;  %vm4058_vm7 = vmor %vm4056_vm1, %vm4057_vm6  ;;  %v1484_v22 = vpop.f32.mrf.mxu3 }
 0x452   : > { %v7317_v46 = vmul.f32 -1.442695, %v1480_v51  ;;  %6476 = vst [vmem:[%s8994_s26 + $0x320] sm:$0xff] %v4049_v32  ;;  %8335 = vpow2.f32 %v7189_v50  ;;  %v1323_v12 = vadd.f32 %v1322_v33, %v8912_v2  ;;  %v5967_v60 = vand.u32 2147483648, %v12603_v41 }
 0x453   : > { %v4055_v31 = vadd.f32 %v8328_v26, %v4054_v15  ;;  %v5958_v48 = vsub.f32 1.0, %v5957_v11  ;;  %8337 = vpow2.f32 %v7316_v47  ;;  %v7190_v23 = vmul.f32 -1.442695, %v994_v35  ;;  %v1155_v18 = vpop.f32.mrf.mxu2 }
 0x454   : > { %v1154_v43 = vadd.f32 %v1153_v3, %v8910_v1  ;;  %vm5962_vm8 = vweird.f32 %v8330_v7  ;;  %v5965_v62 = vand.u32 2147483647, %v12603_v41  ;;  %vm5961_vm9 = vweird.f32 %v12603_v41 }
 0x455   : > { %v4059_v44 = vsel %vm4058_vm7, %v8328_v26, %v4055_v31  ;;  %v5959_v14 = vmul.f32 %v8330_v7, %v5958_v48  ;;  %v7191_v21 = vmul.f32 -1.442695, %v1323_v12  ;;  %v1483_v59 = vadd.f32 %v1482_v52, %v8912_v2  ;;  %vm5963_vm10 = vmor %vm5961_vm9, %vm5962_vm8 }
 0x456   : > { %v8332_v58 = vpop.eup %8331  ;;  %v4064_v61 = vsel %vm12627_vm4, %v4063_v17, %v4059_v44  ;;  %8339 = vpow2.f32 %v7317_v46  ;;  %v7318_v13 = vmul.f32 -1.442695, %v1154_v43  ;;  %v5968_v30 = vor.u32 1.1754944e-38, %v5967_v60 }
 0x457   : > { %6477 = vst [vmem:[%s8994_s26 + $0x328] sm:$0xff] %v4064_v61  ;;  %v5960_v37 = vadd.f32 %v8330_v7, %v5959_v14  ;;  %v12652_v5 = vadd.f32 1.0, %v8332_v58  ;;  %v8334_v63 = vpop.eup %8333  ;;  %8341 = vpow2.f32 %v7190_v23  ;;  %vm5966_vm11 = vcmp.eq.f32.partialorder %v5965_v62, 8.507059e+37 }
 0x458   : > { %v8336_v24 = vpop.eup %8335  ;;  %v996_v41 = vadd.f32 %v995_v16, %v8910_v1  ;;  %v12656_v34 = vadd.f32 1.0, %v8334_v63  ;;  %v7319_v28 = vmul.f32 -1.442695, %v1483_v59  ;;  %v1325_v42 = vadd.f32 %v1324_v27, %v8912_v2 }
 0x459   : > { %v5964_v8 = vsel %vm5963_vm10, %v8330_v7, %v5960_v37  ;;  %8343 = vrcp.f32 %v12652_v5  ;;  %v8338_v9 = vpop.eup %8337  ;;  %v12658_v4 = vadd.f32 1.0, %v8336_v24  ;;  %v5980_v26 = vand.u32 2147483647, %v12652_v5 }
 0x45a   : > { %v5969_v19 = vsel %vm5966_vm11, %v5968_v30, %v5964_v8  ;;  %8345 = vpow2.f32 %v7191_v21  ;;  %v12661_v10 = vadd.f32 1.0, %v8338_v9  ;;  %v5982_v6 = vand.u32 2147483648, %v12652_v5 }
 0x45b   : > { %6604 = vst [vmem:[%s8994_s26 + $0x720] sm:$0xff] %v5969_v19  ;;  %8347 = vpow2.f32 %v7318_v13  ;;  %v12668_v49 = vmul.f32 -1.442695, %v996_v41  ;;  %vm5976_vm12 = vweird.f32 %v12652_v5  ;;  %v12673_v57 = vadd.f32 %v1155_v18, %v8910_v1 }
 0x45c   : > { %8349 = vrcp.f32 %v12656_v34  ;;  %v8340_v38 = vpop.eup %8339  ;;  %v12676_v0 = vadd.f32 %v1484_v22, %v8912_v2  ;;  %v4075_v20 = vand.u32 2147483647, %v12656_v34  ;;  %v4077_v29 = vand.u32 2147483648, %v12656_v34 }
 0x45d   : > { %8351 = vrcp.f32 %v12658_v4  ;;  %v8342_v36 = vpop.eup %8341  ;;  %v12680_v55 = vmul.f32 -1.442695, %v1325_v42  ;;  %vm12683_vm13 = vcmp.eq.f32.partialorder %v5980_v26, 8.507059e+37  ;;  %v4090_v56 = vand.u32 2147483647, %v12658_v4 }
 0x45e   : > { %8353 = vrcp.f32 %v12661_v10  ;;  %v4092_v53 = vand.u32 2147483648, %v12658_v4  ;;  %v12689_v45 = vadd.f32 1.0, %v8340_v38  ;;  %v5983_v7 = vor.u32 1.1754944e-38, %v5982_v6 }
 0x45f   : > { %v8344_v54 = vpop.eup %8343  ;;  %8355 = vpow2.f32 %v7319_v28  ;;  %v5995_v47 = vand.u32 2147483647, %v12661_v10  ;;  %v5997_v51 = vand.u32 2147483648, %v12661_v10  ;;  %v12695_v35 = vadd.f32 1.0, %v8342_v36 }
 0x460   : > { %v8346_v25 = vpop.eup %8345  ;;  %v5972_v40 = vmul.f32 %v8344_v54, %v12652_v5  ;;  %vm4071_vm14 = vweird.f32 %v12656_v34  ;;  %vm4086_vm15 = vweird.f32 %v12658_v4  ;;  %8357 = vrcp.f32 %v12689_v45 }
 0x461   : > { %v12691_v50 = vpop.eup %8347  ;;  %vm12701_vm0 = vcmp.eq.f32.partialorder %v4075_v20, 8.507059e+37  ;;  %v4078_v32 = vor.u32 1.1754944e-38, %v4077_v29  ;;  %vm5991_vm1 = vweird.f32 %v12661_v10  ;;  %8359 = vrcp.f32 %v12695_v35 }
 0x462   : > { %v8350_v39 = vpop.eup %8349  ;;  %v5973_v15 = vsub.f32 1.0, %v5972_v40  ;;  %v12707_v17 = vadd.f32 1.0, %v8346_v25  ;;  %vm5977_vm2 = vweird.f32 %v8344_v54  ;;  %vm12710_vm3 = vcmp.eq.f32.partialorder %v4090_v56, 8.507059e+37 }
 0x463   : > { %v8352_v11 = vpop.eup %8351  ;;  %v4067_v3 = vmul.f32 %v8350_v39, %v12656_v34  ;;  %v4093_v60 = vor.u32 1.1754944e-38, %v4092_v53  ;;  %vm12715_vm4 = vcmp.eq.f32.partialorder %v5995_v47, 8.507059e+37  ;;  %v5998_v62 = vor.u32 1.1754944e-38, %v5997_v51  ;;  %vm5978_vm6 = vmor %vm5976_vm12, %vm5977_vm2 }
 0x464   : > { %v8354_v46 = vpop.eup %8353  ;;  %v5974_v31 = vmul.f32 %v8344_v54, %v5973_v15  ;;  %v4082_v48 = vmul.f32 %v8352_v11, %v12658_v4  ;;  %v6010_v58 = vand.u32 2147483647, %v12689_v45  ;;  %vm4072_vm5 = vweird.f32 %v8350_v39 }
 0x465   : > { %v8356_v23 = vpop.eup %8355  ;;  %v4068_v43 = vsub.f32 1.0, %v4067_v3  ;;  %v5987_v44 = vmul.f32 %v8354_v46, %v12661_v10  ;;  %v6012_v59 = vand.u32 2147483648, %v12689_v45  ;;  %vm4087_vm7 = vweird.f32 %v8352_v11  ;;  %vm4073_vm11 = vmor %vm4071_vm14, %vm4072_vm5 }
 0x466   : > { %v5975_v61 = vadd.f32 %v8344_v54, %v5974_v31  ;;  %v4083_v21 = vsub.f32 1.0, %v4082_v48  ;;  %vm6006_vm8 = vweird.f32 %v12689_v45  ;;  %8361 = vrcp.f32 %v12707_v17  ;;  %v8358_v13 = vpop.eup %8357 }
 0x467   : > { %v4069_v16 = vmul.f32 %v8350_v39, %v4068_v43  ;;  %v5988_v37 = vsub.f32 1.0, %v5987_v44  ;;  %vm5992_vm9 = vweird.f32 %v8354_v46  ;;  %v4105_v27 = vand.u32 2147483647, %v12695_v35  ;;  %v8360_v24 = vpop.eup %8359 }
 0x468   : > { %v5979_v63 = vsel %vm5978_vm6, %v8344_v54, %v5975_v61  ;;  %v4084_v30 = vmul.f32 %v8352_v11, %v4083_v21  ;;  %v6002_v9 = vmul.f32 %v8358_v13, %v12689_v45  ;;  %vm12729_vm10 = vcmp.eq.f32.partialorder %v6010_v58, 8.507059e+37  ;;  %vm5993_vm14 = vmor %vm5991_vm1, %vm5992_vm9  ;;  %v1158_v58 = vpop.f32.mrf.mxu2 }
 0x469   : > { %v5984_v8 = vsel %vm12683_vm13, %v5983_v7, %v5979_v63  ;;  %v4070_v5 = vadd.f32 %v8350_v39, %v4069_v16  ;;  %v5989_v41 = vmul.f32 %v8354_v46, %v5988_v37  ;;  %v6013_v42 = vor.u32 1.1754944e-38, %v6012_v59  ;;  %vm4088_vm13 = vmor %vm4086_vm15, %vm4087_vm7 }
 0x46a   : > { %6605 = vst [vmem:[%s8994_s26 + $0x728] sm:$0xff] %v5984_v8  ;;  %v4085_v28 = vadd.f32 %v8352_v11, %v4084_v30  ;;  %v4097_v18 = vmul.f32 %v8360_v24, %v12695_v35  ;;  %vm4101_vm12 = vweird.f32 %v12695_v35  ;;  %v6003_v38 = vsub.f32 1.0, %v6002_v9 }
 0x46b   : > { %v4074_v22 = vsel %vm4073_vm11, %v8350_v39, %v4070_v5  ;;  %v5990_v26 = vadd.f32 %v8354_v46, %v5989_v41  ;;  %v4107_v6 = vand.u32 2147483648, %v12695_v35  ;;  %vm12748_vm2 = vcmp.eq.f32.partialorder %v4105_v27, 8.507059e+37  ;;  %v1327_v35 = vpop.f32.mrf.mxu1 }
 0x46c   : > { %v4079_v34 = vsel %vm12701_vm0, %v4078_v32, %v4074_v22  ;;  %v4089_v36 = vsel %vm4088_vm13, %v8352_v11, %v4085_v28  ;;  %v4098_v54 = vsub.f32 1.0, %v4097_v18  ;;  %v8362_v4 = vpop.eup %8361  ;;  %v6004_v40 = vmul.f32 %v8358_v13, %v6003_v38  ;;  %v1487_v38 = vpop.f32.mrf.mxu3 }
 0x46d   : > { %6478 = vst [vmem:[%s8994_s26 + $0x330] sm:$0xff] %v4079_v34  ;;  %v4094_v29 = vsel %vm12710_vm3, %v4093_v60, %v4089_v36  ;;  %v5994_v25 = vsel %vm5993_vm14, %v8354_v46, %v5990_v26  ;;  %vm6007_vm15 = vweird.f32 %v8358_v13  ;;  %vm4102_vm0 = vweird.f32 %v8360_v24  ;;  %v998_v46 = vpop.f32.mrf.mxu0 }
 0x46e   : > { %6479 = vst [vmem:[%s8994_s26 + $0x338] sm:$0xff] %v4094_v29  ;;  %v5999_v33 = vsel %vm12715_vm4, %v5998_v62, %v5994_v25  ;;  %v4099_v56 = vmul.f32 %v8360_v24, %v4098_v54  ;;  %v4112_v10 = vmul.f32 %v8362_v4, %v12707_v17  ;;  %v6005_v53 = vadd.f32 %v8358_v13, %v6004_v40  ;;  %vm6008_vm3 = vmor %vm6006_vm8, %vm6007_vm15 }
 0x46f   : > { %6606 = vst [vmem:[%s8994_s26 + $0x730] sm:$0xff] %v5999_v33  ;;  %vm4116_vm1 = vweird.f32 %v12707_v17  ;;  %v4122_v7 = vand.u32 2147483648, %v12707_v17  ;;  %v12763_v47 = vadd.f32 1.0, %v12691_v50  ;;  %v12767_v15 = vadd.f32 1.0, %v8356_v23  ;;  %vm4103_vm4 = vmor %vm4101_vm12, %vm4102_vm0 }
 0x470   : > { %v4100_v51 = vadd.f32 %v8360_v24, %v4099_v56  ;;  %v4113_v39 = vsub.f32 1.0, %v4112_v10  ;;  %8363 = vpow2.f32 %v12668_v49  ;;  %v6009_v11 = vsel %vm6008_vm3, %v8358_v13, %v6005_v53 }
 0x471   : > { %v4108_v3 = vor.u32 1.1754944e-38, %v4107_v6  ;;  %v4120_v52 = vand.u32 2147483647, %v12707_v17  ;;  %8365 = vrcp.f32 %v12763_v47  ;;  %v6014_v45 = vsel %vm12729_vm10, %v6013_v42, %v6009_v11 }
 0x472   : > { %v4104_v50 = vsel %vm4103_vm4, %v8360_v24, %v4100_v51  ;;  %v4114_v32 = vmul.f32 %v8362_v4, %v4113_v39  ;;  %vm4117_vm5 = vweird.f32 %v8362_v4  ;;  %6607 = vst [vmem:[%s8994_s26 + $0x738] sm:$0xff] %v6014_v45  ;;  %8367 = vrcp.f32 %v12767_v15 }
 0x473   : > { %v4109_v49 = vsel %vm12748_vm2, %v4108_v3, %v4104_v50  ;;  %v4123_v48 = vor.u32 1.1754944e-38, %v4122_v7  ;;  %vm4118_vm6 = vmor %vm4116_vm1, %vm4117_vm5  ;;  %8369 = vpow2.f32 %v12680_v55  ;;  %v7320_v12 = vmul.f32 -1.442695, %v12673_v57  ;;  %v1329_v40 = vpop.f32.mrf.mxu1 }
 0x474   : > { %6480 = vst [vmem:[%s8994_s26 + $0x340] sm:$0xff] %v4109_v49  ;;  %v4115_v31 = vadd.f32 %v8362_v4, %v4114_v32  ;;  %v7321_v60 = vmul.f32 -1.442695, %v12676_v0  ;;  %v999_v23 = vadd.f32 %v998_v46, %v8910_v1  ;;  %vm4121_vm7 = vcmp.eq.f32.partialorder %v4120_v52, 8.507059e+37 }
 0x475   : > { %v6025_v14 = vand.u32 2147483647, %v12763_v47  ;;  %v1328_v62 = vadd.f32 %v1327_v35, %v8912_v2  ;;  %v6027_v21 = vand.u32 2147483648, %v12763_v47  ;;  %8371 = vpow2.f32 %v7320_v12  ;;  %v1000_v54 = vpop.f32.mrf.mxu0 }
 0x476   : > { %v8364_v43 = vpop.eup %8363  ;;  %v4119_v44 = vsel %vm4118_vm6, %v8362_v4, %v4115_v31  ;;  %vm6021_vm8 = vweird.f32 %v12763_v47  ;;  %8373 = vpow2.f32 %v7321_v60  ;;  %v7194_v0 = vmul.f32 -1.442695, %v999_v23 }
 0x477   : > { %v8366_v61 = vpop.eup %8365  ;;  %v4124_v17 = vsel %vm4121_vm7, %v4123_v48, %v4119_v44  ;;  %v12790_v59 = vadd.f32 1.0, %v8364_v43  ;;  %v6040_v16 = vand.u32 2147483647, %v12767_v15  ;;  %v6042_v37 = vand.u32 2147483648, %v12767_v15 }
 0x478   : > { %6481 = vst [vmem:[%s8994_s26 + $0x348] sm:$0xff] %v4124_v17  ;;  %v6017_v57 = vmul.f32 %v8366_v61, %v12763_v47  ;;  %v8368_v55 = vpop.eup %8367  ;;  %v7195_v13 = vmul.f32 -1.442695, %v1328_v62  ;;  %vm12798_vm9 = vcmp.eq.f32.partialorder %v6025_v14, 8.507059e+37  ;;  %vm6036_vm10 = vweird.f32 %v12767_v15  ;;  %v1160_v47 = vpop.f32.mrf.mxu2 }
 0x479   : > { %8375 = vrcp.f32 %v12790_v59  ;;  %v6032_v27 = vmul.f32 %v8368_v55, %v12767_v15  ;;  %v8370_v24 = vpop.eup %8369  ;;  %vm6022_vm11 = vweird.f32 %v8366_v61  ;;  %v6028_v8 = vor.u32 1.1754944e-38, %v6027_v21 }
 0x47a   : > { %v6018_v63 = vsub.f32 1.0, %v6017_v57  ;;  %v4135_v5 = vand.u32 2147483647, %v12790_v59  ;;  %v4137_v41 = vand.u32 2147483648, %v12790_v59  ;;  %v12806_v28 = vadd.f32 1.0, %v8370_v24  ;;  %vm6023_vm14 = vmor %vm6021_vm8, %vm6022_vm11 }
 0x47b   : > { %v6033_v19 = vsub.f32 1.0, %v6032_v27  ;;  %8377 = vpow2.f32 %v7194_v0  ;;  %v8372_v42 = vpop.eup %8371  ;;  %vm12808_vm12 = vcmp.eq.f32.partialorder %v6040_v16, 8.507059e+37  ;;  %v6043_v22 = vor.u32 1.1754944e-38, %v6042_v37 }
 0x47c   : > { %v6019_v9 = vmul.f32 %v8366_v61, %v6018_v63  ;;  %8379 = vpow2.f32 %v7195_v13  ;;  %v1159_v26 = vadd.f32 %v1158_v58, %v8910_v1  ;;  %v8374_v6 = vpop.eup %8373  ;;  %vm6037_vm13 = vweird.f32 %v8368_v55 }
 0x47d   : > { %v6034_v36 = vmul.f32 %v8368_v55, %v6033_v19  ;;  %8381 = vrcp.f32 %v12806_v28  ;;  %vm4131_vm2 = vweird.f32 %v12790_v59  ;;  %v4138_v4 = vor.u32 1.1754944e-38, %v4137_v41  ;;  %vm6038_vm0 = vmor %vm6036_vm10, %vm6037_vm13 }
 0x47e   : > { %v6020_v34 = vadd.f32 %v8366_v61, %v6019_v9  ;;  %v12818_v29 = vadd.f32 1.0, %v8372_v42  ;;  %v12820_v25 = vadd.f32 1.0, %v8374_v6  ;;  %vm12823_vm15 = vcmp.eq.f32.partialorder %v4135_v5, 8.507059e+37 }
 0x47f   : > { %v8376_v20 = vpop.eup %8375  ;;  %v6035_v56 = vadd.f32 %v8368_v55, %v6034_v36  ;;  %v1488_v7 = vadd.f32 %v1487_v38, %v8912_v2  ;;  %v7322_v39 = vmul.f32 -1.442695, %v1159_v26  ;;  %v1001_v11 = vadd.f32 %v1000_v54, %v8910_v1 }
 0x480   : > { %v6024_v33 = vsel %vm6023_vm14, %v8366_v61, %v6020_v34  ;;  %v4127_v10 = vmul.f32 %v8376_v20, %v12790_v59  ;;  %8383 = vrcp.f32 %v12818_v29  ;;  %v4150_v50 = vand.u32 2147483647, %v12806_v28 }
 0x481   : > { %v6029_v51 = vsel %vm12798_vm9, %v6028_v8, %v6024_v33  ;;  %v8378_v3 = vpop.eup %8377  ;;  %v6039_v52 = vsel %vm6038_vm0, %v8368_v55, %v6035_v56  ;;  %v12838_v32 = vadd.f32 %v1329_v40, %v8912_v2  ;;  %v4152_v49 = vand.u32 2147483648, %v12806_v28 }
 0x482   : > { %6608 = vst [vmem:[%s8994_s26 + $0x740] sm:$0xff] %v6029_v51  ;;  %v4128_v45 = vsub.f32 1.0, %v4127_v10  ;;  %v8380_v46 = vpop.eup %8379  ;;  %v6044_v15 = vsel %vm12808_vm12, %v6043_v22, %v6039_v52  ;;  %8385 = vrcp.f32 %v12820_v25  ;;  %v1161_v35 = vadd.f32 %v1160_v47, %v8910_v1 }
 0x483   : > { %v8382_v31 = vpop.eup %8381  ;;  %6609 = vst [vmem:[%s8994_s26 + $0x748] sm:$0xff] %v6044_v15  ;;  %vm4132_vm1 = vweird.f32 %v8376_v20  ;;  %v6055_v12 = vand.u32 2147483647, %v12818_v29  ;;  %v6057_v60 = vand.u32 2147483648, %v12818_v29  ;;  %vm4146_vm3 = vweird.f32 %v12806_v28 }
 0x484   : > { %v4129_v48 = vmul.f32 %v8376_v20, %v4128_v45  ;;  %v4142_v23 = vmul.f32 %v8382_v31, %v12806_v28  ;;  %v6072_v43 = vand.u32 2147483648, %v12820_v25  ;;  %v12851_v44 = vadd.f32 1.0, %v8378_v3  ;;  %vm4133_vm5 = vmor %vm4131_vm2, %vm4132_vm1 }
 0x485   : > { %vm12853_vm4 = vcmp.eq.f32.partialorder %v4150_v50, 8.507059e+37  ;;  %v6070_v58 = vand.u32 2147483647, %v12820_v25  ;;  %v12858_v61 = vadd.f32 1.0, %v8380_v46  ;;  %v4153_v57 = vor.u32 1.1754944e-38, %v4152_v49 }
 0x486   : > { %v4130_v14 = vadd.f32 %v8376_v20, %v4129_v48  ;;  %v8384_v17 = vpop.eup %8383  ;;  %v4143_v21 = vsub.f32 1.0, %v4142_v23  ;;  %vm6051_vm6 = vweird.f32 %v12818_v29  ;;  %8387 = vrcp.f32 %v12851_v44  ;;  %v1332_v48 = vpop.f32.mrf.mxu1 }
 0x487   : > { %vm4147_vm7 = vweird.f32 %v8382_v31  ;;  %v6047_v55 = vmul.f32 %v8384_v17, %v12818_v29  ;;  %vm12865_vm8 = vcmp.eq.f32.partialorder %v6055_v12, 8.507059e+37  ;;  %v6058_v37 = vor.u32 1.1754944e-38, %v6057_v60 }
 0x488   : > { %v4134_v0 = vsel %vm4133_vm5, %v8376_v20, %v4130_v14  ;;  %vm6066_vm9 = vweird.f32 %v12820_v25  ;;  %v8386_v59 = vpop.eup %8385  ;;  %v4144_v63 = vmul.f32 %v8382_v31, %v4143_v21  ;;  %v6073_v30 = vor.u32 1.1754944e-38, %v6072_v43  ;;  %vm4148_vm14 = vmor %vm4146_vm3, %vm4147_vm7  ;;  %v1489_v20 = vpop.f32.mrf.mxu3 }
 0x489   : > { %v4139_v13 = vsel %vm12823_vm15, %v4138_v4, %v4134_v0  ;;  %8389 = vrcp.f32 %v12858_v61  ;;  %v6048_v27 = vsub.f32 1.0, %v6047_v55  ;;  %v6062_v24 = vmul.f32 %v8386_v59, %v12820_v25 }
 0x48a   : > { %6482 = vst [vmem:[%s8994_s26 + $0x350] sm:$0xff] %v4139_v13  ;;  %vm12875_vm10 = vcmp.eq.f32.partialorder %v6070_v58, 8.507059e+37  ;;  %vm4161_vm11 = vweird.f32 %v12851_v44  ;;  %v4165_v5 = vand.u32 2147483647, %v12851_v44  ;;  %v4145_v41 = vadd.f32 %v8382_v31, %v4144_v63 }
 0x48b   : > { %vm6052_vm12 = vweird.f32 %v8384_v17  ;;  %vm6067_vm13 = vweird.f32 %v8386_v59  ;;  %v4167_v9 = vand.u32 2147483648, %v12851_v44  ;;  %v6049_v19 = vmul.f32 %v8384_v17, %v6048_v27 }
 0x48c   : > { %v6063_v42 = vsub.f32 1.0, %v6062_v24  ;;  %8391 = vpow2.f32 %v7322_v39  ;;  %v7323_v18 = vmul.f32 -1.442695, %v1488_v7  ;;  %v8388_v22 = vpop.eup %8387  ;;  %v4149_v26 = vsel %vm4148_vm14, %v8382_v31, %v4145_v41  ;;  %vm6053_vm15 = vmor %vm6051_vm6, %vm6052_vm12  ;;  %v1003_v39 = vpop.f32.mrf.mxu0 }
 0x48d   : > { %vm4176_vm2 = vweird.f32 %v12858_v61  ;;  %v4180_v38 = vand.u32 2147483647, %v12858_v61  ;;  %v7196_v6 = vmul.f32 -1.442695, %v1001_v11  ;;  %v4154_v34 = vsel %vm12853_vm4, %v4153_v57, %v4149_v26  ;;  %vm6068_vm0 = vmor %vm6066_vm9, %vm6067_vm13 }
 0x48e   : > { %v6050_v36 = vadd.f32 %v8384_v17, %v6049_v19  ;;  %v6064_v54 = vmul.f32 %v8386_v59, %v6063_v42  ;;  %v4157_v28 = vmul.f32 %v8388_v22, %v12851_v44  ;;  %6483 = vst [vmem:[%s8994_s26 + $0x358] sm:$0xff] %v4154_v34  ;;  %v4182_v40 = vand.u32 2147483648, %v12858_v61 }
 0x48f   : > { %v8390_v4 = vpop.eup %8389  ;;  %8393 = vpow2.f32 %v7323_v18  ;;  %v7197_v33 = vmul.f32 -1.442695, %v12838_v32  ;;  %v7324_v56 = vmul.f32 -1.442695, %v1161_v35  ;;  %vm4162_vm1 = vweird.f32 %v8388_v22 }
 0x490   : > { %v6054_v10 = vsel %vm6053_vm15, %v8384_v17, %v6050_v36  ;;  %v6065_v53 = vadd.f32 %v8386_v59, %v6064_v54  ;;  %v4158_v7 = vsub.f32 1.0, %v4157_v28  ;;  %v4172_v47 = vmul.f32 %v8390_v4, %v12858_v61  ;;  %vm4163_vm4 = vmor %vm4161_vm11, %vm4162_vm1 }
 0x491   : > { %v6059_v51 = vsel %vm12865_vm8, %v6058_v37, %v6054_v10  ;;  %8395 = vpow2.f32 %v7196_v6  ;;  %v1490_v29 = vadd.f32 %v1489_v20, %v8912_v2  ;;  %vm4177_vm3 = vweird.f32 %v8390_v4 }
 0x492   : > { %v8392_v11 = vpop.eup %8391  ;;  %6610 = vst [vmem:[%s8994_s26 + $0x750] sm:$0xff] %v6059_v51  ;;  %v6069_v3 = vsel %vm6068_vm0, %v8386_v59, %v6065_v53  ;;  %v4159_v52 = vmul.f32 %v8388_v22, %v4158_v7  ;;  %v4173_v45 = vsub.f32 1.0, %v4172_v47  ;;  %8397 = vpow2.f32 %v7197_v33  ;;  %vm4178_vm7 = vmor %vm4176_vm2, %vm4177_vm3  ;;  %v1163_v33 = vpop.f32.mrf.mxu2 }
 0x493   : > { %v6074_v50 = vsel %vm12875_vm10, %v6073_v30, %v6069_v3  ;;  %v12906_v32 = vadd.f32 1.0, %v8392_v11  ;;  %8399 = vpow2.f32 %v7324_v56  ;;  %v7325_v25 = vmul.f32 -1.442695, %v1490_v29 }
 0x494   : > { %6611 = vst [vmem:[%s8994_s26 + $0x758] sm:$0xff] %v6074_v50  ;;  %v4160_v46 = vadd.f32 %v8388_v22, %v4159_v52  ;;  %v4174_v15 = vmul.f32 %v8390_v4, %v4173_v45  ;;  %v1004_v49 = vadd.f32 %v1003_v39, %v8910_v1  ;;  %vm4166_vm5 = vcmp.eq.f32.partialorder %v4165_v5, 8.507059e+37 }
 0x495   : > { %v8394_v35 = vpop.eup %8393  ;;  %v4168_v31 = vor.u32 1.1754944e-38, %v4167_v9  ;;  %8401 = vrcp.f32 %v12906_v32  ;;  %vm4181_vm6 = vcmp.eq.f32.partialorder %v4180_v38, 8.507059e+37  ;;  %v4183_v62 = vor.u32 1.1754944e-38, %v4182_v40 }
 0x496   : > { %v4164_v12 = vsel %vm4163_vm4, %v8388_v22, %v4160_v46  ;;  %v4175_v60 = vadd.f32 %v8390_v4, %v4174_v15  ;;  %v12914_v23 = vadd.f32 1.0, %v8394_v35  ;;  %8403 = vpow2.f32 %v7325_v25  ;;  %v1492_v35 = vpop.f32.mrf.mxu3 }
 0x497   : > { %v8396_v43 = vpop.eup %8395  ;;  %v4169_v14 = vsel %vm4166_vm5, %v4168_v31, %v4164_v12  ;;  %v7198_v44 = vmul.f32 -1.442695, %v1004_v49  ;;  %v6085_v21 = vand.u32 2147483647, %v12906_v32  ;;  %v1333_v57 = vadd.f32 %v1332_v48, %v8912_v2 }
 0x498   : > { %v8398_v58 = vpop.eup %8397  ;;  %6484 = vst [vmem:[%s8994_s26 + $0x360] sm:$0xff] %v4169_v14  ;;  %v4179_v17 = vsel %vm4178_vm7, %v8390_v4, %v4175_v60  ;;  %8405 = vrcp.f32 %v12914_v23  ;;  %v6087_v16 = vand.u32 2147483648, %v12906_v32  ;;  %v12923_v37 = vadd.f32 1.0, %v8396_v43 }
 0x499   : > { %v8400_v0 = vpop.eup %8399  ;;  %v4184_v55 = vsel %vm4181_vm6, %v4183_v62, %v4179_v17  ;;  %v12925_v61 = vadd.f32 1.0, %v8398_v58  ;;  %8407 = vpow2.f32 %v7198_v44  ;;  %v6100_v63 = vand.u32 2147483647, %v12914_v23  ;;  %v1005_v17 = vpop.f32.mrf.mxu0 }
 0x49a   : > { %6485 = vst [vmem:[%s8994_s26 + $0x368] sm:$0xff] %v4184_v55  ;;  %v12928_v59 = vadd.f32 1.0, %v8400_v0  ;;  %v6102_v30 = vand.u32 2147483648, %v12914_v23  ;;  %8409 = vrcp.f32 %v12923_v37  ;;  %vm6081_vm8 = vweird.f32 %v12906_v32 }
 0x49b   : > { %v8402_v13 = vpop.eup %8401  ;;  %vm12935_vm9 = vcmp.eq.f32.partialorder %v6085_v21, 8.507059e+37  ;;  %8411 = vrcp.f32 %v12925_v61  ;;  %v6088_v5 = vor.u32 1.1754944e-38, %v6087_v16  ;;  %vm6096_vm10 = vweird.f32 %v12914_v23  ;;  %v1334_v21 = vpop.f32.mrf.mxu1 }
 0x49c   : > { %v6077_v27 = vmul.f32 %v8402_v13, %v12906_v32  ;;  %v8404_v8 = vpop.eup %8403  ;;  %v4197_v41 = vand.u32 2147483648, %v12923_v37  ;;  %v7199_v9 = vmul.f32 -1.442695, %v1333_v57  ;;  %v4195_v18 = vand.u32 2147483647, %v12923_v37 }
 0x49d   : > { %v4212_v22 = vand.u32 2147483648, %v12925_v61  ;;  %8413 = vrcp.f32 %v12928_v59  ;;  %vm12946_vm11 = vcmp.eq.f32.partialorder %v6100_v63, 8.507059e+37  ;;  %v6103_v6 = vor.u32 1.1754944e-38, %v6102_v30 }
 0x49e   : > { %v8406_v19 = vpop.eup %8405  ;;  %v6078_v42 = vsub.f32 1.0, %v6077_v27  ;;  %v4210_v34 = vand.u32 2147483647, %v12925_v61  ;;  %vm6082_vm12 = vweird.f32 %v8402_v13  ;;  %vm4191_vm13 = vweird.f32 %v12923_v37 }
 0x49f   : > { %v6092_v26 = vmul.f32 %v8406_v19, %v12914_v23  ;;  %v8408_v36 = vpop.eup %8407  ;;  %v12952_v28 = vadd.f32 1.0, %v8404_v8  ;;  %v4198_v40 = vor.u32 1.1754944e-38, %v4197_v41  ;;  %vm4206_vm14 = vweird.f32 %v12925_v61  ;;  %vm6083_vm0 = vmor %vm6081_vm8, %vm6082_vm12  ;;  %v1165_v41 = vpop.f32.mrf.mxu2 }
 0x4a0   : > { %v6079_v54 = vmul.f32 %v8402_v13, %v6078_v42  ;;  %v8410_v20 = vpop.eup %8409  ;;  %8415 = vpow2.f32 %v7199_v9  ;;  %vm6097_vm2 = vweird.f32 %v8406_v19  ;;  %vm12956_vm15 = vcmp.eq.f32.partialorder %v4195_v18, 8.507059e+37 }
 0x4a1   : > { %v6093_v4 = vsub.f32 1.0, %v6092_v26  ;;  %v8412_v56 = vpop.eup %8411  ;;  %v4187_v53 = vmul.f32 %v8410_v20, %v12923_v37  ;;  %v4213_v47 = vor.u32 1.1754944e-38, %v4212_v22  ;;  %vm12964_vm1 = vcmp.eq.f32.partialorder %v4210_v34, 8.507059e+37  ;;  %vm6098_vm4 = vmor %vm6096_vm10, %vm6097_vm2  ;;  %v1008_v39 = vpop.f32.mrf.mxu0 }
 0x4a2   : > { %v6080_v10 = vadd.f32 %v8402_v13, %v6079_v54  ;;  %v4202_v29 = vmul.f32 %v8412_v56, %v12925_v61  ;;  %vm6111_vm3 = vweird.f32 %v12928_v59  ;;  %v6115_v11 = vand.u32 2147483647, %v12928_v59  ;;  %v1494_v54 = vpop.f32.mrf.mxu3 }
 0x4a3   : > { %v6094_v51 = vmul.f32 %v8406_v19, %v6093_v4  ;;  %v12970_v3 = vadd.f32 1.0, %v8408_v36  ;;  %v8414_v52 = vpop.eup %8413  ;;  %v4188_v50 = vsub.f32 1.0, %v4187_v53  ;;  %v6117_v32 = vand.u32 2147483648, %v12928_v59 }
 0x4a4   : > { %v6084_v45 = vsel %vm6083_vm0, %v8402_v13, %v6080_v10  ;;  %8417 = vrcp.f32 %v12952_v28  ;;  %v4203_v15 = vsub.f32 1.0, %v4202_v29  ;;  %v6107_v49 = vmul.f32 %v8414_v52, %v12928_v59 }
 0x4a5   : > { %v6089_v25 = vsel %vm12935_vm9, %v6088_v5, %v6084_v45  ;;  %v6095_v46 = vadd.f32 %v8406_v19, %v6094_v51  ;;  %v4189_v31 = vmul.f32 %v8410_v20, %v4188_v50  ;;  %vm4192_vm5 = vweird.f32 %v8410_v20 }
 0x4a6   : > { %6612 = vst [vmem:[%s8994_s26 + $0x760] sm:$0xff] %v6089_v25  ;;  %vm4207_vm6 = vweird.f32 %v8412_v56  ;;  %v1164_v48 = vadd.f32 %v1163_v33, %v8910_v1  ;;  %v8416_v12 = vpop.eup %8415  ;;  %v4204_v43 = vmul.f32 %v8412_v56, %v4203_v15  ;;  %v6108_v14 = vsub.f32 1.0, %v6107_v49  ;;  %vm4193_vm8 = vmor %vm4191_vm13, %vm4192_vm5 }
 0x4a7   : > { %v6099_v60 = vsel %vm6098_vm4, %v8406_v19, %v6095_v46  ;;  %8419 = vrcp.f32 %v12970_v3  ;;  %v4190_v44 = vadd.f32 %v8410_v20, %v4189_v31  ;;  %vm12985_vm7 = vcmp.eq.f32.partialorder %v6115_v11, 8.507059e+37  ;;  %vm4208_vm10 = vmor %vm4206_vm14, %vm4207_vm6  ;;  %v1337_v11 = vpop.f32.mrf.mxu1 }
 0x4a8   : > { %v6104_v62 = vsel %vm12946_vm11, %v6103_v6, %v6099_v60  ;;  %v6130_v23 = vand.u32 2147483647, %v12952_v28  ;;  %v4205_v57 = vadd.f32 %v8412_v56, %v4204_v43  ;;  %v6109_v0 = vmul.f32 %v8414_v52, %v6108_v14 }
 0x4a9   : > { %6613 = vst [vmem:[%s8994_s26 + $0x768] sm:$0xff] %v6104_v62  ;;  %vm6112_vm9 = vweird.f32 %v8414_v52  ;;  %v6118_v55 = vor.u32 1.1754944e-38, %v6117_v32  ;;  %v4194_v13 = vsel %vm4193_vm8, %v8410_v20, %v4190_v44  ;;  %v6132_v63 = vand.u32 2147483648, %v12952_v28 }
 0x4aa   : > { %v8418_v16 = vpop.eup %8417  ;;  %v12998_v30 = vadd.f32 1.0, %v8416_v12  ;;  %v7326_v27 = vmul.f32 -1.442695, %v1164_v48  ;;  %v4199_v37 = vsel %vm12956_vm15, %v4198_v40, %v4194_v13  ;;  %v4209_v24 = vsel %vm4208_vm10, %v8412_v56, %v4205_v57  ;;  %vm6113_vm11 = vmor %vm6111_vm3, %vm6112_vm9  ;;  %v1168_v48 = vpop.f32.mrf.mxu2 }
 0x4ab   : > { %v6110_v8 = vadd.f32 %v8414_v52, %v6109_v0  ;;  %v6122_v5 = vmul.f32 %v8418_v16, %v12952_v28  ;;  %6486 = vst [vmem:[%s8994_s26 + $0x370] sm:$0xff] %v4199_v37  ;;  %v4214_v61 = vsel %vm12964_vm1, %v4213_v47, %v4209_v24  ;;  %vm6126_vm12 = vweird.f32 %v12952_v28 }
 0x4ac   : > { %vm13010_vm13 = vcmp.eq.f32.partialorder %v6130_v23, 8.507059e+37  ;;  %v4225_v19 = vand.u32 2147483647, %v12970_v3  ;;  %6487 = vst [vmem:[%s8994_s26 + $0x378] sm:$0xff] %v4214_v61  ;;  %v4227_v26 = vand.u32 2147483648, %v12970_v3  ;;  %8421 = vrcp.f32 %v12998_v30 }
 0x4ad   : > { %v8420_v42 = vpop.eup %8419  ;;  %v6114_v18 = vsel %vm6113_vm11, %v8414_v52, %v6110_v8  ;;  %v6123_v22 = vsub.f32 1.0, %v6122_v5  ;;  %v6133_v38 = vor.u32 1.1754944e-38, %v6132_v63  ;;  %vm4221_vm14 = vweird.f32 %v12970_v3 }
 0x4ae   : > { %v6119_v59 = vsel %vm12985_vm7, %v6118_v55, %v6114_v18  ;;  %v4217_v6 = vmul.f32 %v8420_v42, %v12970_v3  ;;  %vm6127_vm2 = vweird.f32 %v8418_v16  ;;  %8423 = vpow2.f32 %v7326_v27 }
 0x4af   : > { %6614 = vst [vmem:[%s8994_s26 + $0x770] sm:$0xff] %v6119_v59  ;;  %v6124_v34 = vmul.f32 %v8418_v16, %v6123_v22  ;;  %v1493_v36 = vadd.f32 %v1492_v35, %v8912_v2  ;;  %vm13024_vm15 = vcmp.eq.f32.partialorder %v4225_v19, 8.507059e+37  ;;  %v1006_v40 = vadd.f32 %v1005_v17, %v8910_v1  ;;  %vm6128_vm0 = vmor %vm6126_vm12, %vm6127_vm2  ;;  %v1010_v19 = vpop.f32.mrf.mxu0  ;;  %v1339_v59 = vpop.f32.mrf.mxu1 }
 0x4b0   : > { %v4218_v20 = vsub.f32 1.0, %v4217_v6  ;;  %v1335_v33 = vadd.f32 %v1334_v21, %v8912_v2  ;;  %v4228_v10 = vor.u32 1.1754944e-38, %v4227_v26  ;;  %v1166_v7 = vadd.f32 %v1165_v41, %v8910_v1  ;;  %v1497_v21 = vpop.f32.mrf.mxu3 }
 0x4b1   : > { %v6125_v56 = vadd.f32 %v8418_v16, %v6124_v34  ;;  %v7327_v53 = vmul.f32 -1.442695, %v1493_v36  ;;  %vm4222_vm1 = vweird.f32 %v8420_v42  ;;  %v7200_v51 = vmul.f32 -1.442695, %v1006_v40 }
 0x4b2   : > { %v4219_v47 = vmul.f32 %v8420_v42, %v4218_v20  ;;  %v7201_v29 = vmul.f32 -1.442695, %v1335_v33  ;;  %v8422_v52 = vpop.eup %8421  ;;  %v7328_v50 = vmul.f32 -1.442695, %v1166_v7  ;;  %v1495_v32 = vadd.f32 %v1494_v54, %v8912_v2  ;;  %vm4223_vm4 = vmor %vm4221_vm14, %vm4222_vm1 }
 0x4b3   : > { %v6129_v45 = vsel %vm6128_vm0, %v8418_v16, %v6125_v56  ;;  %8425 = vpow2.f32 %v7327_v53  ;;  %v4232_v28 = vmul.f32 %v8422_v52, %v12998_v30  ;;  %vm4236_vm3 = vweird.f32 %v12998_v30 }
 0x4b4   : > { %v6134_v25 = vsel %vm13010_vm13, %v6133_v38, %v6129_v45  ;;  %v4220_v46 = vadd.f32 %v8420_v42, %v4219_v47  ;;  %v8424_v15 = vpop.eup %8423  ;;  %v4240_v49 = vand.u32 2147483647, %v12998_v30  ;;  %8427 = vpow2.f32 %v7200_v51 }
 0x4b5   : > { %6615 = vst [vmem:[%s8994_s26 + $0x778] sm:$0xff] %v6134_v25  ;;  %v1009_v35 = vadd.f32 %v1008_v39, %v8910_v1  ;;  %v1338_v31 = vadd.f32 %v1337_v11, %v8912_v2  ;;  %v4233_v60 = vsub.f32 1.0, %v4232_v28  ;;  %v13045_v43 = vadd.f32 1.0, %v8424_v15 }
 0x4b6   : > { %v4224_v12 = vsel %vm4223_vm4, %v8420_v42, %v4220_v46  ;;  %8429 = vpow2.f32 %v7201_v29  ;;  %v4242_v62 = vand.u32 2147483648, %v12998_v30  ;;  %v7329_v3 = vmul.f32 -1.442695, %v1495_v32 }
 0x4b7   : > { %v4229_v14 = vsel %vm13024_vm15, %v4228_v10, %v4224_v12  ;;  %8431 = vpow2.f32 %v7328_v50  ;;  %v4234_v44 = vmul.f32 %v8422_v52, %v4233_v60  ;;  %vm4237_vm5 = vweird.f32 %v8422_v52 }
 0x4b8   : > { %6488 = vst [vmem:[%s8994_s26 + $0x380] sm:$0xff] %v4229_v14  ;;  %8433 = vrcp.f32 %v13045_v43  ;;  %v1169_v58 = vadd.f32 %v1168_v48, %v8910_v1  ;;  %v7202_v17 = vmul.f32 -1.442695, %v1009_v35  ;;  %vm4241_vm6 = vcmp.eq.f32.partialorder %v4240_v49, 8.507059e+37  ;;  %vm4238_vm7 = vmor %vm4236_vm3, %vm4237_vm5 }
 0x4b9   : > { %v8426_v23 = vpop.eup %8425  ;;  %v4235_v57 = vadd.f32 %v8422_v52, %v4234_v44  ;;  %v7203_v55 = vmul.f32 -1.442695, %v1338_v31  ;;  %v4243_v13 = vor.u32 1.1754944e-38, %v4242_v62  ;;  %v6145_v63 = vand.u32 2147483647, %v13045_v43 }
 0x4ba   : > { %v13053_v0 = vadd.f32 1.0, %v8426_v23  ;;  %v8428_v16 = vpop.eup %8427  ;;  %v6147_v27 = vand.u32 2147483648, %v13045_v43  ;;  %8435 = vpow2.f32 %v7329_v3  ;;  %v7330_v8 = vmul.f32 -1.442695, %v1169_v58 }
 0x4bb   : > { %v4239_v24 = vsel %vm4238_vm7, %v8422_v52, %v4235_v57  ;;  %v1498_v5 = vadd.f32 %v1497_v21, %v8912_v2  ;;  %v13061_v9 = vadd.f32 1.0, %v8428_v16  ;;  %vm6141_vm8 = vweird.f32 %v13045_v43 }
 0x4bc   : > { %v8430_v37 = vpop.eup %8429  ;;  %8437 = vrcp.f32 %v13053_v0  ;;  %v4244_v61 = vsel %vm4241_vm6, %v4243_v13, %v4239_v24  ;;  %v6160_v26 = vand.u32 2147483647, %v13053_v0  ;;  %vm13072_vm9 = vcmp.eq.f32.partialorder %v6145_v63, 8.507059e+37 }
 0x4bd   : > { %v8432_v41 = vpop.eup %8431  ;;  %v13063_v30 = vadd.f32 1.0, %v8430_v37  ;;  %8439 = vpow2.f32 %v7202_v17  ;;  %6489 = vst [vmem:[%s8994_s26 + $0x388] sm:$0xff] %v4244_v61  ;;  %v6162_v38 = vand.u32 2147483648, %v13053_v0  ;;  %v1011_v6 = vadd.f32 %v1010_v19, %v8910_v1 }
 0x4be   : > { %v8434_v42 = vpop.eup %8433  ;;  %v13066_v18 = vadd.f32 1.0, %v8432_v41  ;;  %8441 = vpow2.f32 %v7203_v55  ;;  %v6148_v54 = vor.u32 1.1754944e-38, %v6147_v27  ;;  %v13079_v20 = vmul.f32 -1.442695, %v1498_v5 }
 0x4bf   : > { %v6137_v22 = vmul.f32 %v8434_v42, %v13045_v43  ;;  %8443 = vrcp.f32 %v13061_v9  ;;  %vm6156_vm10 = vweird.f32 %v13053_v0  ;;  %v4255_v40 = vand.u32 2147483647, %v13061_v9 }
 0x4c0   : > { %8445 = vrcp.f32 %v13063_v30  ;;  %v8436_v34 = vpop.eup %8435  ;;  %v4257_v33 = vand.u32 2147483648, %v13061_v9  ;;  %vm6142_vm11 = vweird.f32 %v8434_v42  ;;  %vm13086_vm12 = vcmp.eq.f32.partialorder %v6160_v26, 8.507059e+37 }
 0x4c1   : > { %v6138_v36 = vsub.f32 1.0, %v6137_v22  ;;  %8447 = vpow2.f32 %v7330_v8  ;;  %v4270_v47 = vand.u32 2147483647, %v13063_v30  ;;  %v6163_v29 = vor.u32 1.1754944e-38, %v6162_v38  ;;  %vm6143_vm2 = vmor %vm6141_vm8, %vm6142_vm11 }
 0x4c2   : > { %v8438_v4 = vpop.eup %8437  ;;  %8449 = vrcp.f32 %v13066_v18  ;;  %vm4251_vm13 = vweird.f32 %v13061_v9  ;;  %v13092_v39 = vadd.f32 1.0, %v8436_v34  ;;  %v13094_v11 = vmul.f32 -1.442695, %v1011_v6 }
 0x4c3   : > { %v8440_v56 = vpop.eup %8439  ;;  %v6139_v10 = vmul.f32 %v8434_v42, %v6138_v36  ;;  %v6152_v53 = vmul.f32 %v8438_v4, %v13053_v0  ;;  %vm4266_vm14 = vweird.f32 %v13063_v30  ;;  %v4272_v32 = vand.u32 2147483648, %v13063_v30 }
 0x4c4   : > { %v8442_v51 = vpop.eup %8441  ;;  %vm6157_vm15 = vweird.f32 %v8438_v4  ;;  %vm13102_vm0 = vcmp.eq.f32.partialorder %v4255_v40, 8.507059e+37  ;;  %v4258_v15 = vor.u32 1.1754944e-38, %v4257_v33  ;;  %v13106_v49 = vadd.f32 1.0, %v8440_v56 }
 0x4c5   : > { %v8444_v52 = vpop.eup %8443  ;;  %v6140_v45 = vadd.f32 %v8434_v42, %v6139_v10  ;;  %v6153_v50 = vsub.f32 1.0, %v6152_v53  ;;  %vm13109_vm1 = vcmp.eq.f32.partialorder %v4270_v47, 8.507059e+37  ;;  %vm6171_vm3 = vweird.f32 %v13066_v18  ;;  %vm6158_vm4 = vmor %vm6156_vm10, %vm6157_vm15 }
 0x4c6   : > { %v8446_v25 = vpop.eup %8445  ;;  %v4247_v46 = vmul.f32 %v8444_v52, %v13061_v9  ;;  %v6175_v3 = vand.u32 2147483647, %v13066_v18  ;;  %8451 = vrcp.f32 %v13092_v39  ;;  %v6177_v17 = vand.u32 2147483648, %v13066_v18 }
 0x4c7   : > { %v8448_v35 = vpop.eup %8447  ;;  %v6144_v31 = vsel %vm6143_vm2, %v8434_v42, %v6140_v45  ;;  %v6154_v48 = vmul.f32 %v8438_v4, %v6153_v50  ;;  %v4262_v12 = vmul.f32 %v8446_v25, %v13063_v30  ;;  %vm4252_vm5 = vweird.f32 %v8444_v52 }
 0x4c8   : > { %v8450_v43 = vpop.eup %8449  ;;  %v6149_v14 = vsel %vm13072_vm9, %v6148_v54, %v6144_v31  ;;  %v4248_v62 = vsub.f32 1.0, %v4247_v46  ;;  %8453 = vrcp.f32 %v13106_v49  ;;  %v13125_v57 = vadd.f32 1.0, %v8442_v51  ;;  %vm4253_vm7 = vmor %vm4251_vm13, %vm4252_vm5 }
 0x4c9   : > { %6616 = vst [vmem:[%s8994_s26 + $0x780] sm:$0xff] %v6149_v14  ;;  %v6155_v44 = vadd.f32 %v8438_v4, %v6154_v48  ;;  %v4263_v58 = vsub.f32 1.0, %v4262_v12  ;;  %v6167_v23 = vmul.f32 %v8450_v43, %v13066_v18  ;;  %vm4267_vm6 = vweird.f32 %v8446_v25  ;;  %v1013_v12 = vpop.f32.mrf.mxu0 }
 0x4ca   : > { %v4249_v21 = vmul.f32 %v8444_v52, %v4248_v62  ;;  %v4273_v37 = vor.u32 1.1754944e-38, %v4272_v32  ;;  %v6190_v24 = vand.u32 2147483647, %v13092_v39  ;;  %vm6172_vm8 = vweird.f32 %v8450_v43  ;;  %vm4268_vm10 = vmor %vm4266_vm14, %vm4267_vm6 }
 0x4cb   : > { %v6159_v55 = vsel %vm6158_vm4, %v8438_v4, %v6155_v44  ;;  %v4264_v16 = vmul.f32 %v8446_v25, %v4263_v58  ;;  %v6168_v13 = vsub.f32 1.0, %v6167_v23  ;;  %vm13133_vm9 = vcmp.eq.f32.partialorder %v6175_v3, 8.507059e+37  ;;  %v1342_v44 = vpop.f32.mrf.mxu1 }
 0x4cc   : > { %v6164_v63 = vsel %vm13086_vm12, %v6163_v29, %v6159_v55  ;;  %v4250_v27 = vadd.f32 %v8444_v52, %v4249_v21  ;;  %v8452_v41 = vpop.eup %8451  ;;  %v6178_v19 = vor.u32 1.1754944e-38, %v6177_v17  ;;  %vm6186_vm11 = vweird.f32 %v13092_v39  ;;  %vm6173_vm12 = vmor %vm6171_vm3, %vm6172_vm8 }
 0x4cd   : > { %6617 = vst [vmem:[%s8994_s26 + $0x788] sm:$0xff] %v6164_v63  ;;  %v4265_v0 = vadd.f32 %v8446_v25, %v4264_v16  ;;  %v6169_v8 = vmul.f32 %v8450_v43, %v6168_v13  ;;  %8455 = vrcp.f32 %v13125_v57  ;;  %v6182_v26 = vmul.f32 %v8452_v41, %v13092_v39 }
 0x4ce   : > { %v4254_v61 = vsel %vm4253_vm7, %v8444_v52, %v4250_v27  ;;  %v8454_v38 = vpop.eup %8453  ;;  %vm13150_vm13 = vcmp.eq.f32.partialorder %v6190_v24, 8.507059e+37  ;;  %v6192_v34 = vand.u32 2147483648, %v13092_v39  ;;  %vm4281_vm14 = vweird.f32 %v13106_v49  ;;  %v1170_v52 = vpop.f32.mrf.mxu2 }
 0x4cf   : > { %v4259_v9 = vsel %vm13102_vm0, %v4258_v15, %v4254_v61  ;;  %v4269_v42 = vsel %vm4268_vm10, %v8446_v25, %v4265_v0  ;;  %v6170_v22 = vadd.f32 %v8450_v43, %v6169_v8  ;;  %v6183_v54 = vsub.f32 1.0, %v6182_v26  ;;  %v1499_v25 = vpop.f32.mrf.mxu3 }
 0x4d0   : > { %6490 = vst [vmem:[%s8994_s26 + $0x390] sm:$0xff] %v4259_v9  ;;  %v4274_v30 = vsel %vm13109_vm1, %v4273_v37, %v4269_v42  ;;  %v4277_v4 = vmul.f32 %v8454_v38, %v13106_v49  ;;  %v4285_v40 = vand.u32 2147483647, %v13106_v49  ;;  %vm6187_vm2 = vweird.f32 %v8452_v41 }
 0x4d1   : > { %6491 = vst [vmem:[%s8994_s26 + $0x398] sm:$0xff] %v4274_v30  ;;  %v6174_v36 = vsel %vm6173_vm12, %v8450_v43, %v6170_v22  ;;  %v4287_v18 = vand.u32 2147483648, %v13106_v49  ;;  %v13162_v56 = vadd.f32 1.0, %v8448_v35  ;;  %v6184_v10 = vmul.f32 %v8452_v41, %v6183_v54  ;;  %vm6188_vm1 = vmor %vm6186_vm11, %vm6187_vm2 }
 0x4d2   : > { %v6179_v33 = vsel %vm13133_vm9, %v6178_v19, %v6174_v36  ;;  %v4278_v53 = vsub.f32 1.0, %v4277_v4  ;;  %8457 = vpow2.f32 %v13079_v20  ;;  %v1340_v7 = vadd.f32 %v1339_v59, %v8912_v2 }
 0x4d3   : > { %6618 = vst [vmem:[%s8994_s26 + $0x790] sm:$0xff] %v6179_v33  ;;  %v8456_v47 = vpop.eup %8455  ;;  %v6193_v51 = vor.u32 1.1754944e-38, %v6192_v34  ;;  %vm4296_vm15 = vweird.f32 %v13125_v57  ;;  %v4300_v29 = vand.u32 2147483647, %v13125_v57  ;;  %8459 = vrcp.f32 %v13162_v56 }
 0x4d4   : > { %v6185_v45 = vadd.f32 %v8452_v41, %v6184_v10  ;;  %v4279_v50 = vmul.f32 %v8454_v38, %v4278_v53  ;;  %vm4282_vm0 = vweird.f32 %v8454_v38  ;;  %v4292_v32 = vmul.f32 %v8456_v47, %v13125_v57 }
 0x4d5   : > { %vm13174_vm3 = vcmp.eq.f32.partialorder %v4285_v40, 8.507059e+37  ;;  %v4288_v46 = vor.u32 1.1754944e-38, %v4287_v18  ;;  %8461 = vpow2.f32 %v13094_v11  ;;  %v7205_v28 = vmul.f32 -1.442695, %v1340_v7  ;;  %vm4283_vm4 = vmor %vm4281_vm14, %vm4282_vm0 }
 0x4d6   : > { %v6189_v15 = vsel %vm6188_vm1, %v8452_v41, %v6185_v45  ;;  %v4280_v35 = vadd.f32 %v8454_v38, %v4279_v50  ;;  %v4293_v31 = vsub.f32 1.0, %v4292_v32  ;;  %v1171_v48 = vadd.f32 %v1170_v52, %v8910_v1  ;;  %v1173_v26 = vpop.f32.mrf.mxu2 }
 0x4d7   : > { %v6194_v60 = vsel %vm13150_vm13, %v6193_v51, %v6189_v15  ;;  %v4302_v39 = vand.u32 2147483648, %v13125_v57  ;;  %8463 = vpow2.f32 %v7205_v28  ;;  %v1500_v43 = vadd.f32 %v1499_v25, %v8912_v2  ;;  %v1502_v50 = vpop.f32.mrf.mxu3 }
 0x4d8   : > { %v8458_v11 = vpop.eup %8457  ;;  %6619 = vst [vmem:[%s8994_s26 + $0x798] sm:$0xff] %v6194_v60  ;;  %v4284_v14 = vsel %vm4283_vm4, %v8454_v38, %v4280_v35  ;;  %v4294_v62 = vmul.f32 %v8456_v47, %v4293_v31  ;;  %vm4297_vm5 = vweird.f32 %v8456_v47  ;;  %v7332_v3 = vmul.f32 -1.442695, %v1171_v48 }
 0x4d9   : > { %v8460_v58 = vpop.eup %8459  ;;  %v4289_v23 = vsel %vm13174_vm3, %v4288_v46, %v4284_v14  ;;  %v13189_v17 = vadd.f32 1.0, %v8458_v11  ;;  %v7333_v49 = vmul.f32 -1.442695, %v1500_v43  ;;  %v1014_v21 = vadd.f32 %v1013_v12, %v8910_v1  ;;  %vm4298_vm7 = vmor %vm4296_vm15, %vm4297_vm5 }
 0x4da   : > { %6492 = vst [vmem:[%s8994_s26 + $0x3a0] sm:$0xff] %v4289_v23  ;;  %v4295_v55 = vadd.f32 %v8456_v47, %v4294_v62  ;;  %vm4301_vm6 = vcmp.eq.f32.partialorder %v4300_v29, 8.507059e+37  ;;  %v6197_v16 = vmul.f32 %v8460_v58, %v13162_v56  ;;  %8465 = vpow2.f32 %v7332_v3 }
 0x4db   : > { %v8462_v13 = vpop.eup %8461  ;;  %v4303_v63 = vor.u32 1.1754944e-38, %v4302_v39  ;;  %v6205_v27 = vand.u32 2147483647, %v13162_v56  ;;  %8467 = vrcp.f32 %v13189_v17  ;;  %v1343_v37 = vadd.f32 %v1342_v44, %v8912_v2 }
 0x4dc   : > { %v4299_v24 = vsel %vm4298_vm7, %v8456_v47, %v4295_v55  ;;  %v6198_v0 = vsub.f32 1.0, %v6197_v16  ;;  %v13199_v8 = vadd.f32 1.0, %v8462_v13  ;;  %8469 = vpow2.f32 %v7333_v49  ;;  %v13249_v49 = vpop.f32.mrf.mxu0 }
 0x4dd   : > { %v8464_v5 = vpop.eup %8463  ;;  %v4304_v41 = vsel %vm4301_vm6, %v4303_v63, %v4299_v24  ;;  %vm6202_vm8 = vweird.f32 %v8460_v58  ;;  %v6207_v61 = vand.u32 2147483648, %v13162_v56  ;;  %v7206_v19 = vmul.f32 -1.442695, %v1014_v21 }
 0x4de   : > { %6493 = vst [vmem:[%s8994_s26 + $0x3a8] sm:$0xff] %v4304_v41  ;;  %v6199_v57 = vmul.f32 %v8460_v58, %v6198_v0  ;;  %v6220_v9 = vand.u32 2147483647, %v13189_v17  ;;  %v6222_v42 = vand.u32 2147483648, %v13189_v17  ;;  %8471 = vrcp.f32 %v13199_v8 }
 0x4df   : > { %vm6201_vm9 = vweird.f32 %v13162_v56  ;;  %v13207_v22 = vadd.f32 1.0, %v8464_v5  ;;  %vm6206_vm10 = vcmp.eq.f32.partialorder %v6205_v27, 8.507059e+37  ;;  %8473 = vpow2.f32 %v7206_v19 }
 0x4e0   : > { %v8466_v59 = vpop.eup %8465  ;;  %v6200_v38 = vadd.f32 %v8460_v58, %v6199_v57  ;;  %v7207_v30 = vmul.f32 -1.442695, %v1343_v37  ;;  %vm6203_vm11 = vmor %vm6201_vm9, %vm6202_vm8  ;;  %v6208_v34 = vor.u32 1.1754944e-38, %v6207_v61  ;;  %vm6216_vm12 = vweird.f32 %v13189_v17 }
 0x4e1   : > { %v8468_v6 = vpop.eup %8467  ;;  %v4315_v36 = vand.u32 2147483647, %v13199_v8  ;;  %8475 = vrcp.f32 %v13207_v22  ;;  %vm13214_vm13 = vcmp.eq.f32.partialorder %v6220_v9, 8.507059e+37  ;;  %v6223_v18 = vor.u32 1.1754944e-38, %v6222_v42 }
 0x4e2   : > { %v8470_v54 = vpop.eup %8469  ;;  %v6204_v4 = vsel %vm6203_vm11, %v8460_v58, %v6200_v38  ;;  %v6212_v40 = vmul.f32 %v8468_v6, %v13189_v17  ;;  %v1174_v56 = vadd.f32 %v1173_v26, %v8910_v1  ;;  %v4317_v53 = vand.u32 2147483648, %v13199_v8 }
 0x4e3   : > { %v6209_v10 = vsel %vm6206_vm10, %v6208_v34, %v6204_v4  ;;  %v13220_v7 = vadd.f32 1.0, %v8466_v59  ;;  %v13222_v47 = vadd.f32 1.0, %v8470_v54  ;;  %v4330_v52 = vand.u32 2147483647, %v13207_v22  ;;  %v1175_v4 = vpop.f32.mrf.mxu2 }
 0x4e4   : > { %v8472_v51 = vpop.eup %8471  ;;  %6620 = vst [vmem:[%s8994_s26 + $0x7a0] sm:$0xff] %v6209_v10  ;;  %v6213_v29 = vsub.f32 1.0, %v6212_v40  ;;  %v4332_v45 = vand.u32 2147483648, %v13207_v22  ;;  %8477 = vpow2.f32 %v7207_v30  ;;  %vm4311_vm14 = vweird.f32 %v13199_v8 }
 0x4e5   : > { %v4307_v32 = vmul.f32 %v8472_v51, %v13199_v8  ;;  %vm13229_vm2 = vcmp.eq.f32.partialorder %v4315_v36, 8.507059e+37  ;;  %8479 = vrcp.f32 %v13220_v7  ;;  %v8474_v20 = vpop.eup %8473  ;;  %vm6217_vm15 = vweird.f32 %v8468_v6 }
 0x4e6   : > { %v6214_v46 = vmul.f32 %v8468_v6, %v6213_v29  ;;  %8481 = vrcp.f32 %v13222_v47  ;;  %v7334_v28 = vmul.f32 -1.442695, %v1174_v56  ;;  %v4318_v31 = vor.u32 1.1754944e-38, %v4317_v53  ;;  %vm6218_vm3 = vmor %vm6216_vm12, %vm6217_vm15  ;;  %v1504_v29 = vpop.f32.mrf.mxu3 }
 0x4e7   : > { %v8476_v15 = vpop.eup %8475  ;;  %v4308_v35 = vsub.f32 1.0, %v4307_v32  ;;  %vm4326_vm0 = vweird.f32 %v13207_v22  ;;  %v1503_v48 = vadd.f32 %v1502_v50, %v8912_v2  ;;  %vm13238_vm1 = vcmp.eq.f32.partialorder %v4330_v52, 8.507059e+37 }
 0x4e8   : > { %v6215_v12 = vadd.f32 %v8468_v6, %v6214_v46  ;;  %v4322_v60 = vmul.f32 %v8476_v15, %v13207_v22  ;;  %v4333_v43 = vor.u32 1.1754944e-38, %v4332_v45  ;;  %vm4312_vm4 = vweird.f32 %v8472_v51 }
 0x4e9   : > { %v4309_v11 = vmul.f32 %v8472_v51, %v4308_v35  ;;  %v6235_v14 = vand.u32 2147483647, %v13220_v7  ;;  %v6237_v62 = vand.u32 2147483648, %v13220_v7  ;;  %vm6231_vm5 = vweird.f32 %v13220_v7  ;;  %vm4313_vm7 = vmor %vm4311_vm14, %vm4312_vm4 }
 0x4ea   : > { %v8478_v3 = vpop.eup %8477  ;;  %v6219_v44 = vsel %vm6218_vm3, %v8468_v6, %v6215_v12  ;;  %v4323_v58 = vsub.f32 1.0, %v4322_v60  ;;  %v13247_v23 = vadd.f32 1.0, %v8474_v20  ;;  %8483 = vpow2.f32 %v7334_v28  ;;  %v1344_v6 = vpop.f32.mrf.mxu1 }
 0x4eb   : > { %v8480_v21 = vpop.eup %8479  ;;  %v6224_v17 = vsel %vm13214_vm13, %v6223_v18, %v6219_v44  ;;  %v4310_v55 = vadd.f32 %v8472_v51, %v4309_v11  ;;  %vm6246_vm6 = vweird.f32 %v13222_v47  ;;  %v6250_v16 = vand.u32 2147483647, %v13222_v47 }
 0x4ec   : > { %v13255_v13 = vadd.f32 1.0, %v8478_v3  ;;  %v8482_v63 = vpop.eup %8481  ;;  %6621 = vst [vmem:[%s8994_s26 + $0x7a8] sm:$0xff] %v6224_v17  ;;  %v4324_v27 = vmul.f32 %v8476_v15, %v4323_v58  ;;  %vm4327_vm8 = vweird.f32 %v8476_v15  ;;  %v6227_v37 = vmul.f32 %v8480_v21, %v13220_v7  ;;  %v1018_v7 = vpop.f32.mrf.mxu0 }
 0x4ed   : > { %8485 = vrcp.f32 %v13247_v23  ;;  %v4314_v24 = vsel %vm4313_vm7, %v8472_v51, %v4310_v55  ;;  %vm13263_vm9 = vcmp.eq.f32.partialorder %v6235_v14, 8.507059e+37  ;;  %v6242_v5 = vmul.f32 %v8482_v63, %v13222_v47  ;;  %vm4328_vm10 = vmor %vm4326_vm0, %vm4327_vm8 }
 0x4ee   : > { %v6252_v41 = vand.u32 2147483648, %v13222_v47  ;;  %v4319_v61 = vsel %vm13229_vm2, %v4318_v31, %v4314_v24  ;;  %v4325_v8 = vadd.f32 %v8476_v15, %v4324_v27  ;;  %v6228_v19 = vsub.f32 1.0, %v6227_v37  ;;  %v1178_v37 = vpop.f32.mrf.mxu2 }
 0x4ef   : > { %v7335_v57 = vmul.f32 -1.442695, %v1503_v48  ;;  %6494 = vst [vmem:[%s8994_s26 + $0x3b0] sm:$0xff] %v4319_v61  ;;  %v6238_v9 = vor.u32 1.1754944e-38, %v6237_v62  ;;  %v6243_v42 = vsub.f32 1.0, %v6242_v5  ;;  %vm13274_vm11 = vcmp.eq.f32.partialorder %v6250_v16, 8.507059e+37 }
 0x4f0   : > { %8487 = vrcp.f32 %v13255_v13  ;;  %v8484_v59 = vpop.eup %8483  ;;  %v4329_v38 = vsel %vm4328_vm10, %v8476_v15, %v4325_v8  ;;  %v6229_v30 = vmul.f32 %v8480_v21, %v6228_v19  ;;  %vm6232_vm12 = vweird.f32 %v8480_v21  ;;  %v1507_v19 = vpop.f32.mrf.mxu3 }
 0x4f1   : > { %vm6247_vm13 = vweird.f32 %v8482_v63  ;;  %v4334_v34 = vsel %vm13238_vm1, %v4333_v43, %v4329_v38  ;;  %v6244_v22 = vmul.f32 %v8482_v63, %v6243_v42  ;;  %v4345_v36 = vand.u32 2147483647, %v13247_v23  ;;  %vm6233_vm14 = vmor %vm6231_vm5, %vm6232_vm12 }
 0x4f2   : > { %v4347_v54 = vand.u32 2147483648, %v13247_v23  ;;  %6495 = vst [vmem:[%s8994_s26 + $0x3b8] sm:$0xff] %v4334_v34  ;;  %v6230_v33 = vadd.f32 %v8480_v21, %v6229_v30  ;;  %v4360_v18 = vand.u32 2147483647, %v13255_v13  ;;  %v13285_v56 = vadd.f32 1.0, %v8484_v59  ;;  %vm6248_vm15 = vmor %vm6246_vm6, %vm6247_vm13  ;;  %v1347_v55 = vpop.f32.mrf.mxu1 }
 0x4f3   : > { %v8486_v40 = vpop.eup %8485  ;;  %8489 = vpow2.f32 %v7335_v57  ;;  %v6245_v10 = vadd.f32 %v8482_v63, %v6244_v22  ;;  %v6253_v53 = vor.u32 1.1754944e-38, %v6252_v41  ;;  %vm4341_vm2 = vweird.f32 %v13247_v23 }
 0x4f4   : > { %v4337_v51 = vmul.f32 %v8486_v40, %v13247_v23  ;;  %v6234_v52 = vsel %vm6233_vm14, %v8480_v21, %v6230_v33  ;;  %vm4356_vm0 = vweird.f32 %v13255_v13  ;;  %v4362_v45 = vand.u32 2147483648, %v13255_v13  ;;  %v1020_v26 = vpop.f32.mrf.mxu0 }
 0x4f5   : > { %8491 = vrcp.f32 %v13285_v56  ;;  %v6239_v32 = vsel %vm13263_vm9, %v6238_v9, %v6234_v52  ;;  %v6249_v25 = vsel %vm6248_vm15, %v8482_v63, %v6245_v10  ;;  %vm13299_vm1 = vcmp.eq.f32.partialorder %v4345_v36, 8.507059e+37 }
 0x4f6   : > { %v8488_v50 = vpop.eup %8487  ;;  %v4338_v20 = vsub.f32 1.0, %v4337_v51  ;;  %6622 = vst [vmem:[%s8994_s26 + $0x7b0] sm:$0xff] %v6239_v32  ;;  %v6254_v47 = vsel %vm13274_vm11, %v6253_v53, %v6249_v25  ;;  %v4348_v28 = vor.u32 1.1754944e-38, %v4347_v54  ;;  %vm13307_vm3 = vcmp.eq.f32.partialorder %v4360_v18, 8.507059e+37 }
 0x4f7   : > { %v4352_v15 = vmul.f32 %v8488_v50, %v13255_v13  ;;  %6623 = vst [vmem:[%s8994_s26 + $0x7b8] sm:$0xff] %v6254_v47  ;;  %vm4342_vm4 = vweird.f32 %v8486_v40  ;;  %v1016_v48 = vadd.f32 %v13249_v49, %v8910_v1  ;;  %v1345_v12 = vadd.f32 %v1344_v6, %v8912_v2 }
 0x4f8   : > { %v4339_v31 = vmul.f32 %v8486_v40, %v4338_v20  ;;  %v4363_v43 = vor.u32 1.1754944e-38, %v4362_v45  ;;  %v1176_v11 = vadd.f32 %v1175_v4, %v8910_v1  ;;  %v1505_v14 = vadd.f32 %v1504_v29, %v8912_v2  ;;  %vm4343_vm5 = vmor %vm4341_vm2, %vm4342_vm4 }
 0x4f9   : > { %v8490_v60 = vpop.eup %8489  ;;  %v4353_v39 = vsub.f32 1.0, %v4352_v15  ;;  %v7208_v44 = vmul.f32 -1.442695, %v1016_v48  ;;  %v1019_v58 = vadd.f32 %v1018_v7, %v8910_v1  ;;  %vm4357_vm6 = vweird.f32 %v8488_v50 }
 0x4fa   : > { %v4340_v62 = vadd.f32 %v8486_v40, %v4339_v31  ;;  %v13317_v3 = vadd.f32 1.0, %v8490_v60  ;;  %vm6261_vm7 = vweird.f32 %v13285_v56  ;;  %v7209_v17 = vmul.f32 -1.442695, %v1345_v12  ;;  %vm4358_vm8 = vmor %vm4356_vm0, %vm4357_vm6  ;;  %v1349_v32 = vpop.f32.mrf.mxu1 }
 0x4fb   : > { %v8492_v21 = vpop.eup %8491  ;;  %v4354_v49 = vmul.f32 %v8488_v50, %v4353_v39  ;;  %v7336_v27 = vmul.f32 -1.442695, %v1176_v11  ;;  %v6265_v23 = vand.u32 2147483647, %v13285_v56  ;;  %v7337_v5 = vmul.f32 -1.442695, %v1505_v14  ;;  %v1180_v14 = vpop.f32.mrf.mxu2 }
 0x4fc   : > { %v4344_v16 = vsel %vm4343_vm5, %v8486_v40, %v4340_v62  ;;  %v6257_v63 = vmul.f32 %v8492_v21, %v13285_v56  ;;  %8493 = vrcp.f32 %v13317_v3  ;;  %v7210_v61 = vmul.f32 -1.442695, %v1019_v58  ;;  %v1509_v62 = vpop.f32.mrf.mxu3 }
 0x4fd   : > { %v4349_v24 = vsel %vm13299_vm1, %v4348_v28, %v4344_v16  ;;  %v4355_v0 = vadd.f32 %v8488_v50, %v4354_v49  ;;  %8495 = vpow2.f32 %v7208_v44  ;;  %v1348_v8 = vadd.f32 %v1347_v55, %v8912_v2 }
 0x4fe   : > { %6496 = vst [vmem:[%s8994_s26 + $0x3c0] sm:$0xff] %v4349_v24  ;;  %v6258_v41 = vsub.f32 1.0, %v6257_v63  ;;  %v6267_v9 = vand.u32 2147483648, %v13285_v56  ;;  %8497 = vpow2.f32 %v7209_v17  ;;  %v1179_v42 = vadd.f32 %v1178_v37, %v8910_v1 }
 0x4ff   : > { %v4359_v57 = vsel %vm4358_vm8, %v8488_v50, %v4355_v0  ;;  %vm6262_vm9 = vweird.f32 %v8492_v21  ;;  %8499 = vpow2.f32 %v7336_v27  ;;  %v7211_v13 = vmul.f32 -1.442695, %v1348_v8 }
 0x500   : > { %v4364_v59 = vsel %vm13307_vm3, %v4363_v43, %v4359_v57  ;;  %v6259_v38 = vmul.f32 %v8492_v21, %v6258_v41  ;;  %8501 = vpow2.f32 %v7337_v5  ;;  %v7338_v30 = vmul.f32 -1.442695, %v1179_v42  ;;  %vm6263_vm11 = vmor %vm6261_vm7, %vm6262_vm9 }
 0x501   : > { %6497 = vst [vmem:[%s8994_s26 + $0x3c8] sm:$0xff] %v4364_v59  ;;  %v1508_v6 = vadd.f32 %v1507_v19, %v8912_v2  ;;  %vm6266_vm10 = vcmp.eq.f32.partialorder %v6265_v23, 8.507059e+37  ;;  %8503 = vpow2.f32 %v7210_v61  ;;  %v1021_v36 = vadd.f32 %v1020_v26, %v8910_v1 }
 0x502   : > { %v8494_v34 = vpop.eup %8493  ;;  %v6260_v22 = vadd.f32 %v8492_v21, %v6259_v38  ;;  %v6268_v54 = vor.u32 1.1754944e-38, %v6267_v9  ;;  %8505 = vpow2.f32 %v7211_v13  ;;  %v6280_v10 = vand.u32 2147483647, %v13317_v3 }
 0x503   : > { %v6272_v4 = vmul.f32 %v8494_v34, %v13317_v3  ;;  %v7339_v40 = vmul.f32 -1.442695, %v1508_v6  ;;  %v8496_v33 = vpop.eup %8495  ;;  %v6282_v53 = vand.u32 2147483648, %v13317_v3  ;;  %8507 = vpow2.f32 %v7338_v30 }
 0x504   : > { %v6264_v18 = vsel %vm6263_vm11, %v8492_v21, %v6260_v22  ;;  %v8498_v51 = vpop.eup %8497  ;;  %v13344_v45 = vadd.f32 1.0, %v8496_v33  ;;  %v7212_v56 = vmul.f32 -1.442695, %v1021_v36  ;;  %vm6277_vm12 = vweird.f32 %v8494_v34 }
 0x505   : > { %v6269_v29 = vsel %vm6266_vm10, %v6268_v54, %v6264_v18  ;;  %v6273_v52 = vsub.f32 1.0, %v6272_v4  ;;  %v8500_v7 = vpop.eup %8499  ;;  %v13347_v50 = vadd.f32 1.0, %v8498_v51  ;;  %8509 = vpow2.f32 %v7339_v40 }
 0x506   : > { %6624 = vst [vmem:[%s8994_s26 + $0x7c0] sm:$0xff] %v6269_v29  ;;  %v8502_v25 = vpop.eup %8501  ;;  %8511 = vrcp.f32 %v13344_v45  ;;  %vm6276_vm13 = vweird.f32 %v13317_v3  ;;  %vm13351_vm14 = vcmp.eq.f32.partialorder %v6280_v10, 8.507059e+37  ;;  %v6283_v28 = vor.u32 1.1754944e-38, %v6282_v53 }
 0x507   : > { %v6274_v20 = vmul.f32 %v8494_v34, %v6273_v52  ;;  %v8504_v46 = vpop.eup %8503  ;;  %8513 = vrcp.f32 %v13347_v50  ;;  %v13356_v31 = vadd.f32 1.0, %v8500_v7  ;;  %v1350_v48 = vadd.f32 %v1349_v32, %v8912_v2  ;;  %vm6278_vm2 = vmor %vm6276_vm13, %vm6277_vm12 }
 0x508   : > { %v8506_v15 = vpop.eup %8505  ;;  %8515 = vpow2.f32 %v7212_v56  ;;  %v4375_v60 = vand.u32 2147483647, %v13344_v45  ;;  %v4377_v39 = vand.u32 2147483648, %v13344_v45  ;;  %v13361_v43 = vadd.f32 1.0, %v8502_v25 }
 0x509   : > { %v6275_v35 = vadd.f32 %v8494_v34, %v6274_v20  ;;  %v8508_v12 = vpop.eup %8507  ;;  %v13363_v11 = vadd.f32 1.0, %v8504_v46  ;;  %v4390_v44 = vand.u32 2147483647, %v13347_v50  ;;  %v4392_v58 = vand.u32 2147483648, %v13347_v50 }
 0x50a   : > { %8517 = vrcp.f32 %v13356_v31  ;;  %v13373_v55 = vmul.f32 -1.442695, %v1350_v48  ;;  %v13376_v16 = vadd.f32 %v1180_v14, %v8910_v1  ;;  %v13379_v63 = vadd.f32 %v1509_v62, %v8912_v2 }
 0x50b   : > { %v6279_v3 = vsel %vm6278_vm2, %v8494_v34, %v6275_v35  ;;  %v8510_v21 = vpop.eup %8509  ;;  %8519 = vrcp.f32 %v13361_v43  ;;  %vm4371_vm15 = vweird.f32 %v13344_v45  ;;  %vm13383_vm0 = vcmp.eq.f32.partialorder %v4375_v60, 8.507059e+37 }
 0x50c   : > { %v6284_v49 = vsel %vm13351_vm14, %v6283_v28, %v6279_v3  ;;  %v8512_v17 = vpop.eup %8511  ;;  %8521 = vrcp.f32 %v13363_v11  ;;  %vm4386_vm1 = vweird.f32 %v13347_v50  ;;  %v4378_v23 = vor.u32 1.1754944e-38, %v4377_v39 }
 0x50d   : > { %6625 = vst [vmem:[%s8994_s26 + $0x7c8] sm:$0xff] %v6284_v49  ;;  %v8514_v27 = vpop.eup %8513  ;;  %v4367_v37 = vmul.f32 %v8512_v17, %v13344_v45  ;;  %vm13391_vm3 = vcmp.eq.f32.partialorder %v4390_v44, 8.507059e+37  ;;  %v4393_v2 = vor.u32 1.1754944e-38, %v4392_v58  ;;  %vm6291_vm4 = vweird.f32 %v13356_v31 }
 0x50e   : > { %v13388_v0 = vpop.eup %8515  ;;  %v4382_v1 = vmul.f32 %v8514_v27, %v13347_v50  ;;  %v6295_v61 = vand.u32 2147483647, %v13356_v31  ;;  %v6297_v8 = vand.u32 2147483648, %v13356_v31  ;;  %v6310_v19 = vand.u32 2147483647, %v13361_v43 }
 0x50f   : > { %v4368_v41 = vsub.f32 1.0, %v4367_v37  ;;  %vm4372_vm5 = vweird.f32 %v8512_v17  ;;  %vm6306_vm6 = vweird.f32 %v13361_v43  ;;  %v6312_v42 = vand.u32 2147483648, %v13361_v43 }
 0x510   : > { %v8518_v57 = vpop.eup %8517  ;;  %v4383_v9 = vsub.f32 1.0, %v4382_v1  ;;  %v13401_v26 = vadd.f32 1.0, %v8506_v15  ;;  %vm4387_vm7 = vweird.f32 %v8514_v27  ;;  %vm4401_vm8 = vweird.f32 %v13363_v11  ;;  %vm4373_vm9 = vmor %vm4371_vm15, %vm4372_vm5 }
 0x511   : > { %v8520_v59 = vpop.eup %8519  ;;  %v4369_v38 = vmul.f32 %v8512_v17, %v4368_v41  ;;  %v6287_v13 = vmul.f32 %v8518_v57, %v13356_v31  ;;  %v4405_v22 = vand.u32 2147483647, %v13363_v11  ;;  %v4407_v36 = vand.u32 2147483648, %v13363_v11  ;;  %vm4388_vm10 = vmor %vm4386_vm1, %vm4387_vm7 }
 0x512   : > { %v8522_v30 = vpop.eup %8521  ;;  %v4384_v6 = vmul.f32 %v8514_v27, %v4383_v9  ;;  %v6302_v34 = vmul.f32 %v8520_v59, %v13361_v43  ;;  %v13409_v33 = vadd.f32 1.0, %v8508_v12  ;;  %8523 = vrcp.f32 %v13401_v26 }
 0x513   : > { %v4370_v54 = vadd.f32 %v8512_v17, %v4369_v38  ;;  %v6288_v4 = vsub.f32 1.0, %v6287_v13  ;;  %v4397_v40 = vmul.f32 %v8522_v30, %v13363_v11  ;;  %v13415_v53 = vadd.f32 1.0, %v8510_v21 }
 0x514   : > { %v4385_v18 = vadd.f32 %v8514_v27, %v4384_v6  ;;  %v6303_v10 = vsub.f32 1.0, %v6302_v34  ;;  %vm6292_vm11 = vweird.f32 %v8518_v57  ;;  %vm6307_vm12 = vweird.f32 %v8520_v59 }
 0x515   : > { %v4374_v51 = vsel %vm4373_vm9, %v8512_v17, %v4370_v54  ;;  %v6289_v29 = vmul.f32 %v8518_v57, %v6288_v4  ;;  %v4398_v52 = vsub.f32 1.0, %v4397_v40  ;;  %vm4402_vm13 = vweird.f32 %v8522_v30  ;;  %vm6293_vm14 = vmor %vm6291_vm4, %vm6292_vm11 }
 0x516   : > { %v4379_v56 = vsel %vm13383_vm0, %v4378_v23, %v4374_v51  ;;  %v4389_v45 = vsel %vm4388_vm10, %v8514_v27, %v4385_v18  ;;  %v6304_v7 = vmul.f32 %v8520_v59, %v6303_v10  ;;  %vm6296_vm2 = vcmp.eq.f32.partialorder %v6295_v61, 8.507059e+37  ;;  %vm6308_vm15 = vmor %vm6306_vm6, %vm6307_vm12 }
 0x517   : > { %6498 = vst [vmem:[%s8994_s26 + $0x3d0] sm:$0xff] %v4379_v56  ;;  %v4394_v32 = vsel %vm13391_vm3, %v4393_v2, %v4389_v45  ;;  %v6290_v25 = vadd.f32 %v8518_v57, %v6289_v29  ;;  %v4399_v20 = vmul.f32 %v8522_v30, %v4398_v52  ;;  %v6298_v50 = vor.u32 1.1754944e-38, %v6297_v8  ;;  %vm4403_vm1 = vmor %vm4401_vm8, %vm4402_vm13 }
 0x518   : > { %6499 = vst [vmem:[%s8994_s26 + $0x3d8] sm:$0xff] %v4394_v32  ;;  %v6305_v46 = vadd.f32 %v8520_v59, %v6304_v7  ;;  %8525 = vrcp.f32 %v13409_v33  ;;  %vm6311_vm0 = vcmp.eq.f32.partialorder %v6310_v19, 8.507059e+37  ;;  %v6313_v28 = vor.u32 1.1754944e-38, %v6312_v42  ;;  %v8524_v35 = vpop.eup %8523 }
 0x519   : > { %v6294_v47 = vsel %vm6293_vm14, %v8518_v57, %v6290_v25  ;;  %v4400_v15 = vadd.f32 %v8522_v30, %v4399_v20  ;;  %v4408_v31 = vor.u32 1.1754944e-38, %v4407_v36  ;;  %8527 = vrcp.f32 %v13415_v53 }
 0x51a   : > { %v6299_v48 = vsel %vm6296_vm2, %v6298_v50, %v6294_v47  ;;  %v6309_v12 = vsel %vm6308_vm15, %v8520_v59, %v6305_v46  ;;  %vm4406_vm3 = vcmp.eq.f32.partialorder %v4405_v22, 8.507059e+37  ;;  %v4412_v43 = vmul.f32 %v8524_v35, %v13401_v26 }
 0x51b   : > { %6626 = vst [vmem:[%s8994_s26 + $0x7d0] sm:$0xff] %v6299_v48  ;;  %v6314_v60 = vsel %vm6311_vm0, %v6313_v28, %v6309_v12  ;;  %v4404_v39 = vsel %vm4403_vm1, %v8522_v30, %v4400_v15  ;;  %v4420_v62 = vand.u32 2147483647, %v13401_v26  ;;  %v4422_v44 = vand.u32 2147483648, %v13401_v26 }
 0x51c   : > { %6627 = vst [vmem:[%s8994_s26 + $0x7d8] sm:$0xff] %v6314_v60  ;;  %v4409_v14 = vsel %vm4406_vm3, %v4408_v31, %v4404_v39  ;;  %v4413_v3 = vsub.f32 1.0, %v4412_v43  ;;  %v13442_v11 = vadd.f32 1.0, %v13388_v0  ;;  %8529 = vpow2.f32 %v13373_v55 }
 0x51d   : > { %6500 = vst [vmem:[%s8994_s26 + $0x3e0] sm:$0xff] %v4409_v14  ;;  %vm4416_vm4 = vweird.f32 %v13401_v26  ;;  %v7340_v21 = vmul.f32 -1.442695, %v13376_v16  ;;  %vm4417_vm5 = vweird.f32 %v8524_v35  ;;  %v7341_v27 = vmul.f32 -1.442695, %v13379_v63 }
 0x51e   : > { %v8526_v58 = vpop.eup %8525  ;;  %v4414_v49 = vmul.f32 %v8524_v35, %v4413_v3  ;;  %vm13449_vm6 = vcmp.eq.f32.partialorder %v4420_v62, 8.507059e+37  ;;  %8531 = vrcp.f32 %v13442_v11  ;;  %v4423_v55 = vor.u32 1.1754944e-38, %v4422_v44  ;;  %vm4418_vm7 = vmor %vm4416_vm4, %vm4417_vm5 }
 0x51f   : > { %v6317_v17 = vmul.f32 %v8526_v58, %v13409_v33  ;;  %v8528_v37 = vpop.eup %8527  ;;  %vm6322_vm8 = vweird.f32 %v8526_v58  ;;  %v6325_v16 = vand.u32 2147483647, %v13409_v33  ;;  %v6327_v5 = vand.u32 2147483648, %v13409_v33 }
 0x520   : > { %v4415_v0 = vadd.f32 %v8524_v35, %v4414_v49  ;;  %v6332_v1 = vmul.f32 %v8528_v37, %v13415_v53  ;;  %8533 = vpow2.f32 %v7340_v21  ;;  %vm6321_vm9 = vweird.f32 %v13409_v33 }
 0x521   : > { %v6318_v23 = vsub.f32 1.0, %v6317_v17  ;;  %8535 = vpow2.f32 %v7341_v27  ;;  %v6342_v19 = vand.u32 2147483648, %v13415_v53  ;;  %vm6337_vm10 = vweird.f32 %v8528_v37  ;;  %vm6323_vm11 = vmor %vm6321_vm9, %vm6322_vm8 }
 0x522   : > { %v8530_v63 = vpop.eup %8529  ;;  %v4419_v2 = vsel %vm4418_vm7, %v8524_v35, %v4415_v0  ;;  %v6333_v61 = vsub.f32 1.0, %v6332_v1  ;;  %v6340_v26 = vand.u32 2147483647, %v13415_v53  ;;  %v6328_v38 = vor.u32 1.1754944e-38, %v6327_v5 }
 0x523   : > { %v6319_v41 = vmul.f32 %v8526_v58, %v6318_v23  ;;  %v4424_v8 = vsel %vm13449_vm6, %v4423_v55, %v4419_v2  ;;  %v2407_v57 = vadd.f32 1.0, %v8530_v63  ;;  %vm6336_vm12 = vweird.f32 %v13415_v53 }
 0x524   : > { %6501 = vst [vmem:[%s8994_s26 + $0x3e8] sm:$0xff] %v4424_v8  ;;  %v6334_v42 = vmul.f32 %v8528_v37, %v6333_v61  ;;  %v8532_v59 = vpop.eup %8531  ;;  %vm6326_vm13 = vcmp.eq.f32.partialorder %v6325_v16, 8.507059e+37  ;;  %vm6338_vm14 = vmor %vm6336_vm12, %vm6337_vm10  ;;  %v6343_v36 = vor.u32 1.1754944e-38, %v6342_v19  ;;  %vm6341_vm2 = vcmp.eq.f32.partialorder %v6340_v26, 8.507059e+37 }
 0x525   : > { %v6320_v9 = vadd.f32 %v8526_v58, %v6319_v41  ;;  %8537 = vrcp.f32 %v2407_v57  ;;  %v4427_v6 = vmul.f32 %v8532_v59, %v13442_v11  ;;  %v4437_v10 = vand.u32 2147483648, %v13442_v11 }
 0x526   : > { %v6335_v30 = vadd.f32 %v8528_v37, %v6334_v42  ;;  %v8534_v34 = vpop.eup %8533  ;;  %vm4432_vm15 = vweird.f32 %v8532_v59  ;;  %v4435_v29 = vand.u32 2147483647, %v13442_v11  ;;  %vm4431_vm0 = vweird.f32 %v13442_v11 }
 0x527   : > { %v6324_v13 = vsel %vm6323_vm11, %v8526_v58, %v6320_v9  ;;  %v8536_v54 = vpop.eup %8535  ;;  %v4428_v40 = vsub.f32 1.0, %v4427_v6  ;;  %v2534_v33 = vadd.f32 1.0, %v8534_v34  ;;  %vm4433_vm1 = vmor %vm4431_vm0, %vm4432_vm15  ;;  %v4438_v7 = vor.u32 1.1754944e-38, %v4437_v10 }
 0x528   : > { %v6329_v22 = vsel %vm6326_vm13, %v6328_v38, %v6324_v13  ;;  %v6339_v4 = vsel %vm6338_vm14, %v8528_v37, %v6335_v30  ;;  %v2535_v53 = vadd.f32 1.0, %v8536_v54  ;;  %vm4436_vm3 = vcmp.eq.f32.partialorder %v4435_v29, 8.507059e+37 }
 0x529   : > { %6628 = vst [vmem:[%s8994_s26 + $0x7e0] sm:$0xff] %v6329_v22  ;;  %v6344_v18 = vsel %vm6341_vm2, %v6343_v36, %v6339_v4  ;;  %v4429_v51 = vmul.f32 %v8532_v59, %v4428_v40  ;;  %8539 = vrcp.f32 %v2534_v33  ;;  %v4450_v50 = vand.u32 2147483647, %v2407_v57 }
 0x52a   : > { %6629 = vst [vmem:[%s8994_s26 + $0x7e8] sm:$0xff] %v6344_v18  ;;  %8541 = vrcp.f32 %v2535_v53  ;;  %v4452_v46 = vand.u32 2147483648, %v2407_v57  ;;  %vm4446_vm5 = vweird.f32 %v2407_v57  ;;  %v6355_v43 = vand.u32 2147483647, %v2534_v33 }
 0x52b   : > { %v8538_v52 = vpop.eup %8537  ;;  %v4430_v56 = vadd.f32 %v8532_v59, %v4429_v51  ;;  %vm4451_vm7 = vcmp.eq.f32.partialorder %v4450_v50, 8.507059e+37  ;;  %v6357_v14 = vand.u32 2147483648, %v2534_v33  ;;  %v6372_v11 = vand.u32 2147483648, %v2535_v53 }
 0x52c   : > { %v4442_v45 = vmul.f32 %v8538_v52, %v2407_v57  ;;  %vm4447_vm4 = vweird.f32 %v8538_v52  ;;  %v4453_v31 = vor.u32 1.1754944e-38, %v4452_v46  ;;  %v6370_v21 = vand.u32 2147483647, %v2535_v53 }
 0x52d   : > { %v4434_v32 = vsel %vm4433_vm1, %v8532_v59, %v4430_v56  ;;  %vm4448_vm6 = vmor %vm4446_vm5, %vm4447_vm4  ;;  %vm6351_vm10 = vweird.f32 %v2534_v33  ;;  %v6358_v17 = vor.u32 1.1754944e-38, %v6357_v14  ;;  %vm6366_vm12 = vweird.f32 %v2535_v53 }
 0x52e   : > { %v4443_v25 = vsub.f32 1.0, %v4442_v45  ;;  %v4439_v20 = vsel %vm4436_vm3, %v4438_v7, %v4434_v32  ;;  %vm6356_vm13 = vcmp.eq.f32.partialorder %v6355_v43, 8.507059e+37  ;;  %v6373_v24 = vor.u32 1.1754944e-38, %v6372_v11 }
 0x52f   : > { %v8540_v47 = vpop.eup %8539  ;;  %6502 = vst [vmem:[%s8994_s26 + $0x3f0] sm:$0xff] %v4439_v20  ;;  %vm6371_vm2 = vcmp.eq.f32.partialorder %v6370_v21, 8.507059e+37 }
 0x530   : > { %v4444_v28 = vmul.f32 %v8538_v52, %v4443_v25  ;;  %v8542_v15 = vpop.eup %8541  ;;  %v6347_v35 = vmul.f32 %v8540_v47, %v2534_v33  ;;  %vm6352_vm8 = vweird.f32 %v8540_v47 }
 0x531   : > { %v6362_v12 = vmul.f32 %v8542_v15, %v2535_v53  ;;  %vm6367_vm9 = vweird.f32 %v8542_v15  ;;  %vm6353_vm11 = vmor %vm6351_vm10, %vm6352_vm8 }
 0x532   : > { %v4445_v48 = vadd.f32 %v8538_v52, %v4444_v28  ;;  %v6348_v60 = vsub.f32 1.0, %v6347_v35  ;;  %vm6368_vm14 = vmor %vm6366_vm12, %vm6367_vm9 }
 0x533   : > { %v6363_v62 = vsub.f32 1.0, %v6362_v12 }
 0x534   : > { %v4449_v39 = vsel %vm4448_vm6, %v8538_v52, %v4445_v48  ;;  %v6349_v44 = vmul.f32 %v8540_v47, %v6348_v60 }
 0x535   : > { %v4454_v3 = vsel %vm4451_vm7, %v4453_v31, %v4449_v39  ;;  %v6364_v58 = vmul.f32 %v8542_v15, %v6363_v62 }
 0x536   : > { %6503 = vst [vmem:[%s8994_s26 + $0x3f8] sm:$0xff] %v4454_v3  ;;  %v6350_v49 = vadd.f32 %v8540_v47, %v6349_v44 }
 0x537   : > { %v6365_v27 = vadd.f32 %v8542_v15, %v6364_v58  ;;  %6639 = sbr.rel (!%p8807_p11) target bundleno = 1371 (0x55b), region = 48 }
 0x538   : > { %v6354_v37 = vsel %vm6353_vm11, %v8540_v47, %v6350_v49 }
 0x539   : > { %v6359_v0 = vsel %vm6356_vm13, %v6358_v17, %v6354_v37  ;;  %v6369_v55 = vsel %vm6368_vm14, %v8542_v15, %v6365_v27 }
 0x53a   : > { %6630 = vst [vmem:[%s8994_s26 + $0x7f0] sm:$0xff] %v6359_v0  ;;  %v6374_v23 = vsel %vm6371_vm2, %v6373_v24, %v6369_v55 }
 0x53b   : > { %6631 = vst [vmem:[%s8994_s26 + $0x7f8] sm:$0xff] %v6374_v23 }
 0x53c   : > { %s13983_s22 = smov (!%p6642_p6, %s6641_s22), 128 }
 0x53d   : > { %s7434_s10 = sshll.u32 %s13983_s22, 4 }
 0x53e   : > { %s6646_s11 = ssub.s32 2048, %s7434_s10 }
 0x53f   : > { %s6647_s17 = sshll.u32 %s6646_s11, 4 }
 0x540   : > { %6648 = vsyncadd %s6633_s27, %s6647_s17  ;;  %p13484_p13 = scmp.ne.s32.totalorder %s7434_s10, 0  ;;  %s7436_s8 = sshll.u32 %s8776_s16, 11 }
 0x541   : > { %s6652_s30 = scalar_lea.hbm %s13540_s3, %s7436_s8  ;;  %s6654_s19 = sshll.u32 %s8994_s26, 4  ;;  %s13493_s19 = int_to_ptr.vmem [resolvable:$true] %s6654_s19 }
 0x542   : > { %s6656_s28 = sshll.u32 %s6652_s30, 4  ;;  %s7350_s5 = sshll.u32 %s13983_s22, 8  ;;  %s13495_s28 = int_to_ptr.hbm [resolvable:$true] %s6656_s28 }
 0x543   : > { %s8642_s6 = sshra.s32 %s13493_s19, 4  ;;  %s8644_s7 = sshrl.u32 %s7350_s5, 4  ;;  %s8643_s6 = int_to_ptr.vmem [resolvable:$true] %s8642_s6 }
 0x544   : > { %s8649_s23 = scalar_lea.vmem %s8643_s6, %s8644_s7  ;;  %s8732_s16 = smov [#allocation8]  }
 0x545   : > { %p8650_p11 = scmp.ne.s32.totalorder %s8643_s6, %s8649_s23  ;;  %s8653_s4 = scalar_lea.vmem %s8732_s16, 4096 }
 0x546   : > { %p8655_p10 = scmp.lt.s32.totalorder %s8653_s4, %s8649_s23 }
 0x547   : > { %p8651_p5 = pnand %p8650_p11, %p13484_p13 }
 0x549   : > { %p8652_p9 = pneg %p8651_p5 }
 0x54b   : > { %p8657_p1 = pnand %p8655_p10, %p8652_p9 }
 0x54d   : > { %8660 = shalt.err (!%p8657_p1)
}
 0x54e   : > { %s8661_s26 = sshra.s32 %s13495_s28, 4  ;;  %s8672_s8 = scalar_lea.hbm %s13540_s3, 4112  ;;  %s8662_s26 = int_to_ptr.hbm [resolvable:$true] %s8661_s26 }
 0x54f   : > { %s8668_s10 = scalar_lea.hbm %s8662_s26, %s8644_s7  ;;  %p8673_p7 = scmp.lt.s32.totalorder %s8662_s26, %s13540_s3 }
 0x550   : > { %p8669_p0 = scmp.ne.s32.totalorder %s8662_s26, %s8668_s10  ;;  %p8674_p8 = scmp.lt.s32.totalorder %s8672_s8, %s8668_s10 }
 0x552   : > { %p8670_p2 = pnand %p8669_p0, %p13484_p13  ;;  %p8675_p4 = por %p8674_p8, %p8673_p7 }
 0x554   : > { %p8671_p3 = pneg %p8670_p2 }
 0x556   : > { %p8676_p12 = pnand %p8675_p4, %p8671_p3 }
 0x558   : > { %8679 = shalt.err (!%p8676_p12)
}
 0x559   : > { %s8733_s30 = smov 256   ;;  %s8734_s6 = smov 16  }
 0x55a   : > { %6662 = dma.vmem_to_hbm [thread:$0]  (%p13484_p13), %s13493_s19, %s7350_s5, %s13495_s28, %s6633_s27, %s8733_s30, %s8733_s30, %s8734_s6  }
 0x55b PF: > { %p7478_p6 = scmp.ge.s32.totalorder %s8723_s15, 2  ;;  %s6671_s7 = sand.u32 1, %s8711_s12  }
 0x55c   : > { %p13975_p11 = scmp.ne.s32.totalorder %s13545_s25, 0  ;;  %s6672_s23 = scalar_lea.sflag [#allocation4], %s6671_s7 }
 0x55e   : > { %p7471_p5 = pnand %p7478_p6, %p13975_p11 }
 0x560   : > { %p7472_p9 = pneg %p7471_p5 }
 0x562   : > { %8706 = dma.done.wait (%p7472_p9), %s6672_s23, 32768  }
 0x563   : > { %8708 = vsyncadd (%p7472_p9), %s6672_s23, 4294934528  ;;  %p17_p10 = scmp.ge.s32.totalorder %s8780_s18, 5   ;;  %s13976_s12 = smov %s8715_s13 }
 0x564   : > { %s13977_s13 = smov %s8719_s14  ;;  %s13978_s14 = smov %s8792_s21 }
 0x565   : > { %s13979_s15 = smov %s8780_s18  ;;  %19 = sbr.rel (!%p17_p10) target bundleno = 6 (0x6), region = 85 }
 0x56a   :  { %6678 = vsyncpa [#allocation3], 1 }
 0x56b   :  { %6680 = vsyncpa [#allocation3 + $0x1], 1 }
 0x56c   :  { %6681 = vsyncpa [#allocation6], 1 }
 0x56d   :  { %6682 = vsyncpa [#allocation4], 1 }
 0x56e   :  { %6684 = vsyncpa [#allocation4 + $0x1], 1 }

</bundles_post_ra>
